<compile_context>
chip_gen: v7x
topology: tpu7x:2x2x1
jax: 0.10.0
libtpu: 0.0.40
codegen_flags: <defaults>
</compile_context>

<pallas_src>
import math

import numpy as np
import jax
import jax.numpy as jnp
from jax.experimental import pallas as pl
from jax.experimental.pallas import tpu as pltpu

NUM_CLASSES = 51
LANE = 128          # lane-pad 80/96/51-wide dims to a full 128-lane tile
HEAD = 192          # FPN head width (toplayer's 96 channels zero-padded into it)
B_TILE = 8          # samples per grid step (multiple of 8 -> sublane-aligned slices)

# Row indices into the stacked shift/bias array (9, 1, HEAD).
SH_TL, SH_F4, SH_F3, SH_F21, SH_F22, SH_R4, SH_R3, SH_R2, SH_C2 = range(9)
# Slice indices into the stacked (6, HEAD, HEAD) head-conv weight tensor.
W_F21, W_F22, W_R4, W_R3, W_R2, W_C2 = range(6)
# Slice indices into the stacked (2, 768, HEAD) weight tensor.
W_TL, W_F4 = range(2)


# ----------------------------------------------------------------------------
# Fused kernel
# ----------------------------------------------------------------------------
def _fused_kernel(x_ref, pe_w, pe_b, w1, w2, w3, w768, f3_w, w192, shifts,
                  fc_w, fc_b, out_ref):
    f32, bf16 = jnp.float32, jnp.bfloat16
    B = out_ref.shape[0]                       # samples in this block

    def bdot(a, w):                            # bf16 x bf16 MXU matmul, f32 acc
        return jnp.dot(a.astype(bf16), w, preferred_element_type=f32)

    def cbr(a, w, sh, relu=True):              # 1x1 conv (+folded BN) (+ReLU)
        y = bdot(a, w) + shifts[sh]
        return jnp.maximum(y, 0.0) if relu else y

    def merge(xin, w_ref):                     # Swin patch merging + linear
        # Rows are hierarchically ordered, so the 4 parity groups are the 4
        # contiguous quarters of xin;  out = sum_k group_k @ W_k.
        q = xin.shape[0] // 4
        acc = bdot(xin[0:q], w_ref[0])
        acc = acc + bdot(xin[q:2 * q], w_ref[1])
        acc = acc + bdot(xin[2 * q:3 * q], w_ref[2])
        acc = acc + bdot(xin[3 * q:4 * q], w_ref[3])
        return acc.astype(bf16)

    def pool2x2(xin):                          # 2x2/s2 avg pool == mean of the
        q = xin.shape[0] // 4                  # 4 contiguous quarters
        s = (xin[0:q].astype(f32) + xin[q:2 * q].astype(f32)
             + xin[2 * q:3 * q].astype(f32) + xin[3 * q:4 * q].astype(f32))
        return (0.25 * s).astype(bf16)

    # ---- backbone (patch embed + 3 patch mergings; simplified Swin-T) ----
    x1 = (bdot(x_ref[...], pe_w[...]) + pe_b[...]).astype(bf16)   # (256B, 128)
    x2 = merge(x1, w1)                                            # (64B, 192)
    x3 = merge(x2, w2)                                            # (16B, 384)
    x4 = merge(x3, w3)                                            # (4B, 768)

    # ---- FPN head (1x1 convs, BN folded into weights) ----
    x5 = cbr(x4, w768[W_TL], SH_TL)                   # toplayer          (4B,192)
    x2_ = cbr(pool2x2(x2), w192[W_F21], SH_F21)       # FTB2_1           (16B,192)
    x2_ = cbr(pool2x2(x2_), w192[W_F22], SH_F22)      # FTB2_2            (4B,192)
    x3_ = cbr(pool2x2(x3), f3_w[...], SH_F3)          # FTB3              (4B,192)
    x4_ = cbr(x4, w768[W_F4], SH_F4)                  # FTB4 (avg=False)  (4B,192)

    p4 = x4_ + cbr(x5, w192[W_R4], SH_R4)             # FRB4
    p3 = x3_ + cbr(p4, w192[W_R3], SH_R3)             # FRB3
    p2 = x2_ + cbr(p3, w192[W_R2], SH_R2)             # FRB2

    # ---- out1=p2*p3 ; softmax over spatial ; *p4 ; conv2 ; +p4 ; GAP ; fc ----
    out1 = p2 * p3                                    # (n_pos*B, 192)
    n_pos = out1.shape[0] // B                        # spatial positions (4)
    o = [out1[k * B:(k + 1) * B] for k in range(n_pos)]
    pk = [p4[k * B:(k + 1) * B] for k in range(n_pos)]
    m = o[0]
    for k in range(1, n_pos):
        m = jnp.maximum(m, o[k])
    e = [jnp.exp(ok - m) for ok in o]
    den = e[0]
    for k in range(1, n_pos):
        den = den + e[k]
    inv = 1.0 / den                                   # exact division (review note)
    out2_avg = e[0] * inv * pk[0]
    p4_avg = pk[0]
    for k in range(1, n_pos):
        out2_avg = out2_avg + e[k] * inv * pk[k]
        p4_avg = p4_avg + pk[k]
    out2_avg = out2_avg * (1.0 / n_pos)
    p4_avg = p4_avg * (1.0 / n_pos)
    # mean(conv2(out2) + p4) == conv2(mean out2) + bias + mean p4 (1x1 linearity)
    pooled = bdot(out2_avg, w192[W_C2]) + shifts[SH_C2] + p4_avg    # (B, 192)
    out_ref[...] = bdot(pooled, fc_w[...]) + fc_b[...]              # (B, 128)


# ----------------------------------------------------------------------------
# Host-side hierarchical row ordering (absorbs merges' selections & FTB pools)
# ----------------------------------------------------------------------------
_QUAD = {(0, 0): 0, (1, 0): 1, (0, 1): 2, (1, 1): 3}   # Swin concat order


def _hier_perm(hp, wp, levels=3):
    """perm[new_row] = row-major patch index; recursive-quadrant ordering so that
    every patch-merging selection / 2x2 pool group is a contiguous row slice."""
    n = hp * wp
    perm = np.zeros(n, np.int32)
    for i in range(hp):
        for j in range(wp):
            ii, jj, idx, block = i, j, 0, n
            for _ in range(levels):
                block //= 4
                idx += _QUAD[(ii & 1, jj & 1)] * block
                ii >>= 1
                jj >>= 1
            idx += ii * (wp >> levels) + jj
            perm[idx] = i * wp + j
    return perm


# ----------------------------------------------------------------------------
# Parameter construction (deterministic, synthetic; BN folded into weights)
# ----------------------------------------------------------------------------
def _conv_bn(key, cin_, cout_, cin_pad, cout_pad, bn=True):
    """1x1 conv (He init) with eval-mode BN folded into the weight; lane-padded."""
    kw, kb = jax.random.split(key)
    w = math.sqrt(2.0 / cout_) * jax.random.normal(kw, (cin_, cout_), jnp.float32)
    b = 0.01 * jax.random.normal(kb, (cout_,), jnp.float32)
    if bn:                                    # gamma=1, beta=0, mean=0, var=1
        s = 1.0 / math.sqrt(1.0 + 1e-5)
        w, shift = w * s, b * s
    else:
        shift = b
    w = jnp.pad(w, ((0, cin_pad - cin_), (0, cout_pad - cout_)))
    shift = jnp.pad(shift, (0, cout_pad - cout_))
    return w.astype(jnp.bfloat16), shift.astype(jnp.float32)


def init_params(key, cin=5):
    ks = jax.random.split(key, 16)
    p = {}
    k_eff = 16 * cin                                   # 80
    # patch_embed.proj: Conv2d(5, 96, 4x4, s4) as an (80 -> 96) matmul, padded.
    pe_w = 0.02 * jax.random.normal(ks[0], (k_eff, 96), jnp.float32)
    pe_b = 0.01 * jax.random.normal(ks[1], (96,), jnp.float32)
    p["pe_w"] = jnp.pad(pe_w, ((0, LANE - k_eff), (0, LANE - 96))).astype(jnp.bfloat16)
    p["pe_b"] = jnp.pad(pe_b, (0, LANE - 96)).reshape(1, LANE)

    # Patch-merging reduction linears (bias-free), stacked over the 4 parity groups.
    def merge_w(k, c, cpad):
        w = 0.02 * jax.random.normal(k, (4, c, 2 * c), jnp.float32)
        return jnp.pad(w, ((0, 0), (0, cpad - c), (0, 0))).astype(jnp.bfloat16)

    p["w1"] = merge_w(ks[2], 96, LANE)        # (4, 128, 192)
    p["w2"] = merge_w(ks[3], 192, 192)        # (4, 192, 384)
    p["w3"] = merge_w(ks[4], 384, 384)        # (4, 384, 768)

    # FPN head 1x1 convs, BN folded; stacked by input width, shifts stacked too.
    tl_w, tl_sh = _conv_bn(ks[5], 768, 96, 768, HEAD)       # toplayer (96 -> pad 192)
    f4_w, f4_sh = _conv_bn(ks[6], 768, 192, 768, HEAD)      # FTB4
    f3_w, f3_sh = _conv_bn(ks[7], 384, 192, 384, HEAD)      # FTB3
    f21_w, f21_sh = _conv_bn(ks[8], 192, 192, HEAD, HEAD)   # FTB2_1
    f22_w, f22_sh = _conv_bn(ks[9], 192, 192, HEAD, HEAD)   # FTB2_2
    r4_w, r4_sh = _conv_bn(ks[10], 96, 192, HEAD, HEAD)     # FRB4 (reads x5's 96 lanes)
    r3_w, r3_sh = _conv_bn(ks[11], 192, 192, HEAD, HEAD)    # FRB3
    r2_w, r2_sh = _conv_bn(ks[12], 192, 192, HEAD, HEAD)    # FRB2
    c2_w, c2_b = _conv_bn(ks[13], 192, 192, HEAD, HEAD, bn=False)   # conv2

    p["w768"] = jnp.stack([tl_w, f4_w])                                # (2, 768, 192)
    p["f3_w"] = f3_w                                                   # (384, 192)
    p["w192"] = jnp.stack([f21_w, f22_w, r4_w, r3_w, r2_w, c2_w])      # (6, 192, 192)
    p["shifts"] = jnp.stack([tl_sh, f4_sh, f3_sh, f21_sh, f22_sh,
                             r4_sh, r3_sh, r2_sh, c2_b])[:, None, :]   # (9, 1, 192)

    fc = (1.0 / math.sqrt(192)) * jax.random.normal(ks[14], (192, NUM_CLASSES),
                                                    jnp.float32)
    fcb = 0.01 * jax.random.normal(ks[15], (NUM_CLASSES,), jnp.float32)
    p["fc_w"] = jnp.pad(fc, ((0, 0), (0, LANE - NUM_CLASSES))).astype(jnp.bfloat16)
    p["fc_b"] = jnp.pad(fcb, (0, LANE - NUM_CLASSES)).reshape(1, LANE)
    return p


# ----------------------------------------------------------------------------
# Forward
# ----------------------------------------------------------------------------
_ARG_ORDER = ("pe_w", "pe_b", "w1", "w2", "w3", "w768", "f3_w", "w192",
              "shifts", "fc_w", "fc_b")


def _const_index(ndim):
    return lambda g: (0,) * ndim


def video2rollnet_swin_forward(x_nchw, params, b_tile=B_TILE):
    n, cin, H, W = x_nchw.shape
    assert H % 32 == 0 and W % 32 == 0 and b_tile % 8 == 0
    hp, wp = H // 4, W // 4
    npatch = hp * wp
    k_eff = 16 * cin
    g = -(-n // b_tile)
    n_pad = g * b_tile

    # Host-side im2col of 4x4/s4 patches + hierarchical row ordering, batch
    # innermost so every per-level group is a contiguous slice of the M dim.
    # TODO(synk): this one-time rearrangement of the raw input stays in XLA; an
    # in-kernel im2col would need NHWC gathers/transposes Mosaic lowers poorly.
    xh = jnp.transpose(x_nchw, (0, 2, 3, 1)).astype(jnp.float32)
    pe = xh.reshape(n, hp, 4, wp, 4, cin).transpose(0, 1, 3, 2, 4, 5)
    pe = pe.reshape(n, npatch, k_eff)[:, _hier_perm(hp, wp), :]
    pe = jnp.pad(pe, ((0, n_pad - n), (0, 0), (0, LANE - k_eff)))
    pe = pe.reshape(g, b_tile, npatch, LANE).transpose(0, 2, 1, 3)
    pe = pe.reshape(g * npatch * b_tile, LANE).astype(jnp.bfloat16)

    weights = [params[k] for k in _ARG_ORDER]
    in_specs = [pl.BlockSpec((npatch * b_tile, LANE), lambda gi: (gi, 0))]
    # Constant index maps -> weights are DMA'd once and stay VMEM-resident.
    # TODO(synk): pipeline_mode=pl.Buffered(1) would halve weight VMEM; left at
    # default double-buffering since total usage (~14 MB) fits every generation.
    in_specs += [pl.BlockSpec(w.shape, _const_index(w.ndim)) for w in weights]

    out = pl.pallas_call(
        _fused_kernel,
        out_shape=jax.ShapeDtypeStruct((n_pad, LANE), jnp.float32),
        grid=(g,),
        in_specs=in_specs,
        out_specs=pl.BlockSpec((b_tile, LANE), lambda gi: (gi, 0)),
        compiler_params=pltpu.CompilerParams(
            dimension_semantics=("parallel",),      # >= b_tile samples per core
            vmem_limit_bytes=32 * 1024 * 1024,
            internal_scratch_in_bytes=1024 * 1024),
    )(pe, *weights)
    return out[:n, :NUM_CLASSES]


if __name__ == "__main__":
    key = jax.random.PRNGKey(0)
    k_x, k_p = jax.random.split(key)
    x = jax.random.normal(k_x, (2, 5, 64, 64), dtype=jnp.float32)   # NCHW like PyTorch
    params = init_params(k_p)
    fwd = jax.jit(video2rollnet_swin_forward)
    out = jax.block_until_ready(fwd(x, params))
    assert out.shape == (2, NUM_CLASSES) and out.dtype == jnp.float32
    print("KERNEL_OK")
</pallas_src>

<mosaic_0001>
module attributes {stable_mosaic.version = 11 : i64} {
  func.func @_fused_kernel(%arg0: i32, %arg1: memref<2048x128xbf16, #tpu.memory_space<vmem>>, %arg2: memref<128x128xbf16, #tpu.memory_space<vmem>>, %arg3: memref<1x128xf32, #tpu.memory_space<vmem>>, %arg4: memref<4x128x192xbf16, #tpu.memory_space<vmem>>, %arg5: memref<4x192x384xbf16, #tpu.memory_space<vmem>>, %arg6: memref<4x384x768xbf16, #tpu.memory_space<vmem>>, %arg7: memref<2x768x192xbf16, #tpu.memory_space<vmem>>, %arg8: memref<384x192xbf16, #tpu.memory_space<vmem>>, %arg9: memref<6x192x192xbf16, #tpu.memory_space<vmem>>, %arg10: memref<9x1x192xf32, #tpu.memory_space<vmem>>, %arg11: memref<192x128xbf16, #tpu.memory_space<vmem>>, %arg12: memref<1x128xf32, #tpu.memory_space<vmem>>, %arg13: memref<8x128xf32, #tpu.memory_space<vmem>>) attributes {dimension_semantics = [#tpu.dimension_semantics<parallel>], iteration_bounds = array<i64: 1>, scalar_prefetch = 0 : i64, scratch_operands = 0 : i64, tpu.core_type = #tpu.core_type<tc>, window_params = [{transform_indices = @transform_0, window_bounds = array<i64: 2048, 128>}, {pipeline_mode = #tpu.pipeline_mode<synchronous>, transform_indices = @transform_1, window_bounds = array<i64: 128, 128>}, {pipeline_mode = #tpu.pipeline_mode<synchronous>, transform_indices = @transform_2, window_bounds = array<i64: 1, 128>}, {pipeline_mode = #tpu.pipeline_mode<synchronous>, transform_indices = @transform_3, window_bounds = array<i64: 4, 128, 192>}, {pipeline_mode = #tpu.pipeline_mode<synchronous>, transform_indices = @transform_4, window_bounds = array<i64: 4, 192, 384>}, {pipeline_mode = #tpu.pipeline_mode<synchronous>, transform_indices = @transform_5, window_bounds = array<i64: 4, 384, 768>}, {pipeline_mode = #tpu.pipeline_mode<synchronous>, transform_indices = @transform_6, window_bounds = array<i64: 2, 768, 192>}, {pipeline_mode = #tpu.pipeline_mode<synchronous>, transform_indices = @transform_7, window_bounds = array<i64: 384, 192>}, {pipeline_mode = #tpu.pipeline_mode<synchronous>, transform_indices = @transform_8, window_bounds = array<i64: 6, 192, 192>}, {pipeline_mode = #tpu.pipeline_mode<synchronous>, transform_indices = @transform_9, window_bounds = array<i64: 9, 1, 192>}, {pipeline_mode = #tpu.pipeline_mode<synchronous>, transform_indices = @transform_10, window_bounds = array<i64: 192, 128>}, {pipeline_mode = #tpu.pipeline_mode<synchronous>, transform_indices = @transform_11, window_bounds = array<i64: 1, 128>}, {transform_indices = @transform_12, window_bounds = array<i64: 8, 128>}]} {
    %c0 = arith.constant 0 : index
    %c0_0 = arith.constant 0 : index
    %0 = vector.load %arg1[%c0, %c0_0] : memref<2048x128xbf16, #tpu.memory_space<vmem>>, vector<2048x128xbf16>
    %c0_1 = arith.constant 0 : index
    %c0_2 = arith.constant 0 : index
    %1 = vector.load %arg2[%c0_1, %c0_2] : memref<128x128xbf16, #tpu.memory_space<vmem>>, vector<128x128xbf16>
    %cst = arith.constant dense<0.000000e+00> : vector<2048x128xf32>
    %2 = tpu.matmul %0, %1, %cst {dimension_numbers = #tpu.dot_dimension_numbers<[1], [0], [0], [1], [0, 0, 1, 1], [], []>} : vector<2048x128xbf16>, vector<128x128xbf16>, vector<2048x128xf32> -> vector<2048x128xf32>
    %c0_3 = arith.constant 0 : index
    %c0_4 = arith.constant 0 : index
    %3 = vector.load %arg3[%c0_3, %c0_4] : memref<1x128xf32, #tpu.memory_space<vmem>>, vector<1x128xf32>
    %4 = vector.broadcast %3 : vector<1x128xf32> to vector<2048x128xf32>
    %5 = arith.addf %2, %4 : vector<2048x128xf32>
    %6 = arith.truncf %5 : vector<2048x128xf32> to vector<2048x128xbf16>
    %7 = vector.extract_strided_slice %6 {offsets = [0, 0], sizes = [512, 128], strides = [1, 1]} : vector<2048x128xbf16> to vector<512x128xbf16>
    %c0_5 = arith.constant 0 : index
    %c0_6 = arith.constant 0 : index
    %c0_7 = arith.constant 0 : index
    %8 = vector.load %arg4[%c0_5, %c0_6, %c0_7] : memref<4x128x192xbf16, #tpu.memory_space<vmem>>, vector<1x128x192xbf16>
    %9 = vector.shape_cast %8 : vector<1x128x192xbf16> to vector<128x192xbf16>
    %cst_8 = arith.constant dense<0.000000e+00> : vector<512x192xf32>
    %10 = tpu.matmul %7, %9, %cst_8 {dimension_numbers = #tpu.dot_dimension_numbers<[1], [0], [0], [1], [0, 0, 1, 1], [], []>} : vector<512x128xbf16>, vector<128x192xbf16>, vector<512x192xf32> -> vector<512x192xf32>
    %11 = vector.extract_strided_slice %6 {offsets = [512, 0], sizes = [512, 128], strides = [1, 1]} : vector<2048x128xbf16> to vector<512x128xbf16>
    %c1 = arith.constant 1 : index
    %c0_9 = arith.constant 0 : index
    %c0_10 = arith.constant 0 : index
    %12 = vector.load %arg4[%c1, %c0_9, %c0_10] : memref<4x128x192xbf16, #tpu.memory_space<vmem>>, vector<1x128x192xbf16>
    %13 = vector.shape_cast %12 : vector<1x128x192xbf16> to vector<128x192xbf16>
    %cst_11 = arith.constant dense<0.000000e+00> : vector<512x192xf32>
    %14 = tpu.matmul %11, %13, %cst_11 {dimension_numbers = #tpu.dot_dimension_numbers<[1], [0], [0], [1], [0, 0, 1, 1], [], []>} : vector<512x128xbf16>, vector<128x192xbf16>, vector<512x192xf32> -> vector<512x192xf32>
    %15 = arith.addf %10, %14 : vector<512x192xf32>
    %16 = vector.extract_strided_slice %6 {offsets = [1024, 0], sizes = [512, 128], strides = [1, 1]} : vector<2048x128xbf16> to vector<512x128xbf16>
    %c2 = arith.constant 2 : index
    %c0_12 = arith.constant 0 : index
    %c0_13 = arith.constant 0 : index
    %17 = vector.load %arg4[%c2, %c0_12, %c0_13] : memref<4x128x192xbf16, #tpu.memory_space<vmem>>, vector<1x128x192xbf16>
    %18 = vector.shape_cast %17 : vector<1x128x192xbf16> to vector<128x192xbf16>
    %cst_14 = arith.constant dense<0.000000e+00> : vector<512x192xf32>
    %19 = tpu.matmul %16, %18, %cst_14 {dimension_numbers = #tpu.dot_dimension_numbers<[1], [0], [0], [1], [0, 0, 1, 1], [], []>} : vector<512x128xbf16>, vector<128x192xbf16>, vector<512x192xf32> -> vector<512x192xf32>
    %20 = arith.addf %15, %19 : vector<512x192xf32>
    %21 = vector.extract_strided_slice %6 {offsets = [1536, 0], sizes = [512, 128], strides = [1, 1]} : vector<2048x128xbf16> to vector<512x128xbf16>
    %c3 = arith.constant 3 : index
    %c0_15 = arith.constant 0 : index
    %c0_16 = arith.constant 0 : index
    %22 = vector.load %arg4[%c3, %c0_15, %c0_16] : memref<4x128x192xbf16, #tpu.memory_space<vmem>>, vector<1x128x192xbf16>
    %23 = vector.shape_cast %22 : vector<1x128x192xbf16> to vector<128x192xbf16>
    %cst_17 = arith.constant dense<0.000000e+00> : vector<512x192xf32>
    %24 = tpu.matmul %21, %23, %cst_17 {dimension_numbers = #tpu.dot_dimension_numbers<[1], [0], [0], [1], [0, 0, 1, 1], [], []>} : vector<512x128xbf16>, vector<128x192xbf16>, vector<512x192xf32> -> vector<512x192xf32>
    %25 = arith.addf %20, %24 : vector<512x192xf32>
    %26 = arith.truncf %25 : vector<512x192xf32> to vector<512x192xbf16>
    %27 = vector.extract_strided_slice %26 {offsets = [0, 0], sizes = [128, 192], strides = [1, 1]} : vector<512x192xbf16> to vector<128x192xbf16>
    %c0_18 = arith.constant 0 : index
    %c0_19 = arith.constant 0 : index
    %c0_20 = arith.constant 0 : index
    %28 = vector.load %arg5[%c0_18, %c0_19, %c0_20] : memref<4x192x384xbf16, #tpu.memory_space<vmem>>, vector<1x192x384xbf16>
    %29 = vector.shape_cast %28 : vector<1x192x384xbf16> to vector<192x384xbf16>
    %cst_21 = arith.constant dense<0.000000e+00> : vector<128x384xf32>
    %30 = tpu.matmul %27, %29, %cst_21 {dimension_numbers = #tpu.dot_dimension_numbers<[1], [0], [0], [1], [0, 0, 1, 1], [], []>} : vector<128x192xbf16>, vector<192x384xbf16>, vector<128x384xf32> -> vector<128x384xf32>
    %31 = vector.extract_strided_slice %26 {offsets = [128, 0], sizes = [128, 192], strides = [1, 1]} : vector<512x192xbf16> to vector<128x192xbf16>
    %c1_22 = arith.constant 1 : index
    %c0_23 = arith.constant 0 : index
    %c0_24 = arith.constant 0 : index
    %32 = vector.load %arg5[%c1_22, %c0_23, %c0_24] : memref<4x192x384xbf16, #tpu.memory_space<vmem>>, vector<1x192x384xbf16>
    %33 = vector.shape_cast %32 : vector<1x192x384xbf16> to vector<192x384xbf16>
    %cst_25 = arith.constant dense<0.000000e+00> : vector<128x384xf32>
    %34 = tpu.matmul %31, %33, %cst_25 {dimension_numbers = #tpu.dot_dimension_numbers<[1], [0], [0], [1], [0, 0, 1, 1], [], []>} : vector<128x192xbf16>, vector<192x384xbf16>, vector<128x384xf32> -> vector<128x384xf32>
    %35 = arith.addf %30, %34 : vector<128x384xf32>
    %36 = vector.extract_strided_slice %26 {offsets = [256, 0], sizes = [128, 192], strides = [1, 1]} : vector<512x192xbf16> to vector<128x192xbf16>
    %c2_26 = arith.constant 2 : index
    %c0_27 = arith.constant 0 : index
    %c0_28 = arith.constant 0 : index
    %37 = vector.load %arg5[%c2_26, %c0_27, %c0_28] : memref<4x192x384xbf16, #tpu.memory_space<vmem>>, vector<1x192x384xbf16>
    %38 = vector.shape_cast %37 : vector<1x192x384xbf16> to vector<192x384xbf16>
    %cst_29 = arith.constant dense<0.000000e+00> : vector<128x384xf32>
    %39 = tpu.matmul %36, %38, %cst_29 {dimension_numbers = #tpu.dot_dimension_numbers<[1], [0], [0], [1], [0, 0, 1, 1], [], []>} : vector<128x192xbf16>, vector<192x384xbf16>, vector<128x384xf32> -> vector<128x384xf32>
    %40 = arith.addf %35, %39 : vector<128x384xf32>
    %41 = vector.extract_strided_slice %26 {offsets = [384, 0], sizes = [128, 192], strides = [1, 1]} : vector<512x192xbf16> to vector<128x192xbf16>
    %c3_30 = arith.constant 3 : index
    %c0_31 = arith.constant 0 : index
    %c0_32 = arith.constant 0 : index
    %42 = vector.load %arg5[%c3_30, %c0_31, %c0_32] : memref<4x192x384xbf16, #tpu.memory_space<vmem>>, vector<1x192x384xbf16>
    %43 = vector.shape_cast %42 : vector<1x192x384xbf16> to vector<192x384xbf16>
    %cst_33 = arith.constant dense<0.000000e+00> : vector<128x384xf32>
    %44 = tpu.matmul %41, %43, %cst_33 {dimension_numbers = #tpu.dot_dimension_numbers<[1], [0], [0], [1], [0, 0, 1, 1], [], []>} : vector<128x192xbf16>, vector<192x384xbf16>, vector<128x384xf32> -> vector<128x384xf32>
    %45 = arith.addf %40, %44 : vector<128x384xf32>
    %46 = arith.truncf %45 : vector<128x384xf32> to vector<128x384xbf16>
    %47 = vector.extract_strided_slice %46 {offsets = [0, 0], sizes = [32, 384], strides = [1, 1]} : vector<128x384xbf16> to vector<32x384xbf16>
    %c0_34 = arith.constant 0 : index
    %c0_35 = arith.constant 0 : index
    %c0_36 = arith.constant 0 : index
    %48 = vector.load %arg6[%c0_34, %c0_35, %c0_36] : memref<4x384x768xbf16, #tpu.memory_space<vmem>>, vector<1x384x768xbf16>
    %49 = vector.shape_cast %48 : vector<1x384x768xbf16> to vector<384x768xbf16>
    %cst_37 = arith.constant dense<0.000000e+00> : vector<32x768xf32>
    %50 = tpu.matmul %47, %49, %cst_37 {dimension_numbers = #tpu.dot_dimension_numbers<[1], [0], [0], [1], [0, 0, 1, 1], [], []>} : vector<32x384xbf16>, vector<384x768xbf16>, vector<32x768xf32> -> vector<32x768xf32>
    %51 = vector.extract_strided_slice %46 {offsets = [32, 0], sizes = [32, 384], strides = [1, 1]} : vector<128x384xbf16> to vector<32x384xbf16>
    %c1_38 = arith.constant 1 : index
    %c0_39 = arith.constant 0 : index
    %c0_40 = arith.constant 0 : index
    %52 = vector.load %arg6[%c1_38, %c0_39, %c0_40] : memref<4x384x768xbf16, #tpu.memory_space<vmem>>, vector<1x384x768xbf16>
    %53 = vector.shape_cast %52 : vector<1x384x768xbf16> to vector<384x768xbf16>
    %cst_41 = arith.constant dense<0.000000e+00> : vector<32x768xf32>
    %54 = tpu.matmul %51, %53, %cst_41 {dimension_numbers = #tpu.dot_dimension_numbers<[1], [0], [0], [1], [0, 0, 1, 1], [], []>} : vector<32x384xbf16>, vector<384x768xbf16>, vector<32x768xf32> -> vector<32x768xf32>
    %55 = arith.addf %50, %54 : vector<32x768xf32>
    %56 = vector.extract_strided_slice %46 {offsets = [64, 0], sizes = [32, 384], strides = [1, 1]} : vector<128x384xbf16> to vector<32x384xbf16>
    %c2_42 = arith.constant 2 : index
    %c0_43 = arith.constant 0 : index
    %c0_44 = arith.constant 0 : index
    %57 = vector.load %arg6[%c2_42, %c0_43, %c0_44] : memref<4x384x768xbf16, #tpu.memory_space<vmem>>, vector<1x384x768xbf16>
    %58 = vector.shape_cast %57 : vector<1x384x768xbf16> to vector<384x768xbf16>
    %cst_45 = arith.constant dense<0.000000e+00> : vector<32x768xf32>
    %59 = tpu.matmul %56, %58, %cst_45 {dimension_numbers = #tpu.dot_dimension_numbers<[1], [0], [0], [1], [0, 0, 1, 1], [], []>} : vector<32x384xbf16>, vector<384x768xbf16>, vector<32x768xf32> -> vector<32x768xf32>
    %60 = arith.addf %55, %59 : vector<32x768xf32>
    %61 = vector.extract_strided_slice %46 {offsets = [96, 0], sizes = [32, 384], strides = [1, 1]} : vector<128x384xbf16> to vector<32x384xbf16>
    %c3_46 = arith.constant 3 : index
    %c0_47 = arith.constant 0 : index
    %c0_48 = arith.constant 0 : index
    %62 = vector.load %arg6[%c3_46, %c0_47, %c0_48] : memref<4x384x768xbf16, #tpu.memory_space<vmem>>, vector<1x384x768xbf16>
    %63 = vector.shape_cast %62 : vector<1x384x768xbf16> to vector<384x768xbf16>
    %cst_49 = arith.constant dense<0.000000e+00> : vector<32x768xf32>
    %64 = tpu.matmul %61, %63, %cst_49 {dimension_numbers = #tpu.dot_dimension_numbers<[1], [0], [0], [1], [0, 0, 1, 1], [], []>} : vector<32x384xbf16>, vector<384x768xbf16>, vector<32x768xf32> -> vector<32x768xf32>
    %65 = arith.addf %60, %64 : vector<32x768xf32>
    %66 = arith.truncf %65 : vector<32x768xf32> to vector<32x768xbf16>
    %c0_50 = arith.constant 0 : index
    %c0_51 = arith.constant 0 : index
    %c0_52 = arith.constant 0 : index
    %67 = vector.load %arg7[%c0_50, %c0_51, %c0_52] : memref<2x768x192xbf16, #tpu.memory_space<vmem>>, vector<1x768x192xbf16>
    %68 = vector.shape_cast %67 : vector<1x768x192xbf16> to vector<768x192xbf16>
    %cst_53 = arith.constant dense<0.000000e+00> : vector<32x192xf32>
    %69 = tpu.matmul %66, %68, %cst_53 {dimension_numbers = #tpu.dot_dimension_numbers<[1], [0], [0], [1], [0, 0, 1, 1], [], []>} : vector<32x768xbf16>, vector<768x192xbf16>, vector<32x192xf32> -> vector<32x192xf32>
    %c0_54 = arith.constant 0 : index
    %c0_55 = arith.constant 0 : index
    %c0_56 = arith.constant 0 : index
    %70 = vector.load %arg10[%c0_54, %c0_55, %c0_56] : memref<9x1x192xf32, #tpu.memory_space<vmem>>, vector<1x1x192xf32>
    %71 = vector.shape_cast %70 : vector<1x1x192xf32> to vector<1x192xf32>
    %72 = vector.broadcast %71 : vector<1x192xf32> to vector<32x192xf32>
    %73 = arith.addf %69, %72 : vector<32x192xf32>
    %cst_57 = arith.constant 0.000000e+00 : f32
    %74 = vector.broadcast %cst_57 : f32 to vector<32x192xf32>
    %75 = arith.maximumf %73, %74 : vector<32x192xf32>
    %76 = vector.extract_strided_slice %26 {offsets = [0, 0], sizes = [128, 192], strides = [1, 1]} : vector<512x192xbf16> to vector<128x192xbf16>
    %77 = arith.extf %76 : vector<128x192xbf16> to vector<128x192xf32>
    %78 = vector.extract_strided_slice %26 {offsets = [128, 0], sizes = [128, 192], strides = [1, 1]} : vector<512x192xbf16> to vector<128x192xbf16>
    %79 = arith.extf %78 : vector<128x192xbf16> to vector<128x192xf32>
    %80 = arith.addf %77, %79 : vector<128x192xf32>
    %81 = vector.extract_strided_slice %26 {offsets = [256, 0], sizes = [128, 192], strides = [1, 1]} : vector<512x192xbf16> to vector<128x192xbf16>
    %82 = arith.extf %81 : vector<128x192xbf16> to vector<128x192xf32>
    %83 = arith.addf %80, %82 : vector<128x192xf32>
    %84 = vector.extract_strided_slice %26 {offsets = [384, 0], sizes = [128, 192], strides = [1, 1]} : vector<512x192xbf16> to vector<128x192xbf16>
    %85 = arith.extf %84 : vector<128x192xbf16> to vector<128x192xf32>
    %86 = arith.addf %83, %85 : vector<128x192xf32>
    %cst_58 = arith.constant 2.500000e-01 : f32
    %87 = vector.broadcast %cst_58 : f32 to vector<128x192xf32>
    %88 = arith.mulf %87, %86 : vector<128x192xf32>
    %89 = arith.truncf %88 : vector<128x192xf32> to vector<128x192xbf16>
    %c0_59 = arith.constant 0 : index
    %c0_60 = arith.constant 0 : index
    %c0_61 = arith.constant 0 : index
    %90 = vector.load %arg9[%c0_59, %c0_60, %c0_61] : memref<6x192x192xbf16, #tpu.memory_space<vmem>>, vector<1x192x192xbf16>
    %91 = vector.shape_cast %90 : vector<1x192x192xbf16> to vector<192x192xbf16>
    %cst_62 = arith.constant dense<0.000000e+00> : vector<128x192xf32>
    %92 = tpu.matmul %89, %91, %cst_62 {dimension_numbers = #tpu.dot_dimension_numbers<[1], [0], [0], [1], [0, 0, 1, 1], [], []>} : vector<128x192xbf16>, vector<192x192xbf16>, vector<128x192xf32> -> vector<128x192xf32>
    %c3_63 = arith.constant 3 : index
    %c0_64 = arith.constant 0 : index
    %c0_65 = arith.constant 0 : index
    %93 = vector.load %arg10[%c3_63, %c0_64, %c0_65] : memref<9x1x192xf32, #tpu.memory_space<vmem>>, vector<1x1x192xf32>
    %94 = vector.shape_cast %93 : vector<1x1x192xf32> to vector<1x192xf32>
    %95 = vector.broadcast %94 : vector<1x192xf32> to vector<128x192xf32>
    %96 = arith.addf %92, %95 : vector<128x192xf32>
    %cst_66 = arith.constant 0.000000e+00 : f32
    %97 = vector.broadcast %cst_66 : f32 to vector<128x192xf32>
    %98 = arith.maximumf %96, %97 : vector<128x192xf32>
    %99 = vector.extract_strided_slice %98 {offsets = [0, 0], sizes = [32, 192], strides = [1, 1]} : vector<128x192xf32> to vector<32x192xf32>
    %100 = vector.extract_strided_slice %98 {offsets = [32, 0], sizes = [32, 192], strides = [1, 1]} : vector<128x192xf32> to vector<32x192xf32>
    %101 = arith.addf %99, %100 : vector<32x192xf32>
    %102 = vector.extract_strided_slice %98 {offsets = [64, 0], sizes = [32, 192], strides = [1, 1]} : vector<128x192xf32> to vector<32x192xf32>
    %103 = arith.addf %101, %102 : vector<32x192xf32>
    %104 = vector.extract_strided_slice %98 {offsets = [96, 0], sizes = [32, 192], strides = [1, 1]} : vector<128x192xf32> to vector<32x192xf32>
    %105 = arith.addf %103, %104 : vector<32x192xf32>
    %cst_67 = arith.constant 2.500000e-01 : f32
    %106 = vector.broadcast %cst_67 : f32 to vector<32x192xf32>
    %107 = arith.mulf %106, %105 : vector<32x192xf32>
    %108 = arith.truncf %107 : vector<32x192xf32> to vector<32x192xbf16>
    %c1_68 = arith.constant 1 : index
    %c0_69 = arith.constant 0 : index
    %c0_70 = arith.constant 0 : index
    %109 = vector.load %arg9[%c1_68, %c0_69, %c0_70] : memref<6x192x192xbf16, #tpu.memory_space<vmem>>, vector<1x192x192xbf16>
    %110 = vector.shape_cast %109 : vector<1x192x192xbf16> to vector<192x192xbf16>
    %cst_71 = arith.constant dense<0.000000e+00> : vector<32x192xf32>
    %111 = tpu.matmul %108, %110, %cst_71 {dimension_numbers = #tpu.dot_dimension_numbers<[1], [0], [0], [1], [0, 0, 1, 1], [], []>} : vector<32x192xbf16>, vector<192x192xbf16>, vector<32x192xf32> -> vector<32x192xf32>
    %c4 = arith.constant 4 : index
    %c0_72 = arith.constant 0 : index
    %c0_73 = arith.constant 0 : index
    %112 = vector.load %arg10[%c4, %c0_72, %c0_73] : memref<9x1x192xf32, #tpu.memory_space<vmem>>, vector<1x1x192xf32>
    %113 = vector.shape_cast %112 : vector<1x1x192xf32> to vector<1x192xf32>
    %114 = vector.broadcast %113 : vector<1x192xf32> to vector<32x192xf32>
    %115 = arith.addf %111, %114 : vector<32x192xf32>
    %cst_74 = arith.constant 0.000000e+00 : f32
    %116 = vector.broadcast %cst_74 : f32 to vector<32x192xf32>
    %117 = arith.maximumf %115, %116 : vector<32x192xf32>
    %118 = vector.extract_strided_slice %46 {offsets = [0, 0], sizes = [32, 384], strides = [1, 1]} : vector<128x384xbf16> to vector<32x384xbf16>
    %119 = arith.extf %118 : vector<32x384xbf16> to vector<32x384xf32>
    %120 = vector.extract_strided_slice %46 {offsets = [32, 0], sizes = [32, 384], strides = [1, 1]} : vector<128x384xbf16> to vector<32x384xbf16>
    %121 = arith.extf %120 : vector<32x384xbf16> to vector<32x384xf32>
    %122 = arith.addf %119, %121 : vector<32x384xf32>
    %123 = vector.extract_strided_slice %46 {offsets = [64, 0], sizes = [32, 384], strides = [1, 1]} : vector<128x384xbf16> to vector<32x384xbf16>
    %124 = arith.extf %123 : vector<32x384xbf16> to vector<32x384xf32>
    %125 = arith.addf %122, %124 : vector<32x384xf32>
    %126 = vector.extract_strided_slice %46 {offsets = [96, 0], sizes = [32, 384], strides = [1, 1]} : vector<128x384xbf16> to vector<32x384xbf16>
    %127 = arith.extf %126 : vector<32x384xbf16> to vector<32x384xf32>
    %128 = arith.addf %125, %127 : vector<32x384xf32>
    %cst_75 = arith.constant 2.500000e-01 : f32
    %129 = vector.broadcast %cst_75 : f32 to vector<32x384xf32>
    %130 = arith.mulf %129, %128 : vector<32x384xf32>
    %131 = arith.truncf %130 : vector<32x384xf32> to vector<32x384xbf16>
    %c0_76 = arith.constant 0 : index
    %c0_77 = arith.constant 0 : index
    %132 = vector.load %arg8[%c0_76, %c0_77] : memref<384x192xbf16, #tpu.memory_space<vmem>>, vector<384x192xbf16>
    %cst_78 = arith.constant dense<0.000000e+00> : vector<32x192xf32>
    %133 = tpu.matmul %131, %132, %cst_78 {dimension_numbers = #tpu.dot_dimension_numbers<[1], [0], [0], [1], [0, 0, 1, 1], [], []>} : vector<32x384xbf16>, vector<384x192xbf16>, vector<32x192xf32> -> vector<32x192xf32>
    %c2_79 = arith.constant 2 : index
    %c0_80 = arith.constant 0 : index
    %c0_81 = arith.constant 0 : index
    %134 = vector.load %arg10[%c2_79, %c0_80, %c0_81] : memref<9x1x192xf32, #tpu.memory_space<vmem>>, vector<1x1x192xf32>
    %135 = vector.shape_cast %134 : vector<1x1x192xf32> to vector<1x192xf32>
    %136 = vector.broadcast %135 : vector<1x192xf32> to vector<32x192xf32>
    %137 = arith.addf %133, %136 : vector<32x192xf32>
    %cst_82 = arith.constant 0.000000e+00 : f32
    %138 = vector.broadcast %cst_82 : f32 to vector<32x192xf32>
    %139 = arith.maximumf %137, %138 : vector<32x192xf32>
    %c1_83 = arith.constant 1 : index
    %c0_84 = arith.constant 0 : index
    %c0_85 = arith.constant 0 : index
    %140 = vector.load %arg7[%c1_83, %c0_84, %c0_85] : memref<2x768x192xbf16, #tpu.memory_space<vmem>>, vector<1x768x192xbf16>
    %141 = vector.shape_cast %140 : vector<1x768x192xbf16> to vector<768x192xbf16>
    %cst_86 = arith.constant dense<0.000000e+00> : vector<32x192xf32>
    %142 = tpu.matmul %66, %141, %cst_86 {dimension_numbers = #tpu.dot_dimension_numbers<[1], [0], [0], [1], [0, 0, 1, 1], [], []>} : vector<32x768xbf16>, vector<768x192xbf16>, vector<32x192xf32> -> vector<32x192xf32>
    %c1_87 = arith.constant 1 : index
    %c0_88 = arith.constant 0 : index
    %c0_89 = arith.constant 0 : index
    %143 = vector.load %arg10[%c1_87, %c0_88, %c0_89] : memref<9x1x192xf32, #tpu.memory_space<vmem>>, vector<1x1x192xf32>
    %144 = vector.shape_cast %143 : vector<1x1x192xf32> to vector<1x192xf32>
    %145 = vector.broadcast %144 : vector<1x192xf32> to vector<32x192xf32>
    %146 = arith.addf %142, %145 : vector<32x192xf32>
    %cst_90 = arith.constant 0.000000e+00 : f32
    %147 = vector.broadcast %cst_90 : f32 to vector<32x192xf32>
    %148 = arith.maximumf %146, %147 : vector<32x192xf32>
    %c2_91 = arith.constant 2 : index
    %c0_92 = arith.constant 0 : index
    %c0_93 = arith.constant 0 : index
    %149 = vector.load %arg9[%c2_91, %c0_92, %c0_93] : memref<6x192x192xbf16, #tpu.memory_space<vmem>>, vector<1x192x192xbf16>
    %150 = vector.shape_cast %149 : vector<1x192x192xbf16> to vector<192x192xbf16>
    %151 = arith.truncf %75 : vector<32x192xf32> to vector<32x192xbf16>
    %cst_94 = arith.constant dense<0.000000e+00> : vector<32x192xf32>
    %152 = tpu.matmul %151, %150, %cst_94 {dimension_numbers = #tpu.dot_dimension_numbers<[1], [0], [0], [1], [0, 0, 1, 1], [], []>} : vector<32x192xbf16>, vector<192x192xbf16>, vector<32x192xf32> -> vector<32x192xf32>
    %c5 = arith.constant 5 : index
    %c0_95 = arith.constant 0 : index
    %c0_96 = arith.constant 0 : index
    %153 = vector.load %arg10[%c5, %c0_95, %c0_96] : memref<9x1x192xf32, #tpu.memory_space<vmem>>, vector<1x1x192xf32>
    %154 = vector.shape_cast %153 : vector<1x1x192xf32> to vector<1x192xf32>
    %155 = vector.broadcast %154 : vector<1x192xf32> to vector<32x192xf32>
    %156 = arith.addf %152, %155 : vector<32x192xf32>
    %cst_97 = arith.constant 0.000000e+00 : f32
    %157 = vector.broadcast %cst_97 : f32 to vector<32x192xf32>
    %158 = arith.maximumf %156, %157 : vector<32x192xf32>
    %159 = arith.addf %148, %158 : vector<32x192xf32>
    %c3_98 = arith.constant 3 : index
    %c0_99 = arith.constant 0 : index
    %c0_100 = arith.constant 0 : index
    %160 = vector.load %arg9[%c3_98, %c0_99, %c0_100] : memref<6x192x192xbf16, #tpu.memory_space<vmem>>, vector<1x192x192xbf16>
    %161 = vector.shape_cast %160 : vector<1x192x192xbf16> to vector<192x192xbf16>
    %162 = arith.truncf %159 : vector<32x192xf32> to vector<32x192xbf16>
    %cst_101 = arith.constant dense<0.000000e+00> : vector<32x192xf32>
    %163 = tpu.matmul %162, %161, %cst_101 {dimension_numbers = #tpu.dot_dimension_numbers<[1], [0], [0], [1], [0, 0, 1, 1], [], []>} : vector<32x192xbf16>, vector<192x192xbf16>, vector<32x192xf32> -> vector<32x192xf32>
    %c6 = arith.constant 6 : index
    %c0_102 = arith.constant 0 : index
    %c0_103 = arith.constant 0 : index
    %164 = vector.load %arg10[%c6, %c0_102, %c0_103] : memref<9x1x192xf32, #tpu.memory_space<vmem>>, vector<1x1x192xf32>
    %165 = vector.shape_cast %164 : vector<1x1x192xf32> to vector<1x192xf32>
    %166 = vector.broadcast %165 : vector<1x192xf32> to vector<32x192xf32>
    %167 = arith.addf %163, %166 : vector<32x192xf32>
    %cst_104 = arith.constant 0.000000e+00 : f32
    %168 = vector.broadcast %cst_104 : f32 to vector<32x192xf32>
    %169 = arith.maximumf %167, %168 : vector<32x192xf32>
    %170 = arith.addf %139, %169 : vector<32x192xf32>
    %c4_105 = arith.constant 4 : index
    %c0_106 = arith.constant 0 : index
    %c0_107 = arith.constant 0 : index
    %171 = vector.load %arg9[%c4_105, %c0_106, %c0_107] : memref<6x192x192xbf16, #tpu.memory_space<vmem>>, vector<1x192x192xbf16>
    %172 = vector.shape_cast %171 : vector<1x192x192xbf16> to vector<192x192xbf16>
    %173 = arith.truncf %170 : vector<32x192xf32> to vector<32x192xbf16>
    %cst_108 = arith.constant dense<0.000000e+00> : vector<32x192xf32>
    %174 = tpu.matmul %173, %172, %cst_108 {dimension_numbers = #tpu.dot_dimension_numbers<[1], [0], [0], [1], [0, 0, 1, 1], [], []>} : vector<32x192xbf16>, vector<192x192xbf16>, vector<32x192xf32> -> vector<32x192xf32>
    %c7 = arith.constant 7 : index
    %c0_109 = arith.constant 0 : index
    %c0_110 = arith.constant 0 : index
    %175 = vector.load %arg10[%c7, %c0_109, %c0_110] : memref<9x1x192xf32, #tpu.memory_space<vmem>>, vector<1x1x192xf32>
    %176 = vector.shape_cast %175 : vector<1x1x192xf32> to vector<1x192xf32>
    %177 = vector.broadcast %176 : vector<1x192xf32> to vector<32x192xf32>
    %178 = arith.addf %174, %177 : vector<32x192xf32>
    %cst_111 = arith.constant 0.000000e+00 : f32
    %179 = vector.broadcast %cst_111 : f32 to vector<32x192xf32>
    %180 = arith.maximumf %178, %179 : vector<32x192xf32>
    %181 = arith.addf %117, %180 : vector<32x192xf32>
    %182 = arith.mulf %181, %170 : vector<32x192xf32>
    %183 = vector.extract_strided_slice %182 {offsets = [0, 0], sizes = [8, 192], strides = [1, 1]} : vector<32x192xf32> to vector<8x192xf32>
    %184 = vector.extract_strided_slice %182 {offsets = [8, 0], sizes = [8, 192], strides = [1, 1]} : vector<32x192xf32> to vector<8x192xf32>
    %185 = vector.extract_strided_slice %182 {offsets = [16, 0], sizes = [8, 192], strides = [1, 1]} : vector<32x192xf32> to vector<8x192xf32>
    %186 = vector.extract_strided_slice %182 {offsets = [24, 0], sizes = [8, 192], strides = [1, 1]} : vector<32x192xf32> to vector<8x192xf32>
    %187 = vector.extract_strided_slice %159 {offsets = [0, 0], sizes = [8, 192], strides = [1, 1]} : vector<32x192xf32> to vector<8x192xf32>
    %188 = vector.extract_strided_slice %159 {offsets = [8, 0], sizes = [8, 192], strides = [1, 1]} : vector<32x192xf32> to vector<8x192xf32>
    %189 = vector.extract_strided_slice %159 {offsets = [16, 0], sizes = [8, 192], strides = [1, 1]} : vector<32x192xf32> to vector<8x192xf32>
    %190 = vector.extract_strided_slice %159 {offsets = [24, 0], sizes = [8, 192], strides = [1, 1]} : vector<32x192xf32> to vector<8x192xf32>
    %191 = arith.maximumf %183, %184 : vector<8x192xf32>
    %192 = arith.maximumf %191, %185 : vector<8x192xf32>
    %193 = arith.maximumf %192, %186 : vector<8x192xf32>
    %194 = arith.subf %183, %193 : vector<8x192xf32>
    %195 = math.exp %194 : vector<8x192xf32>
    %196 = arith.subf %184, %193 : vector<8x192xf32>
    %197 = math.exp %196 : vector<8x192xf32>
    %198 = arith.subf %185, %193 : vector<8x192xf32>
    %199 = math.exp %198 : vector<8x192xf32>
    %200 = arith.subf %186, %193 : vector<8x192xf32>
    %201 = math.exp %200 : vector<8x192xf32>
    %202 = arith.addf %195, %197 : vector<8x192xf32>
    %203 = arith.addf %202, %199 : vector<8x192xf32>
    %204 = arith.addf %203, %201 : vector<8x192xf32>
    %cst_112 = arith.constant 1.000000e+00 : f32
    %205 = vector.broadcast %cst_112 : f32 to vector<8x192xf32>
    %206 = arith.divf %205, %204 : vector<8x192xf32>
    %207 = arith.mulf %195, %206 : vector<8x192xf32>
    %208 = arith.mulf %207, %187 : vector<8x192xf32>
    %209 = arith.mulf %197, %206 : vector<8x192xf32>
    %210 = arith.mulf %209, %188 : vector<8x192xf32>
    %211 = arith.addf %208, %210 : vector<8x192xf32>
    %212 = arith.addf %187, %188 : vector<8x192xf32>
    %213 = arith.mulf %199, %206 : vector<8x192xf32>
    %214 = arith.mulf %213, %189 : vector<8x192xf32>
    %215 = arith.addf %211, %214 : vector<8x192xf32>
    %216 = arith.addf %212, %189 : vector<8x192xf32>
    %217 = arith.mulf %201, %206 : vector<8x192xf32>
    %218 = arith.mulf %217, %190 : vector<8x192xf32>
    %219 = arith.addf %215, %218 : vector<8x192xf32>
    %220 = arith.addf %216, %190 : vector<8x192xf32>
    %cst_113 = arith.constant 2.500000e-01 : f32
    %221 = vector.broadcast %cst_113 : f32 to vector<8x192xf32>
    %222 = arith.mulf %219, %221 : vector<8x192xf32>
    %cst_114 = arith.constant 2.500000e-01 : f32
    %223 = vector.broadcast %cst_114 : f32 to vector<8x192xf32>
    %224 = arith.mulf %220, %223 : vector<8x192xf32>
    %c5_115 = arith.constant 5 : index
    %c0_116 = arith.constant 0 : index
    %c0_117 = arith.constant 0 : index
    %225 = vector.load %arg9[%c5_115, %c0_116, %c0_117] : memref<6x192x192xbf16, #tpu.memory_space<vmem>>, vector<1x192x192xbf16>
    %226 = vector.shape_cast %225 : vector<1x192x192xbf16> to vector<192x192xbf16>
    %227 = arith.truncf %222 : vector<8x192xf32> to vector<8x192xbf16>
    %cst_118 = arith.constant dense<0.000000e+00> : vector<8x192xf32>
    %228 = tpu.matmul %227, %226, %cst_118 {dimension_numbers = #tpu.dot_dimension_numbers<[1], [0], [0], [1], [0, 0, 1, 1], [], []>} : vector<8x192xbf16>, vector<192x192xbf16>, vector<8x192xf32> -> vector<8x192xf32>
    %c8 = arith.constant 8 : index
    %c0_119 = arith.constant 0 : index
    %c0_120 = arith.constant 0 : index
    %229 = vector.load %arg10[%c8, %c0_119, %c0_120] : memref<9x1x192xf32, #tpu.memory_space<vmem>>, vector<1x1x192xf32>
    %230 = vector.shape_cast %229 : vector<1x1x192xf32> to vector<1x192xf32>
    %231 = vector.broadcast %230 : vector<1x192xf32> to vector<8x192xf32>
    %232 = arith.addf %228, %231 : vector<8x192xf32>
    %233 = arith.addf %232, %224 : vector<8x192xf32>
    %c0_121 = arith.constant 0 : index
    %c0_122 = arith.constant 0 : index
    %234 = vector.load %arg11[%c0_121, %c0_122] : memref<192x128xbf16, #tpu.memory_space<vmem>>, vector<192x128xbf16>
    %235 = arith.truncf %233 : vector<8x192xf32> to vector<8x192xbf16>
    %cst_123 = arith.constant dense<0.000000e+00> : vector<8x128xf32>
    %236 = tpu.matmul %235, %234, %cst_123 {dimension_numbers = #tpu.dot_dimension_numbers<[1], [0], [0], [1], [0, 0, 1, 1], [], []>} : vector<8x192xbf16>, vector<192x128xbf16>, vector<8x128xf32> -> vector<8x128xf32>
    %c0_124 = arith.constant 0 : index
    %c0_125 = arith.constant 0 : index
    %237 = vector.load %arg12[%c0_124, %c0_125] : memref<1x128xf32, #tpu.memory_space<vmem>>, vector<1x128xf32>
    %238 = vector.broadcast %237 : vector<1x128xf32> to vector<8x128xf32>
    %239 = arith.addf %236, %238 : vector<8x128xf32>
    %c0_126 = arith.constant 0 : index
    %c0_127 = arith.constant 0 : index
    %240 = vector.load %arg13[%c0_126, %c0_127] : memref<8x128xf32, #tpu.memory_space<vmem>>, vector<8x128xf32>
    tpu.vector_store %arg13[%c0_126, %c0_127], %239 {strides = array<i32>} : memref<8x128xf32, #tpu.memory_space<vmem>>, vector<8x128xf32>,
    return
  }
  func.func @transform_0(%arg0: i32) -> (i32, i32) {
    %c0_i32 = arith.constant 0 : i32
    %c0_i32_0 = arith.constant 0 : i32
    return %arg0, %c0_i32 : i32, i32
  }
  func.func @transform_1(%arg0: i32) -> (i32, i32) {
    %c0_i32 = arith.constant 0 : i32
    %c0_i32_0 = arith.constant 0 : i32
    %c0_i32_1 = arith.constant 0 : i32
    return %c0_i32, %c0_i32_0 : i32, i32
  }
  func.func @transform_2(%arg0: i32) -> (i32, i32) {
    %c0_i32 = arith.constant 0 : i32
    %c0_i32_0 = arith.constant 0 : i32
    %c0_i32_1 = arith.constant 0 : i32
    return %c0_i32, %c0_i32_0 : i32, i32
  }
  func.func @transform_3(%arg0: i32) -> (i32, i32, i32) {
    %c0_i32 = arith.constant 0 : i32
    %c0_i32_0 = arith.constant 0 : i32
    %c0_i32_1 = arith.constant 0 : i32
    %c0_i32_2 = arith.constant 0 : i32
    return %c0_i32, %c0_i32_0, %c0_i32_1 : i32, i32, i32
  }
  func.func @transform_4(%arg0: i32) -> (i32, i32, i32) {
    %c0_i32 = arith.constant 0 : i32
    %c0_i32_0 = arith.constant 0 : i32
    %c0_i32_1 = arith.constant 0 : i32
    %c0_i32_2 = arith.constant 0 : i32
    return %c0_i32, %c0_i32_0, %c0_i32_1 : i32, i32, i32
  }
  func.func @transform_5(%arg0: i32) -> (i32, i32, i32) {
    %c0_i32 = arith.constant 0 : i32
    %c0_i32_0 = arith.constant 0 : i32
    %c0_i32_1 = arith.constant 0 : i32
    %c0_i32_2 = arith.constant 0 : i32
    return %c0_i32, %c0_i32_0, %c0_i32_1 : i32, i32, i32
  }
  func.func @transform_6(%arg0: i32) -> (i32, i32, i32) {
    %c0_i32 = arith.constant 0 : i32
    %c0_i32_0 = arith.constant 0 : i32
    %c0_i32_1 = arith.constant 0 : i32
    %c0_i32_2 = arith.constant 0 : i32
    return %c0_i32, %c0_i32_0, %c0_i32_1 : i32, i32, i32
  }
  func.func @transform_7(%arg0: i32) -> (i32, i32) {
    %c0_i32 = arith.constant 0 : i32
    %c0_i32_0 = arith.constant 0 : i32
    %c0_i32_1 = arith.constant 0 : i32
    return %c0_i32, %c0_i32_0 : i32, i32
  }
  func.func @transform_8(%arg0: i32) -> (i32, i32, i32) {
    %c0_i32 = arith.constant 0 : i32
    %c0_i32_0 = arith.constant 0 : i32
    %c0_i32_1 = arith.constant 0 : i32
    %c0_i32_2 = arith.constant 0 : i32
    return %c0_i32, %c0_i32_0, %c0_i32_1 : i32, i32, i32
  }
  func.func @transform_9(%arg0: i32) -> (i32, i32, i32) {
    %c0_i32 = arith.constant 0 : i32
    %c0_i32_0 = arith.constant 0 : i32
    %c0_i32_1 = arith.constant 0 : i32
    %c0_i32_2 = arith.constant 0 : i32
    return %c0_i32, %c0_i32_0, %c0_i32_1 : i32, i32, i32
  }
  func.func @transform_10(%arg0: i32) -> (i32, i32) {
    %c0_i32 = arith.constant 0 : i32
    %c0_i32_0 = arith.constant 0 : i32
    %c0_i32_1 = arith.constant 0 : i32
    return %c0_i32, %c0_i32_0 : i32, i32
  }
  func.func @transform_11(%arg0: i32) -> (i32, i32) {
    %c0_i32 = arith.constant 0 : i32
    %c0_i32_0 = arith.constant 0 : i32
    %c0_i32_1 = arith.constant 0 : i32
    return %c0_i32, %c0_i32_0 : i32, i32
  }
  func.func @transform_12(%arg0: i32) -> (i32, i32) {
    %c0_i32 = arith.constant 0 : i32
    %c0_i32_0 = arith.constant 0 : i32
    return %arg0, %c0_i32 : i32, i32
  }
}

</mosaic_0001>

<bundles_post_ra>
// kernel: video2rollnet_swin_forward.1
= control target key start
LH: loop header
LB: loop body
LE: loop exit
PB: predicated region body
PF: predicated region fallthrough
CT: control target
= control target key end

     0   :  { %vm4730_vm0 = vcmask 523264   ;;  %s27124_s1 = inlined_call_operand.vmem [shape: bf16[128,128], index: 1, kind: input, shape index: {}]   ;;  %s27125_s0 = inlined_call_operand.vmem [shape: bf16[2048,128], index: 0, kind: input, shape index: {}]   ;;  %s27126_s3 = inlined_call_operand.vmem [shape: bf16[4,128,192], index: 3, kind: input, shape index: {}]   ;;  %s27127_s2 = inlined_call_operand.vmem [shape: f32[1,128], index: 2, kind: input, shape index: {}]   ;;  %s27128_s4 = inlined_call_operand.vmem [shape: bf16[4,192,384], index: 4, kind: input, shape index: {}]   ;;  %s27129_s5 = inlined_call_operand.vmem [shape: bf16[4,384,768], index: 5, kind: input, shape index: {}]   ;;  %s27130_s6 = inlined_call_operand.vmem [shape: bf16[2,768,192], index: 6, kind: input, shape index: {}]   ;;  %s27131_s8 = inlined_call_operand.vmem [shape: bf16[6,192,192], index: 8, kind: input, shape index: {}]   ;;  %s27132_s7 = inlined_call_operand.vmem [shape: bf16[384,192], index: 7, kind: input, shape index: {}]   ;;  %s27133_s9 = inlined_call_operand.vmem [shape: f32[9,1,192], index: 9, kind: input, shape index: {}]   ;;  %s27134_s10 = inlined_call_operand.vmem [shape: bf16[192,128], index: 10, kind: input, shape index: {}]   ;;  %s27135_s11 = inlined_call_operand.vmem [shape: f32[1,128], index: 11, kind: input, shape index: {}]   ;;  %s27136_s12 = inlined_call_operand.vmem [shape: f32[8,128], index: 12, kind: output, shape index: {}]  }
   0x1   :  { %v18755_v0 = vld [vmem:[%s27124_s1] sm:$0xff]   ;;  %v18756_v1 = vld [vmem:[%s27124_s1 + $0x8] sm:$0xff]   ;;  %v18757_v2 = vld [vmem:[%s27124_s1 + $0x10] sm:$0xff]  }
   0x2   :  { %17674 = vmatprep.subr.bf16.mxu0 %v18755_v0  ;;  %v18758_v3 = vld [vmem:[%s27124_s1 + $0x18] sm:$0xff]   ;;  %v18763_v4 = vld [vmem:[%s27125_s0] sm:$0xff]   ;;  %v18760_v6 = vld [vmem:[%s27124_s1 + $0x28] sm:$0xff]  }
   0x3   :  { %17675 = vmatpush3.bf16.msra.mxu0 %v18755_v0  ;;  %17690 = vmatprep.mubr.bf16.mxu0 %v18763_v4  ;;  %v18759_v5 = vld [vmem:[%s27124_s1 + $0x20] sm:$0xff]   ;;  %v18761_v7 = vld [vmem:[%s27124_s1 + $0x30] sm:$0xff]   ;;  %v18762_v8 = vld [vmem:[%s27124_s1 + $0x38] sm:$0xff]  }
   0x4   :  { %17676 = vmatprep.subr.bf16.mxu0 %v18756_v1  ;;  %v18764_v9 = vld [vmem:[%s27125_s0 + $0x8] sm:$0xff]   ;;  %v18765_v10 = vld [vmem:[%s27125_s0 + $0x10] sm:$0xff]   ;;  %v18766_v11 = vld [vmem:[%s27125_s0 + $0x18] sm:$0xff]  }
   0x5   :  { %v18767_v12 = vld [vmem:[%s27125_s0 + $0x20] sm:$0xff]   ;;  %v18768_v13 = vld [vmem:[%s27125_s0 + $0x28] sm:$0xff]   ;;  %v18769_v14 = vld [vmem:[%s27125_s0 + $0x30] sm:$0xff]  }
   0x6   :  { %v18770_v15 = vld [vmem:[%s27125_s0 + $0x38] sm:$0xff]   ;;  %v18771_v16 = vld [vmem:[%s27125_s0 + $0x40] sm:$0xff]   ;;  %v18772_v17 = vld [vmem:[%s27125_s0 + $0x48] sm:$0xff]  }
   0x7   :  { %17677 = vmatpush3.bf16.msra.mxu0 %v18756_v1  ;;  %v18773_v18 = vld [vmem:[%s27125_s0 + $0x50] sm:$0xff]   ;;  %v18774_v19 = vld [vmem:[%s27125_s0 + $0x58] sm:$0xff]   ;;  %v18775_v20 = vld [vmem:[%s27125_s0 + $0x60] sm:$0xff]  }
   0x8   :  { %17678 = vmatprep.subr.bf16.mxu0 %v18757_v2  ;;  %v18776_v21 = vld [vmem:[%s27125_s0 + $0x68] sm:$0xff]   ;;  %v18777_v22 = vld [vmem:[%s27125_s0 + $0x70] sm:$0xff]   ;;  %v18778_v23 = vld [vmem:[%s27125_s0 + $0x78] sm:$0xff]  }
   0x9   :  { %v18779_v24 = vld [vmem:[%s27125_s0 + $0x80] sm:$0xff]   ;;  %v18780_v25 = vld [vmem:[%s27125_s0 + $0x88] sm:$0xff]   ;;  %v18781_v26 = vld [vmem:[%s27125_s0 + $0x90] sm:$0xff]  }
   0xa   :  { %v18782_v27 = vld [vmem:[%s27125_s0 + $0x98] sm:$0xff]   ;;  %v18783_v28 = vld [vmem:[%s27125_s0 + $0xa0] sm:$0xff]   ;;  %v18784_v29 = vld [vmem:[%s27125_s0 + $0xa8] sm:$0xff]  }
   0xb   :  { %17679 = vmatpush3.bf16.msra.mxu0 %v18757_v2  ;;  %v18785_v30 = vld [vmem:[%s27125_s0 + $0xb0] sm:$0xff]   ;;  %v18786_v31 = vld [vmem:[%s27125_s0 + $0xb8] sm:$0xff]   ;;  %v18787_v32 = vld [vmem:[%s27125_s0 + $0xc0] sm:$0xff]  }
   0xc   :  { %17680 = vmatprep.subr.bf16.mxu0 %v18758_v3  ;;  %v18788_v33 = vld [vmem:[%s27125_s0 + $0xc8] sm:$0xff]   ;;  %v18789_v34 = vld [vmem:[%s27125_s0 + $0xd0] sm:$0xff]   ;;  %v18790_v35 = vld [vmem:[%s27125_s0 + $0xd8] sm:$0xff]  }
   0xd   :  { %v18791_v36 = vld [vmem:[%s27125_s0 + $0xe0] sm:$0xff]   ;;  %v18792_v37 = vld [vmem:[%s27125_s0 + $0xe8] sm:$0xff]   ;;  %v18793_v38 = vld [vmem:[%s27125_s0 + $0xf0] sm:$0xff]  }
   0xe   :  { %v18794_v39 = vld [vmem:[%s27125_s0 + $0xf8] sm:$0xff]   ;;  %v18795_v40 = vld [vmem:[%s27125_s0 + $0x100] sm:$0xff]   ;;  %v18796_v41 = vld [vmem:[%s27125_s0 + $0x108] sm:$0xff]  }
   0xf   :  { %17681 = vmatpush3.bf16.msra.mxu0 %v18758_v3  ;;  %v18797_v42 = vld [vmem:[%s27125_s0 + $0x110] sm:$0xff]   ;;  %v18798_v43 = vld [vmem:[%s27125_s0 + $0x118] sm:$0xff]   ;;  %v18799_v44 = vld [vmem:[%s27125_s0 + $0x120] sm:$0xff]  }
  0x10   :  { %17682 = vmatprep.subr.bf16.mxu0 %v18759_v5  ;;  %v18800_v45 = vld [vmem:[%s27125_s0 + $0x128] sm:$0xff]   ;;  %v18801_v46 = vld [vmem:[%s27125_s0 + $0x130] sm:$0xff]   ;;  %v18802_v47 = vld [vmem:[%s27125_s0 + $0x138] sm:$0xff]  }
  0x11   :  { %v18803_v48 = vld [vmem:[%s27125_s0 + $0x140] sm:$0xff]   ;;  %v18804_v49 = vld [vmem:[%s27125_s0 + $0x148] sm:$0xff]   ;;  %v18805_v50 = vld [vmem:[%s27125_s0 + $0x150] sm:$0xff]  }
  0x12   :  { %v18806_v51 = vld [vmem:[%s27125_s0 + $0x158] sm:$0xff]   ;;  %v18807_v52 = vld [vmem:[%s27125_s0 + $0x160] sm:$0xff]   ;;  %v18808_v53 = vld [vmem:[%s27125_s0 + $0x168] sm:$0xff]  }
  0x13   :  { %17683 = vmatpush3.bf16.msra.mxu0 %v18759_v5  ;;  %v18809_v54 = vld [vmem:[%s27125_s0 + $0x170] sm:$0xff]   ;;  %v18810_v55 = vld [vmem:[%s27125_s0 + $0x178] sm:$0xff]   ;;  %v18811_v56 = vld [vmem:[%s27125_s0 + $0x180] sm:$0xff]  }
  0x14   :  { %17684 = vmatprep.subr.bf16.mxu0 %v18760_v6  ;;  %v18819_v57 = vld [vmem:[%s27126_s3 + $0x84] ss:$8 sps:$4 sm:$0xff]   ;;  %v18821_v59 = vld [vmem:[%s27126_s3 + $0x80] ss:$8 sps:$4 sm:$0xff]   ;;  %v18813_v60 = vld [vmem:[%s27125_s0 + $0x190] sm:$0xff]  }
  0x15   :  { %2435 = vmatprep.subr.bf16.mxu1 %v18819_v57  ;;  %v18812_v58 = vld [vmem:[%s27125_s0 + $0x188] sm:$0xff]   ;;  %v18824_v61 = vld [vmem:[%s27126_s3 + $0x94] ss:$8 sps:$4 sm:$0xff]   ;;  %v18826_v62 = vld [vmem:[%s27126_s3 + $0x90] ss:$8 sps:$4 sm:$0xff]  }
  0x16   :  { %2436 = vmatpush1.bf16.msra.mxu1 %v18821_v59  ;;  %v18827_v63 = vld [vmem:[%s27126_s3 + $0xa4] ss:$8 sps:$4 sm:$0xff]   ;;  %v18814_v0 = vld [vmem:[%s27125_s0 + $0x198] sm:$0xff]   ;;  %v18829_v1 = vld [vmem:[%s27126_s3 + $0xa0] ss:$8 sps:$4 sm:$0xff]  }
  0x17   :  { %17685 = vmatpush3.bf16.msra.mxu0 %v18760_v6  ;;  %2437 = vmatprep.subr.bf16.mxu1 %v18824_v61  ;;  %v18815_v2 = vld [vmem:[%s27125_s0 + $0x1a0] sm:$0xff]   ;;  %v18830_v3 = vld [vmem:[%s27126_s3 + $0xb4] ss:$8 sps:$4 sm:$0xff]   ;;  %v18832_v4 = vld [vmem:[%s27126_s3 + $0xb0] ss:$8 sps:$4 sm:$0xff]  }
  0x18   :  { %17686 = vmatprep.subr.bf16.mxu0 %v18761_v7  ;;  %v18833_v5 = vld [vmem:[%s27126_s3 + $0xc4] ss:$8 sps:$4 sm:$0xff]  }
  0x19   :  { %v18816_v6 = vld [vmem:[%s27125_s0 + $0x1a8] sm:$0xff]  }
  0x1a   :  { %2438 = vmatpush1.bf16.msra.mxu1 %v18826_v62 }
  0x1b   :  { %17687 = vmatpush3.bf16.msra.mxu0 %v18761_v7  ;;  %2439 = vmatprep.subr.bf16.mxu1 %v18827_v63  ;;  %v18835_v7 = vld [vmem:[%s27126_s3 + $0xc0] ss:$8 sps:$4 sm:$0xff]  }
  0x1c   :  { %17688 = vmatprep.subr.bf16.mxu0 %v18762_v8 }
  0x1e   :  { %2440 = vmatpush1.bf16.msra.mxu1 %v18829_v1 }
  0x1f   :  { %17689 = vmatpush3.bf16.msra.mxu0 %v18762_v8  ;;  %2441 = vmatprep.subr.bf16.mxu1 %v18830_v3  ;;  %v18817_v8 = vld [vmem:[%s27125_s0 + $0x1b0] sm:$0xff]  }
  0x22   :  { %17691 = vmatmul.mubr.bf16.vlgmr.msra.gmra.mrb[0].mxu0 %v18764_v9  ;;  %2442 = vmatpush1.bf16.msra.mxu1 %v18832_v4  ;;  %v18838_v9 = vld [vmem:[%s27126_s3 + $0xd4] ss:$8 sps:$4 sm:$0xff]  }
  0x23   :  { %17694 = vmatprep.mubr.bf16.mxu0 %v18765_v10  ;;  %2443 = vmatprep.subr.bf16.mxu1 %v18833_v5  ;;  %v18840_v10 = vld [vmem:[%s27126_s3 + $0xd0] ss:$8 sps:$4 sm:$0xff]  }
  0x24   :  { %v18853_v4 = vld [vmem:[%s27125_s0 + $0x1f8] sm:$0xff]  }
  0x26   :  { %2444 = vmatpush1.bf16.msra.mxu1 %v18835_v7 }
  0x27   :  { %2445 = vmatprep.subr.bf16.mxu1 %v18838_v9 }
  0x2a   :  { %17695 = vmatmul.mubr.bf16.gmra.mrb[4].mxu0 %v18766_v11  ;;  %v18841_v11 = vld [vmem:[%s27126_s3 + $0xe4] ss:$8 sps:$4 sm:$0xff]   ;;  %2446 = vmatpush1.bf16.msra.mxu1 %v18840_v10 }
  0x2b   :  { %17698 = vmatprep.mubr.bf16.mxu0 %v18767_v12  ;;  %2447 = vmatprep.subr.bf16.mxu1 %v18841_v11  ;;  %v18843_v12 = vld [vmem:[%s27126_s3 + $0xe0] ss:$8 sps:$4 sm:$0xff]  }
  0x2e   :  { %2448 = vmatpush1.bf16.msra.mxu1 %v18843_v12 }
  0x32   :  { %17699 = vmatmul.mubr.bf16.gmra.mrb[8].mxu0 %v18768_v13 }
  0x33   :  { %17702 = vmatprep.mubr.bf16.mxu0 %v18769_v14  ;;  %v20953_v14 = vld [vmem:[%s27127_s2] ss:$0 sm:$0xff] }
  0x3a   :  { %17703 = vmatmul.mubr.bf16.gmra.mrb[12].mxu0 %v18770_v15 }
  0x3b   :  { %17706 = vmatprep.mubr.bf16.mxu0 %v18771_v16  ;;  %v18818_v16 = vld [vmem:[%s27125_s0 + $0x1b8] sm:$0xff]  }
  0x42   :  { %17707 = vmatmul.mubr.bf16.gmra.mrb[16].mxu0 %v18772_v17 }
  0x43   :  { %17710 = vmatprep.mubr.bf16.mxu0 %v18773_v18  ;;  %v18822_v18 = vld [vmem:[%s27125_s0 + $0x1c0] sm:$0xff]  }
  0x4a   :  { %17711 = vmatmul.mubr.bf16.gmra.mrb[20].mxu0 %v18774_v19  ;;  %v18844_v19 = vld [vmem:[%s27126_s3 + $0xf4] ss:$8 sps:$4 sm:$0xff]  }
  0x4b   :  { %17714 = vmatprep.mubr.bf16.mxu0 %v18775_v20  ;;  %2449 = vmatprep.subr.bf16.mxu1 %v18844_v19 }
  0x52   :  { %17715 = vmatmul.mubr.bf16.gmra.mrb[24].mxu0 %v18776_v21  ;;  %v18846_v21 = vld [vmem:[%s27126_s3 + $0xf0] ss:$8 sps:$4 sm:$0xff]  }
  0x53   :  { %17718 = vmatprep.mubr.bf16.mxu0 %v18777_v22  ;;  %2450 = vmatpush1.bf16.msra.mxu1 %v18846_v21 }
  0x5a   :  { %17719 = vmatmul.mubr.bf16.gmra.mrb[28].mxu0 %v18778_v23 }
  0x5b   :  { %17722 = vmatprep.mubr.bf16.mxu0 %v18779_v24 }
  0x62   :  { %17723 = vmatmul.mubr.bf16.gmra.mrb[32].mxu0 %v18780_v25 }
  0x63   :  { %17726 = vmatprep.mubr.bf16.mxu0 %v18781_v26  ;;  %v27137_v26 = vmov 0  }
  0x64   :  { %2467 = vmatprep.mubr.bf16.mxu1 %v27137_v26 }
  0x6a   :  { %17727 = vmatmul.mubr.bf16.gmra.mrb[36].mxu0 %v18782_v27  ;;  %v18849_v27 = vld [vmem:[%s27126_s3 + $0x4] ss:$8 sps:$4 sm:$0xff]  }
  0x6b   :  { %17730 = vmatprep.mubr.bf16.mxu0 %v18783_v28  ;;  %2868 = vmatprep.subr.bf16.mxu1 %v18849_v27 }
  0x72   :  { %17731 = vmatmul.mubr.bf16.gmra.mrb[40].mxu0 %v18784_v29 }
  0x73   :  { %17734 = vmatprep.mubr.bf16.mxu0 %v18785_v30 }
  0x7a   :  { %17735 = vmatmul.mubr.bf16.gmra.mrb[44].mxu0 %v18786_v31 }
  0x7b   :  { %17738 = vmatprep.mubr.bf16.mxu0 %v18787_v32  ;;  %v18823_v32 = vld [vmem:[%s27125_s0 + $0x1c8] sm:$0xff]  }
  0x82   :  { %17739 = vmatmul.mubr.bf16.gmra.mrb[48].mxu0 %v18788_v33 }
  0x83   :  { %17742 = vmatprep.mubr.bf16.mxu0 %v18789_v34  ;;  %v18836_v34 = vld [vmem:[%s27125_s0 + $0x1d0] sm:$0xff]  }
  0x8a   :  { %17743 = vmatmul.mubr.bf16.gmra.mrb[52].mxu0 %v18790_v35 }
  0x8b   :  { %17746 = vmatprep.mubr.bf16.mxu0 %v18791_v36 }
  0x92   :  { %17747 = vmatmul.mubr.bf16.gmra.mrb[56].mxu0 %v18792_v37 }
  0x93   :  { %17750 = vmatprep.mubr.bf16.mxu0 %v18793_v38 }
  0x9a   :  { %17751 = vmatmul.mubr.bf16.gmra.mrb[60].mxu0 %v18794_v39 }
  0x9b   :  { %17754 = vmatprep.mubr.bf16.mxu0 %v18795_v40 }
  0xa2   :  { %17755 = vmatmul.mubr.bf16.gmra.mrb[64].mxu0 %v18796_v41 }
  0xa3   :  { %17758 = vmatprep.mubr.bf16.mxu0 %v18797_v42 }
  0xaa   :  { %17759 = vmatmul.mubr.bf16.gmra.mrb[68].mxu0 %v18798_v43 }
  0xab   :  { %17762 = vmatprep.mubr.bf16.mxu0 %v18799_v44  ;;  %v18837_v44 = vld [vmem:[%s27125_s0 + $0x1d8] sm:$0xff]  }
  0xb2   :  { %17763 = vmatmul.mubr.bf16.gmra.mrb[72].mxu0 %v18800_v45 }
  0xb3   :  { %17766 = vmatprep.mubr.bf16.mxu0 %v18801_v46  ;;  %v18850_v46 = vld [vmem:[%s27125_s0 + $0x1e0] sm:$0xff]  }
  0xba   :  { %17767 = vmatmul.mubr.bf16.gmra.mrb[76].mxu0 %v18802_v47 }
  0xbb   :  { %17770 = vmatprep.mubr.bf16.mxu0 %v18803_v48 }
  0xc2   :  { %17771 = vmatmul.mubr.bf16.gmra.mrb[80].mxu0 %v18804_v49 }
  0xc3   :  { %17774 = vmatprep.mubr.bf16.mxu0 %v18805_v50 }
  0xca   :  { %17775 = vmatmul.mubr.bf16.gmra.mrb[84].mxu0 %v18806_v51 }
  0xcb   :  { %17778 = vmatprep.mubr.bf16.mxu0 %v18807_v52 }
  0xd2   :  { %17779 = vmatmul.mubr.bf16.gmra.mrb[88].mxu0 %v18808_v53 }
  0xd3   :  { %17782 = vmatprep.mubr.bf16.mxu0 %v18809_v54 }
  0xda   :  { %17783 = vmatmul.mubr.bf16.gmra.mrb[92].mxu0 %v18810_v55 }
  0xdb   :  { %17786 = vmatprep.mubr.bf16.mxu0 %v18811_v56  ;;  %v18851_v56 = vld [vmem:[%s27125_s0 + $0x1e8] sm:$0xff]  }
  0xe2   :  { %17787 = vmatmul.mubr.bf16.gmra.mrb[96].mxu0 %v18812_v58  ;;  %v18852_v58 = vld [vmem:[%s27125_s0 + $0x1f0] sm:$0xff]  }
  0xe3   :  { %17790 = vmatprep.mubr.bf16.mxu0 %v18813_v60 }
  0xea   :  { %17791 = vmatmul.mubr.bf16.gmra.mrb[100].mxu0 %v18814_v0 }
  0xeb   :  { %17794 = vmatprep.mubr.bf16.mxu0 %v18815_v2 }
  0xf2   :  { %17795 = vmatmul.mubr.bf16.gmra.mrb[104].mxu0 %v18816_v6 }
  0xf3   :  { %17798 = vmatprep.mubr.bf16.mxu0 %v18817_v8 }
  0xf5   :  { %v17692_v13 = vpop.f32.mrb[0].mxu0 }
  0xf6   :  { %v1171_v15 = vpop.f32.mrb[1].mxu0  ;;  %v20968_v22 = vadd.f32 %v17692_v13, %v20953_v14 }
  0xf7   :  { %v17693_v17 = vpop.f32.mrb[2].mxu0  ;;  %v20974_v24 = vadd.f32 %v20953_v14, %v1171_v15 }
  0xf8   :  { %v1174_v20 = vpop.f32.mrb[3].mxu0  ;;  %v20971_v23 = vadd.f32 %v17693_v17, %v20953_v14 }
  0xf9   :  { %v20977_v25 = vadd.f32 %v20953_v14, %v1174_v20 }
  0xfa   :  { %17799 = vmatmul.mubr.bf16.gmra.mrb[108].mxu0 %v18818_v16 }
  0xfb   :  { %17802 = vmatprep.mubr.bf16.mxu0 %v18822_v18 }
  0xfd   :  { %v17696_v30 = vpop.f32.mrb[4].mxu0 }
  0xfe   :  { %v1187_v31 = vpop.f32.mrb[5].mxu0  ;;  %v20994_v36 = vadd.f32 %v17696_v30, %v20953_v14 }
  0xff   :  { %v17697_v33 = vpop.f32.mrb[6].mxu0  ;;  %v21000_v38 = vadd.f32 %v20953_v14, %v1187_v31 }
 0x100   :  { %v1190_v35 = vpop.f32.mrb[7].mxu0  ;;  %v20997_v37 = vadd.f32 %v17697_v33, %v20953_v14 }
 0x101   :  { %v21003_v39 = vadd.f32 %v20953_v14, %v1190_v35 }
 0x102   :  { %17803 = vmatmul.mubr.bf16.gmra.mrb[112].mxu0 %v18823_v32 }
 0x103   :  { %17806 = vmatprep.mubr.bf16.mxu0 %v18836_v34 }
 0x105   :  { %v17700_v42 = vpop.f32.mrb[8].mxu0 }
 0x106   :  { %v1203_v43 = vpop.f32.mrb[9].mxu0  ;;  %v21016_v48 = vadd.f32 %v17700_v42, %v20953_v14 }
 0x107   :  { %v17701_v45 = vpop.f32.mrb[10].mxu0  ;;  %v21022_v50 = vadd.f32 %v20953_v14, %v1203_v43 }
 0x108   :  { %v1206_v47 = vpop.f32.mrb[11].mxu0  ;;  %v21019_v49 = vadd.f32 %v17701_v45, %v20953_v14 }
 0x109   :  { %v21025_v51 = vadd.f32 %v20953_v14, %v1206_v47 }
 0x10a   :  { %17807 = vmatmul.mubr.bf16.gmra.mrb[116].mxu0 %v18837_v44 }
 0x10b   :  { %17810 = vmatprep.mubr.bf16.mxu0 %v18850_v46 }
 0x10d   :  { %v17704_v54 = vpop.f32.mrb[12].mxu0 }
 0x10e   :  { %v1219_v55 = vpop.f32.mrb[13].mxu0  ;;  %v21038_v60 = vadd.f32 %v17704_v54, %v20953_v14 }
 0x10f   :  { %v17705_v57 = vpop.f32.mrb[14].mxu0  ;;  %v21044_v62 = vadd.f32 %v20953_v14, %v1219_v55 }
 0x110   :  { %v1222_v59 = vpop.f32.mrb[15].mxu0  ;;  %v21041_v61 = vadd.f32 %v17705_v57, %v20953_v14 }
 0x111   :  { %v21047_v63 = vadd.f32 %v20953_v14, %v1222_v59 }
 0x112   :  { %17811 = vmatmul.mubr.bf16.gmra.mrb[120].mxu0 %v18851_v56 }
 0x113   :  { %17814 = vmatprep.mubr.bf16.mxu0 %v18852_v58 }
 0x115   :  { %v17708_v2 = vpop.f32.mrb[16].mxu0 }
 0x116   :  { %v1235_v3 = vpop.f32.mrb[17].mxu0  ;;  %v21057_v7 = vadd.f32 %v17708_v2, %v20953_v14 }
 0x117   :  { %v17709_v5 = vpop.f32.mrb[18].mxu0  ;;  %v21063_v9 = vadd.f32 %v20953_v14, %v1235_v3 }
 0x118   :  { %v1238_v6 = vpop.f32.mrb[19].mxu0  ;;  %v21060_v8 = vadd.f32 %v17709_v5, %v20953_v14 }
 0x119   :  { %v21066_v10 = vadd.f32 %v20953_v14, %v1238_v6 }
 0x11a   :  { %17815 = vmatmul.mubr.bf16.gmra.mrb[124].mxu0 %v18853_v4 }
 0x11d   :  { %v17712_v13 = vpop.f32.mrb[20].mxu0 }
 0x11e   :  { %v1251_v15 = vpop.f32.mrb[21].mxu0  ;;  %v21073_v18 = vadd.f32 %v17712_v13, %v20953_v14 }
 0x11f   :  { %v17713_v16 = vpop.f32.mrb[22].mxu0  ;;  %v21079_v20 = vadd.f32 %v20953_v14, %v1251_v15 }
 0x120   :  { %v1254_v17 = vpop.f32.mrb[23].mxu0  ;;  %27267 = vst [vmem:[#allocation2_spill] sm:$0xff] %v21073_v18  ;;  %v21076_v19 = vadd.f32 %v17713_v16, %v20953_v14 }
 0x121   :  { %v21082_v21 = vadd.f32 %v20953_v14, %v1254_v17 }
 0x122   :  { %27268 = vst [vmem:[#allocation3_spill] sm:$0xff] %v21076_v19 }
 0x125   :  { %v17716_v31 = vpop.f32.mrb[24].mxu0 }
 0x126   :  { %v1267_v32 = vpop.f32.mrb[25].mxu0  ;;  %v21089_v35 = vadd.f32 %v17716_v31, %v20953_v14 }
 0x127   :  { %v17717_v33 = vpop.f32.mrb[26].mxu0  ;;  %v21095_v43 = vadd.f32 %v20953_v14, %v1267_v32 }
 0x128   :  { %v1270_v34 = vpop.f32.mrb[27].mxu0  ;;  %27269 = vst [vmem:[#allocation4_spill] sm:$0xff] %v21089_v35  ;;  %v21092_v42 = vadd.f32 %v17717_v33, %v20953_v14 }
 0x129   :  { %27271 = vst [vmem:[#allocation6_spill] sm:$0xff] %v21095_v43  ;;  %v21098_v44 = vadd.f32 %v20953_v14, %v1270_v34  ;;  %v18856_v34 = vld [vmem:[%s27126_s3 + $0x14] ss:$8 sps:$4 sm:$0xff]  }
 0x12a   :  { %27270 = vst [vmem:[#allocation5_spill] sm:$0xff] %v21092_v42 }
 0x12b   :  { %27272 = vst [vmem:[#allocation7_spill] sm:$0xff] %v21098_v44 }
 0x12d   :  { %v17720_v47 = vpop.f32.mrb[28].mxu0 }
 0x12e   :  { %v1283_v54 = vpop.f32.mrb[29].mxu0  ;;  %v21105_v57 = vadd.f32 %v17720_v47, %v20953_v14 }
 0x12f   :  { %v17721_v55 = vpop.f32.mrb[30].mxu0  ;;  %v21111_v59 = vadd.f32 %v20953_v14, %v1283_v54 }
 0x130   :  { %v1286_v56 = vpop.f32.mrb[31].mxu0  ;;  %27273 = vst [vmem:[#allocation8_spill] sm:$0xff] %v21105_v57  ;;  %v21108_v58 = vadd.f32 %v17721_v55, %v20953_v14 }
 0x131   :  { %27275 = vst [vmem:[#allocation10_spill] sm:$0xff] %v21111_v59  ;;  %v21114_v2 = vadd.f32 %v20953_v14, %v1286_v56 }
 0x132   :  { %27274 = vst [vmem:[#allocation9_spill] sm:$0xff] %v21108_v58 }
 0x133   :  { %27276 = vst [vmem:[#allocation11_spill] sm:$0xff] %v21114_v2 }
 0x135   :  { %v17724_v5 = vpop.f32.mrb[32].mxu0 }
 0x136   :  { %v1299_v6 = vpop.f32.mrb[33].mxu0  ;;  %v21121_v16 = vadd.f32 %v17724_v5, %v20953_v14 }
 0x137   :  { %v17725_v13 = vpop.f32.mrb[34].mxu0  ;;  %v21127_v31 = vadd.f32 %v20953_v14, %v1299_v6 }
 0x138   :  { %v1302_v15 = vpop.f32.mrb[35].mxu0  ;;  %27277 = vst [vmem:[#allocation12_spill] sm:$0xff] %v21121_v16  ;;  %v21124_v17 = vadd.f32 %v17725_v13, %v20953_v14 }
 0x139   :  { %27279 = vst [vmem:[#allocation14_spill] sm:$0xff] %v21127_v31  ;;  %v21130_v32 = vadd.f32 %v20953_v14, %v1302_v15 }
 0x13a   :  { %27278 = vst [vmem:[#allocation13_spill] sm:$0xff] %v21124_v17 }
 0x13b   :  { %27280 = vst [vmem:[#allocation15_spill] sm:$0xff] %v21130_v32 }
 0x13d   :  { %v17728_v47 = vpop.f32.mrb[36].mxu0 }
 0x13e   :  { %v1315_v54 = vpop.f32.mrb[37].mxu0  ;;  %v21137_v5 = vadd.f32 %v17728_v47, %v20953_v14 }
 0x13f   :  { %v17729_v55 = vpop.f32.mrb[38].mxu0  ;;  %v21143_v6 = vadd.f32 %v20953_v14, %v1315_v54 }
 0x140   :  { %v1318_v56 = vpop.f32.mrb[39].mxu0  ;;  %27281 = vst [vmem:[#allocation16_spill] sm:$0xff] %v21137_v5  ;;  %v21140_v13 = vadd.f32 %v17729_v55, %v20953_v14 }
 0x141   :  { %27283 = vst [vmem:[#allocation18_spill] sm:$0xff] %v21143_v6  ;;  %v21146_v15 = vadd.f32 %v20953_v14, %v1318_v56 }
 0x142   :  { %27282 = vst [vmem:[#allocation17_spill] sm:$0xff] %v21140_v13 }
 0x143   :  { %27284 = vst [vmem:[#allocation19_spill] sm:$0xff] %v21146_v15 }
 0x145   :  { %v17732_v3 = vpop.f32.mrb[40].mxu0 }
 0x146   :  { %v1331_v4 = vpop.f32.mrb[41].mxu0  ;;  %v21153_v46 = vadd.f32 %v17732_v3, %v20953_v14 }
 0x147   :  { %v17733_v45 = vpop.f32.mrb[42].mxu0  ;;  %v21159_v54 = vadd.f32 %v20953_v14, %v1331_v4 }
 0x148   :  { %v1334_v47 = vpop.f32.mrb[43].mxu0  ;;  %27285 = vst [vmem:[#allocation20_spill] sm:$0xff] %v21153_v46  ;;  %v21156_v55 = vadd.f32 %v17733_v45, %v20953_v14 }
 0x149   :  { %27287 = vst [vmem:[#allocation22_spill] sm:$0xff] %v21159_v54  ;;  %v21162_v56 = vadd.f32 %v20953_v14, %v1334_v47 }
 0x14a   :  { %27286 = vst [vmem:[#allocation21_spill] sm:$0xff] %v21156_v55 }
 0x14b   :  { %27288 = vst [vmem:[#allocation23_spill] sm:$0xff] %v21162_v56 }
 0x14d   :  { %v17736_v27 = vpop.f32.mrb[44].mxu0 }
 0x14e   :  { %v1347_v30 = vpop.f32.mrb[45].mxu0  ;;  %v21169_v12 = vadd.f32 %v17736_v27, %v20953_v14 }
 0x14f   :  { %v17737_v11 = vpop.f32.mrb[46].mxu0  ;;  %v21175_v4 = vadd.f32 %v20953_v14, %v1347_v30 }
 0x150   :  { %v1350_v3 = vpop.f32.mrb[47].mxu0  ;;  %27289 = vst [vmem:[#allocation24_spill] sm:$0xff] %v21169_v12  ;;  %v21172_v45 = vadd.f32 %v17737_v11, %v20953_v14 }
 0x151   :  { %27291 = vst [vmem:[#allocation26_spill] sm:$0xff] %v21175_v4  ;;  %v21178_v47 = vadd.f32 %v20953_v14, %v1350_v3 }
 0x152   :  { %27290 = vst [vmem:[#allocation25_spill] sm:$0xff] %v21172_v45 }
 0x153   :  { %27292 = vst [vmem:[#allocation27_spill] sm:$0xff] %v21178_v47 }
 0x155   :  { %v17740_v0 = vpop.f32.mrb[48].mxu0 }
 0x156   :  { %v1363_v1 = vpop.f32.mrb[49].mxu0  ;;  %v21185_v53 = vadd.f32 %v17740_v0, %v20953_v14 }
 0x157   :  { %v17741_v52 = vpop.f32.mrb[50].mxu0  ;;  %v21191_v30 = vadd.f32 %v20953_v14, %v1363_v1 }
 0x158   :  { %v1366_v27 = vpop.f32.mrb[51].mxu0  ;;  %27293 = vst [vmem:[#allocation28_spill] sm:$0xff] %v21185_v53  ;;  %v21188_v11 = vadd.f32 %v17741_v52, %v20953_v14 }
 0x159   :  { %27295 = vst [vmem:[#allocation30_spill] sm:$0xff] %v21191_v30  ;;  %v21194_v3 = vadd.f32 %v20953_v14, %v1366_v27 }
 0x15a   :  { %27294 = vst [vmem:[#allocation29_spill] sm:$0xff] %v21188_v11 }
 0x15b   :  { %27296 = vst [vmem:[#allocation31_spill] sm:$0xff] %v21194_v3 }
 0x15d   :  { %v17744_v40 = vpop.f32.mrb[52].mxu0 }
 0x15e   :  { %v1379_v41 = vpop.f32.mrb[53].mxu0  ;;  %v21201_v29 = vadd.f32 %v17744_v40, %v20953_v14 }
 0x15f   :  { %v17745_v28 = vpop.f32.mrb[54].mxu0  ;;  %v21207_v1 = vadd.f32 %v20953_v14, %v1379_v41 }
 0x160   :  { %v1382_v0 = vpop.f32.mrb[55].mxu0  ;;  %27297 = vst [vmem:[#allocation32_spill] sm:$0xff] %v21201_v29  ;;  %v21204_v52 = vadd.f32 %v17745_v28, %v20953_v14 }
 0x161   :  { %27299 = vst [vmem:[#allocation34_spill] sm:$0xff] %v21207_v1  ;;  %v21210_v27 = vadd.f32 %v20953_v14, %v1382_v0 }
 0x162   :  { %27298 = vst [vmem:[#allocation33_spill] sm:$0xff] %v21204_v52 }
 0x163   :  { %27300 = vst [vmem:[#allocation35_spill] sm:$0xff] %v21210_v27 }
 0x165   :  { %v17748_v26 = vpop.f32.mrb[56].mxu0 }
 0x166   :  { %v1395_v53 = vpop.f32.mrb[57].mxu0  ;;  %v21217_v30 = vadd.f32 %v17748_v26, %v20953_v14 }
 0x167   :  { %v17749_v11 = vpop.f32.mrb[58].mxu0  ;;  %v21223_v41 = vadd.f32 %v20953_v14, %v1395_v53 }
 0x168   :  { %v1398_v40 = vpop.f32.mrb[59].mxu0  ;;  %27301 = vst [vmem:[#allocation36_spill] sm:$0xff] %v21217_v30  ;;  %v21220_v28 = vadd.f32 %v17749_v11, %v20953_v14 }
 0x169   :  { %27303 = vst [vmem:[#allocation38_spill] sm:$0xff] %v21223_v41  ;;  %v21226_v0 = vadd.f32 %v20953_v14, %v1398_v40 }
 0x16a   :  { %27302 = vst [vmem:[#allocation37_spill] sm:$0xff] %v21220_v28 }
 0x16b   :  { %27304 = vst [vmem:[#allocation39_spill] sm:$0xff] %v21226_v0 }
 0x16d   :  { %v17752_v29 = vpop.f32.mrb[60].mxu0 }
 0x16e   :  { %v1411_v52 = vpop.f32.mrb[61].mxu0  ;;  %v21233_v27 = vadd.f32 %v17752_v29, %v20953_v14 }
 0x16f   :  { %v17753_v1 = vpop.f32.mrb[62].mxu0  ;;  %v21239_v53 = vadd.f32 %v20953_v14, %v1411_v52 }
 0x170   :  { %v1414_v26 = vpop.f32.mrb[63].mxu0  ;;  %27305 = vst [vmem:[#allocation40_spill] sm:$0xff] %v21233_v27  ;;  %v21236_v11 = vadd.f32 %v17753_v1, %v20953_v14 }
 0x171   :  { %27307 = vst [vmem:[#allocation42_spill] sm:$0xff] %v21239_v53  ;;  %v21242_v40 = vadd.f32 %v20953_v14, %v1414_v26  ;;  %v18847_v26 = vld [vmem:[%s27126_s3] ss:$8 sps:$4 sm:$0xff]   ;;  %v27309_v53 = vmov 0  }
 0x172   :  { %27306 = vst [vmem:[#allocation41_spill] sm:$0xff] %v21236_v11 }
 0x173   :  { %27308 = vst [vmem:[#allocation43_spill] sm:$0xff] %v21242_v40 }
 0x175   :  { %v17756_v30 = vpop.f32.mrb[64].mxu0 }
 0x176   :  { %v1427_v28 = vpop.f32.mrb[65].mxu0  ;;  %v1436_v0 = vadd.f32 %v17756_v30, %v20953_v14 }
 0x177   :  { %v17757_v41 = vpop.f32.mrb[66].mxu0  ;;  %v1428_v52 = vadd.f32 %v20953_v14, %v1427_v28 }
 0x178   :  { %v1430_v29 = vpop.f32.mrb[67].mxu0  ;;  %v1439_v1 = vadd.f32 %v17757_v41, %v20953_v14  ;;  %v18854_v41 = vld [vmem:[%s27126_s3 + $0x10] ss:$8 sps:$4 sm:$0xff]  }
 0x179   :  { %v1431_v3 = vadd.f32 %v20953_v14, %v1430_v29 }
 0x17a   :  { %v2227_v33 = vpack.c.bf16 %v1439_v1, %v1436_v0 }
 0x17b   :  { %v2226_v27 = vpack.c.bf16 %v1431_v3, %v1428_v52  ;;  %v18859_v3 = vld [vmem:[%s27126_s3 + $0x24] ss:$8 sps:$4 sm:$0xff]  }
 0x17d   :  { %2468 = vmatmul.mubr.bf16.vlgmr.msra.gmra.mrb[0].mxu1 %v2226_v27  ;;  %v17760_v11 = vpop.f32.mrb[68].mxu0 }
 0x17e   :  { %2869 = vmatpush1.bf16.msra.mxu1 %v18847_v26  ;;  %v1443_v30 = vpop.f32.mrb[69].mxu0  ;;  %2477 = vmatprep.mubr.bf16.mxu1 %v27309_v53  ;;  %v1452_v28 = vadd.f32 %v17760_v11, %v20953_v14  ;;  %v18857_v11 = vld [vmem:[%s27126_s3 + $0x20] ss:$8 sps:$4 sm:$0xff]  }
 0x17f   :  { %v17761_v29 = vpop.f32.mrb[70].mxu0  ;;  %v1444_v0 = vadd.f32 %v20953_v14, %v1443_v30  ;;  %2870 = vmatprep.subr.bf16.mxu1 %v18856_v34  ;;  %v18862_v34 = vld [vmem:[%s27126_s3 + $0x34] ss:$8 sps:$4 sm:$0xff]  }
 0x180   :  { %v1446_v27 = vpop.f32.mrb[71].mxu0  ;;  %v1455_v1 = vadd.f32 %v17761_v29, %v20953_v14 }
 0x181   :  { %v1447_v52 = vadd.f32 %v20953_v14, %v1446_v27 }
 0x182   :  { %v2229_v26 = vpack.c.bf16 %v1455_v1, %v1452_v28  ;;  %2871 = vmatpush1.bf16.msra.mxu1 %v18854_v41  ;;  %v18860_v28 = vld [vmem:[%s27126_s3 + $0x30] ss:$8 sps:$4 sm:$0xff]  }
 0x183   :  { %v2228_v40 = vpack.c.bf16 %v1447_v52, %v1444_v0  ;;  %2872 = vmatprep.subr.bf16.mxu1 %v18859_v3  ;;  %v18865_v3 = vld [vmem:[%s27126_s3 + $0x44] ss:$8 sps:$4 sm:$0xff]  }
 0x185   :  { %2478 = vmatmul.mubr.bf16.gmra.mrb[4].mxu1 %v2227_v33  ;;  %v17764_v30 = vpop.f32.mrb[72].mxu0 }
 0x186   :  { %2487 = vmatprep.mubr.bf16.mxu1 %v27309_v53  ;;  %v1459_v12 = vpop.f32.mrb[73].mxu0  ;;  %v1468_v29 = vadd.f32 %v17764_v30, %v20953_v14  ;;  %2873 = vmatpush1.bf16.msra.mxu1 %v18857_v11  ;;  %v18863_v11 = vld [vmem:[%s27126_s3 + $0x40] ss:$8 sps:$4 sm:$0xff]  }
 0x187   :  { %v17765_v41 = vpop.f32.mrb[74].mxu0  ;;  %v1460_v0 = vadd.f32 %v20953_v14, %v1459_v12  ;;  %2874 = vmatprep.subr.bf16.mxu1 %v18862_v34 }
 0x188   :  { %v1462_v33 = vpop.f32.mrb[75].mxu0  ;;  %v1471_v27 = vadd.f32 %v17765_v41, %v20953_v14 }
 0x189   :  { %v1463_v1 = vadd.f32 %v20953_v14, %v1462_v33 }
 0x18a   :  { %v2231_v52 = vpack.c.bf16 %v1471_v27, %v1468_v29  ;;  %2875 = vmatpush1.bf16.msra.mxu1 %v18860_v28 }
 0x18b   :  { %v2230_v30 = vpack.c.bf16 %v1463_v1, %v1460_v0  ;;  %2876 = vmatprep.subr.bf16.mxu1 %v18865_v3  ;;  %v18866_v1 = vld [vmem:[%s27126_s3 + $0x50] ss:$8 sps:$4 sm:$0xff]  }
 0x18d   :  { %2488 = vmatmul.mubr.bf16.gmra.mrb[8].mxu1 %v2228_v40  ;;  %v17768_v12 = vpop.f32.mrb[76].mxu0 }
 0x18e   :  { %2497 = vmatprep.mubr.bf16.mxu1 %v27309_v53  ;;  %v1475_v34 = vpop.f32.mrb[77].mxu0  ;;  %v1484_v45 = vadd.f32 %v17768_v12, %v20953_v14  ;;  %2877 = vmatpush1.bf16.msra.mxu1 %v18863_v11 }
 0x18f   :  { %v17769_v4 = vpop.f32.mrb[78].mxu0  ;;  %v1476_v41 = vadd.f32 %v20953_v14, %v1475_v34 }
 0x190   :  { %v1478_v33 = vpop.f32.mrb[79].mxu0  ;;  %v1487_v29 = vadd.f32 %v17769_v4, %v20953_v14  ;;  %v18868_v4 = vld [vmem:[%s27126_s3 + $0x54] ss:$8 sps:$4 sm:$0xff]  }
 0x191   :  { %v1479_v28 = vadd.f32 %v20953_v14, %v1478_v33  ;;  %2878 = vmatprep.subr.bf16.mxu1 %v18868_v4 }
 0x192   :  { %v2233_v27 = vpack.c.bf16 %v1487_v29, %v1484_v45  ;;  %2879 = vmatpush1.bf16.msra.mxu1 %v18866_v1 }
 0x193   :  { %v2232_v47 = vpack.c.bf16 %v1479_v28, %v1476_v41 }
 0x195   :  { %2498 = vmatmul.mubr.bf16.gmra.mrb[12].mxu1 %v2229_v26  ;;  %v17772_v0 = vpop.f32.mrb[80].mxu0 }
 0x196   :  { %2507 = vmatprep.mubr.bf16.mxu1 %v27309_v53  ;;  %v1491_v40 = vpop.f32.mrb[81].mxu0  ;;  %v21296_v3 = vadd.f32 %v17772_v0, %v20953_v14 }
 0x197   :  { %v17773_v11 = vpop.f32.mrb[82].mxu0  ;;  %v1492_v45 = vadd.f32 %v20953_v14, %v1491_v40 }
 0x198   :  { %v1494_v12 = vpop.f32.mrb[83].mxu0  ;;  %v21306_v26 = vadd.f32 %v17773_v11, %v20953_v14 }
 0x199   :  { %v1495_v34 = vadd.f32 %v20953_v14, %v1494_v12 }
 0x19b   :  { %v2234_v33 = vpack.c.bf16 %v1495_v34, %v1492_v45 }
 0x19d   :  { %2508 = vmatmul.mubr.bf16.gmra.mrb[16].mxu1 %v2230_v30  ;;  %v17776_v29 = vpop.f32.mrb[84].mxu0 }
 0x19e   :  { %2517 = vmatprep.mubr.bf16.mxu1 %v27309_v53  ;;  %v1507_v28 = vpop.f32.mrb[85].mxu0  ;;  %v21313_v0 = vadd.f32 %v17776_v29, %v20953_v14 }
 0x19f   :  { %v17777_v40 = vpop.f32.mrb[86].mxu0  ;;  %v21316_v11 = vadd.f32 %v20953_v14, %v1507_v28 }
 0x1a0   :  { %v1510_v4 = vpop.f32.mrb[87].mxu0  ;;  %v21319_v12 = vadd.f32 %v17777_v40, %v20953_v14 }
 0x1a1   :  { %v21322_v1 = vadd.f32 %v20953_v14, %v1510_v4 }
 0x1a5   :  { %2518 = vmatmul.mubr.bf16.gmra.mrb[20].mxu1 %v2231_v52  ;;  %v17780_v34 = vpop.f32.mrb[88].mxu0 }
 0x1a6   :  { %2527 = vmatprep.mubr.bf16.mxu1 %v27309_v53  ;;  %v21330_v29 = vadd.f32 %v17780_v34, %v20953_v14  ;;  %v1523_v28 = vpop.f32.mrb[89].mxu0 }
 0x1a7   :  { %v21333_v40 = vadd.f32 %v20953_v14, %v1523_v28  ;;  %v17781_v41 = vpop.f32.mrb[90].mxu0 }
 0x1a8   :  { %v21336_v4 = vadd.f32 %v17781_v41, %v20953_v14  ;;  %v1526_v46 = vpop.f32.mrb[91].mxu0 }
 0x1a9   :  { %v21339_v30 = vadd.f32 %v20953_v14, %v1526_v46 }
 0x1ad   :  { %2528 = vmatmul.mubr.bf16.gmra.mrb[24].mxu1 %v2232_v47  ;;  %v17784_v34 = vpop.f32.mrb[92].mxu0 }
 0x1ae   :  { %2537 = vmatprep.mubr.bf16.mxu1 %v27309_v53  ;;  %v21347_v28 = vadd.f32 %v17784_v34, %v20953_v14  ;;  %v1539_v55 = vpop.f32.mrb[93].mxu0 }
 0x1af   :  { %v21350_v41 = vadd.f32 %v20953_v14, %v1539_v55  ;;  %v17785_v54 = vpop.f32.mrb[94].mxu0 }
 0x1b0   :  { %v21353_v46 = vadd.f32 %v17785_v54, %v20953_v14  ;;  %v1542_v56 = vpop.f32.mrb[95].mxu0  ;;  %v18869_v54 = vld [vmem:[%s27126_s3 + $0x60] ss:$8 sps:$4 sm:$0xff]  }
 0x1b1   :  { %v21356_v52 = vadd.f32 %v20953_v14, %v1542_v56  ;;  %v18871_v56 = vld [vmem:[%s27126_s3 + $0x64] ss:$8 sps:$4 sm:$0xff]  }
 0x1b2   :  { %2880 = vmatprep.subr.bf16.mxu1 %v18871_v56 }
 0x1b3   :  { %2881 = vmatpush1.bf16.msra.mxu1 %v18869_v54 }
 0x1b5   :  { %2538 = vmatmul.mubr.bf16.gmra.mrb[28].mxu1 %v2233_v27  ;;  %v17788_v34 = vpop.f32.mrb[96].mxu0 }
 0x1b6   :  { %2547 = vmatprep.mubr.bf16.mxu1 %v27309_v53  ;;  %v21364_v55 = vadd.f32 %v17788_v34, %v20953_v14  ;;  %v1555_v5 = vpop.f32.mrb[97].mxu0 }
 0x1b7   :  { %v21373_v47 = vadd.f32 %v20953_v14, %v1555_v5  ;;  %v17789_v45 = vpop.f32.mrb[98].mxu0 }
 0x1b8   :  { %v21376_v27 = vadd.f32 %v17789_v45, %v20953_v14  ;;  %v1558_v13 = vpop.f32.mrb[99].mxu0 }
 0x1b9   :  { %v21379_v34 = vadd.f32 %v20953_v14, %v1558_v13 }
 0x1bd   :  { %2548 = vmatmul.mubr.bf16.gmra.mrb[32].mxu1 %v2234_v33  ;;  %v17792_v16 = vpop.f32.mrb[100].mxu0 }
 0x1be   :  { %2557 = vmatprep.mubr.bf16.mxu1 %v27309_v53  ;;  %v21387_v5 = vadd.f32 %v17792_v16, %v20953_v14  ;;  %v1571_v45 = vpop.f32.mrb[101].mxu0  ;;  %v27310_v16 = vpack.c.bf16 %v21306_v26, %v21296_v3 }
 0x1bf   :  { %v21390_v56 = vadd.f32 %v20953_v14, %v1571_v45  ;;  %v17793_v13 = vpop.f32.mrb[102].mxu0 }
 0x1c0   :  { %v21393_v54 = vadd.f32 %v17793_v13, %v20953_v14  ;;  %v1574_v17 = vpop.f32.mrb[103].mxu0 }
 0x1c1   :  { %v21396_v6 = vadd.f32 %v20953_v14, %v1574_v17 }
 0x1c5   :  { %2558 = vmatmul.mubr.bf16.gmra.mrb[36].mxu1 %v27310_v16  ;;  %v17796_v45 = vpop.f32.mrb[104].mxu0  ;;  %v27311_v16 = vpack.c.bf16 %v21322_v1, %v21316_v11  ;;  %v18874_v11 = vld [vmem:[%s27126_s3 + $0x74] ss:$8 sps:$4 sm:$0xff]  }
 0x1c6   :  { %2567 = vmatprep.mubr.bf16.mxu1 %v27309_v53  ;;  %v21407_v13 = vadd.f32 %v17796_v45, %v20953_v14  ;;  %v1587_v31 = vpop.f32.mrb[105].mxu0  ;;  %2882 = vmatprep.subr.bf16.mxu1 %v18874_v11 }
 0x1c7   :  { %v21410_v17 = vadd.f32 %v20953_v14, %v1587_v31  ;;  %v17797_v32 = vpop.f32.mrb[106].mxu0 }
 0x1c8   :  { %v21413_v33 = vadd.f32 %v17797_v32, %v20953_v14  ;;  %v1590_v57 = vpop.f32.mrb[107].mxu0 }
 0x1c9   :  { %v21416_v15 = vadd.f32 %v20953_v14, %v1590_v57 }
 0x1cd   :  { %2568 = vmatmul.mubr.bf16.gmra.mrb[40].mxu1 %v27311_v16  ;;  %v17800_v31 = vpop.f32.mrb[108].mxu0  ;;  %v27312_v16 = vpack.c.bf16 %v21319_v12, %v21313_v0 }
 0x1ce   :  { %2577 = vmatprep.mubr.bf16.mxu1 %v27309_v53  ;;  %v21427_v32 = vadd.f32 %v17800_v31, %v20953_v14  ;;  %v1603_v45 = vpop.f32.mrb[109].mxu0 }
 0x1cf   :  { %v21430_v57 = vadd.f32 %v20953_v14, %v1603_v45  ;;  %v17801_v58 = vpop.f32.mrb[110].mxu0 }
 0x1d0   :  { %v21433_v3 = vadd.f32 %v17801_v58, %v20953_v14  ;;  %v1606_v59 = vpop.f32.mrb[111].mxu0 }
 0x1d1   :  { %v21436_v26 = vadd.f32 %v20953_v14, %v1606_v59  ;;  %v18872_v59 = vld [vmem:[%s27126_s3 + $0x70] ss:$8 sps:$4 sm:$0xff]  }
 0x1d2   :  { %2883 = vmatpush1.bf16.msra.mxu1 %v18872_v59 }
 0x1d5   :  { %2578 = vmatmul.mubr.bf16.gmra.mrb[44].mxu1 %v27312_v16  ;;  %v17804_v31 = vpop.f32.mrb[112].mxu0 }
 0x1d6   :  { %2587 = vmatprep.mubr.bf16.mxu1 %v27309_v53  ;;  %v21447_v58 = vadd.f32 %v17804_v31, %v20953_v14  ;;  %v1619_v45 = vpop.f32.mrb[113].mxu0 }
 0x1d7   :  { %v21456_v1 = vadd.f32 %v20953_v14, %v1619_v45  ;;  %v17805_v0 = vpop.f32.mrb[114].mxu0  ;;  %v27313_v45 = vpack.c.bf16 %v21339_v30, %v21333_v40 }
 0x1d8   :  { %v21459_v12 = vadd.f32 %v17805_v0, %v20953_v14  ;;  %v1622_v16 = vpop.f32.mrb[115].mxu0 }
 0x1d9   :  { %v21462_v31 = vadd.f32 %v20953_v14, %v1622_v16 }
 0x1dd   :  { %2588 = vmatmul.mubr.bf16.gmra.mrb[48].mxu1 %v27313_v45  ;;  %v17808_v42 = vpop.f32.mrb[116].mxu0 }
 0x1de   :  { %2597 = vmatprep.mubr.bf16.mxu1 %v27309_v53  ;;  %v21473_v0 = vadd.f32 %v17808_v42, %v20953_v14  ;;  %v1635_v11 = vpop.f32.mrb[117].mxu0  ;;  %v27314_v42 = vpack.c.bf16 %v21336_v4, %v21330_v29 }
 0x1df   :  { %v21476_v16 = vadd.f32 %v20953_v14, %v1635_v11  ;;  %v17809_v59 = vpop.f32.mrb[118].mxu0 }
 0x1e0   :  { %v21479_v2 = vadd.f32 %v17809_v59, %v20953_v14  ;;  %v1638_v43 = vpop.f32.mrb[119].mxu0 }
 0x1e1   :  { %v21482_v35 = vadd.f32 %v20953_v14, %v1638_v43 }
 0x1e3   :  { %v2252_v40 = vpack.c.bf16 %v21482_v35, %v21476_v16  ;;  %v27315_v16 = vpack.c.bf16 %v21356_v52, %v21350_v41 }
 0x1e5   :  { %2598 = vmatmul.mubr.bf16.gmra.mrb[52].mxu1 %v27314_v42  ;;  %v17812_v45 = vpop.f32.mrb[120].mxu0 }
 0x1e6   :  { %2607 = vmatprep.mubr.bf16.mxu1 %v27309_v53  ;;  %v21493_v11 = vadd.f32 %v17812_v45, %v20953_v14  ;;  %v1651_v59 = vpop.f32.mrb[121].mxu0 }
 0x1e7   :  { %v21496_v43 = vadd.f32 %v20953_v14, %v1651_v59  ;;  %v17813_v44 = vpop.f32.mrb[122].mxu0 }
 0x1e8   :  { %v21499_v30 = vadd.f32 %v17813_v44, %v20953_v14  ;;  %v1654_v18 = vpop.f32.mrb[123].mxu0 }
 0x1e9   :  { %v1655_v35 = vadd.f32 %v20953_v14, %v1654_v18 }
 0x1eb   :  { %v2254_v4 = vpack.c.bf16 %v1655_v35, %v21496_v43  ;;  %v27316_v35 = vpack.c.bf16 %v21353_v46, %v21347_v28  ;;  %v27319_v28 = vpack.c.bf16 %v21396_v6, %v21390_v56  ;;  %v27320_v46 = vpack.c.bf16 %v21393_v54, %v21387_v5  ;;  %v18882_v6 = vld [vmem:[%s27125_s0 + $0x208] sm:$0xff]   ;;  %v18884_v5 = vld [vmem:[%s27125_s0 + $0x218] sm:$0xff]   ;;  %v18888_v54 = vld [vmem:[%s27125_s0 + $0x220] sm:$0xff]  }
 0x1ec   :  { %v27324_v56 = vpack.c.bf16 %v21433_v3, %v21427_v32  ;;  %v18890_v3 = vld [vmem:[%s27125_s0 + $0x230] sm:$0xff]   ;;  %v27327_v32 = vpack.c.bf16 %v21479_v2, %v21473_v0 }
 0x1ed   :  { %2608 = vmatmul.mubr.bf16.gmra.mrb[56].mxu1 %v27315_v16  ;;  %v17816_v42 = vpop.f32.mrb[124].mxu0  ;;  %v18877_v16 = vld [vmem:[%s27126_s3 + $0x104] ss:$8 sps:$4 sm:$0xff]   ;;  %v18897_v2 = vld [vmem:[%s27125_s0 + $0x250] sm:$0xff]  }
 0x1ee   :  { %2617 = vmatprep.mubr.bf16.mxu1 %v27309_v53  ;;  %v21510_v45 = vadd.f32 %v17816_v42, %v20953_v14  ;;  %v1667_v44 = vpop.f32.mrb[125].mxu0  ;;  %3318 = vmatprep.subr.bf16.mxu1 %v18877_v16  ;;  %v18880_v0 = vld [vmem:[%s27126_s3 + $0x114] ss:$8 sps:$4 sm:$0xff]   ;;  %v27330_v42 = vpack.c.bf16 %v20971_v23, %v20968_v22  ;;  %v27331_v23 = vpack.c.bf16 %v21003_v39, %v21000_v38  ;;  %v18906_v38 = vld [vmem:[%s27126_s3 + $0x150] ss:$8 sps:$4 sm:$0xff]  }
 0x1ef   :  { %v1668_v59 = vadd.f32 %v20953_v14, %v1667_v44  ;;  %v17817_v19 = vpop.f32.mrb[126].mxu0  ;;  %v18901_v44 = vld [vmem:[%s27126_s3 + $0x144] ss:$8 sps:$4 sm:$0xff]   ;;  %v18904_v22 = vld [vmem:[%s27125_s0 + $0x270] sm:$0xff]   ;;  %v27338_v16 = vpack.c.bf16 %v21060_v8, %v21057_v7 }
 0x1f0   :  { %v21514_v18 = vadd.f32 %v17817_v19, %v20953_v14  ;;  %v1670_v29 = vpop.f32.mrb[127].mxu0  ;;  %v27317_v19 = vpack.c.bf16 %v21379_v34, %v21373_v47  ;;  %v18881_v47 = vld [vmem:[%s27125_s0 + $0x200] sm:$0xff]   ;;  %v18883_v34 = vld [vmem:[%s27125_s0 + $0x210] sm:$0xff]   ;;  %v27340_v7 = vld [vmem:[#allocation3_spill] sm:$0xff] }
 0x1f1   :  { %v1671_v43 = vadd.f32 %v20953_v14, %v1670_v29  ;;  %v27318_v14 = vpack.c.bf16 %v21376_v27, %v21364_v55  ;;  %v27321_v55 = vpack.c.bf16 %v21416_v15, %v21410_v17  ;;  %17818 = vmatprep.mubr.bf16.mxu0 %v18881_v47  ;;  %v27322_v27 = vpack.c.bf16 %v21413_v33, %v21407_v13  ;;  %v18889_v13 = vld [vmem:[%s27125_s0 + $0x228] sm:$0xff]   ;;  %v18878_v29 = vld [vmem:[%s27126_s3 + $0x110] ss:$8 sps:$4 sm:$0xff]   ;;  %v18908_v39 = vld [vmem:[%s27126_s3 + $0x154] ss:$8 sps:$4 sm:$0xff]  }
 0x1f2   :  { %v2257_v52 = vpack.c.bf16 %v21514_v18, %v21510_v45  ;;  %17819 = vmatmul.mubr.bf16.gmra.mrb[128].mxu0 %v18882_v6  ;;  %v27323_v15 = vpack.c.bf16 %v21436_v26, %v21430_v57  ;;  %v27325_v33 = vpack.c.bf16 %v21462_v31, %v21456_v1  ;;  %v27326_v17 = vpack.c.bf16 %v21459_v12, %v21447_v58  ;;  %v18891_v26 = vld [vmem:[%s27125_s0 + $0x238] sm:$0xff]   ;;  %v18895_v57 = vld [vmem:[%s27125_s0 + $0x240] sm:$0xff]   ;;  %v18896_v1 = vld [vmem:[%s27125_s0 + $0x248] sm:$0xff]  }
 0x1f3   :  { %v2256_v41 = vpack.c.bf16 %v1671_v43, %v1668_v59  ;;  %17822 = vmatprep.mubr.bf16.mxu0 %v18883_v34  ;;  %v27328_v58 = vpack.c.bf16 %v21499_v30, %v21493_v11  ;;  %v18898_v12 = vld [vmem:[%s27125_s0 + $0x258] sm:$0xff]   ;;  %v18875_v31 = vld [vmem:[%s27126_s3 + $0x100] ss:$8 sps:$4 sm:$0xff]   ;;  %v27332_v43 = vpack.c.bf16 %v20997_v37, %v20994_v36  ;;  %v27333_v36 = vpack.c.bf16 %v21025_v51, %v21022_v50  ;;  %v27347_v34 = vld [vmem:[#allocation4_spill] sm:$0xff] }
 0x1f4   :  { %v18902_v30 = vld [vmem:[%s27125_s0 + $0x260] sm:$0xff]   ;;  %v18903_v11 = vld [vmem:[%s27125_s0 + $0x268] sm:$0xff]   ;;  %v18892_v45 = vld [vmem:[%s27126_s3 + $0x130] ss:$8 sps:$4 sm:$0xff]   ;;  %v27335_v50 = vpack.c.bf16 %v21047_v63, %v21044_v62 }
 0x1f5   :  { %2618 = vmatmul.mubr.bf16.gmra.mrb[60].mxu1 %v27316_v35  ;;  %v18899_v59 = vld [vmem:[%s27126_s3 + $0x140] ss:$8 sps:$4 sm:$0xff]   ;;  %v18905_v18 = vld [vmem:[%s27125_s0 + $0x278] sm:$0xff]   ;;  %v18911_v35 = vld [vmem:[%s27125_s0 + $0x290] sm:$0xff]  }
 0x1f6   :  { %2627 = vmatprep.mubr.bf16.mxu1 %v27309_v53  ;;  %v18910_v37 = vld [vmem:[%s27125_s0 + $0x288] sm:$0xff]   ;;  %v18912_v51 = vld [vmem:[%s27125_s0 + $0x298] sm:$0xff]   ;;  %v18916_v63 = vld [vmem:[%s27125_s0 + $0x2a0] sm:$0xff]  }
 0x1f7   :  { %v18915_v62 = vld [vmem:[%s27126_s3 + $0x164] ss:$8 sps:$4 sm:$0xff]  }
 0x1f8   :  { %v27341_v8 = vld [vmem:[#allocation2_spill] sm:$0xff]  ;;  %v18924_v6 = vld [vmem:[%s27125_s0 + $0x2c8] sm:$0xff]  }
 0x1f9   :  { %v27344_v47 = vld [vmem:[#allocation6_spill] sm:$0xff] }
 0x1fa   :  { %17823 = vmatmul.mubr.bf16.gmra.mrb[132].mxu0 %v18884_v5  ;;  %v18925_v5 = vld [vmem:[%s27125_s0 + $0x2d0] sm:$0xff]  }
 0x1fb   :  { %17826 = vmatprep.mubr.bf16.mxu0 %v18888_v54  ;;  %v27350_v54 = vld [vmem:[#allocation10_spill] sm:$0xff] }
 0x1fd   :  { %2628 = vmatmul.mubr.bf16.gmra.mrb[64].mxu1 %v27317_v19  ;;  %v18918_v19 = vld [vmem:[%s27125_s0 + $0x2b0] sm:$0xff]  }
 0x1fe   :  { %2637 = vmatprep.mubr.bf16.mxu1 %v27309_v53 }
 0x202   :  { %17827 = vmatmul.mubr.bf16.gmra.mrb[136].mxu0 %v18889_v13  ;;  %v18926_v13 = vld [vmem:[%s27125_s0 + $0x2d8] sm:$0xff]  }
 0x203   :  { %17830 = vmatprep.mubr.bf16.mxu0 %v18890_v3  ;;  %v21770_v3 = vld [vmem:[%s27127_s2] ss:$0 sm:$0xff] }
 0x205   :  { %2638 = vmatmul.mubr.bf16.gmra.mrb[68].mxu1 %v27318_v14  ;;  %v27342_v14 = vpack.c.bf16 %v27340_v7, %v27341_v8 }
 0x206   :  { %2647 = vmatprep.mubr.bf16.mxu1 %v27309_v53 }
 0x20a   :  { %17831 = vmatmul.mubr.bf16.gmra.mrb[140].mxu0 %v18891_v26 }
 0x20b   :  { %17834 = vmatprep.mubr.bf16.mxu0 %v18895_v57 }
 0x20d   :  { %2648 = vmatmul.mubr.bf16.gmra.mrb[72].mxu1 %v27319_v28  ;;  %v18920_v28 = vld [vmem:[%s27126_s3 + $0x170] ss:$8 sps:$4 sm:$0xff]  }
 0x20e   :  { %2657 = vmatprep.mubr.bf16.mxu1 %v27309_v53 }
 0x212   :  { %17835 = vmatmul.mubr.bf16.gmra.mrb[144].mxu0 %v18896_v1 }
 0x213   :  { %17838 = vmatprep.mubr.bf16.mxu0 %v18897_v2  ;;  %v27353_v2 = vld [vmem:[#allocation8_spill] sm:$0xff] }
 0x215   :  { %2658 = vmatmul.mubr.bf16.gmra.mrb[76].mxu1 %v27320_v46  ;;  %v27343_v46 = vld [vmem:[#allocation7_spill] sm:$0xff] }
 0x216   :  { %2667 = vmatprep.mubr.bf16.mxu1 %v27309_v53 }
 0x21a   :  { %17839 = vmatmul.mubr.bf16.gmra.mrb[148].mxu0 %v18898_v12 }
 0x21b   :  { %17842 = vmatprep.mubr.bf16.mxu0 %v18902_v30 }
 0x21d   :  { %2668 = vmatmul.mubr.bf16.gmra.mrb[80].mxu1 %v27321_v55  ;;  %v27345_v55 = vpack.c.bf16 %v27343_v46, %v27344_v47  ;;  %v18936_v46 = vld [vmem:[%s27128_s4 + $0x124] ss:$12 sps:$4 sm:$0xff]  }
 0x21e   :  { %2677 = vmatprep.mubr.bf16.mxu1 %v27309_v53  ;;  %4755 = vmatprep.subr.bf16.mxu0 %v18936_v46 }
 0x222   :  { %17843 = vmatmul.mubr.bf16.gmra.mrb[152].mxu0 %v18903_v11 }
 0x223   :  { %17846 = vmatprep.mubr.bf16.mxu0 %v18904_v22 }
 0x225   :  { %2678 = vmatmul.mubr.bf16.gmra.mrb[84].mxu1 %v27322_v27  ;;  %v27346_v27 = vld [vmem:[#allocation5_spill] sm:$0xff] }
 0x226   :  { %2687 = vmatprep.mubr.bf16.mxu1 %v27309_v53 }
 0x22a   :  { %17847 = vmatmul.mubr.bf16.gmra.mrb[156].mxu0 %v18905_v18 }
 0x22d   :  { %2688 = vmatmul.mubr.bf16.gmra.mrb[88].mxu1 %v27323_v15  ;;  %v27348_v15 = vpack.c.bf16 %v27346_v27, %v27347_v34  ;;  %v27368_v27 = vld [vmem:[#allocation22_spill] sm:$0xff] }
 0x22e   :  { %2697 = vmatprep.mubr.bf16.mxu1 %v27309_v53 }
 0x235   :  { %2698 = vmatmul.mubr.bf16.gmra.mrb[92].mxu1 %v27324_v56  ;;  %v27349_v56 = vld [vmem:[#allocation11_spill] sm:$0xff] }
 0x236   :  { %2707 = vmatprep.mubr.bf16.mxu1 %v27309_v53 }
 0x23d   :  { %2708 = vmatmul.mubr.bf16.gmra.mrb[96].mxu1 %v27325_v33  ;;  %v27351_v33 = vpack.c.bf16 %v27349_v56, %v27350_v54 }
 0x23e   :  { %2717 = vmatprep.mubr.bf16.mxu1 %v27309_v53 }
 0x245   :  { %2718 = vmatmul.mubr.bf16.gmra.mrb[100].mxu1 %v27326_v17 }
 0x246   :  { %2727 = vmatprep.mubr.bf16.mxu1 %v27309_v53 }
 0x24d   :  { %2728 = vmatmul.mubr.bf16.gmra.mrb[104].mxu1 %v2252_v40  ;;  %v27329_v40 = vpack.c.bf16 %v20977_v25, %v20974_v24  ;;  %v18885_v24 = vld [vmem:[%s27126_s3 + $0x120] ss:$8 sps:$4 sm:$0xff]   ;;  %v18894_v25 = vld [vmem:[%s27126_s3 + $0x134] ss:$8 sps:$4 sm:$0xff]  }
 0x24e   :  { %2737 = vmatprep.mubr.bf16.mxu1 %v27309_v53 }
 0x255   :  { %2738 = vmatmul.mubr.bf16.gmra.mrb[108].mxu1 %v27327_v32 }
 0x256   :  { %2747 = vmatprep.mubr.bf16.mxu1 %v27309_v53 }
 0x25d   :  { %2748 = vmatmul.mubr.bf16.gmra.mrb[112].mxu1 %v2254_v4  ;;  %v18887_v4 = vld [vmem:[%s27126_s3 + $0x124] ss:$8 sps:$4 sm:$0xff]  }
 0x25e   :  { %2757 = vmatprep.mubr.bf16.mxu1 %v27309_v53 }
 0x265   :  { %2758 = vmatmul.mubr.bf16.gmra.mrb[116].mxu1 %v27328_v58  ;;  %v27352_v58 = vld [vmem:[#allocation9_spill] sm:$0xff] }
 0x266   :  { %2767 = vmatprep.mubr.bf16.mxu1 %v27309_v53  ;;  %v27354_v12 = vpack.c.bf16 %v27352_v58, %v27353_v2 }
 0x26d   :  { %2768 = vmatmul.mubr.bf16.gmra.mrb[120].mxu1 %v2256_v41  ;;  %v27334_v41 = vpack.c.bf16 %v21019_v49, %v21016_v48  ;;  %v27336_v48 = vpack.c.bf16 %v21041_v61, %v21038_v60  ;;  %v18913_v49 = vld [vmem:[%s27126_s3 + $0x160] ss:$8 sps:$4 sm:$0xff]   ;;  %v27337_v60 = vpack.c.bf16 %v21066_v10, %v21063_v9  ;;  %v27339_v9 = vpack.c.bf16 %v21082_v21, %v21079_v20  ;;  %v18919_v10 = vld [vmem:[%s27125_s0 + $0x2b8] sm:$0xff]  }
 0x26e   :  { %2777 = vmatprep.mubr.bf16.mxu1 %v27309_v53  ;;  %v18917_v61 = vld [vmem:[%s27125_s0 + $0x2a8] sm:$0xff]   ;;  %v18922_v20 = vld [vmem:[%s27126_s3 + $0x174] ss:$8 sps:$4 sm:$0xff]   ;;  %v18923_v21 = vld [vmem:[%s27125_s0 + $0x2c0] sm:$0xff]  }
 0x275   :  { %2778 = vmatmul.mubr.bf16.gmra.mrb[124].mxu1 %v2257_v52  ;;  %v18909_v52 = vld [vmem:[%s27125_s0 + $0x280] sm:$0xff]  }
 0x276   :  { %2900 = vmatprep.mubr.bf16.mxu1 %v27309_v53  ;;  %17850 = vmatprep.mubr.bf16.mxu0 %v18909_v52 }
 0x277   :  { %17851 = vmatmul.mubr.bf16.gmra.mrb[160].mxu0 %v18910_v37 }
 0x278   :  { %17854 = vmatprep.mubr.bf16.mxu0 %v18911_v35 }
 0x27d   :  { %2901 = vmatmul.mubr.bf16.vlgmr.msra.gmra.mrb[0].mxu1 %v27329_v40  ;;  %v18929_v40 = vld [vmem:[%s27126_s3 + $0x184] ss:$8 sps:$4 sm:$0xff]  }
 0x27e   :  { %3319 = vmatpush1.bf16.msra.mxu1 %v18875_v31  ;;  %2910 = vmatprep.mubr.bf16.mxu1 %v27309_v53 }
 0x27f   :  { %3320 = vmatprep.subr.bf16.mxu1 %v18880_v0  ;;  %17855 = vmatmul.mubr.bf16.gmra.mrb[164].mxu0 %v18912_v51  ;;  %v27361_v51 = vld [vmem:[#allocation19_spill] sm:$0xff] }
 0x280   :  { %17858 = vmatprep.mubr.bf16.mxu0 %v18916_v63 }
 0x282   :  { %3321 = vmatpush1.bf16.msra.mxu1 %v18878_v29 }
 0x283   :  { %3322 = vmatprep.subr.bf16.mxu1 %v18887_v4  ;;  %v18930_v4 = vld [vmem:[%s27125_s0 + $0x2e0] sm:$0xff]  }
 0x285   :  { %2911 = vmatmul.mubr.bf16.gmra.mrb[4].mxu1 %v27330_v42 }
 0x286   :  { %2920 = vmatprep.mubr.bf16.mxu1 %v27309_v53  ;;  %3323 = vmatpush1.bf16.msra.mxu1 %v18885_v24  ;;  %v27355_v24 = vld [vmem:[#allocation15_spill] sm:$0xff] }
 0x287   :  { %3324 = vmatprep.subr.bf16.mxu1 %v18894_v25  ;;  %17859 = vmatmul.mubr.bf16.gmra.mrb[168].mxu0 %v18917_v61  ;;  %v27356_v25 = vld [vmem:[#allocation14_spill] sm:$0xff] }
 0x288   :  { %17862 = vmatprep.mubr.bf16.mxu0 %v18918_v19  ;;  %v27357_v42 = vpack.c.bf16 %v27355_v24, %v27356_v25  ;;  %v27373_v24 = vld [vmem:[#allocation27_spill] sm:$0xff]  ;;  %v27374_v25 = vld [vmem:[#allocation26_spill] sm:$0xff] }
 0x28a   :  { %3325 = vmatpush1.bf16.msra.mxu1 %v18892_v45  ;;  %v18931_v45 = vld [vmem:[%s27125_s0 + $0x2e8] sm:$0xff]  }
 0x28b   :  { %3326 = vmatprep.subr.bf16.mxu1 %v18901_v44 }
 0x28d   :  { %2921 = vmatmul.mubr.bf16.gmra.mrb[8].mxu1 %v27331_v23 }
 0x28e   :  { %2930 = vmatprep.mubr.bf16.mxu1 %v27309_v53  ;;  %3327 = vmatpush1.bf16.msra.mxu1 %v18899_v59 }
 0x28f   :  { %3328 = vmatprep.subr.bf16.mxu1 %v18908_v39  ;;  %17863 = vmatmul.mubr.bf16.gmra.mrb[172].mxu0 %v18919_v10  ;;  %v27365_v10 = vld [vmem:[#allocation16_spill] sm:$0xff] }
 0x290   :  { %17866 = vmatprep.mubr.bf16.mxu0 %v18923_v21 }
 0x292   :  { %3329 = vmatpush1.bf16.msra.mxu1 %v18906_v38  ;;  %v27359_v38 = vld [vmem:[#allocation12_spill] sm:$0xff] }
 0x293   :  { %3330 = vmatprep.subr.bf16.mxu1 %v18915_v62  ;;  %v18933_v62 = vld [vmem:[%s27125_s0 + $0x2f8] sm:$0xff]  }
 0x295   :  { %2931 = vmatmul.mubr.bf16.gmra.mrb[12].mxu1 %v27332_v43  ;;  %v27358_v43 = vld [vmem:[#allocation13_spill] sm:$0xff] }
 0x296   :  { %2940 = vmatprep.mubr.bf16.mxu1 %v27309_v53  ;;  %3331 = vmatpush1.bf16.msra.mxu1 %v18913_v49  ;;  %v27360_v39 = vpack.c.bf16 %v27358_v43, %v27359_v38 }
 0x297   :  { %3332 = vmatprep.subr.bf16.mxu1 %v18922_v20  ;;  %17867 = vmatmul.mubr.bf16.gmra.mrb[176].mxu0 %v18924_v6  ;;  %v18934_v20 = vld [vmem:[%s27128_s4 + $0x120] ss:$12 sps:$4 sm:$0xff]  }
 0x298   :  { %17870 = vmatprep.mubr.bf16.mxu0 %v18925_v5  ;;  %4756 = vmatpush1.bf16.msra.mxu0 %v18934_v20  ;;  %v27367_v6 = vld [vmem:[#allocation23_spill] sm:$0xff] }
 0x299   :  { %v27369_v34 = vpack.c.bf16 %v27367_v6, %v27368_v27  ;;  %v18951_v20 = vld [vmem:[%s27128_s4 + $0x13c] ss:$12 sps:$4 sm:$0xff]  }
 0x29a   :  { %3333 = vmatpush1.bf16.msra.mxu1 %v18920_v28  ;;  %4757 = vmatprep.subr.bf16.mxu0 %v18951_v20  ;;  %v18957_v20 = vld [vmem:[%s27125_s0 + $0x340] sm:$0xff]  }
 0x29b   :  { %3896 = vmatprep.subr.bf16.mxu1 %v18929_v40 }
 0x29d   :  { %2941 = vmatmul.mubr.bf16.gmra.mrb[16].mxu1 %v27333_v36 }
 0x29e   :  { %2950 = vmatprep.mubr.bf16.mxu1 %v27309_v53 }
 0x29f   :  { %17871 = vmatmul.mubr.bf16.gmra.mrb[180].mxu0 %v18926_v13 }
 0x2a0   :  { %17874 = vmatprep.mubr.bf16.mxu0 %v18930_v4  ;;  %v18942_v4 = vld [vmem:[%s27125_s0 + $0x310] sm:$0xff]  }
 0x2a5   :  { %2951 = vmatmul.mubr.bf16.gmra.mrb[20].mxu1 %v27334_v41 }
 0x2a6   :  { %2960 = vmatprep.mubr.bf16.mxu1 %v27309_v53 }
 0x2a7   :  { %17875 = vmatmul.mubr.bf16.gmra.mrb[184].mxu0 %v18931_v45  ;;  %v18943_v45 = vld [vmem:[%s27125_s0 + $0x318] sm:$0xff]  }
 0x2ad   :  { %2961 = vmatmul.mubr.bf16.gmra.mrb[24].mxu1 %v27335_v50  ;;  %v18932_v50 = vld [vmem:[%s27125_s0 + $0x2f0] sm:$0xff]  }
 0x2ae   :  { %2970 = vmatprep.mubr.bf16.mxu1 %v27309_v53  ;;  %17878 = vmatprep.mubr.bf16.mxu0 %v18932_v50 }
 0x2af   :  { %17879 = vmatmul.mubr.bf16.gmra.mrb[188].mxu0 %v18933_v62 }
 0x2b5   :  { %2971 = vmatmul.mubr.bf16.gmra.mrb[28].mxu1 %v27336_v48  ;;  %v27362_v48 = vld [vmem:[#allocation18_spill] sm:$0xff] }
 0x2b6   :  { %2980 = vmatprep.mubr.bf16.mxu1 %v27309_v53  ;;  %v27363_v49 = vpack.c.bf16 %v27361_v51, %v27362_v48 }
 0x2bd   :  { %2981 = vmatmul.mubr.bf16.gmra.mrb[32].mxu1 %v27337_v60 }
 0x2be   :  { %2990 = vmatprep.mubr.bf16.mxu1 %v27309_v53 }
 0x2c5   :  { %2991 = vmatmul.mubr.bf16.gmra.mrb[36].mxu1 %v27338_v16  ;;  %v17820_v17 = vpop.f32.mrb[128].mxu0 }
 0x2c6   :  { %3000 = vmatprep.mubr.bf16.mxu1 %v27309_v53  ;;  %v21773_v26 = vadd.f32 %v21770_v3, %v17820_v17  ;;  %v1683_v32 = vpop.f32.mrb[129].mxu0  ;;  %v27370_v17 = vld [vmem:[#allocation21_spill] sm:$0xff] }
 0x2c7   :  { %v21776_v57 = vadd.f32 %v21770_v3, %v1683_v32  ;;  %v17821_v1 = vpop.f32.mrb[130].mxu0  ;;  %v27371_v32 = vld [vmem:[#allocation20_spill] sm:$0xff] }
 0x2c8   :  { %v21782_v31 = vadd.f32 %v21770_v3, %v17821_v1  ;;  %v1686_v0 = vpop.f32.mrb[131].mxu0  ;;  %v27372_v1 = vpack.c.bf16 %v27370_v17, %v27371_v32 }
 0x2c9   :  { %v21786_v30 = vadd.f32 %v21770_v3, %v1686_v0 }
 0x2ca   :  { %v2259_v11 = vpack.c.bf16 %v21782_v31, %v21773_v26  ;;  %v18966_v26 = vld [vmem:[%s27126_s3 + $0x1c4] ss:$8 sps:$4 sm:$0xff]  }
 0x2cb   :  { %v2258_v29 = vpack.c.bf16 %v21786_v30, %v21776_v57  ;;  %v18944_v57 = vld [vmem:[%s27126_s3 + $0x1a0] ss:$8 sps:$4 sm:$0xff]  }
 0x2cd   :  { %3001 = vmatmul.mubr.bf16.gmra.mrb[40].mxu1 %v27339_v9  ;;  %v17824_v44 = vpop.f32.mrb[132].mxu0  ;;  %v27364_v9 = vld [vmem:[#allocation17_spill] sm:$0xff] }
 0x2ce   :  { %3010 = vmatprep.mubr.bf16.mxu1 %v27309_v53  ;;  %v21806_v59 = vadd.f32 %v21770_v3, %v17824_v44  ;;  %v1699_v22 = vpop.f32.mrb[133].mxu0  ;;  %v27366_v7 = vpack.c.bf16 %v27364_v9, %v27365_v10  ;;  %v27380_v9 = vld [vmem:[#allocation30_spill] sm:$0xff] }
 0x2cf   :  { %v21809_v23 = vadd.f32 %v21770_v3, %v1699_v22  ;;  %v17825_v18 = vpop.f32.mrb[134].mxu0 }
 0x2d0   :  { %v21815_v52 = vadd.f32 %v21770_v3, %v17825_v18  ;;  %v1702_v36 = vpop.f32.mrb[135].mxu0 }
 0x2d1   :  { %v21819_v37 = vadd.f32 %v21770_v3, %v1702_v36  ;;  %v27377_v36 = vld [vmem:[#allocation24_spill] sm:$0xff] }
 0x2d2   :  { %v2261_v41 = vpack.c.bf16 %v21815_v52, %v21806_v59  ;;  %v18974_v59 = vld [vmem:[%s27126_s3 + $0x1d0] ss:$8 sps:$4 sm:$0xff]   ;;  %v18976_v52 = vld [vmem:[%s27126_s3 + $0x1d4] ss:$8 sps:$4 sm:$0xff]  }
 0x2d3   :  { %v2260_v35 = vpack.c.bf16 %v21819_v37, %v21809_v23 }
 0x2d5   :  { %3011 = vmatmul.mubr.bf16.gmra.mrb[44].mxu1 %v27342_v14  ;;  %v17828_v63 = vpop.f32.mrb[136].mxu0 }
 0x2d6   :  { %3020 = vmatprep.mubr.bf16.mxu1 %v27309_v53  ;;  %v21836_v60 = vadd.f32 %v21770_v3, %v17828_v63  ;;  %v1715_v61 = vpop.f32.mrb[137].mxu0 }
 0x2d7   :  { %v21839_v16 = vadd.f32 %v21770_v3, %v1715_v61  ;;  %v17829_v19 = vpop.f32.mrb[138].mxu0  ;;  %v18947_v61 = vld [vmem:[%s27125_s0 + $0x320] sm:$0xff]  }
 0x2d8   :  { %v21845_v8 = vadd.f32 %v21770_v3, %v17829_v19  ;;  %v1718_v14 = vpop.f32.mrb[139].mxu0  ;;  %v27379_v19 = vld [vmem:[#allocation31_spill] sm:$0xff] }
 0x2d9   :  { %v21849_v28 = vadd.f32 %v21770_v3, %v1718_v14  ;;  %v27381_v10 = vpack.c.bf16 %v27379_v19, %v27380_v9  ;;  %v18949_v14 = vld [vmem:[%s27128_s4 + $0x138] ss:$12 sps:$4 sm:$0xff]  }
 0x2da   :  { %v2263_v21 = vpack.c.bf16 %v21845_v8, %v21836_v60  ;;  %4758 = vmatpush1.bf16.msra.mxu0 %v18949_v14  ;;  %v18979_v60 = vld [vmem:[%s27125_s0 + $0x390] sm:$0xff]   ;;  %v18980_v8 = vld [vmem:[%s27125_s0 + $0x398] sm:$0xff]  }
 0x2db   :  { %v2262_v47 = vpack.c.bf16 %v21849_v28, %v21839_v16 }
 0x2dd   :  { %3021 = vmatmul.mubr.bf16.gmra.mrb[48].mxu1 %v27345_v55  ;;  %v18940_v55 = vld [vmem:[%s27125_s0 + $0x300] sm:$0xff]   ;;  %v17832_v5 = vpop.f32.mrb[140].mxu0 }
 0x2de   :  { %3030 = vmatprep.mubr.bf16.mxu1 %v27309_v53  ;;  %17882 = vmatprep.mubr.bf16.mxu0 %v18940_v55  ;;  %v21872_v56 = vadd.f32 %v21770_v3, %v17832_v5  ;;  %v1731_v54 = vpop.f32.mrb[141].mxu0  ;;  %v27383_v5 = vld [vmem:[#allocation28_spill] sm:$0xff] }
 0x2df   :  { %v17833_v13 = vpop.f32.mrb[142].mxu0 }
 0x2e0   :  { %v21881_v58 = vadd.f32 %v21770_v3, %v17833_v13  ;;  %v1734_v2 = vpop.f32.mrb[143].mxu0 }
 0x2e2   :  { %v2265_v0 = vpack.c.bf16 %v21881_v58, %v21872_v56 }
 0x2e5   :  { %3031 = vmatmul.mubr.bf16.gmra.mrb[52].mxu1 %v27348_v15  ;;  %v18941_v15 = vld [vmem:[%s27125_s0 + $0x308] sm:$0xff]   ;;  %v17836_v44 = vpop.f32.mrb[144].mxu0 }
 0x2e6   :  { %3040 = vmatprep.mubr.bf16.mxu1 %v27309_v53  ;;  %17883 = vmatmul.mubr.bf16.gmra.mrb[192].mxu0 %v18941_v15  ;;  %v21902_v22 = vadd.f32 %v21770_v3, %v17836_v44  ;;  %v1747_v18 = vpop.f32.mrb[145].mxu0  ;;  %v27382_v15 = vld [vmem:[#allocation29_spill] sm:$0xff] }
 0x2e7   :  { %17886 = vmatprep.mubr.bf16.mxu0 %v18942_v4  ;;  %v21905_v43 = vadd.f32 %v21770_v3, %v1747_v18  ;;  %v17837_v38 = vpop.f32.mrb[146].mxu0  ;;  %v18952_v4 = vld [vmem:[%s27125_s0 + $0x330] sm:$0xff]  }
 0x2e8   :  { %v21911_v51 = vadd.f32 %v21770_v3, %v17837_v38  ;;  %v1750_v48 = vpop.f32.mrb[147].mxu0 }
 0x2ea   :  { %v2267_v62 = vpack.c.bf16 %v21911_v51, %v21902_v22  ;;  %v18989_v22 = vld [vmem:[%s27125_s0 + $0x3b0] sm:$0xff]   ;;  %v18990_v51 = vld [vmem:[%s27125_s0 + $0x3b8] sm:$0xff]  }
 0x2ed   :  { %3041 = vmatmul.mubr.bf16.gmra.mrb[56].mxu1 %v27351_v33  ;;  %v21875_v33 = vadd.f32 %v21770_v3, %v1731_v54  ;;  %v17840_v46 = vpop.f32.mrb[148].mxu0  ;;  %v27384_v54 = vpack.c.bf16 %v27382_v15, %v27383_v5  ;;  %v18958_v15 = vld [vmem:[%s27125_s0 + $0x348] sm:$0xff]  }
 0x2ee   :  { %3050 = vmatprep.mubr.bf16.mxu1 %v27309_v53  ;;  %17887 = vmatmul.mubr.bf16.gmra.mrb[196].mxu0 %v18943_v45  ;;  %v21938_v55 = vadd.f32 %v21770_v3, %v17840_v46  ;;  %v1763_v6 = vpop.f32.mrb[149].mxu0  ;;  %v18953_v45 = vld [vmem:[%s27125_s0 + $0x338] sm:$0xff]   ;;  %v27391_v46 = vld [vmem:[#allocation39_spill] sm:$0xff] }
 0x2ef   :  { %17890 = vmatprep.mubr.bf16.mxu0 %v18947_v61  ;;  %v21941_v27 = vadd.f32 %v21770_v3, %v1763_v6  ;;  %v27392_v6 = vld [vmem:[#allocation38_spill] sm:$0xff] }
 0x2f5   :  { %3051 = vmatmul.mubr.bf16.gmra.mrb[60].mxu1 %v27354_v12  ;;  %v21885_v12 = vadd.f32 %v21770_v3, %v1734_v2 }
 0x2f6   :  { %3060 = vmatprep.mubr.bf16.mxu1 %v27309_v53 }
 0x2f7   :  { %v2264_v40 = vpack.c.bf16 %v21885_v12, %v21875_v33 }
 0x2fd   :  { %3061 = vmatmul.mubr.bf16.gmra.mrb[64].mxu1 %v27357_v42  ;;  %v27375_v42 = vpack.c.bf16 %v27373_v24, %v27374_v25  ;;  %v27385_v24 = vld [vmem:[#allocation35_spill] sm:$0xff]  ;;  %v27386_v25 = vld [vmem:[#allocation34_spill] sm:$0xff] }
 0x2fe   :  { %3070 = vmatprep.mubr.bf16.mxu1 %v27309_v53 }
 0x305   :  { %3071 = vmatmul.mubr.bf16.gmra.mrb[68].mxu1 %v27360_v39  ;;  %v27376_v39 = vld [vmem:[#allocation25_spill] sm:$0xff] }
 0x306   :  { %3080 = vmatprep.mubr.bf16.mxu1 %v27309_v53  ;;  %v27378_v50 = vpack.c.bf16 %v27376_v39, %v27377_v36  ;;  %v27388_v39 = vld [vmem:[#allocation33_spill] sm:$0xff]  ;;  %v27389_v36 = vld [vmem:[#allocation32_spill] sm:$0xff] }
 0x30d   :  { %3081 = vmatmul.mubr.bf16.gmra.mrb[72].mxu1 %v27363_v49  ;;  %v21915_v49 = vadd.f32 %v21770_v3, %v1750_v48 }
 0x30e   :  { %3090 = vmatprep.mubr.bf16.mxu1 %v27309_v53 }
 0x30f   :  { %v2266_v63 = vpack.c.bf16 %v21915_v49, %v21905_v43 }
 0x315   :  { %3091 = vmatmul.mubr.bf16.gmra.mrb[76].mxu1 %v27366_v7  ;;  %v18948_v7 = vld [vmem:[%s27125_s0 + $0x328] sm:$0xff]  }
 0x316   :  { %3100 = vmatprep.mubr.bf16.mxu1 %v27309_v53  ;;  %17891 = vmatmul.mubr.bf16.gmra.mrb[200].mxu0 %v18948_v7 }
 0x317   :  { %17894 = vmatprep.mubr.bf16.mxu0 %v18952_v4  ;;  %v27394_v4 = vld [vmem:[#allocation37_spill] sm:$0xff] }
 0x31d   :  { %3101 = vmatmul.mubr.bf16.gmra.mrb[80].mxu1 %v27369_v34  ;;  %v17841_v34 = vpop.f32.mrb[150].mxu0 }
 0x31e   :  { %3110 = vmatprep.mubr.bf16.mxu1 %v27309_v53  ;;  %v21947_v13 = vadd.f32 %v21770_v3, %v17841_v34  ;;  %v1766_v17 = vpop.f32.mrb[151].mxu0  ;;  %17895 = vmatmul.mubr.bf16.gmra.mrb[204].mxu0 %v18953_v45  ;;  %v27393_v34 = vpack.c.bf16 %v27391_v46, %v27392_v6  ;;  %v27397_v46 = vld [vmem:[#allocation43_spill] sm:$0xff]  ;;  %v27398_v6 = vld [vmem:[#allocation42_spill] sm:$0xff] }
 0x31f   :  { %v21951_v32 = vadd.f32 %v21770_v3, %v1766_v17  ;;  %v17844_v44 = vpop.f32.mrb[152].mxu0  ;;  %17898 = vmatprep.mubr.bf16.mxu0 %v18957_v20  ;;  %v18962_v20 = vld [vmem:[%s27125_s0 + $0x350] sm:$0xff]  }
 0x320   :  { %v21968_v18 = vadd.f32 %v21770_v3, %v17844_v44  ;;  %v1779_v38 = vpop.f32.mrb[153].mxu0 }
 0x321   :  { %v2268_v2 = vpack.c.bf16 %v21951_v32, %v21941_v27  ;;  %v21974_v48 = vadd.f32 %v21770_v3, %v1779_v38  ;;  %v17845_v61 = vpop.f32.mrb[154].mxu0 }
 0x322   :  { %v21978_v19 = vadd.f32 %v21770_v3, %v17845_v61  ;;  %v1782_v9 = vpop.f32.mrb[155].mxu0 }
 0x323   :  { %v17848_v5 = vpop.f32.mrb[156].mxu0 }
 0x324   :  { %v2271_v7 = vpack.c.bf16 %v21978_v19, %v21968_v18  ;;  %v1795_v17 = vpop.f32.mrb[157].mxu0 }
 0x325   :  { %3111 = vmatmul.mubr.bf16.gmra.mrb[84].mxu1 %v27372_v1  ;;  %v2269_v1 = vpack.c.bf16 %v21947_v13, %v21938_v55  ;;  %v17849_v45 = vpop.f32.mrb[158].mxu0 }
 0x326   :  { %3120 = vmatprep.mubr.bf16.mxu1 %v27309_v53  ;;  %17899 = vmatmul.mubr.bf16.gmra.mrb[208].mxu0 %v18958_v15  ;;  %v22008_v44 = vadd.f32 %v21770_v3, %v17849_v45  ;;  %v1798_v38 = vpop.f32.mrb[159].mxu0  ;;  %v18963_v15 = vld [vmem:[%s27125_s0 + $0x358] sm:$0xff]  }
 0x327   :  { %17902 = vmatprep.mubr.bf16.mxu0 %v18962_v20  ;;  %v27400_v45 = vld [vmem:[#allocation41_spill] sm:$0xff] }
 0x32d   :  { %3121 = vmatmul.mubr.bf16.gmra.mrb[88].mxu1 %v27375_v42  ;;  %v27387_v42 = vpack.c.bf16 %v27385_v24, %v27386_v25  ;;  %v27395_v24 = vld [vmem:[#allocation36_spill] sm:$0xff] }
 0x32e   :  { %3130 = vmatprep.mubr.bf16.mxu1 %v27309_v53  ;;  %v27396_v25 = vpack.c.bf16 %v27394_v4, %v27395_v24  ;;  %17903 = vmatmul.mubr.bf16.gmra.mrb[212].mxu0 %v18963_v15  ;;  %v18927_v15 = vld [vmem:[%s27126_s3 + $0x180] ss:$8 sps:$4 sm:$0xff]  }
 0x335   :  { %3131 = vmatmul.mubr.bf16.gmra.mrb[92].mxu1 %v27378_v50  ;;  %v27390_v50 = vpack.c.bf16 %v27388_v39, %v27389_v36  ;;  %v18959_v39 = vld [vmem:[%s27128_s4 + $0x150] ss:$12 sps:$4 sm:$0xff]   ;;  %v18961_v36 = vld [vmem:[%s27128_s4 + $0x154] ss:$12 sps:$4 sm:$0xff]  }
 0x336   :  { %3140 = vmatprep.mubr.bf16.mxu1 %v27309_v53  ;;  %4759 = vmatprep.subr.bf16.mxu0 %v18961_v36 }
 0x337   :  { %4760 = vmatpush1.bf16.msra.mxu0 %v18959_v39 }
 0x33d   :  { %3141 = vmatmul.mubr.bf16.gmra.mrb[96].mxu1 %v27381_v10  ;;  %v21981_v10 = vadd.f32 %v21770_v3, %v1782_v9 }
 0x33e   :  { %3150 = vmatprep.mubr.bf16.mxu1 %v27309_v53 }
 0x33f   :  { %v2270_v14 = vpack.c.bf16 %v21981_v10, %v21974_v48 }
 0x345   :  { %3151 = vmatmul.mubr.bf16.gmra.mrb[100].mxu1 %v27384_v54  ;;  %v21998_v54 = vadd.f32 %v21770_v3, %v17848_v5 }
 0x346   :  { %3160 = vmatprep.mubr.bf16.mxu1 %v27309_v53 }
 0x347   :  { %v2273_v61 = vpack.c.bf16 %v22008_v44, %v21998_v54  ;;  %v19001_v54 = vld [vmem:[%s27125_s0 + $0x3e0] sm:$0xff]   ;;  %v19002_v44 = vld [vmem:[%s27125_s0 + $0x3e8] sm:$0xff]  }
 0x34a   :  { %v17852_v5 = vpop.f32.mrb[160].mxu0 }
 0x34b   :  { %v1811_v4 = vpop.f32.mrb[161].mxu0 }
 0x34c   :  { %v22037_v24 = vadd.f32 %v21770_v3, %v1811_v4  ;;  %v18967_v4 = vld [vmem:[%s27125_s0 + $0x360] sm:$0xff]  }
 0x34d   :  { %3161 = vmatmul.mubr.bf16.gmra.mrb[104].mxu1 %v27387_v42  ;;  %v22004_v42 = vadd.f32 %v21770_v3, %v1795_v17  ;;  %v22034_v17 = vadd.f32 %v21770_v3, %v17852_v5  ;;  %v18939_v5 = vld [vmem:[%s27126_s3 + $0x194] ss:$8 sps:$4 sm:$0xff]   ;;  %17906 = vmatprep.mubr.bf16.mxu0 %v18967_v4 }
 0x34e   :  { %3170 = vmatprep.mubr.bf16.mxu1 %v27309_v53 }
 0x355   :  { %3171 = vmatmul.mubr.bf16.gmra.mrb[108].mxu1 %v27390_v50  ;;  %v22017_v50 = vadd.f32 %v21770_v3, %v1798_v38  ;;  %v27401_v38 = vld [vmem:[#allocation40_spill] sm:$0xff] }
 0x356   :  { %3180 = vmatprep.mubr.bf16.mxu1 %v27309_v53  ;;  %v27402_v39 = vpack.c.bf16 %v27400_v45, %v27401_v38  ;;  %v18937_v45 = vld [vmem:[%s27126_s3 + $0x190] ss:$8 sps:$4 sm:$0xff]   ;;  %v18946_v38 = vld [vmem:[%s27126_s3 + $0x1a4] ss:$8 sps:$4 sm:$0xff]  }
 0x357   :  { %v2272_v9 = vpack.c.bf16 %v22017_v50, %v22004_v42 }
 0x35d   :  { %3181 = vmatmul.mubr.bf16.gmra.mrb[112].mxu1 %v27393_v34  ;;  %v27399_v34 = vpack.c.bf16 %v27397_v46, %v27398_v6 }
 0x35e   :  { %3190 = vmatprep.mubr.bf16.mxu1 %v27309_v53 }
 0x365   :  { %3191 = vmatmul.mubr.bf16.gmra.mrb[116].mxu1 %v27396_v25  ;;  %v17853_v25 = vpop.f32.mrb[162].mxu0 }
 0x366   :  { %3200 = vmatprep.mubr.bf16.mxu1 %v27309_v53  ;;  %v22043_v36 = vadd.f32 %v21770_v3, %v17853_v25  ;;  %v1814_v46 = vpop.f32.mrb[163].mxu0  ;;  %v18968_v25 = vld [vmem:[%s27125_s0 + $0x368] sm:$0xff]  }
 0x367   :  { %v22047_v20 = vadd.f32 %v21770_v3, %v1814_v46  ;;  %17907 = vmatmul.mubr.bf16.gmra.mrb[216].mxu0 %v18968_v25  ;;  %v17856_v30 = vpop.f32.mrb[164].mxu0 }
 0x368   :  { %v2275_v6 = vpack.c.bf16 %v22043_v36, %v22034_v17  ;;  %v1827_v46 = vpop.f32.mrb[165].mxu0  ;;  %v19003_v17 = vld [vmem:[%s27125_s0 + $0x3f0] sm:$0xff]   ;;  %v19004_v36 = vld [vmem:[%s27125_s0 + $0x3f8] sm:$0xff]  }
 0x36d   :  { %3201 = vmatmul.mubr.bf16.gmra.mrb[120].mxu1 %v27399_v34  ;;  %v2274_v34 = vpack.c.bf16 %v22047_v20, %v22037_v24 }
 0x36e   :  { %3210 = vmatprep.mubr.bf16.mxu1 %v27309_v53 }
 0x375   :  { %3211 = vmatmul.mubr.bf16.gmra.mrb[124].mxu1 %v27402_v39  ;;  %v22082_v39 = vadd.f32 %v21770_v3, %v17856_v30  ;;  %v18969_v30 = vld [vmem:[%s27125_s0 + $0x370] sm:$0xff]  }
 0x376   :  { %3350 = vmatprep.mubr.bf16.mxu1 %v27309_v53  ;;  %17910 = vmatprep.mubr.bf16.mxu0 %v18969_v30 }
 0x37d   :  { %3351 = vmatmul.mubr.bf16.vlgmr.msra.gmra.mrb[0].mxu1 %v2258_v29  ;;  %v18956_v29 = vld [vmem:[%s27126_s3 + $0x1b4] ss:$8 sps:$4 sm:$0xff]  }
 0x37e   :  { %3897 = vmatpush1.bf16.msra.mxu1 %v18927_v15  ;;  %3360 = vmatprep.mubr.bf16.mxu1 %v27309_v53  ;;  %v22085_v15 = vadd.f32 %v21770_v3, %v1827_v46 }
 0x37f   :  { %3898 = vmatprep.subr.bf16.mxu1 %v18939_v5  ;;  %v17857_v5 = vpop.f32.mrb[166].mxu0 }
 0x380   :  { %v22091_v4 = vadd.f32 %v21770_v3, %v17857_v5  ;;  %v1830_v25 = vpop.f32.mrb[167].mxu0 }
 0x381   :  { %v17860_v46 = vpop.f32.mrb[168].mxu0 }
 0x382   :  { %3899 = vmatpush1.bf16.msra.mxu1 %v18937_v45  ;;  %v18954_v45 = vld [vmem:[%s27126_s3 + $0x1b0] ss:$8 sps:$4 sm:$0xff]   ;;  %v2277_v31 = vpack.c.bf16 %v22091_v4, %v22082_v39  ;;  %v22121_v5 = vadd.f32 %v21770_v3, %v17860_v46  ;;  %v18977_v46 = vld [vmem:[%s27125_s0 + $0x380] sm:$0xff]  }
 0x383   :  { %3900 = vmatprep.subr.bf16.mxu1 %v18946_v38  ;;  %v22098_v38 = vadd.f32 %v21770_v3, %v1830_v25  ;;  %v1843_v25 = vpop.f32.mrb[169].mxu0 }
 0x385   :  { %3361 = vmatmul.mubr.bf16.gmra.mrb[4].mxu1 %v2259_v11  ;;  %v2276_v11 = vpack.c.bf16 %v22098_v38, %v22085_v15 }
 0x386   :  { %3370 = vmatprep.mubr.bf16.mxu1 %v27309_v53  ;;  %3901 = vmatpush1.bf16.msra.mxu1 %v18944_v57  ;;  %v18964_v57 = vld [vmem:[%s27126_s3 + $0x1c0] ss:$8 sps:$4 sm:$0xff]  }
 0x387   :  { %3902 = vmatprep.subr.bf16.mxu1 %v18956_v29  ;;  %v18970_v29 = vld [vmem:[%s27125_s0 + $0x378] sm:$0xff]  }
 0x388   :  { %17911 = vmatmul.mubr.bf16.gmra.mrb[220].mxu0 %v18970_v29 }
 0x389   :  { %17914 = vmatprep.mubr.bf16.mxu0 %v18977_v46 }
 0x38a   :  { %3903 = vmatpush1.bf16.msra.mxu1 %v18954_v45  ;;  %v22124_v45 = vadd.f32 %v21770_v3, %v1843_v25  ;;  %v18978_v25 = vld [vmem:[%s27125_s0 + $0x388] sm:$0xff]  }
 0x38b   :  { %3904 = vmatprep.subr.bf16.mxu1 %v18966_v26  ;;  %v17861_v26 = vpop.f32.mrb[170].mxu0 }
 0x38c   :  { %v22130_v23 = vadd.f32 %v21770_v3, %v17861_v26  ;;  %v1846_v37 = vpop.f32.mrb[171].mxu0 }
 0x38d   :  { %3371 = vmatmul.mubr.bf16.gmra.mrb[8].mxu1 %v2260_v35  ;;  %v18971_v35 = vld [vmem:[%s27128_s4 + $0x168] ss:$12 sps:$4 sm:$0xff]   ;;  %v22140_v30 = vadd.f32 %v21770_v3, %v1846_v37  ;;  %v17864_v26 = vpop.f32.mrb[172].mxu0 }
 0x38e   :  { %3380 = vmatprep.mubr.bf16.mxu1 %v27309_v53  ;;  %3905 = vmatpush1.bf16.msra.mxu1 %v18964_v57  ;;  %v18973_v57 = vld [vmem:[%s27128_s4 + $0x16c] ss:$12 sps:$4 sm:$0xff]   ;;  %v22163_v37 = vadd.f32 %v21770_v3, %v17864_v26 }
 0x38f   :  { %4761 = vmatprep.subr.bf16.mxu0 %v18973_v57  ;;  %v2278_v29 = vpack.c.bf16 %v22140_v30, %v22124_v45  ;;  %3906 = vmatprep.subr.bf16.mxu1 %v18976_v52 }
 0x390   :  { %4762 = vmatpush1.bf16.msra.mxu0 %v18971_v35  ;;  %v1859_v35 = vpop.f32.mrb[173].mxu0 }
 0x391   :  { %17915 = vmatmul.mubr.bf16.gmra.mrb[224].mxu0 %v18978_v25  ;;  %v22166_v16 = vadd.f32 %v21770_v3, %v1859_v35  ;;  %v17865_v28 = vpop.f32.mrb[174].mxu0 }
 0x392   :  { %3907 = vmatpush1.bf16.msra.mxu1 %v18974_v59  ;;  %v1862_v57 = vpop.f32.mrb[175].mxu0  ;;  %17918 = vmatprep.mubr.bf16.mxu0 %v18979_v60  ;;  %v18983_v60 = vld [vmem:[%s27126_s3 + $0x1e4] ss:$8 sps:$4 sm:$0xff]  }
 0x393   :  { %v22176_v59 = vadd.f32 %v21770_v3, %v1862_v57  ;;  %v18981_v57 = vld [vmem:[%s27126_s3 + $0x1e0] ss:$8 sps:$4 sm:$0xff]   ;;  %3908 = vmatprep.subr.bf16.mxu1 %v18983_v60 }
 0x395   :  { %3381 = vmatmul.mubr.bf16.gmra.mrb[12].mxu1 %v2261_v41  ;;  %v2279_v41 = vpack.c.bf16 %v22130_v23, %v22121_v5  ;;  %v2280_v46 = vpack.c.bf16 %v22176_v59, %v22166_v16 }
 0x396   :  { %3390 = vmatprep.mubr.bf16.mxu1 %v27309_v53  ;;  %3909 = vmatpush1.bf16.msra.mxu1 %v18981_v57 }
 0x399   :  { %17919 = vmatmul.mubr.bf16.gmra.mrb[228].mxu0 %v18980_v8  ;;  %v18985_v8 = vld [vmem:[%s27128_s4 + $0x180] ss:$12 sps:$4 sm:$0xff]  }
 0x39d   :  { %3391 = vmatmul.mubr.bf16.gmra.mrb[16].mxu1 %v2262_v47  ;;  %v22172_v47 = vadd.f32 %v21770_v3, %v17865_v28 }
 0x39e   :  { %3400 = vmatprep.mubr.bf16.mxu1 %v27309_v53 }
 0x39f   :  { %v2281_v52 = vpack.c.bf16 %v22172_v47, %v22163_v37  ;;  %v19008_v37 = vld [vmem:[%s27128_s4 + $0x1c8] ss:$12 sps:$4 sm:$0xff]   ;;  %v19010_v47 = vld [vmem:[%s27128_s4 + $0x1cc] ss:$12 sps:$4 sm:$0xff]  }
 0x3a5   :  { %3401 = vmatmul.mubr.bf16.gmra.mrb[20].mxu1 %v2263_v21  ;;  %v17868_v21 = vpop.f32.mrb[176].mxu0 }
 0x3a6   :  { %3410 = vmatprep.mubr.bf16.mxu1 %v27309_v53  ;;  %v22193_v25 = vadd.f32 %v21770_v3, %v17868_v21  ;;  %v1875_v26 = vpop.f32.mrb[177].mxu0  ;;  %v18987_v21 = vld [vmem:[%s27128_s4 + $0x184] ss:$12 sps:$4 sm:$0xff]  }
 0x3a7   :  { %v22196_v33 = vadd.f32 %v21770_v3, %v1875_v26  ;;  %v17869_v12 = vpop.f32.mrb[178].mxu0  ;;  %v18988_v26 = vld [vmem:[%s27125_s0 + $0x3a8] sm:$0xff]   ;;  %4763 = vmatprep.subr.bf16.mxu0 %v18987_v21 }
 0x3a8   :  { %v1878_v35 = vpop.f32.mrb[179].mxu0  ;;  %4764 = vmatpush1.bf16.msra.mxu0 %v18985_v8 }
 0x3a9   :  { %v22206_v28 = vadd.f32 %v21770_v3, %v1878_v35  ;;  %v17872_v43 = vpop.f32.mrb[180].mxu0 }
 0x3aa   :  { %v22235_v49 = vadd.f32 %v21770_v3, %v17872_v43 }
 0x3ab   :  { %v2282_v58 = vpack.c.bf16 %v22206_v28, %v22196_v33 }
 0x3ad   :  { %3411 = vmatmul.mubr.bf16.gmra.mrb[24].mxu1 %v2264_v40  ;;  %v22202_v40 = vadd.f32 %v21770_v3, %v17869_v12 }
 0x3ae   :  { %3420 = vmatprep.mubr.bf16.mxu1 %v27309_v53 }
 0x3af   :  { %v2283_v56 = vpack.c.bf16 %v22202_v40, %v22193_v25 }
 0x3b5   :  { %3421 = vmatmul.mubr.bf16.gmra.mrb[28].mxu1 %v2265_v0  ;;  %v18984_v0 = vld [vmem:[%s27125_s0 + $0x3a0] sm:$0xff]  }
 0x3b6   :  { %3430 = vmatprep.mubr.bf16.mxu1 %v27309_v53  ;;  %17922 = vmatprep.mubr.bf16.mxu0 %v18984_v0 }
 0x3b7   :  { %17923 = vmatmul.mubr.bf16.gmra.mrb[232].mxu0 %v18988_v26 }
 0x3b8   :  { %17926 = vmatprep.mubr.bf16.mxu0 %v18989_v22  ;;  %v18993_v22 = vld [vmem:[%s27126_s3 + $0x1f4] ss:$8 sps:$4 sm:$0xff]  }
 0x3b9   :  { %3910 = vmatprep.subr.bf16.mxu1 %v18993_v22  ;;  %v18996_v22 = vld [vmem:[%s27128_s4 + $0x198] ss:$12 sps:$4 sm:$0xff]  }
 0x3bd   :  { %3431 = vmatmul.mubr.bf16.gmra.mrb[32].mxu1 %v2266_v63  ;;  %v1891_v63 = vpop.f32.mrb[181].mxu0 }
 0x3be   :  { %3440 = vmatprep.mubr.bf16.mxu1 %v27309_v53  ;;  %v22238_v12 = vadd.f32 %v21770_v3, %v1891_v63  ;;  %v17873_v35 = vpop.f32.mrb[182].mxu0 }
 0x3bf   :  { %v22244_v57 = vadd.f32 %v21770_v3, %v17873_v35  ;;  %v1894_v60 = vpop.f32.mrb[183].mxu0  ;;  %17927 = vmatmul.mubr.bf16.gmra.mrb[236].mxu0 %v18990_v51 }
 0x3c0   :  { %v22248_v0 = vadd.f32 %v21770_v3, %v1894_v60  ;;  %v18991_v60 = vld [vmem:[%s27126_s3 + $0x1f0] ss:$8 sps:$4 sm:$0xff]  }
 0x3c1   :  { %v2285_v8 = vpack.c.bf16 %v22244_v57, %v22235_v49  ;;  %3911 = vmatpush1.bf16.msra.mxu1 %v18991_v60 }
 0x3c2   :  { %v2284_v21 = vpack.c.bf16 %v22248_v0, %v22238_v12 }
 0x3c5   :  { %3441 = vmatmul.mubr.bf16.gmra.mrb[36].mxu1 %v2267_v62  ;;  %v17876_v62 = vpop.f32.mrb[184].mxu0 }
 0x3c6   :  { %3450 = vmatprep.mubr.bf16.mxu1 %v27309_v53  ;;  %v22265_v26 = vadd.f32 %v21770_v3, %v17876_v62  ;;  %v1907_v43 = vpop.f32.mrb[185].mxu0  ;;  %v22303_v62 = vld [vmem:[%s27127_s2] ss:$0 sm:$0xff] }
 0x3c7   :  { %v22268_v27 = vadd.f32 %v21770_v3, %v1907_v43  ;;  %v17877_v32 = vpop.f32.mrb[186].mxu0 }
 0x3c8   :  { %v1910_v63 = vpop.f32.mrb[187].mxu0 }
 0x3c9   :  { %v22278_v35 = vadd.f32 %v21770_v3, %v1910_v63  ;;  %v17880_v51 = vpop.f32.mrb[188].mxu0 }
 0x3ca   :  { %v22306_v48 = vadd.f32 %v22303_v62, %v17880_v51  ;;  %v1923_v10 = vpop.f32.mrb[189].mxu0 }
 0x3cb   :  { %v2286_v13 = vpack.c.bf16 %v22278_v35, %v22268_v27  ;;  %v17881_v43 = vpop.f32.mrb[190].mxu0 }
 0x3cc   :  { %v1926_v63 = vpop.f32.mrb[191].mxu0 }
 0x3cd   :  { %3451 = vmatmul.mubr.bf16.gmra.mrb[40].mxu1 %v2268_v2  ;;  %v22274_v2 = vadd.f32 %v21770_v3, %v17877_v32  ;;  %v18994_v3 = vld [vmem:[%s27125_s0 + $0x3c0] sm:$0xff]   ;;  %v22315_v32 = vadd.f32 %v22303_v62, %v17881_v43  ;;  %v22319_v60 = vadd.f32 %v22303_v62, %v1926_v63  ;;  %v17884_v51 = vpop.f32.mrb[192].mxu0 }
 0x3ce   :  { %3460 = vmatprep.mubr.bf16.mxu1 %v27309_v53  ;;  %17930 = vmatprep.mubr.bf16.mxu0 %v18994_v3  ;;  %v18998_v3 = vld [vmem:[%s27128_s4 + $0x19c] ss:$12 sps:$4 sm:$0xff]   ;;  %v1939_v43 = vpop.f32.mrb[193].mxu0 }
 0x3cf   :  { %v2287_v55 = vpack.c.bf16 %v22274_v2, %v22265_v26  ;;  %v2289_v18 = vpack.c.bf16 %v22315_v32, %v22306_v48  ;;  %4765 = vmatprep.subr.bf16.mxu0 %v18998_v3  ;;  %v22345_v42 = vadd.f32 %v22303_v62, %v1939_v43  ;;  %v17885_v50 = vpop.f32.mrb[194].mxu0 }
 0x3d0   :  { %4766 = vmatpush1.bf16.msra.mxu0 %v18996_v22  ;;  %v1942_v63 = vpop.f32.mrb[195].mxu0 }
 0x3d1   :  { %v22355_v22 = vadd.f32 %v22303_v62, %v1942_v63 }
 0x3d5   :  { %3461 = vmatmul.mubr.bf16.gmra.mrb[44].mxu1 %v2269_v1  ;;  %v18995_v1 = vld [vmem:[%s27125_s0 + $0x3c8] sm:$0xff]  }
 0x3d6   :  { %3470 = vmatprep.mubr.bf16.mxu1 %v27309_v53  ;;  %17931 = vmatmul.mubr.bf16.gmra.mrb[240].mxu0 %v18995_v1  ;;  %v19000_v1 = vld [vmem:[%s27125_s0 + $0x3d8] sm:$0xff]  }
 0x3dd   :  { %3471 = vmatmul.mubr.bf16.gmra.mrb[48].mxu1 %v2270_v14  ;;  %v22309_v14 = vadd.f32 %v22303_v62, %v1923_v10  ;;  %v22342_v10 = vadd.f32 %v22303_v62, %v17884_v51 }
 0x3de   :  { %3480 = vmatprep.mubr.bf16.mxu1 %v27309_v53 }
 0x3df   :  { %v2288_v19 = vpack.c.bf16 %v22319_v60, %v22309_v14 }
 0x3e5   :  { %3481 = vmatmul.mubr.bf16.gmra.mrb[52].mxu1 %v2271_v7  ;;  %v18999_v7 = vld [vmem:[%s27125_s0 + $0x3d0] sm:$0xff]  }
 0x3e6   :  { %3490 = vmatprep.mubr.bf16.mxu1 %v27309_v53  ;;  %17934 = vmatprep.mubr.bf16.mxu0 %v18999_v7  ;;  %v2290_v7 = vpack.c.bf16 %v22355_v22, %v22345_v42 }
 0x3e7   :  { %17935 = vmatmul.mubr.bf16.gmra.mrb[244].mxu0 %v19000_v1 }
 0x3e8   :  { %17938 = vmatprep.mubr.bf16.mxu0 %v19001_v54 }
 0x3ed   :  { %3491 = vmatmul.mubr.bf16.gmra.mrb[56].mxu1 %v2272_v9  ;;  %v22351_v9 = vadd.f32 %v22303_v62, %v17885_v50 }
 0x3ee   :  { %3500 = vmatprep.mubr.bf16.mxu1 %v27309_v53 }
 0x3ef   :  { %v2291_v3 = vpack.c.bf16 %v22351_v9, %v22342_v10  ;;  %17939 = vmatmul.mubr.bf16.gmra.mrb[248].mxu0 %v19002_v44 }
 0x3f0   :  { %17942 = vmatprep.mubr.bf16.mxu0 %v19003_v17 }
 0x3f5   :  { %3501 = vmatmul.mubr.bf16.gmra.mrb[60].mxu1 %v2273_v61  ;;  %v17888_v61 = vpop.f32.mrb[196].mxu0 }
 0x3f6   :  { %3510 = vmatprep.mubr.bf16.mxu1 %v27309_v53  ;;  %v22372_v1 = vadd.f32 %v22303_v62, %v17888_v61  ;;  %v1955_v51 = vpop.f32.mrb[197].mxu0 }
 0x3f7   :  { %v22375_v24 = vadd.f32 %v22303_v62, %v1955_v51  ;;  %v17889_v20 = vpop.f32.mrb[198].mxu0  ;;  %17943 = vmatmul.mubr.bf16.gmra.mrb[252].mxu0 %v19004_v36 }
 0x3f8   :  { %v1958_v43 = vpop.f32.mrb[199].mxu0 }
 0x3f9   :  { %v22385_v50 = vadd.f32 %v22303_v62, %v1958_v43  ;;  %v19007_v43 = vld [vmem:[%s27128_s4 + $0x1b4] ss:$12 sps:$4 sm:$0xff]  }
 0x3fa   :  { %4767 = vmatprep.subr.bf16.mxu0 %v19007_v43 }
 0x3fb   :  { %v2292_v54 = vpack.c.bf16 %v22385_v50, %v22375_v24  ;;  %v19016_v24 = vld [vmem:[%s27128_s4 + $0x1fc] ss:$12 sps:$4 sm:$0xff]  }
 0x3fd   :  { %3511 = vmatmul.mubr.bf16.gmra.mrb[64].mxu1 %v2274_v34  ;;  %v22381_v34 = vadd.f32 %v22303_v62, %v17889_v20  ;;  %v19005_v20 = vld [vmem:[%s27128_s4 + $0x1b0] ss:$12 sps:$4 sm:$0xff]  }
 0x3fe   :  { %3520 = vmatprep.mubr.bf16.mxu1 %v27309_v53  ;;  %4768 = vmatpush1.bf16.msra.mxu0 %v19005_v20 }
 0x3ff   :  { %v2293_v63 = vpack.c.bf16 %v22381_v34, %v22372_v1  ;;  %4769 = vmatprep.subr.bf16.mxu0 %v19010_v47 }
 0x402   :  { %4770 = vmatpush1.bf16.msra.mxu0 %v19008_v37 }
 0x405   :  { %3521 = vmatmul.mubr.bf16.gmra.mrb[68].mxu1 %v2275_v6  ;;  %v17892_v6 = vpop.f32.mrb[200].mxu0 }
 0x406   :  { %3530 = vmatprep.mubr.bf16.mxu1 %v27309_v53  ;;  %v22402_v44 = vadd.f32 %v22303_v62, %v17892_v6  ;;  %v1971_v61 = vpop.f32.mrb[201].mxu0 }
 0x407   :  { %v22405_v15 = vadd.f32 %v22303_v62, %v1971_v61  ;;  %v17893_v38 = vpop.f32.mrb[202].mxu0 }
 0x408   :  { %v1974_v51 = vpop.f32.mrb[203].mxu0 }
 0x409   :  { %v22421_v17 = vadd.f32 %v22303_v62, %v1974_v51 }
 0x40b   :  { %v2294_v4 = vpack.c.bf16 %v22421_v17, %v22405_v15 }
 0x40d   :  { %3531 = vmatmul.mubr.bf16.gmra.mrb[72].mxu1 %v2276_v11  ;;  %v22411_v11 = vadd.f32 %v22303_v62, %v17893_v38 }
 0x40e   :  { %3540 = vmatprep.mubr.bf16.mxu1 %v27309_v53 }
 0x40f   :  { %v2295_v39 = vpack.c.bf16 %v22411_v11, %v22402_v44 }
 0x415   :  { %3541 = vmatmul.mubr.bf16.gmra.mrb[76].mxu1 %v2277_v31  ;;  %v17896_v31 = vpop.f32.mrb[204].mxu0 }
 0x416   :  { %3550 = vmatprep.mubr.bf16.mxu1 %v27309_v53  ;;  %v22432_v36 = vadd.f32 %v22303_v62, %v17896_v31  ;;  %v1987_v6 = vpop.f32.mrb[205].mxu0 }
 0x417   :  { %v22435_v61 = vadd.f32 %v22303_v62, %v1987_v6  ;;  %v17897_v38 = vpop.f32.mrb[206].mxu0 }
 0x418   :  { %v22441_v51 = vadd.f32 %v22303_v62, %v17897_v38  ;;  %v1990_v45 = vpop.f32.mrb[207].mxu0 }
 0x419   :  { %v22445_v30 = vadd.f32 %v22303_v62, %v1990_v45  ;;  %v17900_v5 = vpop.f32.mrb[208].mxu0 }
 0x41a   :  { %v22456_v23 = vadd.f32 %v22303_v62, %v17900_v5 }
 0x41b   :  { %v2296_v20 = vpack.c.bf16 %v22445_v30, %v22435_v61 }
 0x41d   :  { %3551 = vmatmul.mubr.bf16.gmra.mrb[80].mxu1 %v2278_v29  ;;  %v2297_v29 = vpack.c.bf16 %v22441_v51, %v22432_v36 }
 0x41e   :  { %3560 = vmatprep.mubr.bf16.mxu1 %v27309_v53 }
 0x425   :  { %3561 = vmatmul.mubr.bf16.gmra.mrb[84].mxu1 %v2279_v41  ;;  %v2003_v41 = vpop.f32.mrb[209].mxu0 }
 0x426   :  { %3570 = vmatprep.mubr.bf16.mxu1 %v27309_v53  ;;  %v22459_v43 = vadd.f32 %v22303_v62, %v2003_v41  ;;  %v17901_v31 = vpop.f32.mrb[210].mxu0 }
 0x427   :  { %v22465_v6 = vadd.f32 %v22303_v62, %v17901_v31  ;;  %v2006_v16 = vpop.f32.mrb[211].mxu0 }
 0x428   :  { %v22469_v59 = vadd.f32 %v22303_v62, %v2006_v16 }
 0x42a   :  { %v2298_v38 = vpack.c.bf16 %v22469_v59, %v22459_v43 }
 0x42d   :  { %3571 = vmatmul.mubr.bf16.gmra.mrb[88].mxu1 %v2280_v46  ;;  %v2299_v46 = vpack.c.bf16 %v22465_v6, %v22456_v23 }
 0x42e   :  { %3580 = vmatprep.mubr.bf16.mxu1 %v27309_v53 }
 0x435   :  { %3581 = vmatmul.mubr.bf16.gmra.mrb[92].mxu1 %v2281_v52  ;;  %v17904_v52 = vpop.f32.mrb[212].mxu0 }
 0x436   :  { %3590 = vmatprep.mubr.bf16.mxu1 %v27309_v53  ;;  %v22486_v45 = vadd.f32 %v22303_v62, %v17904_v52  ;;  %v2019_v5 = vpop.f32.mrb[213].mxu0 }
 0x437   :  { %v22489_v33 = vadd.f32 %v22303_v62, %v2019_v5  ;;  %v17905_v28 = vpop.f32.mrb[214].mxu0 }
 0x438   :  { %v2022_v41 = vpop.f32.mrb[215].mxu0 }
 0x439   :  { %v22499_v31 = vadd.f32 %v22303_v62, %v2022_v41 }
 0x43a   :  { %v17908_v25 = vpop.f32.mrb[216].mxu0 }
 0x43b   :  { %v2300_v37 = vpack.c.bf16 %v22499_v31, %v22489_v33  ;;  %v22510_v40 = vadd.f32 %v22303_v62, %v17908_v25 }
 0x43d   :  { %3591 = vmatmul.mubr.bf16.gmra.mrb[96].mxu1 %v2282_v58  ;;  %v22495_v58 = vadd.f32 %v22303_v62, %v17905_v28 }
 0x43e   :  { %3600 = vmatprep.mubr.bf16.mxu1 %v27309_v53 }
 0x43f   :  { %v2301_v16 = vpack.c.bf16 %v22495_v58, %v22486_v45 }
 0x445   :  { %3601 = vmatmul.mubr.bf16.gmra.mrb[100].mxu1 %v2283_v56  ;;  %v2035_v56 = vpop.f32.mrb[217].mxu0 }
 0x446   :  { %3610 = vmatprep.mubr.bf16.mxu1 %v27309_v53  ;;  %v22516_v47 = vadd.f32 %v22303_v62, %v2035_v56  ;;  %v17909_v52 = vpop.f32.mrb[218].mxu0  ;;  %v19013_v56 = vld [vmem:[%s27128_s4 + $0x1e4] ss:$12 sps:$4 sm:$0xff]  }
 0x447   :  { %v22520_v12 = vadd.f32 %v22303_v62, %v17909_v52  ;;  %v2038_v0 = vpop.f32.mrb[219].mxu0  ;;  %4771 = vmatprep.subr.bf16.mxu0 %v19013_v56 }
 0x449   :  { %v2303_v5 = vpack.c.bf16 %v22520_v12, %v22510_v40 }
 0x44d   :  { %3611 = vmatmul.mubr.bf16.gmra.mrb[104].mxu1 %v2284_v21  ;;  %v22523_v21 = vadd.f32 %v22303_v62, %v2038_v0 }
 0x44e   :  { %3620 = vmatprep.mubr.bf16.mxu1 %v27309_v53 }
 0x44f   :  { %v2302_v49 = vpack.c.bf16 %v22523_v21, %v22516_v47 }
 0x455   :  { %3621 = vmatmul.mubr.bf16.gmra.mrb[108].mxu1 %v2285_v8 }
 0x456   :  { %3630 = vmatprep.mubr.bf16.mxu1 %v27309_v53 }
 0x45b   :  { %v17912_v57 = vpop.f32.mrb[220].mxu0 }
 0x45c   :  { %v22534_v8 = vadd.f32 %v22303_v62, %v17912_v57  ;;  %v2051_v28 = vpop.f32.mrb[221].mxu0 }
 0x45d   :  { %3631 = vmatmul.mubr.bf16.gmra.mrb[112].mxu1 %v2286_v13  ;;  %v22540_v41 = vadd.f32 %v22303_v62, %v2051_v28  ;;  %v17913_v25 = vpop.f32.mrb[222].mxu0  ;;  %v19011_v13 = vld [vmem:[%s27128_s4 + $0x1e0] ss:$12 sps:$4 sm:$0xff]  }
 0x45e   :  { %3640 = vmatprep.mubr.bf16.mxu1 %v27309_v53  ;;  %v22544_v27 = vadd.f32 %v22303_v62, %v17913_v25  ;;  %v2054_v35 = vpop.f32.mrb[223].mxu0  ;;  %4772 = vmatpush1.bf16.msra.mxu0 %v19011_v13 }
 0x45f   :  { %v22553_v26 = vadd.f32 %v22303_v62, %v2054_v35  ;;  %4773 = vmatprep.subr.bf16.mxu0 %v19016_v24 }
 0x460   :  { %v2305_v2 = vpack.c.bf16 %v22544_v27, %v22534_v8 }
 0x464   :  { %v17916_v52 = vpop.f32.mrb[224].mxu0 }
 0x465   :  { %3641 = vmatmul.mubr.bf16.gmra.mrb[116].mxu1 %v2287_v55  ;;  %v2304_v55 = vpack.c.bf16 %v22553_v26, %v22540_v41  ;;  %v22567_v0 = vadd.f32 %v22303_v62, %v17916_v52  ;;  %v2067_v57 = vpop.f32.mrb[225].mxu0 }
 0x466   :  { %3650 = vmatprep.mubr.bf16.mxu1 %v27309_v53  ;;  %v22571_v28 = vadd.f32 %v22303_v62, %v2067_v57  ;;  %v17917_v25 = vpop.f32.mrb[226].mxu0 }
 0x467   :  { %v22574_v14 = vadd.f32 %v22303_v62, %v17917_v25  ;;  %v2070_v60 = vpop.f32.mrb[227].mxu0 }
 0x469   :  { %v2307_v48 = vpack.c.bf16 %v22574_v14, %v22567_v0 }
 0x46d   :  { %3651 = vmatmul.mubr.bf16.gmra.mrb[120].mxu1 %v2288_v19  ;;  %v22577_v19 = vadd.f32 %v22303_v62, %v2070_v60  ;;  %v19014_v60 = vld [vmem:[%s27128_s4 + $0x1f8] ss:$12 sps:$4 sm:$0xff]  }
 0x46e   :  { %3660 = vmatprep.mubr.bf16.mxu1 %v27309_v53  ;;  %4774 = vmatpush1.bf16.msra.mxu0 %v19014_v60 }
 0x46f   :  { %v2306_v32 = vpack.c.bf16 %v22577_v19, %v22571_v28 }
 0x475   :  { %3661 = vmatmul.mubr.bf16.gmra.mrb[124].mxu1 %v2289_v18  ;;  %v17920_v18 = vpop.f32.mrb[228].mxu0 }
 0x476   :  { %3928 = vmatprep.mubr.bf16.mxu1 %v27309_v53  ;;  %v22591_v35 = vadd.f32 %v22303_v62, %v17920_v18  ;;  %v2083_v13 = vpop.f32.mrb[229].mxu0 }
 0x477   :  { %v22595_v56 = vadd.f32 %v22303_v62, %v2083_v13  ;;  %v17921_v52 = vpop.f32.mrb[230].mxu0 }
 0x478   :  { %v22598_v42 = vadd.f32 %v22303_v62, %v17921_v52  ;;  %v2086_v22 = vpop.f32.mrb[231].mxu0 }
 0x47a   :  { %v2309_v10 = vpack.c.bf16 %v22598_v42, %v22591_v35 }
 0x47d   :  { %3929 = vmatmul.mubr.bf16.vlgmr.msra.gmra.mrb[0].mxu1 %v2290_v7  ;;  %v22601_v7 = vadd.f32 %v22303_v62, %v2086_v22 }
 0x47e   :  { %3938 = vmatprep.mubr.bf16.mxu1 %v27309_v53 }
 0x47f   :  { %v2308_v9 = vpack.c.bf16 %v22601_v7, %v22595_v56 }
 0x485   :  { %3939 = vmatmul.mubr.bf16.gmra.mrb[4].mxu1 %v2291_v3 }
 0x486   :  { %3948 = vmatprep.mubr.bf16.mxu1 %v27309_v53 }
 0x48a   :  { %v17924_v3 = vpop.f32.mrb[232].mxu0 }
 0x48b   :  { %v22615_v57 = vadd.f32 %v22303_v62, %v17924_v3  ;;  %v2099_v25 = vpop.f32.mrb[233].mxu0 }
 0x48c   :  { %v22625_v50 = vadd.f32 %v22303_v62, %v2099_v25 }
 0x48d   :  { %3949 = vmatmul.mubr.bf16.gmra.mrb[8].mxu1 %v2292_v54  ;;  %v17925_v54 = vpop.f32.mrb[234].mxu0 }
 0x48e   :  { %3958 = vmatprep.mubr.bf16.mxu1 %v27309_v53  ;;  %v22628_v1 = vadd.f32 %v22303_v62, %v17925_v54  ;;  %v2102_v34 = vpop.f32.mrb[235].mxu0 }
 0x490   :  { %v2311_v18 = vpack.c.bf16 %v22628_v1, %v22615_v57 }
 0x492   :  { %v17928_v52 = vpop.f32.mrb[236].mxu0 }
 0x493   :  { %v22645_v22 = vadd.f32 %v22303_v62, %v17928_v52  ;;  %v2115_v3 = vpop.f32.mrb[237].mxu0 }
 0x494   :  { %v22649_v25 = vadd.f32 %v22303_v62, %v2115_v3  ;;  %v17929_v60 = vpop.f32.mrb[238].mxu0  ;;  %v19019_v3 = vld [vmem:[%s27128_s4 + $0x214] ss:$12 sps:$4 sm:$0xff]  }
 0x495   :  { %3959 = vmatmul.mubr.bf16.gmra.mrb[12].mxu1 %v2293_v63  ;;  %v22631_v63 = vadd.f32 %v22303_v62, %v2102_v34  ;;  %v22652_v15 = vadd.f32 %v22303_v62, %v17929_v60  ;;  %v2118_v17 = vpop.f32.mrb[239].mxu0  ;;  %4775 = vmatprep.subr.bf16.mxu0 %v19019_v3 }
 0x496   :  { %3968 = vmatprep.mubr.bf16.mxu1 %v27309_v53 }
 0x497   :  { %v2310_v13 = vpack.c.bf16 %v22631_v63, %v22625_v50  ;;  %v2313_v44 = vpack.c.bf16 %v22652_v15, %v22645_v22 }
 0x49d   :  { %3969 = vmatmul.mubr.bf16.gmra.mrb[16].mxu1 %v2294_v4  ;;  %v22655_v4 = vadd.f32 %v22303_v62, %v2118_v17 }
 0x49e   :  { %3978 = vmatprep.mubr.bf16.mxu1 %v27309_v53 }
 0x49f   :  { %v2312_v11 = vpack.c.bf16 %v22655_v4, %v22649_v25 }
 0x4a5   :  { %3979 = vmatmul.mubr.bf16.gmra.mrb[20].mxu1 %v2295_v39 }
 0x4a6   :  { %3988 = vmatprep.mubr.bf16.mxu1 %v27309_v53 }
 0x4a9   :  { %v17932_v39 = vpop.f32.mrb[240].mxu0 }
 0x4aa   :  { %v22669_v24 = vadd.f32 %v22303_v62, %v17932_v39  ;;  %v2131_v54 = vpop.f32.mrb[241].mxu0 }
 0x4ab   :  { %v22673_v34 = vadd.f32 %v22303_v62, %v2131_v54  ;;  %v17933_v52 = vpop.f32.mrb[242].mxu0 }
 0x4ac   :  { %v22676_v61 = vadd.f32 %v22303_v62, %v17933_v52  ;;  %v2134_v30 = vpop.f32.mrb[243].mxu0 }
 0x4ad   :  { %3989 = vmatmul.mubr.bf16.gmra.mrb[24].mxu1 %v2296_v20  ;;  %v22679_v20 = vadd.f32 %v22303_v62, %v2134_v30 }
 0x4ae   :  { %3998 = vmatprep.mubr.bf16.mxu1 %v27309_v53  ;;  %v2315_v36 = vpack.c.bf16 %v22676_v61, %v22669_v24 }
 0x4af   :  { %v2314_v51 = vpack.c.bf16 %v22679_v20, %v22673_v34 }
 0x4b5   :  { %3999 = vmatmul.mubr.bf16.gmra.mrb[28].mxu1 %v2297_v29  ;;  %v19017_v29 = vld [vmem:[%s27128_s4 + $0x210] ss:$12 sps:$4 sm:$0xff]  }
 0x4b6   :  { %4008 = vmatprep.mubr.bf16.mxu1 %v27309_v53  ;;  %4776 = vmatpush1.bf16.msra.mxu0 %v19017_v29 }
 0x4ba   :  { %v17936_v60 = vpop.f32.mrb[244].mxu0 }
 0x4bb   :  { %v22699_v43 = vadd.f32 %v22303_v62, %v17936_v60  ;;  %v2147_v59 = vpop.f32.mrb[245].mxu0 }
 0x4bc   :  { %v17937_v17 = vpop.f32.mrb[246].mxu0 }
 0x4bd   :  { %4009 = vmatmul.mubr.bf16.gmra.mrb[32].mxu1 %v2298_v38  ;;  %v22703_v38 = vadd.f32 %v22303_v62, %v2147_v59  ;;  %v22706_v39 = vadd.f32 %v22303_v62, %v17937_v17  ;;  %v2150_v54 = vpop.f32.mrb[247].mxu0 }
 0x4be   :  { %4018 = vmatprep.mubr.bf16.mxu1 %v27309_v53  ;;  %v2151_v52 = vadd.f32 %v22303_v62, %v2150_v54 }
 0x4bf   :  { %v2317_v23 = vpack.c.bf16 %v22706_v39, %v22699_v43 }
 0x4c0   :  { %v2316_v6 = vpack.c.bf16 %v2151_v52, %v22703_v38 }
 0x4c5   :  { %4019 = vmatmul.mubr.bf16.gmra.mrb[36].mxu1 %v2299_v46  ;;  %v17940_v46 = vpop.f32.mrb[248].mxu0 }
 0x4c6   :  { %4028 = vmatprep.mubr.bf16.mxu1 %v27309_v53  ;;  %v22721_v30 = vadd.f32 %v22303_v62, %v17940_v46  ;;  %v2163_v29 = vpop.f32.mrb[249].mxu0 }
 0x4c7   :  { %v22724_v3 = vadd.f32 %v22303_v62, %v2163_v29  ;;  %v17941_v60 = vpop.f32.mrb[250].mxu0 }
 0x4c8   :  { %v22727_v33 = vadd.f32 %v22303_v62, %v17941_v60  ;;  %v2166_v31 = vpop.f32.mrb[251].mxu0 }
 0x4ca   :  { %v2319_v45 = vpack.c.bf16 %v22727_v33, %v22721_v30 }
 0x4cd   :  { %4029 = vmatmul.mubr.bf16.gmra.mrb[40].mxu1 %v2300_v37  ;;  %v2167_v37 = vadd.f32 %v22303_v62, %v2166_v31 }
 0x4ce   :  { %4038 = vmatprep.mubr.bf16.mxu1 %v27309_v53 }
 0x4cf   :  { %v2318_v58 = vpack.c.bf16 %v2167_v37, %v22724_v3 }
 0x4d5   :  { %4039 = vmatmul.mubr.bf16.gmra.mrb[44].mxu1 %v2301_v16  ;;  %v17944_v16 = vpop.f32.mrb[252].mxu0 }
 0x4d6   :  { %4048 = vmatprep.mubr.bf16.mxu1 %v27309_v53  ;;  %v22742_v59 = vadd.f32 %v22303_v62, %v17944_v16  ;;  %v2179_v38 = vpop.f32.mrb[253].mxu0 }
 0x4d7   :  { %v22745_v17 = vadd.f32 %v22303_v62, %v2179_v38  ;;  %v17945_v54 = vpop.f32.mrb[254].mxu0 }
 0x4d8   :  { %v22748_v47 = vadd.f32 %v22303_v62, %v17945_v54  ;;  %v2182_v21 = vpop.f32.mrb[255].mxu0 }
 0x4da   :  { %v2321_v40 = vpack.c.bf16 %v22748_v47, %v22742_v59  ;;  %v19024_v47 = vld [vmem:[%s27128_s4 + $0x140] ss:$12 sps:$4 sm:$0xff]  }
 0x4dd   :  { %4049 = vmatmul.mubr.bf16.gmra.mrb[48].mxu1 %v2302_v49  ;;  %v22751_v49 = vadd.f32 %v22303_v62, %v2182_v21  ;;  %v19022_v62 = vld [vmem:[%s27128_s4 + $0x22c] ss:$12 sps:$4 sm:$0xff]  }
 0x4de   :  { %4058 = vmatprep.mubr.bf16.mxu1 %v27309_v53  ;;  %4777 = vmatprep.subr.bf16.mxu0 %v19022_v62  ;;  %v19025_v62 = vld [vmem:[%s27128_s4 + $0x158] ss:$12 sps:$4 sm:$0xff]  }
 0x4df   :  { %v2320_v12 = vpack.c.bf16 %v22751_v49, %v22745_v17  ;;  %v19023_v17 = vld [vmem:[%s27128_s4 + $0x128] ss:$12 sps:$4 sm:$0xff]  }
 0x4e5   :  { %4059 = vmatmul.mubr.bf16.gmra.mrb[52].mxu1 %v2303_v5  ;;  %v19020_v5 = vld [vmem:[%s27128_s4 + $0x228] ss:$12 sps:$4 sm:$0xff]  }
 0x4e6   :  { %4068 = vmatprep.mubr.bf16.mxu1 %v27309_v53  ;;  %4778 = vmatpush1.bf16.msra.mxu0 %v19020_v5 }
 0x4e7   :  { %4868 = vmatprep.subr.bf16.mxu0 %v27309_v53 }
 0x4ed   :  { %4069 = vmatmul.mubr.bf16.gmra.mrb[56].mxu1 %v2304_v55 }
 0x4ee   :  { %4078 = vmatprep.mubr.bf16.mxu1 %v27309_v53 }
 0x4f5   :  { %4079 = vmatmul.mubr.bf16.gmra.mrb[60].mxu1 %v2305_v2 }
 0x4f6   :  { %4088 = vmatprep.mubr.bf16.mxu1 %v27309_v53 }
 0x4fd   :  { %4089 = vmatmul.mubr.bf16.gmra.mrb[64].mxu1 %v2306_v32 }
 0x4fe   :  { %4098 = vmatprep.mubr.bf16.mxu1 %v27309_v53 }
 0x505   :  { %4099 = vmatmul.mubr.bf16.gmra.mrb[68].mxu1 %v2307_v48 }
 0x506   :  { %4108 = vmatprep.mubr.bf16.mxu1 %v27309_v53 }
 0x50d   :  { %4109 = vmatmul.mubr.bf16.gmra.mrb[72].mxu1 %v2308_v9 }
 0x50e   :  { %4118 = vmatprep.mubr.bf16.mxu1 %v27309_v53 }
 0x515   :  { %4119 = vmatmul.mubr.bf16.gmra.mrb[76].mxu1 %v2309_v10 }
 0x516   :  { %4128 = vmatprep.mubr.bf16.mxu1 %v27309_v53 }
 0x51d   :  { %4129 = vmatmul.mubr.bf16.gmra.mrb[80].mxu1 %v2310_v13 }
 0x51e   :  { %4138 = vmatprep.mubr.bf16.mxu1 %v27309_v53 }
 0x525   :  { %4139 = vmatmul.mubr.bf16.gmra.mrb[84].mxu1 %v2311_v18 }
 0x526   :  { %4148 = vmatprep.mubr.bf16.mxu1 %v27309_v53 }
 0x52d   :  { %4149 = vmatmul.mubr.bf16.gmra.mrb[88].mxu1 %v2312_v11 }
 0x52e   :  { %4158 = vmatprep.mubr.bf16.mxu1 %v27309_v53 }
 0x535   :  { %4159 = vmatmul.mubr.bf16.gmra.mrb[92].mxu1 %v2313_v44 }
 0x536   :  { %4168 = vmatprep.mubr.bf16.mxu1 %v27309_v53 }
 0x53d   :  { %4169 = vmatmul.mubr.bf16.gmra.mrb[96].mxu1 %v2314_v51 }
 0x53e   :  { %4178 = vmatprep.mubr.bf16.mxu1 %v27309_v53 }
 0x545   :  { %4179 = vmatmul.mubr.bf16.gmra.mrb[100].mxu1 %v2315_v36 }
 0x546   :  { %4188 = vmatprep.mubr.bf16.mxu1 %v27309_v53 }
 0x54d   :  { %4189 = vmatmul.mubr.bf16.gmra.mrb[104].mxu1 %v2316_v6 }
 0x54e   :  { %4198 = vmatprep.mubr.bf16.mxu1 %v27309_v53 }
 0x550   :  { %v3930_v8 = vpop.f32.mrb[0].mxu1 }
 0x551   :  { %v3932_v41 = vpop.f32.mrb[1].mxu1 }
 0x552   :  { %v3934_v27 = vpop.f32.mrb[2].mxu1 }
 0x553   :  { %v22813_v26 = vpack.c.bf16 %v3934_v27, %v3930_v8  ;;  %v3936_v2 = vpop.f32.mrb[3].mxu1 }
 0x554   :  { %v22815_v55 = vpack.c.bf16 %v3936_v2, %v3932_v41  ;;  %v19026_v41 = vld [vmem:[%s27128_s4 + $0x170] ss:$12 sps:$4 sm:$0xff]  }
 0x555   :  { %4199 = vmatmul.mubr.bf16.gmra.mrb[108].mxu1 %v2317_v23 }
 0x556   :  { %4208 = vmatprep.mubr.bf16.mxu1 %v27309_v53 }
 0x558   :  { %v3940_v0 = vpop.f32.mrb[4].mxu1 }
 0x559   :  { %v3942_v28 = vpop.f32.mrb[5].mxu1 }
 0x55a   :  { %v3944_v14 = vpop.f32.mrb[6].mxu1 }
 0x55b   :  { %v22821_v19 = vpack.c.bf16 %v3944_v14, %v3940_v0  ;;  %v3946_v48 = vpop.f32.mrb[7].mxu1 }
 0x55c   :  { %v22823_v32 = vpack.c.bf16 %v3946_v48, %v3942_v28  ;;  %v19027_v48 = vld [vmem:[%s27128_s4 + $0x188] ss:$12 sps:$4 sm:$0xff]  }
 0x55d   :  { %4209 = vmatmul.mubr.bf16.gmra.mrb[112].mxu1 %v2318_v58 }
 0x55e   :  { %4218 = vmatprep.mubr.bf16.mxu1 %v27309_v53 }
 0x560   :  { %v3950_v35 = vpop.f32.mrb[8].mxu1 }
 0x561   :  { %v3952_v56 = vpop.f32.mrb[9].mxu1 }
 0x562   :  { %v3954_v42 = vpop.f32.mrb[10].mxu1 }
 0x563   :  { %v22826_v7 = vpack.c.bf16 %v3954_v42, %v3950_v35  ;;  %v3956_v10 = vpop.f32.mrb[11].mxu1 }
 0x564   :  { %v22828_v9 = vpack.c.bf16 %v3956_v10, %v3952_v56  ;;  %v19028_v56 = vld [vmem:[%s27128_s4 + $0x1a0] ss:$12 sps:$4 sm:$0xff]  }
 0x565   :  { %4219 = vmatmul.mubr.bf16.gmra.mrb[116].mxu1 %v2319_v45 }
 0x566   :  { %4228 = vmatprep.mubr.bf16.mxu1 %v27309_v53 }
 0x568   :  { %v3960_v57 = vpop.f32.mrb[12].mxu1 }
 0x569   :  { %v3962_v50 = vpop.f32.mrb[13].mxu1 }
 0x56a   :  { %v3964_v1 = vpop.f32.mrb[14].mxu1 }
 0x56b   :  { %v22834_v63 = vpack.c.bf16 %v3964_v1, %v3960_v57  ;;  %v3966_v18 = vpop.f32.mrb[15].mxu1 }
 0x56c   :  { %v22836_v13 = vpack.c.bf16 %v3966_v18, %v3962_v50  ;;  %v19029_v18 = vld [vmem:[%s27128_s4 + $0x1b8] ss:$12 sps:$4 sm:$0xff]  }
 0x56d   :  { %4229 = vmatmul.mubr.bf16.gmra.mrb[120].mxu1 %v2320_v12 }
 0x56e   :  { %4238 = vmatprep.mubr.bf16.mxu1 %v27309_v53 }
 0x570   :  { %v3970_v22 = vpop.f32.mrb[16].mxu1 }
 0x571   :  { %v3972_v25 = vpop.f32.mrb[17].mxu1 }
 0x572   :  { %v3974_v15 = vpop.f32.mrb[18].mxu1 }
 0x573   :  { %v22839_v4 = vpack.c.bf16 %v3974_v15, %v3970_v22  ;;  %v3976_v44 = vpop.f32.mrb[19].mxu1 }
 0x574   :  { %v22841_v11 = vpack.c.bf16 %v3976_v44, %v3972_v25  ;;  %v19030_v25 = vld [vmem:[%s27128_s4 + $0x1d0] ss:$12 sps:$4 sm:$0xff]  }
 0x575   :  { %4239 = vmatmul.mubr.bf16.gmra.mrb[124].mxu1 %v2321_v40 }
 0x578   :  { %v3980_v24 = vpop.f32.mrb[20].mxu1 }
 0x579   :  { %v3982_v34 = vpop.f32.mrb[21].mxu1 }
 0x57a   :  { %v3984_v61 = vpop.f32.mrb[22].mxu1 }
 0x57b   :  { %v22846_v20 = vpack.c.bf16 %v3984_v61, %v3980_v24  ;;  %v3986_v36 = vpop.f32.mrb[23].mxu1 }
 0x57c   :  { %v22848_v51 = vpack.c.bf16 %v3986_v36, %v3982_v34  ;;  %v19031_v36 = vld [vmem:[%s27128_s4 + $0x1e8] ss:$12 sps:$4 sm:$0xff]  }
 0x57e   :  { %27403 = vst [vmem:[#allocation3_spill] sm:$0xff] %v22848_v51 }
 0x580   :  { %v3990_v43 = vpop.f32.mrb[24].mxu1 }
 0x581   :  { %v3992_v39 = vpop.f32.mrb[25].mxu1 }
 0x582   :  { %v3994_v52 = vpop.f32.mrb[26].mxu1 }
 0x583   :  { %v22850_v23 = vpack.c.bf16 %v3994_v52, %v3990_v43  ;;  %v3996_v6 = vpop.f32.mrb[27].mxu1 }
 0x584   :  { %v22852_v46 = vpack.c.bf16 %v3996_v6, %v3992_v39  ;;  %v19032_v39 = vld [vmem:[%s27128_s4 + $0x200] ss:$12 sps:$4 sm:$0xff]  }
 0x585   :  { %27404 = vst [vmem:[#allocation2_spill] sm:$0xff] %v22850_v23 }
 0x586   :  { %27405 = vst [vmem:[#allocation7_spill] sm:$0xff] %v22852_v46 }
 0x588   :  { %v4000_v30 = vpop.f32.mrb[28].mxu1 }
 0x589   :  { %v4002_v29 = vpop.f32.mrb[29].mxu1 }
 0x58a   :  { %v4004_v3 = vpop.f32.mrb[30].mxu1 }
 0x58b   :  { %v22854_v60 = vpack.c.bf16 %v4004_v3, %v4000_v30  ;;  %v4006_v33 = vpop.f32.mrb[31].mxu1 }
 0x58c   :  { %v22856_v31 = vpack.c.bf16 %v4006_v33, %v4002_v29  ;;  %v19033_v33 = vld [vmem:[%s27128_s4 + $0x218] ss:$12 sps:$4 sm:$0xff]  }
 0x58d   :  { %27406 = vst [vmem:[#allocation6_spill] sm:$0xff] %v22854_v60 }
 0x58e   :  { %27407 = vst [vmem:[#allocation5_spill] sm:$0xff] %v22856_v31 }
 0x590   :  { %v4010_v37 = vpop.f32.mrb[32].mxu1 }
 0x591   :  { %v4012_v45 = vpop.f32.mrb[33].mxu1 }
 0x592   :  { %v4014_v58 = vpop.f32.mrb[34].mxu1 }
 0x593   :  { %v22858_v16 = vpack.c.bf16 %v4014_v58, %v4010_v37  ;;  %v4016_v59 = vpop.f32.mrb[35].mxu1 }
 0x594   :  { %v22860_v38 = vpack.c.bf16 %v4016_v59, %v4012_v45  ;;  %v19034_v45 = vld [vmem:[%s27128_s4 + $0x230] ss:$12 sps:$4 sm:$0xff]  }
 0x595   :  { %v19037_v59 = vld [vmem:[%s27128_s4 + $0x4] ss:$12 sps:$4 sm:$0xff]  }
 0x596   :  { %15623 = vmatprep.mubr.msk.bf16.mxu0 %vm4730_vm0, %v22860_v38 }
 0x597   :  { %4788 = vmatmul.mubr.bf16.vlgmr.msra.gmra.mrb[0].mxu0 %v22858_v16 }
 0x598   :  { %4869 = vmatpush1.bf16.msra.mxu0 %v19023_v17  ;;  %v4020_v54 = vpop.f32.mrb[36].mxu1 }
 0x599   :  { %v4022_v21 = vpop.f32.mrb[37].mxu1  ;;  %4870 = vmatprep.subr.bf16.mxu0 %v27309_v53 }
 0x59a   :  { %v4024_v49 = vpop.f32.mrb[38].mxu1 }
 0x59b   :  { %v22872_v40 = vpack.c.bf16 %v4024_v49, %v4020_v54  ;;  %v4026_v12 = vpop.f32.mrb[39].mxu1 }
 0x59c   :  { %v22874_v5 = vpack.c.bf16 %v4026_v12, %v4022_v21  ;;  %4871 = vmatpush1.bf16.msra.mxu0 %v19024_v47 }
 0x59d   :  { %4872 = vmatprep.subr.bf16.mxu0 %v27309_v53 }
 0x59e   :  { %15624 = vmatprep.mubr.msk.bf16.mxu0 %vm4730_vm0, %v22874_v5 }
 0x59f   :  { %4798 = vmatmul.mubr.bf16.gmra.mrb[4].mxu0 %v22872_v40 }
 0x5a0   :  { %v4030_v8 = vpop.f32.mrb[40].mxu1  ;;  %4873 = vmatpush1.bf16.msra.mxu0 %v19025_v62 }
 0x5a1   :  { %v4032_v27 = vpop.f32.mrb[41].mxu1  ;;  %4874 = vmatprep.subr.bf16.mxu0 %v27309_v53 }
 0x5a2   :  { %v4034_v2 = vpop.f32.mrb[42].mxu1 }
 0x5a3   :  { %v22887_v0 = vpack.c.bf16 %v4034_v2, %v4030_v8  ;;  %v4036_v28 = vpop.f32.mrb[43].mxu1 }
 0x5a4   :  { %v22889_v14 = vpack.c.bf16 %v4036_v28, %v4032_v27  ;;  %4875 = vmatpush1.bf16.msra.mxu0 %v19026_v41 }
 0x5a5   :  { %27408 = vst [vmem:[#allocation4_spill] sm:$0xff] %v22887_v0  ;;  %4876 = vmatprep.subr.bf16.mxu0 %v27309_v53 }
 0x5a6   :  { %15625 = vmatprep.mubr.msk.bf16.mxu0 %vm4730_vm0, %v22889_v14 }
 0x5a7   :  { %4808 = vmatmul.mubr.bf16.gmra.mrb[8].mxu0 %v22887_v0 }
 0x5a8   :  { %v4040_v35 = vpop.f32.mrb[44].mxu1  ;;  %4877 = vmatpush1.bf16.msra.mxu0 %v19027_v48 }
 0x5a9   :  { %v4042_v42 = vpop.f32.mrb[45].mxu1  ;;  %4878 = vmatprep.subr.bf16.mxu0 %v27309_v53 }
 0x5aa   :  { %v4044_v10 = vpop.f32.mrb[46].mxu1 }
 0x5ab   :  { %v22902_v57 = vpack.c.bf16 %v4044_v10, %v4040_v35  ;;  %v4046_v50 = vpop.f32.mrb[47].mxu1  ;;  %v19035_v10 = vld [vmem:[%s27128_s4] ss:$12 sps:$4 sm:$0xff]  }
 0x5ac   :  { %v22904_v1 = vpack.c.bf16 %v4046_v50, %v4042_v42  ;;  %4879 = vmatpush1.bf16.msra.mxu0 %v19028_v56  ;;  %v19040_v50 = vld [vmem:[%s27128_s4 + $0x1c] ss:$12 sps:$4 sm:$0xff]  }
 0x5ad   :  { %27409 = vst [vmem:[#allocation11_spill] sm:$0xff] %v22902_v57  ;;  %4880 = vmatprep.subr.bf16.mxu0 %v27309_v53 }
 0x5ae   :  { %27410 = vst [vmem:[#allocation10_spill] sm:$0xff] %v22904_v1  ;;  %15626 = vmatprep.mubr.msk.bf16.mxu0 %vm4730_vm0, %v22904_v1 }
 0x5af   :  { %4818 = vmatmul.mubr.bf16.gmra.mrb[12].mxu0 %v22902_v57 }
 0x5b0   :  { %v4050_v22 = vpop.f32.mrb[48].mxu1  ;;  %4881 = vmatpush1.bf16.msra.mxu0 %v19029_v18 }
 0x5b1   :  { %v4052_v15 = vpop.f32.mrb[49].mxu1  ;;  %4882 = vmatprep.subr.bf16.mxu0 %v27309_v53 }
 0x5b2   :  { %v4054_v44 = vpop.f32.mrb[50].mxu1 }
 0x5b3   :  { %v22917_v24 = vpack.c.bf16 %v4054_v44, %v4050_v22  ;;  %v4056_v34 = vpop.f32.mrb[51].mxu1  ;;  %v19038_v22 = vld [vmem:[%s27128_s4 + $0x18] ss:$12 sps:$4 sm:$0xff]  }
 0x5b4   :  { %v22919_v61 = vpack.c.bf16 %v4056_v34, %v4052_v15  ;;  %4883 = vmatpush1.bf16.msra.mxu0 %v19030_v25  ;;  %v19043_v15 = vld [vmem:[%s27128_s4 + $0x34] ss:$12 sps:$4 sm:$0xff]  }
 0x5b5   :  { %27411 = vst [vmem:[#allocation9_spill] sm:$0xff] %v22917_v24  ;;  %4884 = vmatprep.subr.bf16.mxu0 %v27309_v53 }
 0x5b6   :  { %27412 = vst [vmem:[#allocation8_spill] sm:$0xff] %v22919_v61  ;;  %15627 = vmatprep.mubr.msk.bf16.mxu0 %vm4730_vm0, %v22919_v61 }
 0x5b7   :  { %4828 = vmatmul.mubr.bf16.gmra.mrb[16].mxu0 %v22917_v24 }
 0x5b8   :  { %v4060_v43 = vpop.f32.mrb[52].mxu1  ;;  %4885 = vmatpush1.bf16.msra.mxu0 %v19031_v36 }
 0x5b9   :  { %v4062_v52 = vpop.f32.mrb[53].mxu1  ;;  %4886 = vmatprep.subr.bf16.mxu0 %v27309_v53 }
 0x5ba   :  { %v4064_v6 = vpop.f32.mrb[54].mxu1 }
 0x5bb   :  { %v22932_v30 = vpack.c.bf16 %v4064_v6, %v4060_v43  ;;  %v4066_v29 = vpop.f32.mrb[55].mxu1 }
 0x5bc   :  { %v22934_v3 = vpack.c.bf16 %v4066_v29, %v4062_v52  ;;  %4887 = vmatpush1.bf16.msra.mxu0 %v19032_v39  ;;  %v19041_v39 = vld [vmem:[%s27128_s4 + $0x30] ss:$12 sps:$4 sm:$0xff]   ;;  %v19046_v52 = vld [vmem:[%s27128_s4 + $0x4c] ss:$12 sps:$4 sm:$0xff]   ;;  %v19044_v29 = vld [vmem:[%s27128_s4 + $0x48] ss:$12 sps:$4 sm:$0xff]  }
 0x5bd   :  { %27413 = vst [vmem:[#allocation15_spill] sm:$0xff] %v22932_v30  ;;  %4888 = vmatprep.subr.bf16.mxu0 %v27309_v53 }
 0x5be   :  { %27414 = vst [vmem:[#allocation14_spill] sm:$0xff] %v22934_v3  ;;  %15628 = vmatprep.mubr.msk.bf16.mxu0 %vm4730_vm0, %v22934_v3 }
 0x5bf   :  { %4838 = vmatmul.mubr.bf16.gmra.mrb[20].mxu0 %v22932_v30 }
 0x5c0   :  { %v4070_v37 = vpop.f32.mrb[56].mxu1  ;;  %4889 = vmatpush1.bf16.msra.mxu0 %v19033_v33 }
 0x5c1   :  { %v4072_v58 = vpop.f32.mrb[57].mxu1  ;;  %4890 = vmatprep.subr.bf16.mxu0 %v27309_v53 }
 0x5c2   :  { %v4074_v17 = vpop.f32.mrb[58].mxu1 }
 0x5c3   :  { %v22950_v54 = vpack.c.bf16 %v4074_v17, %v4070_v37  ;;  %v4076_v47 = vpop.f32.mrb[59].mxu1  ;;  %v19049_v37 = vld [vmem:[%s27128_s4 + $0x64] ss:$12 sps:$4 sm:$0xff]  }
 0x5c4   :  { %v22952_v21 = vpack.c.bf16 %v4076_v47, %v4072_v58  ;;  %4891 = vmatpush1.bf16.msra.mxu0 %v19034_v45  ;;  %v19047_v47 = vld [vmem:[%s27128_s4 + $0x60] ss:$12 sps:$4 sm:$0xff]  }
 0x5c5   :  { %27415 = vst [vmem:[#allocation13_spill] sm:$0xff] %v22950_v54  ;;  %5181 = vmatprep.subr.bf16.mxu0 %v19037_v59 }
 0x5c6   :  { %27416 = vst [vmem:[#allocation12_spill] sm:$0xff] %v22952_v21  ;;  %15629 = vmatprep.mubr.msk.bf16.mxu0 %vm4730_vm0, %v22952_v21 }
 0x5c7   :  { %4848 = vmatmul.mubr.bf16.gmra.mrb[24].mxu0 %v22950_v54 }
 0x5c8   :  { %v4080_v49 = vpop.f32.mrb[60].mxu1 }
 0x5c9   :  { %v4082_v12 = vpop.f32.mrb[61].mxu1 }
 0x5ca   :  { %v4084_v62 = vpop.f32.mrb[62].mxu1 }
 0x5cb   :  { %v22957_v8 = vpack.c.bf16 %v4084_v62, %v4080_v49  ;;  %v4086_v41 = vpop.f32.mrb[63].mxu1  ;;  %v19052_v49 = vld [vmem:[%s27128_s4 + $0x7c] ss:$12 sps:$4 sm:$0xff]   ;;  %v19050_v62 = vld [vmem:[%s27128_s4 + $0x78] ss:$12 sps:$4 sm:$0xff]  }
 0x5cc   :  { %v22959_v27 = vpack.c.bf16 %v4086_v41, %v4082_v12 }
 0x5cd   :  { %27417 = vst [vmem:[#allocation19_spill] sm:$0xff] %v22957_v8 }
 0x5ce   :  { %27418 = vst [vmem:[#allocation18_spill] sm:$0xff] %v22959_v27  ;;  %15630 = vmatprep.mubr.msk.bf16.mxu0 %vm4730_vm0, %v22959_v27 }
 0x5cf   :  { %4858 = vmatmul.mubr.bf16.gmra.mrb[28].mxu0 %v22957_v8 }
 0x5d0   :  { %v4090_v2 = vpop.f32.mrb[64].mxu1  ;;  %15631 = vmatprep.mubr.msk.bf16.mxu0 %vm4730_vm0, %v22860_v38 }
 0x5d1   :  { %v4092_v28 = vpop.f32.mrb[65].mxu1 }
 0x5d2   :  { %v4094_v48 = vpop.f32.mrb[66].mxu1 }
 0x5d3   :  { %v22966_v35 = vpack.c.bf16 %v4094_v48, %v4090_v2  ;;  %v4096_v56 = vpop.f32.mrb[67].mxu1  ;;  %v19055_v2 = vld [vmem:[%s27128_s4 + $0x94] ss:$12 sps:$4 sm:$0xff]  }
 0x5d4   :  { %v22968_v42 = vpack.c.bf16 %v4096_v56, %v4092_v28 }
 0x5d7   :  { %4901 = vmatmul.mubr.bf16.vlgmr.msra.gmra.mrb[32].mxu0 %v22858_v16 }
 0x5d8   :  { %5182 = vmatpush1.bf16.msra.mxu0 %v19035_v10  ;;  %v4100_v18 = vpop.f32.mrb[68].mxu1  ;;  %15632 = vmatprep.mubr.msk.bf16.mxu0 %vm4730_vm0, %v22874_v5 }
 0x5d9   :  { %v4102_v25 = vpop.f32.mrb[69].mxu1  ;;  %5183 = vmatprep.subr.bf16.mxu0 %v19040_v50  ;;  %v19053_v50 = vld [vmem:[%s27128_s4 + $0x90] ss:$12 sps:$4 sm:$0xff]  }
 0x5da   :  { %v4104_v44 = vpop.f32.mrb[70].mxu1 }
 0x5db   :  { %v22985_v34 = vpack.c.bf16 %v4104_v44, %v4100_v18  ;;  %v4106_v36 = vpop.f32.mrb[71].mxu1  ;;  %v19058_v18 = vld [vmem:[%s27128_s4 + $0xac] ss:$12 sps:$4 sm:$0xff]   ;;  %v19061_v44 = vld [vmem:[%s27128_s4 + $0xc4] ss:$12 sps:$4 sm:$0xff]  }
 0x5dc   :  { %v22987_v43 = vpack.c.bf16 %v4106_v36, %v4102_v25  ;;  %5184 = vmatpush1.bf16.msra.mxu0 %v19038_v22  ;;  %v19056_v25 = vld [vmem:[%s27128_s4 + $0xa8] ss:$12 sps:$4 sm:$0xff]  }
 0x5dd   :  { %5185 = vmatprep.subr.bf16.mxu0 %v19043_v15 }
 0x5df   :  { %4909 = vmatmul.mubr.bf16.gmra.mrb[36].mxu0 %v22872_v40 }
 0x5e0   :  { %v4110_v6 = vpop.f32.mrb[72].mxu1  ;;  %15633 = vmatprep.mubr.msk.bf16.mxu0 %vm4730_vm0, %v22889_v14  ;;  %5186 = vmatpush1.bf16.msra.mxu0 %v19041_v39 }
 0x5e1   :  { %v4112_v33 = vpop.f32.mrb[73].mxu1  ;;  %5187 = vmatprep.subr.bf16.mxu0 %v19046_v52 }
 0x5e2   :  { %v4114_v45 = vpop.f32.mrb[74].mxu1 }
 0x5e3   :  { %v23004_v58 = vpack.c.bf16 %v4114_v45, %v4110_v6  ;;  %v4116_v59 = vpop.f32.mrb[75].mxu1  ;;  %v19062_v45 = vld [vmem:[%s27128_s4 + $0xd8] ss:$12 sps:$4 sm:$0xff]  }
 0x5e4   :  { %v23006_v17 = vpack.c.bf16 %v4116_v59, %v4112_v33  ;;  %5188 = vmatpush1.bf16.msra.mxu0 %v19044_v29  ;;  %v19059_v29 = vld [vmem:[%s27128_s4 + $0xc0] ss:$12 sps:$4 sm:$0xff]   ;;  %v19064_v33 = vld [vmem:[%s27128_s4 + $0xdc] ss:$12 sps:$4 sm:$0xff]  }
 0x5e5   :  { %5189 = vmatprep.subr.bf16.mxu0 %v19049_v37 }
 0x5e7   :  { %4917 = vmatmul.mubr.bf16.gmra.mrb[40].mxu0 %v22887_v0 }
 0x5e8   :  { %v4120_v12 = vpop.f32.mrb[76].mxu1  ;;  %15634 = vmatprep.mubr.msk.bf16.mxu0 %vm4730_vm0, %v22904_v1  ;;  %5190 = vmatpush1.bf16.msra.mxu0 %v19047_v47  ;;  %v19067_v47 = vld [vmem:[%s27128_s4 + $0xf4] ss:$12 sps:$4 sm:$0xff]  }
 0x5e9   :  { %v4122_v41 = vpop.f32.mrb[77].mxu1  ;;  %5191 = vmatprep.subr.bf16.mxu0 %v19052_v49 }
 0x5ea   :  { %v4124_v28 = vpop.f32.mrb[78].mxu1 }
 0x5eb   :  { %v23023_v48 = vpack.c.bf16 %v4124_v28, %v4120_v12  ;;  %v4126_v56 = vpop.f32.mrb[79].mxu1  ;;  %v19070_v28 = vld [vmem:[%s27128_s4 + $0x10c] ss:$12 sps:$4 sm:$0xff]  }
 0x5ec   :  { %v23025_v10 = vpack.c.bf16 %v4126_v56, %v4122_v41  ;;  %5192 = vmatpush1.bf16.msra.mxu0 %v19050_v62 }
 0x5ed   :  { %27419 = vst [vmem:[#allocation17_spill] sm:$0xff] %v23023_v48  ;;  %5193 = vmatprep.subr.bf16.mxu0 %v19055_v2  ;;  %v19065_v2 = vld [vmem:[%s27128_s4 + $0xf0] ss:$12 sps:$4 sm:$0xff]  }
 0x5ef   :  { %4925 = vmatmul.mubr.bf16.gmra.mrb[44].mxu0 %v22902_v57 }
 0x5f0   :  { %v4130_v22 = vpop.f32.mrb[80].mxu1  ;;  %15635 = vmatprep.mubr.msk.bf16.mxu0 %vm4730_vm0, %v22919_v61  ;;  %5194 = vmatpush1.bf16.msra.mxu0 %v19053_v50  ;;  %v19068_v50 = vld [vmem:[%s27128_s4 + $0x108] ss:$12 sps:$4 sm:$0xff]  }
 0x5f1   :  { %v4132_v15 = vpop.f32.mrb[81].mxu1  ;;  %5195 = vmatprep.subr.bf16.mxu0 %v19058_v18 }
 0x5f2   :  { %v4134_v36 = vpop.f32.mrb[82].mxu1 }
 0x5f3   :  { %v23042_v39 = vpack.c.bf16 %v4134_v36, %v4130_v22  ;;  %v4136_v52 = vpop.f32.mrb[83].mxu1 }
 0x5f4   :  { %v23044_v6 = vpack.c.bf16 %v4136_v52, %v4132_v15  ;;  %5196 = vmatpush1.bf16.msra.mxu0 %v19056_v25 }
 0x5f5   :  { %27420 = vst [vmem:[#allocation16_spill] sm:$0xff] %v23042_v39  ;;  %5197 = vmatprep.subr.bf16.mxu0 %v19061_v44 }
 0x5f6   :  { %27421 = vst [vmem:[#allocation23_spill] sm:$0xff] %v23044_v6 }
 0x5f7   :  { %4933 = vmatmul.mubr.bf16.gmra.mrb[48].mxu0 %v22917_v24 }
 0x5f8   :  { %v4140_v37 = vpop.f32.mrb[84].mxu1  ;;  %15636 = vmatprep.mubr.msk.bf16.mxu0 %vm4730_vm0, %v22934_v3  ;;  %5198 = vmatpush1.bf16.msra.mxu0 %v19059_v29 }
 0x5f9   :  { %v4142_v59 = vpop.f32.mrb[85].mxu1  ;;  %5199 = vmatprep.subr.bf16.mxu0 %v19064_v33 }
 0x5fa   :  { %v4144_v49 = vpop.f32.mrb[86].mxu1 }
 0x5fb   :  { %v23061_v12 = vpack.c.bf16 %v4144_v49, %v4140_v37  ;;  %v4146_v62 = vpop.f32.mrb[87].mxu1 }
 0x5fc   :  { %v23063_v41 = vpack.c.bf16 %v4146_v62, %v4142_v59  ;;  %5200 = vmatpush1.bf16.msra.mxu0 %v19062_v45 }
 0x5fd   :  { %27422 = vst [vmem:[#allocation22_spill] sm:$0xff] %v23061_v12  ;;  %5201 = vmatprep.subr.bf16.mxu0 %v19067_v47 }
 0x5fe   :  { %27423 = vst [vmem:[#allocation21_spill] sm:$0xff] %v23063_v41 }
 0x5ff   :  { %4941 = vmatmul.mubr.bf16.gmra.mrb[52].mxu0 %v22932_v30 }
 0x600   :  { %v4150_v56 = vpop.f32.mrb[88].mxu1  ;;  %15637 = vmatprep.mubr.msk.bf16.mxu0 %vm4730_vm0, %v22952_v21  ;;  %5202 = vmatpush1.bf16.msra.mxu0 %v19065_v2  ;;  %v19081_v21 = vld [vmem:[%s27128_s4 + $0xf8] ss:$12 sps:$4 sm:$0xff]  }
 0x601   :  { %v4152_v18 = vpop.f32.mrb[89].mxu1  ;;  %5203 = vmatprep.subr.bf16.mxu0 %v19070_v28 }
 0x602   :  { %v4154_v22 = vpop.f32.mrb[90].mxu1 }
 0x603   :  { %v23077_v25 = vpack.c.bf16 %v4154_v22, %v4150_v56  ;;  %v4156_v15 = vpop.f32.mrb[91].mxu1  ;;  %v19071_v56 = vld [vmem:[%s27128_s4 + $0x8] ss:$12 sps:$4 sm:$0xff]  }
 0x604   :  { %v23079_v44 = vpack.c.bf16 %v4156_v15, %v4152_v18  ;;  %5204 = vmatpush1.bf16.msra.mxu0 %v19068_v50  ;;  %v19072_v18 = vld [vmem:[%s27128_s4 + $0x20] ss:$12 sps:$4 sm:$0xff]  }
 0x605   :  { %27424 = vst [vmem:[#allocation20_spill] sm:$0xff] %v23077_v25  ;;  %5294 = vmatprep.subr.bf16.mxu0 %v27309_v53 }
 0x606   :  { %27425 = vst [vmem:[#allocation27_spill] sm:$0xff] %v23079_v44 }
 0x607   :  { %4949 = vmatmul.mubr.bf16.gmra.mrb[56].mxu0 %v22950_v54 }
 0x608   :  { %v4160_v36 = vpop.f32.mrb[92].mxu1  ;;  %15638 = vmatprep.mubr.msk.bf16.mxu0 %vm4730_vm0, %v22959_v27  ;;  %v19079_v27 = vld [vmem:[%s27128_s4 + $0xc8] ss:$12 sps:$4 sm:$0xff]  }
 0x609   :  { %v4162_v52 = vpop.f32.mrb[93].mxu1 }
 0x60a   :  { %v4164_v29 = vpop.f32.mrb[94].mxu1 }
 0x60b   :  { %v23085_v33 = vpack.c.bf16 %v4164_v29, %v4160_v36  ;;  %v4166_v37 = vpop.f32.mrb[95].mxu1 }
 0x60c   :  { %v23087_v45 = vpack.c.bf16 %v4166_v37, %v4162_v52  ;;  %v19073_v37 = vld [vmem:[%s27128_s4 + $0x38] ss:$12 sps:$4 sm:$0xff]  }
 0x60d   :  { %27426 = vst [vmem:[#allocation26_spill] sm:$0xff] %v23085_v33 }
 0x60e   :  { %27427 = vst [vmem:[#allocation25_spill] sm:$0xff] %v23087_v45 }
 0x60f   :  { %4957 = vmatmul.mubr.bf16.gmra.mrb[60].mxu0 %v22957_v8 }
 0x610   :  { %v4170_v59 = vpop.f32.mrb[96].mxu1  ;;  %15675 = vmatprep.mubr.msk.bf16.mxu0 %vm4730_vm0, %v22815_v55 }
 0x611   :  { %v4172_v47 = vpop.f32.mrb[97].mxu1 }
 0x612   :  { %v4174_v49 = vpop.f32.mrb[98].mxu1 }
 0x613   :  { %v23092_v62 = vpack.c.bf16 %v4174_v49, %v4170_v59  ;;  %v4176_v2 = vpop.f32.mrb[99].mxu1 }
 0x614   :  { %v23094_v28 = vpack.c.bf16 %v4176_v2, %v4172_v47  ;;  %v19074_v47 = vld [vmem:[%s27128_s4 + $0x50] ss:$12 sps:$4 sm:$0xff]  }
 0x617   :  { %5214 = vmatmul.mubr.bf16.vlgmr.msra.gmra.mrb[0].mxu0 %v22813_v26 }
 0x618   :  { %5295 = vmatpush1.bf16.msra.mxu0 %v19071_v56  ;;  %v4180_v50 = vpop.f32.mrb[100].mxu1  ;;  %15676 = vmatprep.mubr.msk.bf16.mxu0 %vm4730_vm0, %v22823_v32 }
 0x619   :  { %v4182_v22 = vpop.f32.mrb[101].mxu1  ;;  %5296 = vmatprep.subr.bf16.mxu0 %v27309_v53 }
 0x61a   :  { %v4184_v15 = vpop.f32.mrb[102].mxu1 }
 0x61b   :  { %v23106_v36 = vpack.c.bf16 %v4184_v15, %v4180_v50  ;;  %v4186_v52 = vpop.f32.mrb[103].mxu1 }
 0x61c   :  { %v23108_v29 = vpack.c.bf16 %v4186_v52, %v4182_v22  ;;  %5297 = vmatpush1.bf16.msra.mxu0 %v19072_v18  ;;  %v19075_v22 = vld [vmem:[%s27128_s4 + $0x68] ss:$12 sps:$4 sm:$0xff]   ;;  %v19076_v52 = vld [vmem:[%s27128_s4 + $0x80] ss:$12 sps:$4 sm:$0xff]  }
 0x61d   :  { %5298 = vmatprep.subr.bf16.mxu0 %v27309_v53 }
 0x61f   :  { %5224 = vmatmul.mubr.bf16.gmra.mrb[4].mxu0 %v22821_v19 }
 0x620   :  { %v4190_v59 = vpop.f32.mrb[104].mxu1  ;;  %15677 = vmatprep.mubr.msk.bf16.mxu0 %vm4730_vm0, %v22828_v9  ;;  %5299 = vmatpush1.bf16.msra.mxu0 %v19073_v37 }
 0x621   :  { %v4192_v49 = vpop.f32.mrb[105].mxu1  ;;  %5300 = vmatprep.subr.bf16.mxu0 %v27309_v53 }
 0x622   :  { %v4194_v2 = vpop.f32.mrb[106].mxu1 }
 0x623   :  { %v23121_v56 = vpack.c.bf16 %v4194_v2, %v4190_v59  ;;  %v4196_v50 = vpop.f32.mrb[107].mxu1 }
 0x624   :  { %v23123_v18 = vpack.c.bf16 %v4196_v50, %v4192_v49  ;;  %5301 = vmatpush1.bf16.msra.mxu0 %v19074_v47  ;;  %v19077_v50 = vld [vmem:[%s27128_s4 + $0x98] ss:$12 sps:$4 sm:$0xff]  }
 0x625   :  { %5302 = vmatprep.subr.bf16.mxu0 %v27309_v53 }
 0x627   :  { %5234 = vmatmul.mubr.bf16.gmra.mrb[8].mxu0 %v22826_v7 }
 0x628   :  { %v4200_v15 = vpop.f32.mrb[108].mxu1  ;;  %15678 = vmatprep.mubr.msk.bf16.mxu0 %vm4730_vm0, %v22836_v13  ;;  %5303 = vmatpush1.bf16.msra.mxu0 %v19075_v22 }
 0x629   :  { %v4202_v37 = vpop.f32.mrb[109].mxu1  ;;  %5304 = vmatprep.subr.bf16.mxu0 %v27309_v53 }
 0x62a   :  { %v4204_v59 = vpop.f32.mrb[110].mxu1 }
 0x62b   :  { %v23136_v47 = vpack.c.bf16 %v4204_v59, %v4200_v15  ;;  %v4206_v49 = vpop.f32.mrb[111].mxu1  ;;  %v19078_v15 = vld [vmem:[%s27128_s4 + $0xb0] ss:$12 sps:$4 sm:$0xff]  }
 0x62c   :  { %v23138_v2 = vpack.c.bf16 %v4206_v49, %v4202_v37  ;;  %5305 = vmatpush1.bf16.msra.mxu0 %v19076_v52 }
 0x62d   :  { %27428 = vst [vmem:[#allocation24_spill] sm:$0xff] %v23136_v47  ;;  %5306 = vmatprep.subr.bf16.mxu0 %v27309_v53 }
 0x62f   :  { %5244 = vmatmul.mubr.bf16.gmra.mrb[12].mxu0 %v22834_v63 }
 0x630   :  { %v4210_v22 = vpop.f32.mrb[112].mxu1  ;;  %15679 = vmatprep.mubr.msk.bf16.mxu0 %vm4730_vm0, %v22841_v11  ;;  %5307 = vmatpush1.bf16.msra.mxu0 %v19077_v50 }
 0x631   :  { %v4212_v37 = vpop.f32.mrb[113].mxu1  ;;  %5308 = vmatprep.subr.bf16.mxu0 %v27309_v53 }
 0x632   :  { %v4214_v52 = vpop.f32.mrb[114].mxu1 }
 0x633   :  { %v23151_v59 = vpack.c.bf16 %v4214_v52, %v4210_v22  ;;  %v4216_v49 = vpop.f32.mrb[115].mxu1  ;;  %v19080_v22 = vld [vmem:[%s27128_s4 + $0xe0] ss:$12 sps:$4 sm:$0xff]  }
 0x634   :  { %v23153_v8 = vpack.c.bf16 %v4216_v49, %v4212_v37  ;;  %5309 = vmatpush1.bf16.msra.mxu0 %v19078_v15 }
 0x635   :  { %27429 = vst [vmem:[#allocation31_spill] sm:$0xff] %v23151_v59  ;;  %5310 = vmatprep.subr.bf16.mxu0 %v27309_v53 }
 0x636   :  { %27430 = vst [vmem:[#allocation30_spill] sm:$0xff] %v23153_v8 }
 0x637   :  { %5254 = vmatmul.mubr.bf16.gmra.mrb[16].mxu0 %v22839_v4 }
 0x638   :  { %v4220_v50 = vpop.f32.mrb[116].mxu1  ;;  %15680 = vmatprep.mubr.msk.bf16.mxu0 %vm4730_vm0, %v22848_v51  ;;  %5311 = vmatpush1.bf16.msra.mxu0 %v19079_v27 }
 0x639   :  { %v4222_v37 = vpop.f32.mrb[117].mxu1  ;;  %5312 = vmatprep.subr.bf16.mxu0 %v27309_v53 }
 0x63a   :  { %v4224_v15 = vpop.f32.mrb[118].mxu1 }
 0x63b   :  { %v23166_v52 = vpack.c.bf16 %v4224_v15, %v4220_v50  ;;  %v4226_v49 = vpop.f32.mrb[119].mxu1  ;;  %v19082_v50 = vld [vmem:[%s27128_s4 + $0x110] ss:$12 sps:$4 sm:$0xff]  }
 0x63c   :  { %v23168_v54 = vpack.c.bf16 %v4226_v49, %v4222_v37  ;;  %5313 = vmatpush1.bf16.msra.mxu0 %v19080_v22  ;;  %v19085_v22 = vld [vmem:[%s27128_s4 + $0x244] ss:$12 sps:$4 sm:$0xff]  }
 0x63d   :  { %27431 = vst [vmem:[#allocation29_spill] sm:$0xff] %v23166_v52  ;;  %5314 = vmatprep.subr.bf16.mxu0 %v27309_v53 }
 0x63e   :  { %27432 = vst [vmem:[#allocation28_spill] sm:$0xff] %v23168_v54 }
 0x63f   :  { %5264 = vmatmul.mubr.bf16.gmra.mrb[20].mxu0 %v22846_v20 }
 0x640   :  { %v4230_v27 = vpop.f32.mrb[120].mxu1  ;;  %15681 = vmatprep.mubr.msk.bf16.mxu0 %vm4730_vm0, %v22852_v46  ;;  %5315 = vmatpush1.bf16.msra.mxu0 %v19081_v21 }
 0x641   :  { %v4232_v37 = vpop.f32.mrb[121].mxu1  ;;  %5316 = vmatprep.subr.bf16.mxu0 %v27309_v53 }
 0x642   :  { %v4234_v15 = vpop.f32.mrb[122].mxu1 }
 0x643   :  { %v23184_v49 = vpack.c.bf16 %v4234_v15, %v4230_v27  ;;  %v4236_v30 = vpop.f32.mrb[123].mxu1  ;;  %v19088_v27 = vld [vmem:[%s27128_s4 + $0x25c] ss:$12 sps:$4 sm:$0xff]   ;;  %v19095_v15 = vld [vmem:[%s27128_s4 + $0x2a0] ss:$12 sps:$4 sm:$0xff]  }
 0x644   :  { %v23186_v3 = vpack.c.bf16 %v4236_v30, %v4232_v37  ;;  %5317 = vmatpush1.bf16.msra.mxu0 %v19082_v50  ;;  %v19083_v30 = vld [vmem:[%s27128_s4 + $0x240] ss:$12 sps:$4 sm:$0xff]   ;;  %v19092_v37 = vld [vmem:[%s27128_s4 + $0x288] ss:$12 sps:$4 sm:$0xff]  }
 0x645   :  { %27433 = vst [vmem:[#allocation35_spill] sm:$0xff] %v23184_v49  ;;  %5656 = vmatprep.subr.bf16.mxu0 %v19085_v22  ;;  %v19094_v50 = vld [vmem:[%s27128_s4 + $0x28c] ss:$12 sps:$4 sm:$0xff]   ;;  %v19097_v22 = vld [vmem:[%s27128_s4 + $0x2a4] ss:$12 sps:$4 sm:$0xff]  }
 0x646   :  { %27434 = vst [vmem:[#allocation34_spill] sm:$0xff] %v23186_v3 }
 0x647   :  { %5274 = vmatmul.mubr.bf16.gmra.mrb[24].mxu0 %v22850_v23 }
 0x648   :  { %v4240_v21 = vpop.f32.mrb[124].mxu1  ;;  %15682 = vmatprep.mubr.msk.bf16.mxu0 %vm4730_vm0, %v22856_v31 }
 0x649   :  { %v4242_v24 = vpop.f32.mrb[125].mxu1 }
 0x64a   :  { %v4244_v61 = vpop.f32.mrb[126].mxu1 }
 0x64b   :  { %v23191_v57 = vpack.c.bf16 %v4244_v61, %v4240_v21  ;;  %v4246_v1 = vpop.f32.mrb[127].mxu1  ;;  %v19089_v61 = vld [vmem:[%s27128_s4 + $0x270] ss:$12 sps:$4 sm:$0xff]  }
 0x64c   :  { %v23193_v0 = vpack.c.bf16 %v4246_v1, %v4242_v24  ;;  %v19086_v1 = vld [vmem:[%s27128_s4 + $0x258] ss:$12 sps:$4 sm:$0xff]   ;;  %v19091_v24 = vld [vmem:[%s27128_s4 + $0x274] ss:$12 sps:$4 sm:$0xff]   ;;  %v19100_v21 = vld [vmem:[%s27128_s4 + $0x2bc] ss:$12 sps:$4 sm:$0xff]  }
 0x64d   :  { %27435 = vst [vmem:[#allocation33_spill] sm:$0xff] %v23191_v57 }
 0x64e   :  { %27436 = vst [vmem:[#allocation32_spill] sm:$0xff] %v23193_v0 }
 0x64f   :  { %5284 = vmatmul.mubr.bf16.gmra.mrb[28].mxu0 %v22854_v60 }
 0x650   :  { %15683 = vmatprep.mubr.msk.bf16.mxu0 %vm4730_vm0, %v22815_v55 }
 0x657   :  { %5327 = vmatmul.mubr.bf16.vlgmr.msra.gmra.mrb[32].mxu0 %v22813_v26 }
 0x658   :  { %5657 = vmatpush1.bf16.msra.mxu0 %v19083_v30  ;;  %15684 = vmatprep.mubr.msk.bf16.mxu0 %vm4730_vm0, %v22823_v32  ;;  %v19098_v30 = vld [vmem:[%s27128_s4 + $0x2b8] ss:$12 sps:$4 sm:$0xff]  }
 0x659   :  { %5658 = vmatprep.subr.bf16.mxu0 %v19088_v27  ;;  %v19103_v27 = vld [vmem:[%s27128_s4 + $0x2d4] ss:$12 sps:$4 sm:$0xff]  }
 0x65c   :  { %5659 = vmatpush1.bf16.msra.mxu0 %v19086_v1  ;;  %v19101_v1 = vld [vmem:[%s27128_s4 + $0x2d0] ss:$12 sps:$4 sm:$0xff]  }
 0x65d   :  { %5660 = vmatprep.subr.bf16.mxu0 %v19091_v24  ;;  %v19106_v24 = vld [vmem:[%s27128_s4 + $0x2ec] ss:$12 sps:$4 sm:$0xff]  }
 0x65f   :  { %5335 = vmatmul.mubr.bf16.gmra.mrb[36].mxu0 %v22821_v19 }
 0x660   :  { %15685 = vmatprep.mubr.msk.bf16.mxu0 %vm4730_vm0, %v22828_v9  ;;  %5661 = vmatpush1.bf16.msra.mxu0 %v19089_v61  ;;  %v19104_v61 = vld [vmem:[%s27128_s4 + $0x2e8] ss:$12 sps:$4 sm:$0xff]  }
 0x661   :  { %5662 = vmatprep.subr.bf16.mxu0 %v19094_v50  ;;  %v19109_v50 = vld [vmem:[%s27128_s4 + $0x304] ss:$12 sps:$4 sm:$0xff]  }
 0x664   :  { %5663 = vmatpush1.bf16.msra.mxu0 %v19092_v37  ;;  %v19107_v37 = vld [vmem:[%s27128_s4 + $0x300] ss:$12 sps:$4 sm:$0xff]  }
 0x665   :  { %5664 = vmatprep.subr.bf16.mxu0 %v19097_v22  ;;  %v19112_v22 = vld [vmem:[%s27128_s4 + $0x31c] ss:$12 sps:$4 sm:$0xff]  }
 0x667   :  { %5343 = vmatmul.mubr.bf16.gmra.mrb[40].mxu0 %v22826_v7 }
 0x668   :  { %15686 = vmatprep.mubr.msk.bf16.mxu0 %vm4730_vm0, %v22836_v13  ;;  %5665 = vmatpush1.bf16.msra.mxu0 %v19095_v15  ;;  %v19110_v15 = vld [vmem:[%s27128_s4 + $0x318] ss:$12 sps:$4 sm:$0xff]  }
 0x669   :  { %5666 = vmatprep.subr.bf16.mxu0 %v19100_v21  ;;  %v19115_v21 = vld [vmem:[%s27128_s4 + $0x334] ss:$12 sps:$4 sm:$0xff]  }
 0x66c   :  { %5667 = vmatpush1.bf16.msra.mxu0 %v19098_v30  ;;  %v19113_v30 = vld [vmem:[%s27128_s4 + $0x330] ss:$12 sps:$4 sm:$0xff]  }
 0x66d   :  { %5668 = vmatprep.subr.bf16.mxu0 %v19103_v27  ;;  %v19118_v27 = vld [vmem:[%s27128_s4 + $0x34c] ss:$12 sps:$4 sm:$0xff]  }
 0x66f   :  { %5351 = vmatmul.mubr.bf16.gmra.mrb[44].mxu0 %v22834_v63 }
 0x670   :  { %15687 = vmatprep.mubr.msk.bf16.mxu0 %vm4730_vm0, %v22841_v11  ;;  %5669 = vmatpush1.bf16.msra.mxu0 %v19101_v1  ;;  %v19116_v1 = vld [vmem:[%s27128_s4 + $0x348] ss:$12 sps:$4 sm:$0xff]  }
 0x671   :  { %5670 = vmatprep.subr.bf16.mxu0 %v19106_v24  ;;  %v19119_v24 = vld [vmem:[%s27128_s4 + $0x248] ss:$12 sps:$4 sm:$0xff]  }
 0x674   :  { %5671 = vmatpush1.bf16.msra.mxu0 %v19104_v61  ;;  %v19120_v61 = vld [vmem:[%s27128_s4 + $0x260] ss:$12 sps:$4 sm:$0xff]  }
 0x675   :  { %5672 = vmatprep.subr.bf16.mxu0 %v19109_v50  ;;  %v19121_v50 = vld [vmem:[%s27128_s4 + $0x278] ss:$12 sps:$4 sm:$0xff]  }
 0x677   :  { %5359 = vmatmul.mubr.bf16.gmra.mrb[48].mxu0 %v22839_v4 }
 0x678   :  { %15688 = vmatprep.mubr.msk.bf16.mxu0 %vm4730_vm0, %v22848_v51  ;;  %5673 = vmatpush1.bf16.msra.mxu0 %v19107_v37  ;;  %v19122_v37 = vld [vmem:[%s27128_s4 + $0x290] ss:$12 sps:$4 sm:$0xff]  }
 0x679   :  { %5674 = vmatprep.subr.bf16.mxu0 %v19112_v22  ;;  %v19123_v22 = vld [vmem:[%s27128_s4 + $0x2a8] ss:$12 sps:$4 sm:$0xff]  }
 0x67c   :  { %5675 = vmatpush1.bf16.msra.mxu0 %v19110_v15  ;;  %v19124_v15 = vld [vmem:[%s27128_s4 + $0x2c0] ss:$12 sps:$4 sm:$0xff]  }
 0x67d   :  { %5676 = vmatprep.subr.bf16.mxu0 %v19115_v21  ;;  %v19125_v21 = vld [vmem:[%s27128_s4 + $0x2d8] ss:$12 sps:$4 sm:$0xff]  }
 0x67f   :  { %5367 = vmatmul.mubr.bf16.gmra.mrb[52].mxu0 %v22846_v20 }
 0x680   :  { %15689 = vmatprep.mubr.msk.bf16.mxu0 %vm4730_vm0, %v22852_v46  ;;  %5677 = vmatpush1.bf16.msra.mxu0 %v19113_v30  ;;  %v19126_v30 = vld [vmem:[%s27128_s4 + $0x2f0] ss:$12 sps:$4 sm:$0xff]  }
 0x681   :  { %5678 = vmatprep.subr.bf16.mxu0 %v19118_v27  ;;  %v19127_v27 = vld [vmem:[%s27128_s4 + $0x308] ss:$12 sps:$4 sm:$0xff]  }
 0x684   :  { %5679 = vmatpush1.bf16.msra.mxu0 %v19116_v1  ;;  %v19128_v1 = vld [vmem:[%s27128_s4 + $0x320] ss:$12 sps:$4 sm:$0xff]  }
 0x685   :  { %5769 = vmatprep.subr.bf16.mxu0 %v27309_v53 }
 0x687   :  { %5375 = vmatmul.mubr.bf16.gmra.mrb[56].mxu0 %v22850_v23 }
 0x688   :  { %15690 = vmatprep.mubr.msk.bf16.mxu0 %vm4730_vm0, %v22856_v31 }
 0x68f   :  { %5383 = vmatmul.mubr.bf16.gmra.mrb[60].mxu0 %v22854_v60 }
 0x690   :  { %15775 = vmatprep.mubr.msk.bf16.mxu0 %vm4730_vm0, %v22968_v42 }
 0x697   :  { %5689 = vmatmul.mubr.bf16.vlgmr.msra.gmra.mrb[0].mxu0 %v22966_v35 }
 0x698   :  { %5770 = vmatpush1.bf16.msra.mxu0 %v19119_v24  ;;  %15776 = vmatprep.mubr.msk.bf16.mxu0 %vm4730_vm0, %v22987_v43  ;;  %v19129_v24 = vld [vmem:[%s27128_s4 + $0x338] ss:$12 sps:$4 sm:$0xff]  }
 0x699   :  { %5771 = vmatprep.subr.bf16.mxu0 %v27309_v53 }
 0x69c   :  { %5772 = vmatpush1.bf16.msra.mxu0 %v19120_v61  ;;  %v19130_v61 = vld [vmem:[%s27128_s4 + $0x350] ss:$12 sps:$4 sm:$0xff]  }
 0x69d   :  { %5773 = vmatprep.subr.bf16.mxu0 %v27309_v53 }
 0x69f   :  { %5699 = vmatmul.mubr.bf16.gmra.mrb[4].mxu0 %v22985_v34 }
 0x6a0   :  { %15777 = vmatprep.mubr.msk.bf16.mxu0 %vm4730_vm0, %v23006_v17  ;;  %5774 = vmatpush1.bf16.msra.mxu0 %v19121_v50  ;;  %v19133_v50 = vld [vmem:[%s27128_s4 + $0x364] ss:$12 sps:$4 sm:$0xff]  }
 0x6a1   :  { %5775 = vmatprep.subr.bf16.mxu0 %v27309_v53 }
 0x6a4   :  { %5776 = vmatpush1.bf16.msra.mxu0 %v19122_v37  ;;  %v19131_v37 = vld [vmem:[%s27128_s4 + $0x360] ss:$12 sps:$4 sm:$0xff]  }
 0x6a5   :  { %5777 = vmatprep.subr.bf16.mxu0 %v27309_v53 }
 0x6a7   :  { %5709 = vmatmul.mubr.bf16.gmra.mrb[8].mxu0 %v23004_v58 }
 0x6a8   :  { %15778 = vmatprep.mubr.msk.bf16.mxu0 %vm4730_vm0, %v23025_v10  ;;  %5778 = vmatpush1.bf16.msra.mxu0 %v19123_v22  ;;  %v19136_v22 = vld [vmem:[%s27128_s4 + $0x37c] ss:$12 sps:$4 sm:$0xff]  }
 0x6a9   :  { %5779 = vmatprep.subr.bf16.mxu0 %v27309_v53 }
 0x6ac   :  { %5780 = vmatpush1.bf16.msra.mxu0 %v19124_v15  ;;  %v19134_v15 = vld [vmem:[%s27128_s4 + $0x378] ss:$12 sps:$4 sm:$0xff]  }
 0x6ad   :  { %5781 = vmatprep.subr.bf16.mxu0 %v27309_v53 }
 0x6af   :  { %5719 = vmatmul.mubr.bf16.gmra.mrb[12].mxu0 %v23023_v48 }
 0x6b0   :  { %15779 = vmatprep.mubr.msk.bf16.mxu0 %vm4730_vm0, %v23044_v6  ;;  %5782 = vmatpush1.bf16.msra.mxu0 %v19125_v21  ;;  %v19139_v21 = vld [vmem:[%s27128_s4 + $0x394] ss:$12 sps:$4 sm:$0xff]  }
 0x6b1   :  { %5783 = vmatprep.subr.bf16.mxu0 %v27309_v53 }
 0x6b4   :  { %5784 = vmatpush1.bf16.msra.mxu0 %v19126_v30  ;;  %v19137_v30 = vld [vmem:[%s27128_s4 + $0x390] ss:$12 sps:$4 sm:$0xff]  }
 0x6b5   :  { %5785 = vmatprep.subr.bf16.mxu0 %v27309_v53 }
 0x6b7   :  { %5729 = vmatmul.mubr.bf16.gmra.mrb[16].mxu0 %v23042_v39 }
 0x6b8   :  { %15780 = vmatprep.mubr.msk.bf16.mxu0 %vm4730_vm0, %v23063_v41  ;;  %5786 = vmatpush1.bf16.msra.mxu0 %v19127_v27  ;;  %v19142_v27 = vld [vmem:[%s27128_s4 + $0x3ac] ss:$12 sps:$4 sm:$0xff]  }
 0x6b9   :  { %5787 = vmatprep.subr.bf16.mxu0 %v27309_v53 }
 0x6bc   :  { %5788 = vmatpush1.bf16.msra.mxu0 %v19128_v1  ;;  %v19140_v1 = vld [vmem:[%s27128_s4 + $0x3a8] ss:$12 sps:$4 sm:$0xff]  }
 0x6bd   :  { %5789 = vmatprep.subr.bf16.mxu0 %v27309_v53 }
 0x6bf   :  { %5739 = vmatmul.mubr.bf16.gmra.mrb[20].mxu0 %v23061_v12 }
 0x6c0   :  { %15781 = vmatprep.mubr.msk.bf16.mxu0 %vm4730_vm0, %v23079_v44  ;;  %5790 = vmatpush1.bf16.msra.mxu0 %v19129_v24  ;;  %v19145_v24 = vld [vmem:[%s27128_s4 + $0x3c4] ss:$12 sps:$4 sm:$0xff]  }
 0x6c1   :  { %5791 = vmatprep.subr.bf16.mxu0 %v27309_v53 }
 0x6c4   :  { %5792 = vmatpush1.bf16.msra.mxu0 %v19130_v61  ;;  %v19143_v61 = vld [vmem:[%s27128_s4 + $0x3c0] ss:$12 sps:$4 sm:$0xff]  }
 0x6c5   :  { %6179 = vmatprep.subr.bf16.mxu0 %v19133_v50  ;;  %v19148_v50 = vld [vmem:[%s27128_s4 + $0x3dc] ss:$12 sps:$4 sm:$0xff]  }
 0x6c7   :  { %5749 = vmatmul.mubr.bf16.gmra.mrb[24].mxu0 %v23077_v25 }
 0x6c8   :  { %15782 = vmatprep.mubr.msk.bf16.mxu0 %vm4730_vm0, %v23087_v45 }
 0x6cf   :  { %5759 = vmatmul.mubr.bf16.gmra.mrb[28].mxu0 %v23085_v33 }
 0x6d0   :  { %15783 = vmatprep.mubr.msk.bf16.mxu0 %vm4730_vm0, %v22968_v42 }
 0x6d7   :  { %5802 = vmatmul.mubr.bf16.vlgmr.msra.gmra.mrb[32].mxu0 %v22966_v35 }
 0x6d8   :  { %6180 = vmatpush1.bf16.msra.mxu0 %v19131_v37  ;;  %15784 = vmatprep.mubr.msk.bf16.mxu0 %vm4730_vm0, %v22987_v43  ;;  %v19146_v37 = vld [vmem:[%s27128_s4 + $0x3d8] ss:$12 sps:$4 sm:$0xff]  }
 0x6d9   :  { %6181 = vmatprep.subr.bf16.mxu0 %v19136_v22  ;;  %v19151_v22 = vld [vmem:[%s27128_s4 + $0x3f4] ss:$12 sps:$4 sm:$0xff]  }
 0x6dc   :  { %6182 = vmatpush1.bf16.msra.mxu0 %v19134_v15  ;;  %v19149_v15 = vld [vmem:[%s27128_s4 + $0x3f0] ss:$12 sps:$4 sm:$0xff]  }
 0x6dd   :  { %6183 = vmatprep.subr.bf16.mxu0 %v19139_v21  ;;  %v19154_v21 = vld [vmem:[%s27128_s4 + $0x40c] ss:$12 sps:$4 sm:$0xff]  }
 0x6df   :  { %5810 = vmatmul.mubr.bf16.gmra.mrb[36].mxu0 %v22985_v34 }
 0x6e0   :  { %15785 = vmatprep.mubr.msk.bf16.mxu0 %vm4730_vm0, %v23006_v17  ;;  %6184 = vmatpush1.bf16.msra.mxu0 %v19137_v30  ;;  %v19152_v30 = vld [vmem:[%s27128_s4 + $0x408] ss:$12 sps:$4 sm:$0xff]  }
 0x6e1   :  { %6185 = vmatprep.subr.bf16.mxu0 %v19142_v27  ;;  %v19157_v27 = vld [vmem:[%s27128_s4 + $0x424] ss:$12 sps:$4 sm:$0xff]  }
 0x6e4   :  { %6186 = vmatpush1.bf16.msra.mxu0 %v19140_v1  ;;  %v19155_v1 = vld [vmem:[%s27128_s4 + $0x420] ss:$12 sps:$4 sm:$0xff]  }
 0x6e5   :  { %6187 = vmatprep.subr.bf16.mxu0 %v19145_v24  ;;  %v19160_v24 = vld [vmem:[%s27128_s4 + $0x43c] ss:$12 sps:$4 sm:$0xff]  }
 0x6e7   :  { %5818 = vmatmul.mubr.bf16.gmra.mrb[40].mxu0 %v23004_v58 }
 0x6e8   :  { %15786 = vmatprep.mubr.msk.bf16.mxu0 %vm4730_vm0, %v23025_v10  ;;  %6188 = vmatpush1.bf16.msra.mxu0 %v19143_v61  ;;  %v19158_v61 = vld [vmem:[%s27128_s4 + $0x438] ss:$12 sps:$4 sm:$0xff]  }
 0x6e9   :  { %6189 = vmatprep.subr.bf16.mxu0 %v19148_v50  ;;  %v19163_v50 = vld [vmem:[%s27128_s4 + $0x454] ss:$12 sps:$4 sm:$0xff]  }
 0x6ec   :  { %6190 = vmatpush1.bf16.msra.mxu0 %v19146_v37  ;;  %v19161_v37 = vld [vmem:[%s27128_s4 + $0x450] ss:$12 sps:$4 sm:$0xff]  }
 0x6ed   :  { %6191 = vmatprep.subr.bf16.mxu0 %v19151_v22  ;;  %v19166_v22 = vld [vmem:[%s27128_s4 + $0x46c] ss:$12 sps:$4 sm:$0xff]  }
 0x6ef   :  { %5826 = vmatmul.mubr.bf16.gmra.mrb[44].mxu0 %v23023_v48 }
 0x6f0   :  { %15787 = vmatprep.mubr.msk.bf16.mxu0 %vm4730_vm0, %v23044_v6  ;;  %6192 = vmatpush1.bf16.msra.mxu0 %v19149_v15  ;;  %v19164_v15 = vld [vmem:[%s27128_s4 + $0x468] ss:$12 sps:$4 sm:$0xff]  }
 0x6f1   :  { %6193 = vmatprep.subr.bf16.mxu0 %v19154_v21  ;;  %v19182_v21 = vld [vmem:[%s27129_s5 + $0x488] ss:$24 sps:$4 sm:$0xff]  }
 0x6f4   :  { %6194 = vmatpush1.bf16.msra.mxu0 %v19152_v30  ;;  %v19184_v30 = vld [vmem:[%s27129_s5 + $0x48c] ss:$24 sps:$4 sm:$0xff]  }
 0x6f5   :  { %6195 = vmatprep.subr.bf16.mxu0 %v19157_v27  ;;  %v19167_v27 = vld [vmem:[%s27128_s4 + $0x368] ss:$12 sps:$4 sm:$0xff]   ;;  %7576 = vmatprep.subr.bf16.mxu1 %v19184_v30  ;;  %v19208_v30 = vld [vmem:[%s27129_s5 + $0x54c] ss:$24 sps:$4 sm:$0xff]  }
 0x6f6   :  { %7577 = vmatpush1.bf16.msra.mxu1 %v19182_v21  ;;  %v19200_v21 = vld [vmem:[%s27129_s5 + $0x518] ss:$24 sps:$4 sm:$0xff]  }
 0x6f7   :  { %5834 = vmatmul.mubr.bf16.gmra.mrb[48].mxu0 %v23042_v39 }
 0x6f8   :  { %15788 = vmatprep.mubr.msk.bf16.mxu0 %vm4730_vm0, %v23063_v41  ;;  %6196 = vmatpush1.bf16.msra.mxu0 %v19155_v1  ;;  %v19188_v1 = vld [vmem:[%s27129_s5 + $0x4b8] ss:$24 sps:$4 sm:$0xff]  }
 0x6f9   :  { %6197 = vmatprep.subr.bf16.mxu0 %v19160_v24  ;;  %v19190_v24 = vld [vmem:[%s27129_s5 + $0x4bc] ss:$24 sps:$4 sm:$0xff]  }
 0x6fa   :  { %7578 = vmatprep.subr.bf16.mxu1 %v19190_v24  ;;  %v19214_v24 = vld [vmem:[%s27129_s5 + $0x57c] ss:$24 sps:$4 sm:$0xff]  }
 0x6fb   :  { %7579 = vmatpush1.bf16.msra.mxu1 %v19188_v1  ;;  %v19206_v1 = vld [vmem:[%s27129_s5 + $0x548] ss:$24 sps:$4 sm:$0xff]  }
 0x6fc   :  { %6198 = vmatpush1.bf16.msra.mxu0 %v19158_v61  ;;  %v19196_v61 = vld [vmem:[%s27129_s5 + $0x4ec] ss:$24 sps:$4 sm:$0xff]  }
 0x6fd   :  { %6199 = vmatprep.subr.bf16.mxu0 %v19163_v50  ;;  %v19168_v50 = vld [vmem:[%s27128_s4 + $0x380] ss:$12 sps:$4 sm:$0xff]   ;;  %7580 = vmatprep.subr.bf16.mxu1 %v19196_v61  ;;  %v19171_v61 = vld [vmem:[%s27128_s4 + $0x3c8] ss:$12 sps:$4 sm:$0xff]  }
 0x6ff   :  { %5842 = vmatmul.mubr.bf16.gmra.mrb[52].mxu0 %v23061_v12 }
 0x700   :  { %15789 = vmatprep.mubr.msk.bf16.mxu0 %vm4730_vm0, %v23079_v44  ;;  %6200 = vmatpush1.bf16.msra.mxu0 %v19161_v37  ;;  %v19194_v37 = vld [vmem:[%s27129_s5 + $0x4e8] ss:$24 sps:$4 sm:$0xff]  }
 0x701   :  { %6201 = vmatprep.subr.bf16.mxu0 %v19166_v22  ;;  %v19202_v22 = vld [vmem:[%s27129_s5 + $0x51c] ss:$24 sps:$4 sm:$0xff]   ;;  %7581 = vmatpush1.bf16.msra.mxu1 %v19194_v37  ;;  %v19220_v37 = vld [vmem:[%s27129_s5 + $0x5ac] ss:$24 sps:$4 sm:$0xff]  }
 0x702   :  { %7582 = vmatprep.subr.bf16.mxu1 %v19202_v22  ;;  %v19172_v22 = vld [vmem:[%s27128_s4 + $0x3e0] ss:$12 sps:$4 sm:$0xff]  }
 0x704   :  { %6202 = vmatpush1.bf16.msra.mxu0 %v19164_v15  ;;  %v19169_v15 = vld [vmem:[%s27128_s4 + $0x398] ss:$12 sps:$4 sm:$0xff]  }
 0x705   :  { %6292 = vmatprep.subr.bf16.mxu0 %v27309_v53  ;;  %7583 = vmatpush1.bf16.msra.mxu1 %v19200_v21  ;;  %v19226_v21 = vld [vmem:[%s27129_s5 + $0x5dc] ss:$24 sps:$4 sm:$0xff]  }
 0x706   :  { %7584 = vmatprep.subr.bf16.mxu1 %v19208_v30  ;;  %v19173_v30 = vld [vmem:[%s27128_s4 + $0x3f8] ss:$12 sps:$4 sm:$0xff]  }
 0x707   :  { %5850 = vmatmul.mubr.bf16.gmra.mrb[56].mxu0 %v23077_v25 }
 0x708   :  { %15790 = vmatprep.mubr.msk.bf16.mxu0 %vm4730_vm0, %v23087_v45 }
 0x709   :  { %7585 = vmatpush1.bf16.msra.mxu1 %v19206_v1  ;;  %v19232_v1 = vld [vmem:[%s27129_s5 + $0x60c] ss:$24 sps:$4 sm:$0xff]  }
 0x70a   :  { %7586 = vmatprep.subr.bf16.mxu1 %v19214_v24  ;;  %v19174_v24 = vld [vmem:[%s27128_s4 + $0x410] ss:$12 sps:$4 sm:$0xff]  }
 0x70f   :  { %5858 = vmatmul.mubr.bf16.gmra.mrb[60].mxu0 %v23085_v33 }
 0x710   :  { %15875 = vmatprep.mubr.msk.bf16.mxu0 %vm4730_vm0, %v23094_v28 }
 0x717   :  { %6212 = vmatmul.mubr.bf16.vlgmr.msra.gmra.mrb[0].mxu0 %v23092_v62 }
 0x718   :  { %6293 = vmatpush1.bf16.msra.mxu0 %v19167_v27  ;;  %15876 = vmatprep.mubr.msk.bf16.mxu0 %vm4730_vm0, %v23108_v29  ;;  %v19170_v27 = vld [vmem:[%s27128_s4 + $0x3b0] ss:$12 sps:$4 sm:$0xff]  }
 0x719   :  { %6294 = vmatprep.subr.bf16.mxu0 %v27309_v53 }
 0x71c   :  { %6295 = vmatpush1.bf16.msra.mxu0 %v19168_v50  ;;  %v19212_v50 = vld [vmem:[%s27129_s5 + $0x578] ss:$24 sps:$4 sm:$0xff]  }
 0x71d   :  { %6296 = vmatprep.subr.bf16.mxu0 %v27309_v53  ;;  %7587 = vmatpush1.bf16.msra.mxu1 %v19212_v50  ;;  %v19238_v50 = vld [vmem:[%s27129_s5 + $0x63c] ss:$24 sps:$4 sm:$0xff]  }
 0x71e   :  { %7588 = vmatprep.subr.bf16.mxu1 %v19220_v37  ;;  %v19175_v37 = vld [vmem:[%s27128_s4 + $0x428] ss:$12 sps:$4 sm:$0xff]  }
 0x71f   :  { %6222 = vmatmul.mubr.bf16.gmra.mrb[4].mxu0 %v23106_v36 }
 0x720   :  { %15877 = vmatprep.mubr.msk.bf16.mxu0 %vm4730_vm0, %v23123_v18  ;;  %6297 = vmatpush1.bf16.msra.mxu0 %v19169_v15  ;;  %v19218_v15 = vld [vmem:[%s27129_s5 + $0x5a8] ss:$24 sps:$4 sm:$0xff]  }
 0x721   :  { %6298 = vmatprep.subr.bf16.mxu0 %v27309_v53  ;;  %7589 = vmatpush1.bf16.msra.mxu1 %v19218_v15  ;;  %v19244_v15 = vld [vmem:[%s27129_s5 + $0x66c] ss:$24 sps:$4 sm:$0xff]  }
 0x722   :  { %7590 = vmatprep.subr.bf16.mxu1 %v19226_v21  ;;  %v19176_v21 = vld [vmem:[%s27128_s4 + $0x440] ss:$12 sps:$4 sm:$0xff]  }
 0x724   :  { %6299 = vmatpush1.bf16.msra.mxu0 %v19170_v27  ;;  %v19224_v27 = vld [vmem:[%s27129_s5 + $0x5d8] ss:$24 sps:$4 sm:$0xff]  }
 0x725   :  { %6300 = vmatprep.subr.bf16.mxu0 %v27309_v53  ;;  %7591 = vmatpush1.bf16.msra.mxu1 %v19224_v27  ;;  %v19177_v27 = vld [vmem:[%s27128_s4 + $0x458] ss:$12 sps:$4 sm:$0xff]  }
 0x726   :  { %7592 = vmatprep.subr.bf16.mxu1 %v19232_v1  ;;  %v19178_v1 = vld [vmem:[%s27128_s4 + $0x470] ss:$12 sps:$4 sm:$0xff]  }
 0x727   :  { %6232 = vmatmul.mubr.bf16.gmra.mrb[8].mxu0 %v23121_v56 }
 0x728   :  { %15878 = vmatprep.mubr.msk.bf16.mxu0 %vm4730_vm0, %v23138_v2  ;;  %6301 = vmatpush1.bf16.msra.mxu0 %v19171_v61  ;;  %v19230_v61 = vld [vmem:[%s27129_s5 + $0x608] ss:$24 sps:$4 sm:$0xff]  }
 0x729   :  { %6302 = vmatprep.subr.bf16.mxu0 %v27309_v53  ;;  %7593 = vmatpush1.bf16.msra.mxu1 %v19230_v61  ;;  %v19179_v61 = vld [vmem:[%s27129_s5 + $0x480] ss:$24 sps:$4 sm:$0xff]  }
 0x72a   :  { %7594 = vmatprep.subr.bf16.mxu1 %v19238_v50  ;;  %v19187_v50 = vld [vmem:[%s27129_s5 + $0x4b4] ss:$24 sps:$4 sm:$0xff]  }
 0x72c   :  { %6303 = vmatpush1.bf16.msra.mxu0 %v19172_v22  ;;  %v19236_v22 = vld [vmem:[%s27129_s5 + $0x638] ss:$24 sps:$4 sm:$0xff]  }
 0x72d   :  { %6304 = vmatprep.subr.bf16.mxu0 %v27309_v53  ;;  %7595 = vmatpush1.bf16.msra.mxu1 %v19236_v22  ;;  %v19193_v22 = vld [vmem:[%s27129_s5 + $0x4e4] ss:$24 sps:$4 sm:$0xff]  }
 0x72e   :  { %7596 = vmatprep.subr.bf16.mxu1 %v19244_v15  ;;  %v19191_v15 = vld [vmem:[%s27129_s5 + $0x4e0] ss:$24 sps:$4 sm:$0xff]  }
 0x72f   :  { %6242 = vmatmul.mubr.bf16.gmra.mrb[12].mxu0 %v23136_v47 }
 0x730   :  { %15879 = vmatprep.mubr.msk.bf16.mxu0 %vm4730_vm0, %v23153_v8  ;;  %6305 = vmatpush1.bf16.msra.mxu0 %v19173_v30  ;;  %v19242_v30 = vld [vmem:[%s27129_s5 + $0x668] ss:$24 sps:$4 sm:$0xff]  }
 0x731   :  { %6306 = vmatprep.subr.bf16.mxu0 %v27309_v53  ;;  %7597 = vmatpush1.bf16.msra.mxu1 %v19242_v30  ;;  %v19197_v30 = vld [vmem:[%s27129_s5 + $0x510] ss:$24 sps:$4 sm:$0xff]  }
 0x734   :  { %6307 = vmatpush1.bf16.msra.mxu0 %v19174_v24  ;;  %v19181_v24 = vld [vmem:[%s27129_s5 + $0x484] ss:$24 sps:$4 sm:$0xff]  }
 0x735   :  { %6308 = vmatprep.subr.bf16.mxu0 %v27309_v53 }
 0x737   :  { %6252 = vmatmul.mubr.bf16.gmra.mrb[16].mxu0 %v23151_v59 }
 0x738   :  { %15880 = vmatprep.mubr.msk.bf16.mxu0 %vm4730_vm0, %v23168_v54  ;;  %6309 = vmatpush1.bf16.msra.mxu0 %v19175_v37  ;;  %v19185_v37 = vld [vmem:[%s27129_s5 + $0x4b0] ss:$24 sps:$4 sm:$0xff]  }
 0x739   :  { %6310 = vmatprep.subr.bf16.mxu0 %v27309_v53 }
 0x73c   :  { %6311 = vmatpush1.bf16.msra.mxu0 %v19176_v21  ;;  %v19199_v21 = vld [vmem:[%s27129_s5 + $0x514] ss:$24 sps:$4 sm:$0xff]  }
 0x73d   :  { %6312 = vmatprep.subr.bf16.mxu0 %v27309_v53 }
 0x73f   :  { %6262 = vmatmul.mubr.bf16.gmra.mrb[20].mxu0 %v23166_v52 }
 0x740   :  { %15881 = vmatprep.mubr.msk.bf16.mxu0 %vm4730_vm0, %v23186_v3  ;;  %6313 = vmatpush1.bf16.msra.mxu0 %v19177_v27  ;;  %v19205_v27 = vld [vmem:[%s27129_s5 + $0x544] ss:$24 sps:$4 sm:$0xff]  }
 0x741   :  { %6314 = vmatprep.subr.bf16.mxu0 %v27309_v53 }
 0x744   :  { %6315 = vmatpush1.bf16.msra.mxu0 %v19178_v1  ;;  %v19203_v1 = vld [vmem:[%s27129_s5 + $0x540] ss:$24 sps:$4 sm:$0xff]  }
 0x745   :  { %7470 = vmatprep.subr.bf16.mxu0 %v19181_v24  ;;  %v19211_v24 = vld [vmem:[%s27129_s5 + $0x574] ss:$24 sps:$4 sm:$0xff]  }
 0x747   :  { %6272 = vmatmul.mubr.bf16.gmra.mrb[24].mxu0 %v23184_v49 }
 0x748   :  { %15882 = vmatprep.mubr.msk.bf16.mxu0 %vm4730_vm0, %v23193_v0 }
 0x74f   :  { %6282 = vmatmul.mubr.bf16.gmra.mrb[28].mxu0 %v23191_v57 }
 0x750   :  { %15883 = vmatprep.mubr.msk.bf16.mxu0 %vm4730_vm0, %v23094_v28 }
 0x757   :  { %6325 = vmatmul.mubr.bf16.vlgmr.msra.gmra.mrb[32].mxu0 %v23092_v62 }
 0x758   :  { %15884 = vmatprep.mubr.msk.bf16.mxu0 %vm4730_vm0, %v23108_v29  ;;  %7471 = vmatpush1.bf16.msra.mxu0 %v19179_v61  ;;  %v19209_v61 = vld [vmem:[%s27129_s5 + $0x570] ss:$24 sps:$4 sm:$0xff]  }
 0x759   :  { %7472 = vmatprep.subr.bf16.mxu0 %v19187_v50  ;;  %v19217_v50 = vld [vmem:[%s27129_s5 + $0x5a4] ss:$24 sps:$4 sm:$0xff]  }
 0x75c   :  { %7473 = vmatpush1.bf16.msra.mxu0 %v19185_v37  ;;  %v19215_v37 = vld [vmem:[%s27129_s5 + $0x5a0] ss:$24 sps:$4 sm:$0xff]  }
 0x75d   :  { %7474 = vmatprep.subr.bf16.mxu0 %v19193_v22  ;;  %v19250_v22 = vld [vmem:[%s27129_s5 + $0x69c] ss:$24 sps:$4 sm:$0xff]  }
 0x75e   :  { %7598 = vmatprep.subr.bf16.mxu1 %v19250_v22  ;;  %v19260_v22 = vld [vmem:[%s27129_s5 + $0x6f8] ss:$24 sps:$4 sm:$0xff]  }
 0x75f   :  { %6333 = vmatmul.mubr.bf16.gmra.mrb[36].mxu0 %v23106_v36 }
 0x760   :  { %15885 = vmatprep.mubr.msk.bf16.mxu0 %vm4730_vm0, %v23123_v18  ;;  %7475 = vmatpush1.bf16.msra.mxu0 %v19191_v15  ;;  %v19223_v15 = vld [vmem:[%s27129_s5 + $0x5d4] ss:$24 sps:$4 sm:$0xff]  }
 0x761   :  { %7476 = vmatprep.subr.bf16.mxu0 %v19199_v21  ;;  %v19248_v21 = vld [vmem:[%s27129_s5 + $0x698] ss:$24 sps:$4 sm:$0xff]  }
 0x762   :  { %7599 = vmatpush1.bf16.msra.mxu1 %v19248_v21  ;;  %v19266_v21 = vld [vmem:[%s27129_s5 + $0x728] ss:$24 sps:$4 sm:$0xff]  }
 0x764   :  { %7477 = vmatpush1.bf16.msra.mxu0 %v19197_v30  ;;  %v19221_v30 = vld [vmem:[%s27129_s5 + $0x5d0] ss:$24 sps:$4 sm:$0xff]  }
 0x765   :  { %7478 = vmatprep.subr.bf16.mxu0 %v19205_v27  ;;  %v19229_v27 = vld [vmem:[%s27129_s5 + $0x604] ss:$24 sps:$4 sm:$0xff]  }
 0x767   :  { %6341 = vmatmul.mubr.bf16.gmra.mrb[40].mxu0 %v23121_v56 }
 0x768   :  { %15886 = vmatprep.mubr.msk.bf16.mxu0 %vm4730_vm0, %v23138_v2  ;;  %7479 = vmatpush1.bf16.msra.mxu0 %v19203_v1  ;;  %v19254_v1 = vld [vmem:[%s27129_s5 + $0x6c8] ss:$24 sps:$4 sm:$0xff]  }
 0x769   :  { %7480 = vmatprep.subr.bf16.mxu0 %v19211_v24  ;;  %v19256_v24 = vld [vmem:[%s27129_s5 + $0x6cc] ss:$24 sps:$4 sm:$0xff]  }
 0x76a   :  { %7600 = vmatprep.subr.bf16.mxu1 %v19256_v24  ;;  %v19274_v24 = vld [vmem:[%s27129_s5 + $0x75c] ss:$24 sps:$4 sm:$0xff]  }
 0x76b   :  { %7601 = vmatpush1.bf16.msra.mxu1 %v19254_v1  ;;  %v19239_v1 = vld [vmem:[%s27129_s5 + $0x660] ss:$24 sps:$4 sm:$0xff]  }
 0x76c   :  { %7481 = vmatpush1.bf16.msra.mxu0 %v19209_v61  ;;  %v19227_v61 = vld [vmem:[%s27129_s5 + $0x600] ss:$24 sps:$4 sm:$0xff]  }
 0x76d   :  { %7482 = vmatprep.subr.bf16.mxu0 %v19217_v50  ;;  %v19262_v50 = vld [vmem:[%s27129_s5 + $0x6fc] ss:$24 sps:$4 sm:$0xff]  }
 0x76e   :  { %7602 = vmatprep.subr.bf16.mxu1 %v19262_v50  ;;  %v19247_v50 = vld [vmem:[%s27129_s5 + $0x694] ss:$24 sps:$4 sm:$0xff]  }
 0x76f   :  { %6349 = vmatmul.mubr.bf16.gmra.mrb[44].mxu0 %v23136_v47  ;;  %7603 = vmatpush1.bf16.msra.mxu1 %v19260_v22  ;;  %v19253_v22 = vld [vmem:[%s27129_s5 + $0x6c4] ss:$24 sps:$4 sm:$0xff]  }
 0x770   :  { %15887 = vmatprep.mubr.msk.bf16.mxu0 %vm4730_vm0, %v23153_v8  ;;  %7483 = vmatpush1.bf16.msra.mxu0 %v19215_v37  ;;  %v19235_v37 = vld [vmem:[%s27129_s5 + $0x634] ss:$24 sps:$4 sm:$0xff]  }
 0x771   :  { %7484 = vmatprep.subr.bf16.mxu0 %v19223_v15  ;;  %v19233_v15 = vld [vmem:[%s27129_s5 + $0x630] ss:$24 sps:$4 sm:$0xff]  }
 0x774   :  { %7485 = vmatpush1.bf16.msra.mxu0 %v19221_v30  ;;  %v19241_v30 = vld [vmem:[%s27129_s5 + $0x664] ss:$24 sps:$4 sm:$0xff]  }
 0x775   :  { %7486 = vmatprep.subr.bf16.mxu0 %v19229_v27  ;;  %v19268_v27 = vld [vmem:[%s27129_s5 + $0x72c] ss:$24 sps:$4 sm:$0xff]  }
 0x776   :  { %7604 = vmatprep.subr.bf16.mxu1 %v19268_v27  ;;  %v19265_v27 = vld [vmem:[%s27129_s5 + $0x724] ss:$24 sps:$4 sm:$0xff]  }
 0x777   :  { %6357 = vmatmul.mubr.bf16.gmra.mrb[48].mxu0 %v23151_v59  ;;  %7605 = vmatpush1.bf16.msra.mxu1 %v19266_v21  ;;  %v19259_v21 = vld [vmem:[%s27129_s5 + $0x6f4] ss:$24 sps:$4 sm:$0xff]  }
 0x778   :  { %15888 = vmatprep.mubr.msk.bf16.mxu0 %vm4730_vm0, %v23168_v54  ;;  %7487 = vmatpush1.bf16.msra.mxu0 %v19227_v61  ;;  %v19272_v61 = vld [vmem:[%s27129_s5 + $0x758] ss:$24 sps:$4 sm:$0xff]  }
 0x779   :  { %7488 = vmatprep.subr.bf16.mxu0 %v19235_v37  ;;  %7606 = vmatprep.subr.bf16.mxu1 %v19274_v24  ;;  %v19245_v37 = vld [vmem:[%s27129_s5 + $0x690] ss:$24 sps:$4 sm:$0xff]   ;;  %v19271_v24 = vld [vmem:[%s27129_s5 + $0x754] ss:$24 sps:$4 sm:$0xff]  }
 0x77b   :  { %7607 = vmatpush1.bf16.msra.mxu1 %v19272_v61  ;;  %v19277_v61 = vld [vmem:[%s27129_s5 + $0x784] ss:$24 sps:$4 sm:$0xff]  }
 0x77c   :  { %7489 = vmatpush1.bf16.msra.mxu0 %v19233_v15  ;;  %v19251_v15 = vld [vmem:[%s27129_s5 + $0x6c0] ss:$24 sps:$4 sm:$0xff]  }
 0x77d   :  { %7490 = vmatprep.subr.bf16.mxu0 %v19241_v30  ;;  %v19257_v30 = vld [vmem:[%s27129_s5 + $0x6f0] ss:$24 sps:$4 sm:$0xff]  }
 0x77f   :  { %6365 = vmatmul.mubr.bf16.gmra.mrb[52].mxu0 %v23166_v52 }
 0x780   :  { %15889 = vmatprep.mubr.msk.bf16.mxu0 %vm4730_vm0, %v23186_v3  ;;  %7491 = vmatpush1.bf16.msra.mxu0 %v19239_v1  ;;  %v19263_v1 = vld [vmem:[%s27129_s5 + $0x720] ss:$24 sps:$4 sm:$0xff]  }
 0x781   :  { %7492 = vmatprep.subr.bf16.mxu0 %v19247_v50  ;;  %v19269_v50 = vld [vmem:[%s27129_s5 + $0x750] ss:$24 sps:$4 sm:$0xff]  }
 0x784   :  { %7493 = vmatpush1.bf16.msra.mxu0 %v19245_v37  ;;  %v19280_v37 = vld [vmem:[%s27129_s5 + $0x78c] ss:$24 sps:$4 sm:$0xff]  }
 0x785   :  { %7494 = vmatprep.subr.bf16.mxu0 %v19253_v22  ;;  %7629 = vmatprep.subr.bf16.mxu1 %v19280_v37 }
 0x787   :  { %6373 = vmatmul.mubr.bf16.gmra.mrb[56].mxu0 %v23184_v49 }
 0x788   :  { %15890 = vmatprep.mubr.msk.bf16.mxu0 %vm4730_vm0, %v23193_v0  ;;  %7495 = vmatpush1.bf16.msra.mxu0 %v19251_v15 }
 0x789   :  { %7496 = vmatprep.subr.bf16.mxu0 %v19259_v21 }
 0x78c   :  { %7497 = vmatpush1.bf16.msra.mxu0 %v19257_v30 }
 0x78d   :  { %7498 = vmatprep.subr.bf16.mxu0 %v19265_v27 }
 0x78f   :  { %6381 = vmatmul.mubr.bf16.gmra.mrb[60].mxu0 %v23191_v57 }
 0x790   :  { %7499 = vmatpush1.bf16.msra.mxu0 %v19263_v1 }
 0x791   :  { %7500 = vmatprep.subr.bf16.mxu0 %v19271_v24 }
 0x794   :  { %7501 = vmatpush1.bf16.msra.mxu0 %v19269_v50 }
 0x795   :  { %7523 = vmatprep.subr.bf16.mxu0 %v19277_v61 }
 0x7ea   :  { %v6213_v22 = vpop.f32.mrb[0].mxu0 }
 0x7eb   :  { %v6215_v15 = vpop.f32.mrb[1].mxu0 }
 0x7ec   :  { %v6217_v21 = vpop.f32.mrb[2].mxu0 }
 0x7ed   :  { %v23751_v30 = vpack.c.bf16 %v6217_v21, %v6213_v22  ;;  %v6219_v27 = vpop.f32.mrb[3].mxu0  ;;  %v19275_v22 = vld [vmem:[%s27129_s5 + $0x780] ss:$24 sps:$4 sm:$0xff]  }
 0x7ee   :  { %v23753_v57 = vpack.c.bf16 %v6219_v27, %v6215_v15  ;;  %v19278_v15 = vld [vmem:[%s27129_s5 + $0x788] ss:$24 sps:$4 sm:$0xff]  }
 0x7f2   :  { %v6223_v1 = vpop.f32.mrb[4].mxu0 }
 0x7f3   :  { %v6225_v24 = vpop.f32.mrb[5].mxu0 }
 0x7f4   :  { %v6227_v50 = vpop.f32.mrb[6].mxu0 }
 0x7f5   :  { %v23755_v33 = vpack.c.bf16 %v6227_v50, %v6223_v1  ;;  %v6229_v60 = vpop.f32.mrb[7].mxu0  ;;  %v19289_v1 = vld [vmem:[%s27129_s5 + $0x7e4] ss:$24 sps:$4 sm:$0xff]  }
 0x7f6   :  { %v23757_v0 = vpack.c.bf16 %v6229_v60, %v6225_v24  ;;  %v19283_v60 = vld [vmem:[%s27129_s5 + $0x7b4] ss:$24 sps:$4 sm:$0xff]  }
 0x7f7   :  { %v19292_v24 = vld [vmem:[%s27129_s5 + $0x7ec] ss:$24 sps:$4 sm:$0xff]  }
 0x7fa   :  { %v6233_v49 = vpop.f32.mrb[8].mxu0 }
 0x7fb   :  { %v6235_v45 = vpop.f32.mrb[9].mxu0 }
 0x7fc   :  { %v6237_v61 = vpop.f32.mrb[10].mxu0 }
 0x7fd   :  { %v23759_v37 = vpack.c.bf16 %v6237_v61, %v6233_v49  ;;  %v6239_v25 = vpop.f32.mrb[11].mxu0  ;;  %v19286_v49 = vld [vmem:[%s27129_s5 + $0x7bc] ss:$24 sps:$4 sm:$0xff]  }
 0x7fe   :  { %v23767_v21 = vpack.c.bf16 %v6239_v25, %v6235_v45  ;;  %v19281_v25 = vld [vmem:[%s27129_s5 + $0x7b0] ss:$24 sps:$4 sm:$0xff]  }
 0x7ff   :  { %v19284_v45 = vld [vmem:[%s27129_s5 + $0x7b8] ss:$24 sps:$4 sm:$0xff]  }
 0x800   :  { %27437 = vst [vmem:[#allocation39_spill] sm:$0xff] %v23767_v21  ;;  %7502 = vmatprep.mubr.bf16.mxu0 %v23767_v21  ;;  %7608 = vmatprep.mubr.bf16.mxu1 %v23767_v21 }
 0x801   :  { %7503 = vmatmul.mubr.bf16.vlgmr.msra.gmra.mrb[64].mxu0 %v23759_v37  ;;  %7609 = vmatmul.mubr.bf16.vlgmr.msra.gmra.mrb[128].mxu1 %v23759_v37 }
 0x802   :  { %v6243_v27 = vpop.f32.mrb[12].mxu0  ;;  %7524 = vmatpush1.bf16.msra.mxu0 %v19275_v22  ;;  %7630 = vmatpush1.bf16.msra.mxu1 %v19278_v15  ;;  %v19287_v22 = vld [vmem:[%s27129_s5 + $0x7e0] ss:$24 sps:$4 sm:$0xff]  }
 0x803   :  { %v6245_v50 = vpop.f32.mrb[13].mxu0  ;;  %7525 = vmatprep.subr.bf16.mxu0 %v19283_v60  ;;  %7631 = vmatprep.subr.bf16.mxu1 %v19286_v49  ;;  %v19290_v15 = vld [vmem:[%s27129_s5 + $0x7e8] ss:$24 sps:$4 sm:$0xff]   ;;  %v19295_v60 = vld [vmem:[%s27129_s5 + $0x814] ss:$24 sps:$4 sm:$0xff]  }
 0x804   :  { %v6247_v61 = vpop.f32.mrb[14].mxu0 }
 0x805   :  { %v23791_v31 = vpack.c.bf16 %v6247_v61, %v6243_v27  ;;  %v6249_v3 = vpop.f32.mrb[15].mxu0 }
 0x806   :  { %v23793_v52 = vpack.c.bf16 %v6249_v3, %v6245_v50  ;;  %7526 = vmatpush1.bf16.msra.mxu0 %v19281_v25  ;;  %7632 = vmatpush1.bf16.msra.mxu1 %v19284_v45  ;;  %v19298_v3 = vld [vmem:[%s27129_s5 + $0x81c] ss:$24 sps:$4 sm:$0xff]   ;;  %v19293_v25 = vld [vmem:[%s27129_s5 + $0x810] ss:$24 sps:$4 sm:$0xff]  }
 0x807   :  { %7527 = vmatprep.subr.bf16.mxu0 %v19289_v1  ;;  %7633 = vmatprep.subr.bf16.mxu1 %v19292_v24  ;;  %v19296_v45 = vld [vmem:[%s27129_s5 + $0x818] ss:$24 sps:$4 sm:$0xff]   ;;  %v19301_v1 = vld [vmem:[%s27129_s5 + $0x844] ss:$24 sps:$4 sm:$0xff]  }
 0x808   :  { %7512 = vmatprep.mubr.bf16.mxu0 %v23793_v52  ;;  %7618 = vmatprep.mubr.bf16.mxu1 %v23793_v52  ;;  %v19304_v24 = vld [vmem:[%s27129_s5 + $0x84c] ss:$24 sps:$4 sm:$0xff]  }
 0x809   :  { %7513 = vmatmul.mubr.bf16.gmra.mrb[68].mxu0 %v23791_v31  ;;  %7619 = vmatmul.mubr.bf16.gmra.mrb[132].mxu1 %v23791_v31 }
 0x80a   :  { %v6253_v49 = vpop.f32.mrb[16].mxu0  ;;  %7528 = vmatpush1.bf16.msra.mxu0 %v19287_v22  ;;  %7634 = vmatpush1.bf16.msra.mxu1 %v19290_v15 }
 0x80b   :  { %v6255_v27 = vpop.f32.mrb[17].mxu0  ;;  %7529 = vmatprep.subr.bf16.mxu0 %v19295_v60  ;;  %7635 = vmatprep.subr.bf16.mxu1 %v19298_v3  ;;  %v19299_v60 = vld [vmem:[%s27129_s5 + $0x840] ss:$24 sps:$4 sm:$0xff]  }
 0x80c   :  { %v6257_v50 = vpop.f32.mrb[18].mxu0  ;;  %7555 = vmatprep.mubr.bf16.mxu0 %v27309_v53  ;;  %7661 = vmatprep.mubr.bf16.mxu1 %v27309_v53  ;;  %v19302_v3 = vld [vmem:[%s27129_s5 + $0x848] ss:$24 sps:$4 sm:$0xff]  }
 0x80d   :  { %v23825_v61 = vpack.c.bf16 %v6257_v50, %v6253_v49  ;;  %v6259_v22 = vpop.f32.mrb[19].mxu0  ;;  %v19307_v49 = vld [vmem:[%s27129_s5 + $0x874] ss:$24 sps:$4 sm:$0xff]   ;;  %v19313_v50 = vld [vmem:[%s27129_s5 + $0x8a4] ss:$24 sps:$4 sm:$0xff]  }
 0x80e   :  { %v23827_v15 = vpack.c.bf16 %v6259_v22, %v6255_v27  ;;  %7530 = vmatpush1.bf16.msra.mxu0 %v19293_v25  ;;  %7636 = vmatpush1.bf16.msra.mxu1 %v19296_v45  ;;  %v19310_v27 = vld [vmem:[%s27129_s5 + $0x87c] ss:$24 sps:$4 sm:$0xff]   ;;  %v19305_v45 = vld [vmem:[%s27129_s5 + $0x870] ss:$24 sps:$4 sm:$0xff]   ;;  %v19316_v22 = vld [vmem:[%s27129_s5 + $0x8ac] ss:$24 sps:$4 sm:$0xff]  }
 0x80f   :  { %7531 = vmatprep.subr.bf16.mxu0 %v19301_v1  ;;  %7637 = vmatprep.subr.bf16.mxu1 %v19304_v24  ;;  %v19308_v1 = vld [vmem:[%s27129_s5 + $0x878] ss:$24 sps:$4 sm:$0xff]  }
 0x812   :  { %v6263_v25 = vpop.f32.mrb[20].mxu0  ;;  %7532 = vmatpush1.bf16.msra.mxu0 %v19299_v60  ;;  %7638 = vmatpush1.bf16.msra.mxu1 %v19302_v3 }
 0x813   :  { %v6265_v24 = vpop.f32.mrb[21].mxu0  ;;  %7533 = vmatprep.subr.bf16.mxu0 %v19307_v49  ;;  %7639 = vmatprep.subr.bf16.mxu1 %v19310_v27  ;;  %v19311_v49 = vld [vmem:[%s27129_s5 + $0x8a0] ss:$24 sps:$4 sm:$0xff]  }
 0x814   :  { %v6267_v60 = vpop.f32.mrb[22].mxu0  ;;  %v19314_v27 = vld [vmem:[%s27129_s5 + $0x8a8] ss:$24 sps:$4 sm:$0xff]  }
 0x815   :  { %v23853_v3 = vpack.c.bf16 %v6267_v60, %v6263_v25  ;;  %v6269_v44 = vpop.f32.mrb[23].mxu0  ;;  %v19319_v25 = vld [vmem:[%s27129_s5 + $0x8d4] ss:$24 sps:$4 sm:$0xff]  }
 0x816   :  { %v23855_v12 = vpack.c.bf16 %v6269_v44, %v6265_v24  ;;  %7534 = vmatpush1.bf16.msra.mxu0 %v19305_v45  ;;  %7640 = vmatpush1.bf16.msra.mxu1 %v19308_v1  ;;  %v19322_v44 = vld [vmem:[%s27129_s5 + $0x8dc] ss:$24 sps:$4 sm:$0xff]   ;;  %v19317_v1 = vld [vmem:[%s27129_s5 + $0x8d0] ss:$24 sps:$4 sm:$0xff]   ;;  %v19328_v60 = vld [vmem:[%s27129_s5 + $0xc] ss:$24 sps:$4 sm:$0xff]  }
 0x817   :  { %7535 = vmatprep.subr.bf16.mxu0 %v19313_v50  ;;  %7641 = vmatprep.subr.bf16.mxu1 %v19316_v22  ;;  %v19320_v24 = vld [vmem:[%s27129_s5 + $0x8d8] ss:$24 sps:$4 sm:$0xff]   ;;  %v19325_v22 = vld [vmem:[%s27129_s5 + $0x494] ss:$24 sps:$4 sm:$0xff]  }
 0x81a   :  { %v6273_v45 = vpop.f32.mrb[24].mxu0  ;;  %7536 = vmatpush1.bf16.msra.mxu0 %v19311_v49  ;;  %7642 = vmatpush1.bf16.msra.mxu1 %v19314_v27 }
 0x81b   :  { %v6275_v50 = vpop.f32.mrb[25].mxu0  ;;  %7537 = vmatprep.subr.bf16.mxu0 %v19319_v25  ;;  %7643 = vmatprep.subr.bf16.mxu1 %v19322_v44 }
 0x81c   :  { %v6277_v49 = vpop.f32.mrb[26].mxu0 }
 0x81d   :  { %v23881_v27 = vpack.c.bf16 %v6277_v49, %v6273_v45  ;;  %v6279_v46 = vpop.f32.mrb[27].mxu0 }
 0x81e   :  { %v23883_v54 = vpack.c.bf16 %v6279_v46, %v6275_v50  ;;  %7538 = vmatpush1.bf16.msra.mxu0 %v19317_v1  ;;  %7644 = vmatpush1.bf16.msra.mxu1 %v19320_v24 }
 0x81f   :  { %7682 = vmatprep.subr.bf16.mxu0 %v19325_v22  ;;  %8614 = vmatprep.subr.bf16.mxu1 %v19328_v60 }
 0x822   :  { %v6283_v25 = vpop.f32.mrb[28].mxu0 }
 0x823   :  { %v6285_v44 = vpop.f32.mrb[29].mxu0 }
 0x824   :  { %v6287_v59 = vpop.f32.mrb[30].mxu0 }
 0x825   :  { %v23885_v41 = vpack.c.bf16 %v6287_v59, %v6283_v25  ;;  %v6289_v39 = vpop.f32.mrb[31].mxu0  ;;  %v19331_v59 = vld [vmem:[%s27129_s5 + $0x4c4] ss:$24 sps:$4 sm:$0xff]   ;;  %v19332_v25 = vld [vmem:[%s27129_s5 + $0x38] ss:$24 sps:$4 sm:$0xff]  }
 0x826   :  { %v23887_v23 = vpack.c.bf16 %v6289_v39, %v6285_v44  ;;  %v19323_v39 = vld [vmem:[%s27129_s5 + $0x490] ss:$24 sps:$4 sm:$0xff]   ;;  %v19337_v44 = vld [vmem:[%s27129_s5 + $0x4f4] ss:$24 sps:$4 sm:$0xff]  }
 0x82a   :  { %v6326_v8 = vpop.f32.mrb[32].mxu0 }
 0x82b   :  { %v6328_v47 = vpop.f32.mrb[33].mxu0 }
 0x82c   :  { %v6329_v6 = vpop.f32.mrb[34].mxu0  ;;  %v19326_v47 = vld [vmem:[%s27129_s5 + $0x8] ss:$24 sps:$4 sm:$0xff]  }
 0x82d   :  { %v23889_v45 = vpack.c.bf16 %v6329_v6, %v6326_v8  ;;  %v6331_v49 = vpop.f32.mrb[35].mxu0 }
 0x82e   :  { %v19340_v49 = vld [vmem:[%s27129_s5 + $0x6c] ss:$24 sps:$4 sm:$0xff]  }
 0x82f   :  { %27438 = vst [vmem:[#allocation38_spill] sm:$0xff] %v23889_v45 }
 0x832   :  { %v6334_v46 = vpop.f32.mrb[36].mxu0 }
 0x833   :  { %v6336_v50 = vpop.f32.mrb[37].mxu0 }
 0x834   :  { %v6337_v1 = vpop.f32.mrb[38].mxu0 }
 0x835   :  { %v23891_v24 = vpack.c.bf16 %v6337_v1, %v6334_v46  ;;  %v6339_v22 = vpop.f32.mrb[39].mxu0 }
 0x836   :  { %v19335_v22 = vld [vmem:[%s27129_s5 + $0x4f0] ss:$24 sps:$4 sm:$0xff]  }
 0x837   :  { %27439 = vst [vmem:[#allocation37_spill] sm:$0xff] %v23891_v24 }
 0x83a   :  { %v6342_v60 = vpop.f32.mrb[40].mxu0 }
 0x83b   :  { %v6344_v48 = vpop.f32.mrb[41].mxu0 }
 0x83c   :  { %v6345_v51 = vpop.f32.mrb[42].mxu0  ;;  %v19334_v48 = vld [vmem:[%s27129_s5 + $0x3c] ss:$24 sps:$4 sm:$0xff]  }
 0x83d   :  { %v23899_v8 = vpack.c.bf16 %v6345_v51, %v6342_v60  ;;  %v6347_v6 = vpop.f32.mrb[43].mxu0  ;;  %v19329_v51 = vld [vmem:[%s27129_s5 + $0x4c0] ss:$24 sps:$4 sm:$0xff]  }
 0x83e   :  { %v19338_v60 = vld [vmem:[%s27129_s5 + $0x68] ss:$24 sps:$4 sm:$0xff]   ;;  %v19343_v6 = vld [vmem:[%s27129_s5 + $0x524] ss:$24 sps:$4 sm:$0xff]  }
 0x83f   :  { %27440 = vst [vmem:[#allocation36_spill] sm:$0xff] %v23899_v8  ;;  %7556 = vmatmul.mubr.bf16.vlgmr.msra.gmra.mrb[64].mxu0 %v23899_v8  ;;  %7662 = vmatmul.mubr.bf16.vlgmr.msra.gmra.mrb[128].mxu1 %v23899_v8 }
 0x840   :  { %7683 = vmatpush1.bf16.msra.mxu0 %v19323_v39  ;;  %8615 = vmatpush1.bf16.msra.mxu1 %v19326_v47 }
 0x841   :  { %7684 = vmatprep.subr.bf16.mxu0 %v19331_v59  ;;  %8616 = vmatprep.subr.bf16.mxu1 %v19334_v48  ;;  %v19346_v59 = vld [vmem:[%s27129_s5 + $0x9c] ss:$24 sps:$4 sm:$0xff]   ;;  %v19341_v48 = vld [vmem:[%s27129_s5 + $0x520] ss:$24 sps:$4 sm:$0xff]  }
 0x842   :  { %v6350_v46 = vpop.f32.mrb[44].mxu0  ;;  %7565 = vmatprep.mubr.bf16.mxu0 %v27309_v53  ;;  %7671 = vmatprep.mubr.bf16.mxu1 %v27309_v53 }
 0x843   :  { %v6352_v50 = vpop.f32.mrb[45].mxu0 }
 0x844   :  { %7685 = vmatpush1.bf16.msra.mxu0 %v19329_v51  ;;  %8617 = vmatpush1.bf16.msra.mxu1 %v19332_v25  ;;  %v6353_v1 = vpop.f32.mrb[46].mxu0  ;;  %v19344_v51 = vld [vmem:[%s27129_s5 + $0x98] ss:$24 sps:$4 sm:$0xff]   ;;  %v19349_v25 = vld [vmem:[%s27129_s5 + $0x554] ss:$24 sps:$4 sm:$0xff]  }
 0x845   :  { %v23929_v39 = vpack.c.bf16 %v6353_v1, %v6350_v46  ;;  %v6355_v47 = vpop.f32.mrb[47].mxu0  ;;  %7686 = vmatprep.subr.bf16.mxu0 %v19337_v44  ;;  %8618 = vmatprep.subr.bf16.mxu1 %v19340_v49  ;;  %v19352_v44 = vld [vmem:[%s27129_s5 + $0xcc] ss:$24 sps:$4 sm:$0xff]   ;;  %v19347_v1 = vld [vmem:[%s27129_s5 + $0x550] ss:$24 sps:$4 sm:$0xff]  }
 0x847   :  { %27441 = vst [vmem:[#allocation43_spill] sm:$0xff] %v23929_v39  ;;  %7566 = vmatmul.mubr.bf16.gmra.mrb[68].mxu0 %v23929_v39  ;;  %7672 = vmatmul.mubr.bf16.gmra.mrb[132].mxu1 %v23929_v39 }
 0x848   :  { %7687 = vmatpush1.bf16.msra.mxu0 %v19335_v22  ;;  %8619 = vmatpush1.bf16.msra.mxu1 %v19338_v60  ;;  %v19350_v22 = vld [vmem:[%s27129_s5 + $0xc8] ss:$24 sps:$4 sm:$0xff]  }
 0x849   :  { %7714 = vmatprep.mubr.bf16.mxu0 %v23767_v21  ;;  %8646 = vmatprep.mubr.bf16.mxu1 %v23753_v57 }
 0x84a   :  { %v6358_v49 = vpop.f32.mrb[48].mxu0  ;;  %7688 = vmatprep.subr.bf16.mxu0 %v19343_v6  ;;  %8620 = vmatprep.subr.bf16.mxu1 %v19346_v59  ;;  %v19355_v6 = vld [vmem:[%s27129_s5 + $0x584] ss:$24 sps:$4 sm:$0xff]  }
 0x84b   :  { %v6360_v46 = vpop.f32.mrb[49].mxu0  ;;  %v19358_v59 = vld [vmem:[%s27129_s5 + $0xfc] ss:$24 sps:$4 sm:$0xff]  }
 0x84c   :  { %7689 = vmatpush1.bf16.msra.mxu0 %v19341_v48  ;;  %8621 = vmatpush1.bf16.msra.mxu1 %v19344_v51  ;;  %v6361_v50 = vpop.f32.mrb[50].mxu0  ;;  %v19353_v48 = vld [vmem:[%s27129_s5 + $0x580] ss:$24 sps:$4 sm:$0xff]  }
 0x84d   :  { %v23959_v60 = vpack.c.bf16 %v6361_v50, %v6358_v49  ;;  %v6363_v47 = vpop.f32.mrb[51].mxu0  ;;  %7690 = vmatprep.subr.bf16.mxu0 %v19349_v25  ;;  %8622 = vmatprep.subr.bf16.mxu1 %v19352_v44  ;;  %v19356_v51 = vld [vmem:[%s27129_s5 + $0xf8] ss:$24 sps:$4 sm:$0xff]   ;;  %v19361_v25 = vld [vmem:[%s27129_s5 + $0x5b4] ss:$24 sps:$4 sm:$0xff]  }
 0x84e   :  { %v19364_v44 = vld [vmem:[%s27129_s5 + $0x12c] ss:$24 sps:$4 sm:$0xff]  }
 0x84f   :  { %27442 = vst [vmem:[#allocation42_spill] sm:$0xff] %v23959_v60 }
 0x850   :  { %7691 = vmatpush1.bf16.msra.mxu0 %v19347_v1  ;;  %8623 = vmatpush1.bf16.msra.mxu1 %v19350_v22  ;;  %v19359_v1 = vld [vmem:[%s27129_s5 + $0x5b0] ss:$24 sps:$4 sm:$0xff]  }
 0x851   :  { %7692 = vmatprep.subr.bf16.mxu0 %v19355_v6  ;;  %8624 = vmatprep.subr.bf16.mxu1 %v19358_v59  ;;  %v19362_v22 = vld [vmem:[%s27129_s5 + $0x128] ss:$24 sps:$4 sm:$0xff]   ;;  %v19367_v59 = vld [vmem:[%s27129_s5 + $0x5e4] ss:$24 sps:$4 sm:$0xff]  }
 0x852   :  { %v6366_v49 = vpop.f32.mrb[52].mxu0 }
 0x853   :  { %v6368_v46 = vpop.f32.mrb[53].mxu0 }
 0x854   :  { %7693 = vmatpush1.bf16.msra.mxu0 %v19353_v48  ;;  %8625 = vmatpush1.bf16.msra.mxu1 %v19356_v51  ;;  %v6369_v50 = vpop.f32.mrb[54].mxu0  ;;  %v19370_v48 = vld [vmem:[%s27129_s5 + $0x15c] ss:$24 sps:$4 sm:$0xff]   ;;  %v19365_v51 = vld [vmem:[%s27129_s5 + $0x5e0] ss:$24 sps:$4 sm:$0xff]  }
 0x855   :  { %v23985_v47 = vpack.c.bf16 %v6369_v50, %v6366_v49  ;;  %v6371_v6 = vpop.f32.mrb[55].mxu0  ;;  %7694 = vmatprep.subr.bf16.mxu0 %v19361_v25  ;;  %8626 = vmatprep.subr.bf16.mxu1 %v19364_v44  ;;  %v19368_v49 = vld [vmem:[%s27129_s5 + $0x158] ss:$24 sps:$4 sm:$0xff]   ;;  %v19373_v25 = vld [vmem:[%s27129_s5 + $0x614] ss:$24 sps:$4 sm:$0xff]  }
 0x856   :  { %v19376_v44 = vld [vmem:[%s27129_s5 + $0x18c] ss:$24 sps:$4 sm:$0xff]   ;;  %v19374_v6 = vld [vmem:[%s27129_s5 + $0x188] ss:$24 sps:$4 sm:$0xff]  }
 0x857   :  { %27443 = vst [vmem:[#allocation41_spill] sm:$0xff] %v23985_v47 }
 0x858   :  { %7695 = vmatpush1.bf16.msra.mxu0 %v19359_v1  ;;  %8627 = vmatpush1.bf16.msra.mxu1 %v19362_v22  ;;  %v19371_v22 = vld [vmem:[%s27129_s5 + $0x610] ss:$24 sps:$4 sm:$0xff]  }
 0x859   :  { %7696 = vmatprep.subr.bf16.mxu0 %v19367_v59  ;;  %8628 = vmatprep.subr.bf16.mxu1 %v19370_v48 }
 0x85a   :  { %v6374_v46 = vpop.f32.mrb[56].mxu0 }
 0x85b   :  { %v6376_v50 = vpop.f32.mrb[57].mxu0 }
 0x85c   :  { %7697 = vmatpush1.bf16.msra.mxu0 %v19365_v51  ;;  %8629 = vmatpush1.bf16.msra.mxu1 %v19368_v49  ;;  %v6377_v1 = vpop.f32.mrb[58].mxu0  ;;  %v19379_v50 = vld [vmem:[%s27129_s5 + $0x644] ss:$24 sps:$4 sm:$0xff]   ;;  %v19377_v49 = vld [vmem:[%s27129_s5 + $0x640] ss:$24 sps:$4 sm:$0xff]  }
 0x85d   :  { %v24011_v59 = vpack.c.bf16 %v6377_v1, %v6374_v46  ;;  %v6379_v48 = vpop.f32.mrb[59].mxu0  ;;  %7698 = vmatprep.subr.bf16.mxu0 %v19373_v25  ;;  %8630 = vmatprep.subr.bf16.mxu1 %v19376_v44  ;;  %v19382_v51 = vld [vmem:[%s27129_s5 + $0x1bc] ss:$24 sps:$4 sm:$0xff]   ;;  %v19380_v46 = vld [vmem:[%s27129_s5 + $0x1b8] ss:$24 sps:$4 sm:$0xff]  }
 0x85e   :  { %v19385_v25 = vld [vmem:[%s27129_s5 + $0x674] ss:$24 sps:$4 sm:$0xff]   ;;  %v19383_v48 = vld [vmem:[%s27129_s5 + $0x670] ss:$24 sps:$4 sm:$0xff]  }
 0x85f   :  { %27444 = vst [vmem:[#allocation40_spill] sm:$0xff] %v24011_v59  ;;  %v19388_v44 = vld [vmem:[%s27129_s5 + $0x1ec] ss:$24 sps:$4 sm:$0xff]  }
 0x860   :  { %7699 = vmatpush1.bf16.msra.mxu0 %v19371_v22  ;;  %8631 = vmatpush1.bf16.msra.mxu1 %v19374_v6 }
 0x861   :  { %7700 = vmatprep.subr.bf16.mxu0 %v19379_v50  ;;  %8632 = vmatprep.subr.bf16.mxu1 %v19382_v51  ;;  %v19386_v50 = vld [vmem:[%s27129_s5 + $0x1e8] ss:$24 sps:$4 sm:$0xff]  }
 0x862   :  { %v6382_v1 = vpop.f32.mrb[60].mxu0 }
 0x863   :  { %v6384_v22 = vpop.f32.mrb[61].mxu0 }
 0x864   :  { %7701 = vmatpush1.bf16.msra.mxu0 %v19377_v49  ;;  %8633 = vmatpush1.bf16.msra.mxu1 %v19380_v46  ;;  %v6385_v6 = vpop.f32.mrb[62].mxu0  ;;  %v19391_v22 = vld [vmem:[%s27129_s5 + $0x6a4] ss:$24 sps:$4 sm:$0xff]   ;;  %v19389_v46 = vld [vmem:[%s27129_s5 + $0x6a0] ss:$24 sps:$4 sm:$0xff]  }
 0x865   :  { %v24037_v51 = vpack.c.bf16 %v6385_v6, %v6382_v1  ;;  %v6387_v21 = vpop.f32.mrb[63].mxu0  ;;  %7702 = vmatprep.subr.bf16.mxu0 %v19385_v25  ;;  %8634 = vmatprep.subr.bf16.mxu1 %v19388_v44  ;;  %v19394_v49 = vld [vmem:[%s27129_s5 + $0x21c] ss:$24 sps:$4 sm:$0xff]   ;;  %v19400_v44 = vld [vmem:[%s27129_s5 + $0x24c] ss:$24 sps:$4 sm:$0xff]  }
 0x866   :  { %v19392_v21 = vld [vmem:[%s27129_s5 + $0x218] ss:$24 sps:$4 sm:$0xff]   ;;  %v19397_v25 = vld [vmem:[%s27129_s5 + $0x6d4] ss:$24 sps:$4 sm:$0xff]   ;;  %v19398_v6 = vld [vmem:[%s27129_s5 + $0x248] ss:$24 sps:$4 sm:$0xff]  }
 0x867   :  { %27445 = vst [vmem:[#allocation44_spill] sm:$0xff] %v24037_v51  ;;  %v19395_v1 = vld [vmem:[%s27129_s5 + $0x6d0] ss:$24 sps:$4 sm:$0xff]  }
 0x868   :  { %7703 = vmatpush1.bf16.msra.mxu0 %v19383_v48  ;;  %8635 = vmatpush1.bf16.msra.mxu1 %v19386_v50  ;;  %v19403_v48 = vld [vmem:[%s27129_s5 + $0x704] ss:$24 sps:$4 sm:$0xff]  }
 0x869   :  { %7704 = vmatprep.subr.bf16.mxu0 %v19391_v22  ;;  %8636 = vmatprep.subr.bf16.mxu1 %v19394_v49  ;;  %v19406_v50 = vld [vmem:[%s27129_s5 + $0x27c] ss:$24 sps:$4 sm:$0xff]   ;;  %v19401_v22 = vld [vmem:[%s27129_s5 + $0x700] ss:$24 sps:$4 sm:$0xff]  }
 0x86a   :  { %v19404_v49 = vld [vmem:[%s27129_s5 + $0x278] ss:$24 sps:$4 sm:$0xff]  }
 0x86c   :  { %7705 = vmatpush1.bf16.msra.mxu0 %v19389_v46  ;;  %8637 = vmatpush1.bf16.msra.mxu1 %v19392_v21  ;;  %v19409_v46 = vld [vmem:[%s27129_s5 + $0x734] ss:$24 sps:$4 sm:$0xff]  }
 0x86d   :  { %7706 = vmatprep.subr.bf16.mxu0 %v19397_v25  ;;  %8638 = vmatprep.subr.bf16.mxu1 %v19400_v44  ;;  %v19412_v21 = vld [vmem:[%s27129_s5 + $0x2ac] ss:$24 sps:$4 sm:$0xff]   ;;  %v19407_v25 = vld [vmem:[%s27129_s5 + $0x730] ss:$24 sps:$4 sm:$0xff]  }
 0x86e   :  { %v19410_v44 = vld [vmem:[%s27129_s5 + $0x2a8] ss:$24 sps:$4 sm:$0xff]  }
 0x870   :  { %7707 = vmatpush1.bf16.msra.mxu0 %v19395_v1  ;;  %8639 = vmatpush1.bf16.msra.mxu1 %v19398_v6  ;;  %v19415_v1 = vld [vmem:[%s27129_s5 + $0x764] ss:$24 sps:$4 sm:$0xff]  }
 0x871   :  { %7708 = vmatprep.subr.bf16.mxu0 %v19403_v48  ;;  %8640 = vmatprep.subr.bf16.mxu1 %v19406_v50  ;;  %v19418_v6 = vld [vmem:[%s27129_s5 + $0x2dc] ss:$24 sps:$4 sm:$0xff]   ;;  %v19413_v48 = vld [vmem:[%s27129_s5 + $0x760] ss:$24 sps:$4 sm:$0xff]  }
 0x872   :  { %v19416_v50 = vld [vmem:[%s27129_s5 + $0x2d8] ss:$24 sps:$4 sm:$0xff]  }
 0x874   :  { %7709 = vmatpush1.bf16.msra.mxu0 %v19401_v22  ;;  %8641 = vmatpush1.bf16.msra.mxu1 %v19404_v49  ;;  %v19421_v22 = vld [vmem:[%s27129_s5 + $0x794] ss:$24 sps:$4 sm:$0xff]  }
 0x875   :  { %7710 = vmatprep.subr.bf16.mxu0 %v19409_v46  ;;  %8642 = vmatprep.subr.bf16.mxu1 %v19412_v21  ;;  %v19424_v49 = vld [vmem:[%s27129_s5 + $0x30c] ss:$24 sps:$4 sm:$0xff]   ;;  %v19419_v46 = vld [vmem:[%s27129_s5 + $0x790] ss:$24 sps:$4 sm:$0xff]  }
 0x876   :  { %v19422_v21 = vld [vmem:[%s27129_s5 + $0x308] ss:$24 sps:$4 sm:$0xff]  }
 0x878   :  { %7711 = vmatpush1.bf16.msra.mxu0 %v19407_v25  ;;  %8643 = vmatpush1.bf16.msra.mxu1 %v19410_v44  ;;  %v19427_v25 = vld [vmem:[%s27129_s5 + $0x7c4] ss:$24 sps:$4 sm:$0xff]  }
 0x879   :  { %7712 = vmatprep.subr.bf16.mxu0 %v19415_v1  ;;  %8644 = vmatprep.subr.bf16.mxu1 %v19418_v6  ;;  %v19430_v44 = vld [vmem:[%s27129_s5 + $0x33c] ss:$24 sps:$4 sm:$0xff]   ;;  %v19425_v1 = vld [vmem:[%s27129_s5 + $0x7c0] ss:$24 sps:$4 sm:$0xff]  }
 0x87a   :  { %v19428_v6 = vld [vmem:[%s27129_s5 + $0x338] ss:$24 sps:$4 sm:$0xff]  }
 0x87c   :  { %7713 = vmatpush1.bf16.msra.mxu0 %v19413_v48  ;;  %8645 = vmatpush1.bf16.msra.mxu1 %v19416_v50  ;;  %v19433_v48 = vld [vmem:[%s27129_s5 + $0x7f4] ss:$24 sps:$4 sm:$0xff]  }
 0x87d   :  { %7735 = vmatprep.subr.bf16.mxu0 %v19421_v22  ;;  %8667 = vmatprep.subr.bf16.mxu1 %v19424_v49  ;;  %v19436_v50 = vld [vmem:[%s27129_s5 + $0x36c] ss:$24 sps:$4 sm:$0xff]   ;;  %v19431_v22 = vld [vmem:[%s27129_s5 + $0x7f0] ss:$24 sps:$4 sm:$0xff]  }
 0x87e   :  { %v19434_v49 = vld [vmem:[%s27129_s5 + $0x368] ss:$24 sps:$4 sm:$0xff]  }
 0x87f   :  { %7715 = vmatmul.mubr.bf16.vlgmr.msra.gmra.mrb[72].mxu0 %v23759_v37  ;;  %8647 = vmatmul.mubr.bf16.vlgmr.msra.gmra.mrb[128].mxu1 %v23751_v30 }
 0x880   :  { %7724 = vmatprep.mubr.bf16.mxu0 %v23793_v52  ;;  %7736 = vmatpush1.bf16.msra.mxu0 %v19419_v46  ;;  %v19439_v46 = vld [vmem:[%s27129_s5 + $0x824] ss:$24 sps:$4 sm:$0xff]  }
 0x881   :  { %8656 = vmatprep.mubr.bf16.mxu1 %v23757_v0  ;;  %8668 = vmatpush1.bf16.msra.mxu1 %v19422_v21  ;;  %v19442_v21 = vld [vmem:[%s27129_s5 + $0x39c] ss:$24 sps:$4 sm:$0xff]  }
 0x882   :  { %7737 = vmatprep.subr.bf16.mxu0 %v19427_v25  ;;  %8669 = vmatprep.subr.bf16.mxu1 %v19430_v44  ;;  %v19437_v25 = vld [vmem:[%s27129_s5 + $0x820] ss:$24 sps:$4 sm:$0xff]  }
 0x883   :  { %v19440_v44 = vld [vmem:[%s27129_s5 + $0x398] ss:$24 sps:$4 sm:$0xff]  }
 0x884   :  { %7738 = vmatpush1.bf16.msra.mxu0 %v19425_v1  ;;  %v19445_v1 = vld [vmem:[%s27129_s5 + $0x854] ss:$24 sps:$4 sm:$0xff]  }
 0x885   :  { %8670 = vmatpush1.bf16.msra.mxu1 %v19428_v6  ;;  %7739 = vmatprep.subr.bf16.mxu0 %v19433_v48  ;;  %v19448_v6 = vld [vmem:[%s27129_s5 + $0x3cc] ss:$24 sps:$4 sm:$0xff]   ;;  %v19443_v48 = vld [vmem:[%s27129_s5 + $0x850] ss:$24 sps:$4 sm:$0xff]  }
 0x886   :  { %8671 = vmatprep.subr.bf16.mxu1 %v19436_v50  ;;  %v19446_v50 = vld [vmem:[%s27129_s5 + $0x3c8] ss:$24 sps:$4 sm:$0xff]  }
 0x887   :  { %7725 = vmatmul.mubr.bf16.gmra.mrb[76].mxu0 %v23791_v31  ;;  %8657 = vmatmul.mubr.bf16.gmra.mrb[132].mxu1 %v23755_v33 }
 0x888   :  { %7740 = vmatpush1.bf16.msra.mxu0 %v19431_v22  ;;  %7767 = vmatprep.mubr.bf16.mxu0 %v27309_v53  ;;  %v19451_v22 = vld [vmem:[%s27129_s5 + $0x884] ss:$24 sps:$4 sm:$0xff]  }
 0x889   :  { %8672 = vmatpush1.bf16.msra.mxu1 %v19434_v49  ;;  %7741 = vmatprep.subr.bf16.mxu0 %v19439_v46  ;;  %v19454_v49 = vld [vmem:[%s27129_s5 + $0x3fc] ss:$24 sps:$4 sm:$0xff]   ;;  %v19449_v46 = vld [vmem:[%s27129_s5 + $0x880] ss:$24 sps:$4 sm:$0xff]  }
 0x88a   :  { %8673 = vmatprep.subr.bf16.mxu1 %v19442_v21  ;;  %8699 = vmatprep.mubr.bf16.mxu1 %v27309_v53  ;;  %v19452_v21 = vld [vmem:[%s27129_s5 + $0x3f8] ss:$24 sps:$4 sm:$0xff]  }
 0x88c   :  { %7742 = vmatpush1.bf16.msra.mxu0 %v19437_v25  ;;  %v19457_v25 = vld [vmem:[%s27129_s5 + $0x8b4] ss:$24 sps:$4 sm:$0xff]  }
 0x88d   :  { %8674 = vmatpush1.bf16.msra.mxu1 %v19440_v44  ;;  %7743 = vmatprep.subr.bf16.mxu0 %v19445_v1  ;;  %v19460_v44 = vld [vmem:[%s27129_s5 + $0x42c] ss:$24 sps:$4 sm:$0xff]   ;;  %v19455_v1 = vld [vmem:[%s27129_s5 + $0x8b0] ss:$24 sps:$4 sm:$0xff]  }
 0x88e   :  { %8675 = vmatprep.subr.bf16.mxu1 %v19448_v6  ;;  %v19458_v6 = vld [vmem:[%s27129_s5 + $0x428] ss:$24 sps:$4 sm:$0xff]  }
 0x890   :  { %7744 = vmatpush1.bf16.msra.mxu0 %v19443_v48  ;;  %v19463_v48 = vld [vmem:[%s27129_s5 + $0x8e4] ss:$24 sps:$4 sm:$0xff]  }
 0x891   :  { %8676 = vmatpush1.bf16.msra.mxu1 %v19446_v50  ;;  %7745 = vmatprep.subr.bf16.mxu0 %v19451_v22  ;;  %v19466_v50 = vld [vmem:[%s27129_s5 + $0x45c] ss:$24 sps:$4 sm:$0xff]   ;;  %v19461_v22 = vld [vmem:[%s27129_s5 + $0x8e0] ss:$24 sps:$4 sm:$0xff]  }
 0x892   :  { %8677 = vmatprep.subr.bf16.mxu1 %v19454_v49  ;;  %v19464_v49 = vld [vmem:[%s27129_s5 + $0x458] ss:$24 sps:$4 sm:$0xff]  }
 0x894   :  { %7746 = vmatpush1.bf16.msra.mxu0 %v19449_v46  ;;  %v19469_v46 = vld [vmem:[%s27129_s5 + $0x4] ss:$24 sps:$4 sm:$0xff]  }
 0x895   :  { %8678 = vmatpush1.bf16.msra.mxu1 %v19452_v21  ;;  %7747 = vmatprep.subr.bf16.mxu0 %v19457_v25  ;;  %v19472_v21 = vld [vmem:[%s27129_s5 + $0x90c] ss:$24 sps:$4 sm:$0xff]   ;;  %v19467_v25 = vld [vmem:[%s27129_s5] ss:$24 sps:$4 sm:$0xff]  }
 0x896   :  { %8679 = vmatprep.subr.bf16.mxu1 %v19460_v44  ;;  %v19470_v44 = vld [vmem:[%s27129_s5 + $0x908] ss:$24 sps:$4 sm:$0xff]  }
 0x898   :  { %7748 = vmatpush1.bf16.msra.mxu0 %v19455_v1  ;;  %v19475_v1 = vld [vmem:[%s27129_s5 + $0x34] ss:$24 sps:$4 sm:$0xff]  }
 0x899   :  { %8680 = vmatpush1.bf16.msra.mxu1 %v19458_v6  ;;  %7749 = vmatprep.subr.bf16.mxu0 %v19463_v48  ;;  %v19478_v6 = vld [vmem:[%s27129_s5 + $0x93c] ss:$24 sps:$4 sm:$0xff]   ;;  %v19473_v48 = vld [vmem:[%s27129_s5 + $0x30] ss:$24 sps:$4 sm:$0xff]  }
 0x89a   :  { %8681 = vmatprep.subr.bf16.mxu1 %v19466_v50  ;;  %v19476_v50 = vld [vmem:[%s27129_s5 + $0x938] ss:$24 sps:$4 sm:$0xff]  }
 0x89c   :  { %7750 = vmatpush1.bf16.msra.mxu0 %v19461_v22  ;;  %v19481_v22 = vld [vmem:[%s27129_s5 + $0x64] ss:$24 sps:$4 sm:$0xff]  }
 0x89d   :  { %8682 = vmatpush1.bf16.msra.mxu1 %v19464_v49  ;;  %8508 = vmatprep.subr.bf16.mxu0 %v19469_v46  ;;  %v19484_v49 = vld [vmem:[%s27129_s5 + $0x96c] ss:$24 sps:$4 sm:$0xff]   ;;  %v19479_v46 = vld [vmem:[%s27129_s5 + $0x60] ss:$24 sps:$4 sm:$0xff]  }
 0x89e   :  { %9797 = vmatprep.subr.bf16.mxu1 %v19472_v21  ;;  %v19482_v21 = vld [vmem:[%s27129_s5 + $0x968] ss:$24 sps:$4 sm:$0xff]  }
 0x89f   :  { %7768 = vmatmul.mubr.bf16.vlgmr.msra.gmra.mrb[72].mxu0 %v23899_v8  ;;  %v20157_v8 = vld [vmem:[%s27130_s6 + $0x130] ss:$8 sps:$4 sm:$0xff]  }
 0x8a0   :  { %8700 = vmatmul.mubr.bf16.vlgmr.msra.gmra.mrb[128].mxu1 %v23889_v45  ;;  %8509 = vmatpush1.bf16.msra.mxu0 %v19467_v25  ;;  %v19487_v25 = vld [vmem:[%s27129_s5 + $0x94] ss:$24 sps:$4 sm:$0xff]  }
 0x8a1   :  { %9798 = vmatpush1.bf16.msra.mxu1 %v19470_v44  ;;  %8510 = vmatprep.subr.bf16.mxu0 %v19475_v1  ;;  %v19490_v44 = vld [vmem:[%s27129_s5 + $0x99c] ss:$24 sps:$4 sm:$0xff]   ;;  %v19485_v1 = vld [vmem:[%s27129_s5 + $0x90] ss:$24 sps:$4 sm:$0xff]  }
 0x8a2   :  { %9799 = vmatprep.subr.bf16.mxu1 %v19478_v6  ;;  %7777 = vmatprep.mubr.bf16.mxu0 %v27309_v53  ;;  %v19488_v6 = vld [vmem:[%s27129_s5 + $0x998] ss:$24 sps:$4 sm:$0xff]  }
 0x8a3   :  { %8709 = vmatprep.mubr.bf16.mxu1 %v27309_v53 }
 0x8a4   :  { %8511 = vmatpush1.bf16.msra.mxu0 %v19473_v48  ;;  %v19493_v48 = vld [vmem:[%s27129_s5 + $0xc4] ss:$24 sps:$4 sm:$0xff]  }
 0x8a5   :  { %9800 = vmatpush1.bf16.msra.mxu1 %v19476_v50  ;;  %8512 = vmatprep.subr.bf16.mxu0 %v19481_v22  ;;  %v19496_v50 = vld [vmem:[%s27129_s5 + $0x9cc] ss:$24 sps:$4 sm:$0xff]   ;;  %v19491_v22 = vld [vmem:[%s27129_s5 + $0xc0] ss:$24 sps:$4 sm:$0xff]  }
 0x8a6   :  { %9801 = vmatprep.subr.bf16.mxu1 %v19484_v49  ;;  %v19494_v49 = vld [vmem:[%s27129_s5 + $0x9c8] ss:$24 sps:$4 sm:$0xff]  }
 0x8a7   :  { %7778 = vmatmul.mubr.bf16.gmra.mrb[76].mxu0 %v23929_v39  ;;  %v19931_v39 = vld [vmem:[%s27129_s5 + $0xf64] ss:$24 sps:$4 sm:$0xff]  }
 0x8a8   :  { %8710 = vmatmul.mubr.bf16.gmra.mrb[132].mxu1 %v23891_v24  ;;  %8513 = vmatpush1.bf16.msra.mxu0 %v19479_v46  ;;  %v19499_v46 = vld [vmem:[%s27129_s5 + $0xf4] ss:$24 sps:$4 sm:$0xff]  }
 0x8a9   :  { %8540 = vmatprep.mubr.bf16.mxu0 %v23753_v57  ;;  %9802 = vmatpush1.bf16.msra.mxu1 %v19482_v21  ;;  %v19502_v21 = vld [vmem:[%s27129_s5 + $0x9fc] ss:$24 sps:$4 sm:$0xff]  }
 0x8aa   :  { %9829 = vmatprep.mubr.bf16.mxu1 %v23827_v15  ;;  %8514 = vmatprep.subr.bf16.mxu0 %v19487_v25  ;;  %v19497_v25 = vld [vmem:[%s27129_s5 + $0xf0] ss:$24 sps:$4 sm:$0xff]  }
 0x8ab   :  { %9803 = vmatprep.subr.bf16.mxu1 %v19490_v44  ;;  %v19500_v44 = vld [vmem:[%s27129_s5 + $0x9f8] ss:$24 sps:$4 sm:$0xff]  }
 0x8ac   :  { %8515 = vmatpush1.bf16.msra.mxu0 %v19485_v1  ;;  %v19505_v1 = vld [vmem:[%s27129_s5 + $0x124] ss:$24 sps:$4 sm:$0xff]  }
 0x8ad   :  { %9804 = vmatpush1.bf16.msra.mxu1 %v19488_v6  ;;  %8516 = vmatprep.subr.bf16.mxu0 %v19493_v48  ;;  %v19508_v6 = vld [vmem:[%s27129_s5 + $0xa2c] ss:$24 sps:$4 sm:$0xff]   ;;  %v19503_v48 = vld [vmem:[%s27129_s5 + $0x120] ss:$24 sps:$4 sm:$0xff]  }
 0x8ae   :  { %9805 = vmatprep.subr.bf16.mxu1 %v19496_v50  ;;  %v19506_v50 = vld [vmem:[%s27129_s5 + $0xa28] ss:$24 sps:$4 sm:$0xff]  }
 0x8b0   :  { %8517 = vmatpush1.bf16.msra.mxu0 %v19491_v22  ;;  %v19511_v22 = vld [vmem:[%s27129_s5 + $0x154] ss:$24 sps:$4 sm:$0xff]  }
 0x8b1   :  { %9806 = vmatpush1.bf16.msra.mxu1 %v19494_v49  ;;  %8518 = vmatprep.subr.bf16.mxu0 %v19499_v46  ;;  %v19514_v49 = vld [vmem:[%s27129_s5 + $0xa5c] ss:$24 sps:$4 sm:$0xff]   ;;  %v19509_v46 = vld [vmem:[%s27129_s5 + $0x150] ss:$24 sps:$4 sm:$0xff]  }
 0x8b2   :  { %9807 = vmatprep.subr.bf16.mxu1 %v19502_v21  ;;  %v19512_v21 = vld [vmem:[%s27129_s5 + $0xa58] ss:$24 sps:$4 sm:$0xff]  }
 0x8b4   :  { %8519 = vmatpush1.bf16.msra.mxu0 %v19497_v25  ;;  %v19517_v25 = vld [vmem:[%s27129_s5 + $0x184] ss:$24 sps:$4 sm:$0xff]  }
 0x8b5   :  { %9808 = vmatpush1.bf16.msra.mxu1 %v19500_v44  ;;  %8520 = vmatprep.subr.bf16.mxu0 %v19505_v1  ;;  %v19520_v44 = vld [vmem:[%s27129_s5 + $0xa8c] ss:$24 sps:$4 sm:$0xff]   ;;  %v19515_v1 = vld [vmem:[%s27129_s5 + $0x180] ss:$24 sps:$4 sm:$0xff]  }
 0x8b6   :  { %9809 = vmatprep.subr.bf16.mxu1 %v19508_v6  ;;  %v19518_v6 = vld [vmem:[%s27129_s5 + $0xa88] ss:$24 sps:$4 sm:$0xff]  }
 0x8b8   :  { %8521 = vmatpush1.bf16.msra.mxu0 %v19503_v48  ;;  %v19523_v48 = vld [vmem:[%s27129_s5 + $0x1b4] ss:$24 sps:$4 sm:$0xff]  }
 0x8b9   :  { %9810 = vmatpush1.bf16.msra.mxu1 %v19506_v50  ;;  %8522 = vmatprep.subr.bf16.mxu0 %v19511_v22  ;;  %v19526_v50 = vld [vmem:[%s27129_s5 + $0xabc] ss:$24 sps:$4 sm:$0xff]   ;;  %v19521_v22 = vld [vmem:[%s27129_s5 + $0x1b0] ss:$24 sps:$4 sm:$0xff]  }
 0x8ba   :  { %9811 = vmatprep.subr.bf16.mxu1 %v19514_v49  ;;  %v19524_v49 = vld [vmem:[%s27129_s5 + $0xab8] ss:$24 sps:$4 sm:$0xff]  }
 0x8bc   :  { %8523 = vmatpush1.bf16.msra.mxu0 %v19509_v46  ;;  %v19529_v46 = vld [vmem:[%s27129_s5 + $0x1e4] ss:$24 sps:$4 sm:$0xff]  }
 0x8bd   :  { %9812 = vmatpush1.bf16.msra.mxu1 %v19512_v21  ;;  %8524 = vmatprep.subr.bf16.mxu0 %v19517_v25  ;;  %v19532_v21 = vld [vmem:[%s27129_s5 + $0xaec] ss:$24 sps:$4 sm:$0xff]   ;;  %v19527_v25 = vld [vmem:[%s27129_s5 + $0x1e0] ss:$24 sps:$4 sm:$0xff]  }
 0x8be   :  { %9813 = vmatprep.subr.bf16.mxu1 %v19520_v44  ;;  %v19530_v44 = vld [vmem:[%s27129_s5 + $0xae8] ss:$24 sps:$4 sm:$0xff]  }
 0x8c0   :  { %8525 = vmatpush1.bf16.msra.mxu0 %v19515_v1  ;;  %v19535_v1 = vld [vmem:[%s27129_s5 + $0x214] ss:$24 sps:$4 sm:$0xff]  }
 0x8c1   :  { %9814 = vmatpush1.bf16.msra.mxu1 %v19518_v6  ;;  %8526 = vmatprep.subr.bf16.mxu0 %v19523_v48  ;;  %v19538_v6 = vld [vmem:[%s27129_s5 + $0xb1c] ss:$24 sps:$4 sm:$0xff]   ;;  %v19533_v48 = vld [vmem:[%s27129_s5 + $0x210] ss:$24 sps:$4 sm:$0xff]  }
 0x8c2   :  { %9815 = vmatprep.subr.bf16.mxu1 %v19526_v50  ;;  %v19536_v50 = vld [vmem:[%s27129_s5 + $0xb18] ss:$24 sps:$4 sm:$0xff]  }
 0x8c4   :  { %8527 = vmatpush1.bf16.msra.mxu0 %v19521_v22  ;;  %v19541_v22 = vld [vmem:[%s27129_s5 + $0x244] ss:$24 sps:$4 sm:$0xff]  }
 0x8c5   :  { %9816 = vmatpush1.bf16.msra.mxu1 %v19524_v49  ;;  %8528 = vmatprep.subr.bf16.mxu0 %v19529_v46  ;;  %v19544_v49 = vld [vmem:[%s27129_s5 + $0xb4c] ss:$24 sps:$4 sm:$0xff]   ;;  %v19539_v46 = vld [vmem:[%s27129_s5 + $0x240] ss:$24 sps:$4 sm:$0xff]  }
 0x8c6   :  { %9817 = vmatprep.subr.bf16.mxu1 %v19532_v21  ;;  %v19542_v21 = vld [vmem:[%s27129_s5 + $0xb48] ss:$24 sps:$4 sm:$0xff]  }
 0x8c8   :  { %8529 = vmatpush1.bf16.msra.mxu0 %v19527_v25  ;;  %v19547_v25 = vld [vmem:[%s27129_s5 + $0x274] ss:$24 sps:$4 sm:$0xff]  }
 0x8c9   :  { %9818 = vmatpush1.bf16.msra.mxu1 %v19530_v44  ;;  %8530 = vmatprep.subr.bf16.mxu0 %v19535_v1  ;;  %v19550_v44 = vld [vmem:[%s27129_s5 + $0xb7c] ss:$24 sps:$4 sm:$0xff]   ;;  %v19545_v1 = vld [vmem:[%s27129_s5 + $0x270] ss:$24 sps:$4 sm:$0xff]  }
 0x8ca   :  { %9819 = vmatprep.subr.bf16.mxu1 %v19538_v6  ;;  %v19548_v6 = vld [vmem:[%s27129_s5 + $0xb78] ss:$24 sps:$4 sm:$0xff]  }
 0x8cc   :  { %8531 = vmatpush1.bf16.msra.mxu0 %v19533_v48  ;;  %v19553_v48 = vld [vmem:[%s27129_s5 + $0x2a4] ss:$24 sps:$4 sm:$0xff]  }
 0x8cd   :  { %9820 = vmatpush1.bf16.msra.mxu1 %v19536_v50  ;;  %8532 = vmatprep.subr.bf16.mxu0 %v19541_v22  ;;  %v19556_v50 = vld [vmem:[%s27129_s5 + $0xbac] ss:$24 sps:$4 sm:$0xff]   ;;  %v19551_v22 = vld [vmem:[%s27129_s5 + $0x2a0] ss:$24 sps:$4 sm:$0xff]  }
 0x8ce   :  { %9821 = vmatprep.subr.bf16.mxu1 %v19544_v49  ;;  %v19554_v49 = vld [vmem:[%s27129_s5 + $0xba8] ss:$24 sps:$4 sm:$0xff]  }
 0x8d0   :  { %8533 = vmatpush1.bf16.msra.mxu0 %v19539_v46  ;;  %v19559_v46 = vld [vmem:[%s27129_s5 + $0x2d4] ss:$24 sps:$4 sm:$0xff]  }
 0x8d1   :  { %9822 = vmatpush1.bf16.msra.mxu1 %v19542_v21  ;;  %8534 = vmatprep.subr.bf16.mxu0 %v19547_v25  ;;  %v19562_v21 = vld [vmem:[%s27129_s5 + $0xbdc] ss:$24 sps:$4 sm:$0xff]   ;;  %v19557_v25 = vld [vmem:[%s27129_s5 + $0x2d0] ss:$24 sps:$4 sm:$0xff]  }
 0x8d2   :  { %9823 = vmatprep.subr.bf16.mxu1 %v19550_v44  ;;  %v19560_v44 = vld [vmem:[%s27129_s5 + $0xbd8] ss:$24 sps:$4 sm:$0xff]  }
 0x8d4   :  { %8535 = vmatpush1.bf16.msra.mxu0 %v19545_v1  ;;  %v19565_v1 = vld [vmem:[%s27129_s5 + $0x304] ss:$24 sps:$4 sm:$0xff]  }
 0x8d5   :  { %9824 = vmatpush1.bf16.msra.mxu1 %v19548_v6  ;;  %8536 = vmatprep.subr.bf16.mxu0 %v19553_v48  ;;  %v19568_v6 = vld [vmem:[%s27129_s5 + $0xc0c] ss:$24 sps:$4 sm:$0xff]   ;;  %v19563_v48 = vld [vmem:[%s27129_s5 + $0x300] ss:$24 sps:$4 sm:$0xff]  }
 0x8d6   :  { %9825 = vmatprep.subr.bf16.mxu1 %v19556_v50  ;;  %v19566_v50 = vld [vmem:[%s27129_s5 + $0xc08] ss:$24 sps:$4 sm:$0xff]  }
 0x8d8   :  { %8537 = vmatpush1.bf16.msra.mxu0 %v19551_v22  ;;  %v19571_v22 = vld [vmem:[%s27129_s5 + $0x334] ss:$24 sps:$4 sm:$0xff]  }
 0x8d9   :  { %9826 = vmatpush1.bf16.msra.mxu1 %v19554_v49  ;;  %8538 = vmatprep.subr.bf16.mxu0 %v19559_v46  ;;  %v19574_v49 = vld [vmem:[%s27129_s5 + $0xc3c] ss:$24 sps:$4 sm:$0xff]   ;;  %v19569_v46 = vld [vmem:[%s27129_s5 + $0x330] ss:$24 sps:$4 sm:$0xff]  }
 0x8da   :  { %9827 = vmatprep.subr.bf16.mxu1 %v19562_v21  ;;  %v19572_v21 = vld [vmem:[%s27129_s5 + $0xc38] ss:$24 sps:$4 sm:$0xff]  }
 0x8dc   :  { %8539 = vmatpush1.bf16.msra.mxu0 %v19557_v25  ;;  %v19577_v25 = vld [vmem:[%s27129_s5 + $0x364] ss:$24 sps:$4 sm:$0xff]  }
 0x8dd   :  { %9828 = vmatpush1.bf16.msra.mxu1 %v19560_v44  ;;  %8561 = vmatprep.subr.bf16.mxu0 %v19565_v1  ;;  %v19580_v44 = vld [vmem:[%s27129_s5 + $0xc6c] ss:$24 sps:$4 sm:$0xff]   ;;  %v19575_v1 = vld [vmem:[%s27129_s5 + $0x360] ss:$24 sps:$4 sm:$0xff]  }
 0x8de   :  { %9850 = vmatprep.subr.bf16.mxu1 %v19568_v6  ;;  %v19578_v6 = vld [vmem:[%s27129_s5 + $0xc68] ss:$24 sps:$4 sm:$0xff]  }
 0x8df   :  { %8541 = vmatmul.mubr.bf16.vlgmr.msra.gmra.mrb[64].mxu0 %v23751_v30 }
 0x8e0   :  { %9830 = vmatmul.mubr.bf16.vlgmr.msra.gmra.mrb[128].mxu1 %v23825_v61  ;;  %8550 = vmatprep.mubr.bf16.mxu0 %v23757_v0 }
 0x8e1   :  { %8562 = vmatpush1.bf16.msra.mxu0 %v19563_v48  ;;  %9839 = vmatprep.mubr.bf16.mxu1 %v23855_v12  ;;  %v19583_v48 = vld [vmem:[%s27129_s5 + $0x394] ss:$24 sps:$4 sm:$0xff]  }
 0x8e2   :  { %9851 = vmatpush1.bf16.msra.mxu1 %v19566_v50  ;;  %8563 = vmatprep.subr.bf16.mxu0 %v19571_v22  ;;  %v19586_v50 = vld [vmem:[%s27129_s5 + $0xc9c] ss:$24 sps:$4 sm:$0xff]   ;;  %v19581_v22 = vld [vmem:[%s27129_s5 + $0x390] ss:$24 sps:$4 sm:$0xff]  }
 0x8e3   :  { %9852 = vmatprep.subr.bf16.mxu1 %v19574_v49  ;;  %v19584_v49 = vld [vmem:[%s27129_s5 + $0xc98] ss:$24 sps:$4 sm:$0xff]  }
 0x8e5   :  { %8564 = vmatpush1.bf16.msra.mxu0 %v19569_v46  ;;  %v19589_v46 = vld [vmem:[%s27129_s5 + $0x3c4] ss:$24 sps:$4 sm:$0xff]  }
 0x8e6   :  { %9853 = vmatpush1.bf16.msra.mxu1 %v19572_v21  ;;  %8565 = vmatprep.subr.bf16.mxu0 %v19577_v25  ;;  %v19592_v21 = vld [vmem:[%s27129_s5 + $0xccc] ss:$24 sps:$4 sm:$0xff]   ;;  %v19587_v25 = vld [vmem:[%s27129_s5 + $0x3c0] ss:$24 sps:$4 sm:$0xff]  }
 0x8e7   :  { %8551 = vmatmul.mubr.bf16.gmra.mrb[68].mxu0 %v23755_v33  ;;  %9854 = vmatprep.subr.bf16.mxu1 %v19580_v44  ;;  %v19590_v44 = vld [vmem:[%s27129_s5 + $0xcc8] ss:$24 sps:$4 sm:$0xff]  }
 0x8e8   :  { %9840 = vmatmul.mubr.bf16.gmra.mrb[132].mxu1 %v23853_v3  ;;  %8593 = vmatprep.mubr.bf16.mxu0 %v27309_v53 }
 0x8e9   :  { %8566 = vmatpush1.bf16.msra.mxu0 %v19575_v1  ;;  %9882 = vmatprep.mubr.bf16.mxu1 %v27309_v53  ;;  %v19595_v1 = vld [vmem:[%s27129_s5 + $0x3f4] ss:$24 sps:$4 sm:$0xff]  }
 0x8ea   :  { %9855 = vmatpush1.bf16.msra.mxu1 %v19578_v6  ;;  %8567 = vmatprep.subr.bf16.mxu0 %v19583_v48  ;;  %v19598_v6 = vld [vmem:[%s27129_s5 + $0xcfc] ss:$24 sps:$4 sm:$0xff]   ;;  %v19593_v48 = vld [vmem:[%s27129_s5 + $0x3f0] ss:$24 sps:$4 sm:$0xff]  }
 0x8eb   :  { %9856 = vmatprep.subr.bf16.mxu1 %v19586_v50  ;;  %v19596_v50 = vld [vmem:[%s27129_s5 + $0xcf8] ss:$24 sps:$4 sm:$0xff]  }
 0x8ed   :  { %8568 = vmatpush1.bf16.msra.mxu0 %v19581_v22  ;;  %v19601_v22 = vld [vmem:[%s27129_s5 + $0x424] ss:$24 sps:$4 sm:$0xff]  }
 0x8ee   :  { %9857 = vmatpush1.bf16.msra.mxu1 %v19584_v49  ;;  %8569 = vmatprep.subr.bf16.mxu0 %v19589_v46  ;;  %v19604_v49 = vld [vmem:[%s27129_s5 + $0xd2c] ss:$24 sps:$4 sm:$0xff]   ;;  %v19599_v46 = vld [vmem:[%s27129_s5 + $0x420] ss:$24 sps:$4 sm:$0xff]  }
 0x8ef   :  { %9858 = vmatprep.subr.bf16.mxu1 %v19592_v21  ;;  %v19602_v21 = vld [vmem:[%s27129_s5 + $0xd28] ss:$24 sps:$4 sm:$0xff]  }
 0x8f1   :  { %8570 = vmatpush1.bf16.msra.mxu0 %v19587_v25  ;;  %v19607_v25 = vld [vmem:[%s27129_s5 + $0x454] ss:$24 sps:$4 sm:$0xff]  }
 0x8f2   :  { %9859 = vmatpush1.bf16.msra.mxu1 %v19590_v44  ;;  %8571 = vmatprep.subr.bf16.mxu0 %v19595_v1  ;;  %v19610_v44 = vld [vmem:[%s27129_s5 + $0xd5c] ss:$24 sps:$4 sm:$0xff]   ;;  %v19605_v1 = vld [vmem:[%s27129_s5 + $0x450] ss:$24 sps:$4 sm:$0xff]  }
 0x8f3   :  { %9860 = vmatprep.subr.bf16.mxu1 %v19598_v6  ;;  %v19608_v6 = vld [vmem:[%s27129_s5 + $0xd58] ss:$24 sps:$4 sm:$0xff]  }
 0x8f5   :  { %8572 = vmatpush1.bf16.msra.mxu0 %v19593_v48  ;;  %v19613_v48 = vld [vmem:[%s27129_s5 + $0x14] ss:$24 sps:$4 sm:$0xff]  }
 0x8f6   :  { %9861 = vmatpush1.bf16.msra.mxu1 %v19596_v50  ;;  %8573 = vmatprep.subr.bf16.mxu0 %v19601_v22  ;;  %v19616_v50 = vld [vmem:[%s27129_s5 + $0xd8c] ss:$24 sps:$4 sm:$0xff]   ;;  %v19611_v22 = vld [vmem:[%s27129_s5 + $0x10] ss:$24 sps:$4 sm:$0xff]  }
 0x8f7   :  { %9862 = vmatprep.subr.bf16.mxu1 %v19604_v49  ;;  %v19614_v49 = vld [vmem:[%s27129_s5 + $0xd88] ss:$24 sps:$4 sm:$0xff]  }
 0x8f9   :  { %8574 = vmatpush1.bf16.msra.mxu0 %v19599_v46  ;;  %v19619_v46 = vld [vmem:[%s27129_s5 + $0x44] ss:$24 sps:$4 sm:$0xff]  }
 0x8fa   :  { %9863 = vmatpush1.bf16.msra.mxu1 %v19602_v21  ;;  %8575 = vmatprep.subr.bf16.mxu0 %v19607_v25  ;;  %v19622_v21 = vld [vmem:[%s27129_s5 + $0xdbc] ss:$24 sps:$4 sm:$0xff]   ;;  %v19617_v25 = vld [vmem:[%s27129_s5 + $0x40] ss:$24 sps:$4 sm:$0xff]  }
 0x8fb   :  { %9864 = vmatprep.subr.bf16.mxu1 %v19610_v44  ;;  %v19620_v44 = vld [vmem:[%s27129_s5 + $0xdb8] ss:$24 sps:$4 sm:$0xff]  }
 0x8fd   :  { %8576 = vmatpush1.bf16.msra.mxu0 %v19605_v1  ;;  %v19625_v1 = vld [vmem:[%s27129_s5 + $0x74] ss:$24 sps:$4 sm:$0xff]  }
 0x8fe   :  { %9865 = vmatpush1.bf16.msra.mxu1 %v19608_v6  ;;  %8720 = vmatprep.subr.bf16.mxu0 %v19613_v48  ;;  %v19628_v6 = vld [vmem:[%s27129_s5 + $0xdec] ss:$24 sps:$4 sm:$0xff]   ;;  %v19623_v48 = vld [vmem:[%s27129_s5 + $0x70] ss:$24 sps:$4 sm:$0xff]  }
 0x8ff   :  { %11004 = vmatprep.subr.bf16.mxu1 %v19616_v50  ;;  %v19626_v50 = vld [vmem:[%s27129_s5 + $0xde8] ss:$24 sps:$4 sm:$0xff]  }
 0x900   :  { %8594 = vmatmul.mubr.bf16.vlgmr.msra.gmra.mrb[64].mxu0 %v23889_v45 }
 0x901   :  { %9883 = vmatmul.mubr.bf16.vlgmr.msra.gmra.mrb[128].mxu1 %v23959_v60  ;;  %8721 = vmatpush1.bf16.msra.mxu0 %v19611_v22  ;;  %v19631_v22 = vld [vmem:[%s27129_s5 + $0xa4] ss:$24 sps:$4 sm:$0xff]  }
 0x902   :  { %11005 = vmatpush1.bf16.msra.mxu1 %v19614_v49  ;;  %8722 = vmatprep.subr.bf16.mxu0 %v19619_v46  ;;  %v19634_v49 = vld [vmem:[%s27129_s5 + $0xe1c] ss:$24 sps:$4 sm:$0xff]   ;;  %v19629_v46 = vld [vmem:[%s27129_s5 + $0xa0] ss:$24 sps:$4 sm:$0xff]  }
 0x903   :  { %11006 = vmatprep.subr.bf16.mxu1 %v19622_v21  ;;  %8603 = vmatprep.mubr.bf16.mxu0 %v27309_v53  ;;  %v19632_v21 = vld [vmem:[%s27129_s5 + $0xe18] ss:$24 sps:$4 sm:$0xff]  }
 0x904   :  { %9892 = vmatprep.mubr.bf16.mxu1 %v27309_v53 }
 0x905   :  { %8723 = vmatpush1.bf16.msra.mxu0 %v19617_v25  ;;  %v19637_v25 = vld [vmem:[%s27129_s5 + $0xd4] ss:$24 sps:$4 sm:$0xff]  }
 0x906   :  { %11007 = vmatpush1.bf16.msra.mxu1 %v19620_v44  ;;  %8724 = vmatprep.subr.bf16.mxu0 %v19625_v1  ;;  %v19640_v44 = vld [vmem:[%s27129_s5 + $0xe4c] ss:$24 sps:$4 sm:$0xff]   ;;  %v19635_v1 = vld [vmem:[%s27129_s5 + $0xd0] ss:$24 sps:$4 sm:$0xff]  }
 0x907   :  { %11008 = vmatprep.subr.bf16.mxu1 %v19628_v6  ;;  %v19638_v6 = vld [vmem:[%s27129_s5 + $0xe48] ss:$24 sps:$4 sm:$0xff]  }
 0x908   :  { %8604 = vmatmul.mubr.bf16.gmra.mrb[68].mxu0 %v23891_v24 }
 0x909   :  { %9893 = vmatmul.mubr.bf16.gmra.mrb[132].mxu1 %v23985_v47  ;;  %8725 = vmatpush1.bf16.msra.mxu0 %v19623_v48  ;;  %v19643_v48 = vld [vmem:[%s27129_s5 + $0x104] ss:$24 sps:$4 sm:$0xff]  }
 0x90a   :  { %8752 = vmatprep.mubr.bf16.mxu0 %v23753_v57  ;;  %11009 = vmatpush1.bf16.msra.mxu1 %v19626_v50  ;;  %v19646_v50 = vld [vmem:[%s27129_s5 + $0xe7c] ss:$24 sps:$4 sm:$0xff]  }
 0x90b   :  { %11036 = vmatprep.mubr.bf16.mxu1 %v23883_v54  ;;  %8726 = vmatprep.subr.bf16.mxu0 %v19631_v22  ;;  %v19641_v22 = vld [vmem:[%s27129_s5 + $0x100] ss:$24 sps:$4 sm:$0xff]  }
 0x90c   :  { %11010 = vmatprep.subr.bf16.mxu1 %v19634_v49  ;;  %v19644_v49 = vld [vmem:[%s27129_s5 + $0xe78] ss:$24 sps:$4 sm:$0xff]  }
 0x90d   :  { %8727 = vmatpush1.bf16.msra.mxu0 %v19629_v46  ;;  %v19649_v46 = vld [vmem:[%s27129_s5 + $0x134] ss:$24 sps:$4 sm:$0xff]  }
 0x90e   :  { %11011 = vmatpush1.bf16.msra.mxu1 %v19632_v21  ;;  %8728 = vmatprep.subr.bf16.mxu0 %v19637_v25  ;;  %v19652_v21 = vld [vmem:[%s27129_s5 + $0xeac] ss:$24 sps:$4 sm:$0xff]   ;;  %v19647_v25 = vld [vmem:[%s27129_s5 + $0x130] ss:$24 sps:$4 sm:$0xff]  }
 0x90f   :  { %11012 = vmatprep.subr.bf16.mxu1 %v19640_v44  ;;  %v19650_v44 = vld [vmem:[%s27129_s5 + $0xea8] ss:$24 sps:$4 sm:$0xff]  }
 0x911   :  { %8729 = vmatpush1.bf16.msra.mxu0 %v19635_v1  ;;  %v19655_v1 = vld [vmem:[%s27129_s5 + $0x164] ss:$24 sps:$4 sm:$0xff]  }
 0x912   :  { %11013 = vmatpush1.bf16.msra.mxu1 %v19638_v6  ;;  %8730 = vmatprep.subr.bf16.mxu0 %v19643_v48  ;;  %v19658_v6 = vld [vmem:[%s27129_s5 + $0xedc] ss:$24 sps:$4 sm:$0xff]   ;;  %v19653_v48 = vld [vmem:[%s27129_s5 + $0x160] ss:$24 sps:$4 sm:$0xff]  }
 0x913   :  { %11014 = vmatprep.subr.bf16.mxu1 %v19646_v50  ;;  %v19656_v50 = vld [vmem:[%s27129_s5 + $0xed8] ss:$24 sps:$4 sm:$0xff]  }
 0x915   :  { %8731 = vmatpush1.bf16.msra.mxu0 %v19641_v22  ;;  %v19661_v22 = vld [vmem:[%s27129_s5 + $0x194] ss:$24 sps:$4 sm:$0xff]  }
 0x916   :  { %11015 = vmatpush1.bf16.msra.mxu1 %v19644_v49  ;;  %8732 = vmatprep.subr.bf16.mxu0 %v19649_v46  ;;  %v19664_v49 = vld [vmem:[%s27129_s5 + $0xf0c] ss:$24 sps:$4 sm:$0xff]   ;;  %v19659_v46 = vld [vmem:[%s27129_s5 + $0x190] ss:$24 sps:$4 sm:$0xff]  }
 0x917   :  { %11016 = vmatprep.subr.bf16.mxu1 %v19652_v21  ;;  %v19662_v21 = vld [vmem:[%s27129_s5 + $0xf08] ss:$24 sps:$4 sm:$0xff]  }
 0x919   :  { %8733 = vmatpush1.bf16.msra.mxu0 %v19647_v25  ;;  %v19667_v25 = vld [vmem:[%s27129_s5 + $0x1c4] ss:$24 sps:$4 sm:$0xff]  }
 0x91a   :  { %11017 = vmatpush1.bf16.msra.mxu1 %v19650_v44  ;;  %8734 = vmatprep.subr.bf16.mxu0 %v19655_v1  ;;  %v19670_v44 = vld [vmem:[%s27129_s5 + $0xf3c] ss:$24 sps:$4 sm:$0xff]   ;;  %v19665_v1 = vld [vmem:[%s27129_s5 + $0x1c0] ss:$24 sps:$4 sm:$0xff]  }
 0x91b   :  { %11018 = vmatprep.subr.bf16.mxu1 %v19658_v6  ;;  %v19668_v6 = vld [vmem:[%s27129_s5 + $0xf38] ss:$24 sps:$4 sm:$0xff]  }
 0x91d   :  { %8735 = vmatpush1.bf16.msra.mxu0 %v19653_v48  ;;  %v19673_v48 = vld [vmem:[%s27129_s5 + $0x1f4] ss:$24 sps:$4 sm:$0xff]  }
 0x91e   :  { %11019 = vmatpush1.bf16.msra.mxu1 %v19656_v50  ;;  %8736 = vmatprep.subr.bf16.mxu0 %v19661_v22  ;;  %v19676_v50 = vld [vmem:[%s27129_s5 + $0xf6c] ss:$24 sps:$4 sm:$0xff]   ;;  %v19671_v22 = vld [vmem:[%s27129_s5 + $0x1f0] ss:$24 sps:$4 sm:$0xff]  }
 0x91f   :  { %11020 = vmatprep.subr.bf16.mxu1 %v19664_v49  ;;  %v19674_v49 = vld [vmem:[%s27129_s5 + $0xf68] ss:$24 sps:$4 sm:$0xff]  }
 0x921   :  { %8737 = vmatpush1.bf16.msra.mxu0 %v19659_v46  ;;  %v19679_v46 = vld [vmem:[%s27129_s5 + $0x224] ss:$24 sps:$4 sm:$0xff]  }
 0x922   :  { %11021 = vmatpush1.bf16.msra.mxu1 %v19662_v21  ;;  %8738 = vmatprep.subr.bf16.mxu0 %v19667_v25  ;;  %v19682_v21 = vld [vmem:[%s27129_s5 + $0xf9c] ss:$24 sps:$4 sm:$0xff]   ;;  %v19677_v25 = vld [vmem:[%s27129_s5 + $0x220] ss:$24 sps:$4 sm:$0xff]  }
 0x923   :  { %11022 = vmatprep.subr.bf16.mxu1 %v19670_v44  ;;  %v19680_v44 = vld [vmem:[%s27129_s5 + $0xf98] ss:$24 sps:$4 sm:$0xff]  }
 0x925   :  { %8739 = vmatpush1.bf16.msra.mxu0 %v19665_v1  ;;  %v19685_v1 = vld [vmem:[%s27129_s5 + $0x254] ss:$24 sps:$4 sm:$0xff]  }
 0x926   :  { %11023 = vmatpush1.bf16.msra.mxu1 %v19668_v6  ;;  %8740 = vmatprep.subr.bf16.mxu0 %v19673_v48  ;;  %v19688_v6 = vld [vmem:[%s27129_s5 + $0xfcc] ss:$24 sps:$4 sm:$0xff]   ;;  %v19683_v48 = vld [vmem:[%s27129_s5 + $0x250] ss:$24 sps:$4 sm:$0xff]  }
 0x927   :  { %11024 = vmatprep.subr.bf16.mxu1 %v19676_v50  ;;  %v19686_v50 = vld [vmem:[%s27129_s5 + $0xfc8] ss:$24 sps:$4 sm:$0xff]  }
 0x929   :  { %8741 = vmatpush1.bf16.msra.mxu0 %v19671_v22  ;;  %v19691_v22 = vld [vmem:[%s27129_s5 + $0x284] ss:$24 sps:$4 sm:$0xff]  }
 0x92a   :  { %11025 = vmatpush1.bf16.msra.mxu1 %v19674_v49  ;;  %8742 = vmatprep.subr.bf16.mxu0 %v19679_v46  ;;  %v19694_v49 = vld [vmem:[%s27129_s5 + $0xffc] ss:$24 sps:$4 sm:$0xff]   ;;  %v19689_v46 = vld [vmem:[%s27129_s5 + $0x280] ss:$24 sps:$4 sm:$0xff]  }
 0x92b   :  { %11026 = vmatprep.subr.bf16.mxu1 %v19682_v21  ;;  %v19692_v21 = vld [vmem:[%s27129_s5 + $0xff8] ss:$24 sps:$4 sm:$0xff]  }
 0x92d   :  { %8743 = vmatpush1.bf16.msra.mxu0 %v19677_v25  ;;  %v19697_v25 = vld [vmem:[%s27129_s5 + $0x2b4] ss:$24 sps:$4 sm:$0xff]  }
 0x92e   :  { %11027 = vmatpush1.bf16.msra.mxu1 %v19680_v44  ;;  %8744 = vmatprep.subr.bf16.mxu0 %v19685_v1  ;;  %v19700_v44 = vld [vmem:[%s27129_s5 + $0x102c] ss:$24 sps:$4 sm:$0xff]   ;;  %v19695_v1 = vld [vmem:[%s27129_s5 + $0x2b0] ss:$24 sps:$4 sm:$0xff]  }
 0x92f   :  { %11028 = vmatprep.subr.bf16.mxu1 %v19688_v6  ;;  %v19698_v6 = vld [vmem:[%s27129_s5 + $0x1028] ss:$24 sps:$4 sm:$0xff]  }
 0x931   :  { %8745 = vmatpush1.bf16.msra.mxu0 %v19683_v48  ;;  %v19703_v48 = vld [vmem:[%s27129_s5 + $0x2e4] ss:$24 sps:$4 sm:$0xff]  }
 0x932   :  { %11029 = vmatpush1.bf16.msra.mxu1 %v19686_v50  ;;  %8746 = vmatprep.subr.bf16.mxu0 %v19691_v22  ;;  %v19706_v50 = vld [vmem:[%s27129_s5 + $0x105c] ss:$24 sps:$4 sm:$0xff]   ;;  %v19701_v22 = vld [vmem:[%s27129_s5 + $0x2e0] ss:$24 sps:$4 sm:$0xff]  }
 0x933   :  { %11030 = vmatprep.subr.bf16.mxu1 %v19694_v49  ;;  %v19704_v49 = vld [vmem:[%s27129_s5 + $0x1058] ss:$24 sps:$4 sm:$0xff]  }
 0x935   :  { %8747 = vmatpush1.bf16.msra.mxu0 %v19689_v46  ;;  %v19709_v46 = vld [vmem:[%s27129_s5 + $0x314] ss:$24 sps:$4 sm:$0xff]  }
 0x936   :  { %11031 = vmatpush1.bf16.msra.mxu1 %v19692_v21  ;;  %8748 = vmatprep.subr.bf16.mxu0 %v19697_v25  ;;  %v19712_v21 = vld [vmem:[%s27129_s5 + $0x108c] ss:$24 sps:$4 sm:$0xff]   ;;  %v19707_v25 = vld [vmem:[%s27129_s5 + $0x310] ss:$24 sps:$4 sm:$0xff]  }
 0x937   :  { %11032 = vmatprep.subr.bf16.mxu1 %v19700_v44  ;;  %v19710_v44 = vld [vmem:[%s27129_s5 + $0x1088] ss:$24 sps:$4 sm:$0xff]  }
 0x939   :  { %8749 = vmatpush1.bf16.msra.mxu0 %v19695_v1  ;;  %v19715_v1 = vld [vmem:[%s27129_s5 + $0x344] ss:$24 sps:$4 sm:$0xff]  }
 0x93a   :  { %11033 = vmatpush1.bf16.msra.mxu1 %v19698_v6  ;;  %8750 = vmatprep.subr.bf16.mxu0 %v19703_v48  ;;  %v19718_v6 = vld [vmem:[%s27129_s5 + $0x10bc] ss:$24 sps:$4 sm:$0xff]   ;;  %v19713_v48 = vld [vmem:[%s27129_s5 + $0x340] ss:$24 sps:$4 sm:$0xff]  }
 0x93b   :  { %11034 = vmatprep.subr.bf16.mxu1 %v19706_v50  ;;  %v19716_v50 = vld [vmem:[%s27129_s5 + $0x10b8] ss:$24 sps:$4 sm:$0xff]  }
 0x93d   :  { %8751 = vmatpush1.bf16.msra.mxu0 %v19701_v22  ;;  %v19721_v22 = vld [vmem:[%s27129_s5 + $0x374] ss:$24 sps:$4 sm:$0xff]  }
 0x93e   :  { %11035 = vmatpush1.bf16.msra.mxu1 %v19704_v49  ;;  %8773 = vmatprep.subr.bf16.mxu0 %v19709_v46  ;;  %v19724_v49 = vld [vmem:[%s27129_s5 + $0x10ec] ss:$24 sps:$4 sm:$0xff]   ;;  %v19719_v46 = vld [vmem:[%s27129_s5 + $0x370] ss:$24 sps:$4 sm:$0xff]  }
 0x93f   :  { %11057 = vmatprep.subr.bf16.mxu1 %v19712_v21  ;;  %v19722_v21 = vld [vmem:[%s27129_s5 + $0x10e8] ss:$24 sps:$4 sm:$0xff]  }
 0x940   :  { %8753 = vmatmul.mubr.bf16.vlgmr.msra.gmra.mrb[72].mxu0 %v23751_v30 }
 0x941   :  { %11037 = vmatmul.mubr.bf16.vlgmr.msra.gmra.mrb[128].mxu1 %v23881_v27  ;;  %8762 = vmatprep.mubr.bf16.mxu0 %v23757_v0 }
 0x942   :  { %8774 = vmatpush1.bf16.msra.mxu0 %v19707_v25  ;;  %11046 = vmatprep.mubr.bf16.mxu1 %v23887_v23  ;;  %v19727_v25 = vld [vmem:[%s27129_s5 + $0x3a4] ss:$24 sps:$4 sm:$0xff]  }
 0x943   :  { %11058 = vmatpush1.bf16.msra.mxu1 %v19710_v44  ;;  %8775 = vmatprep.subr.bf16.mxu0 %v19715_v1  ;;  %v19730_v44 = vld [vmem:[%s27129_s5 + $0x111c] ss:$24 sps:$4 sm:$0xff]   ;;  %v19725_v1 = vld [vmem:[%s27129_s5 + $0x3a0] ss:$24 sps:$4 sm:$0xff]  }
 0x944   :  { %11059 = vmatprep.subr.bf16.mxu1 %v19718_v6  ;;  %v19728_v6 = vld [vmem:[%s27129_s5 + $0x1118] ss:$24 sps:$4 sm:$0xff]  }
 0x946   :  { %8776 = vmatpush1.bf16.msra.mxu0 %v19713_v48  ;;  %v19733_v48 = vld [vmem:[%s27129_s5 + $0x3d4] ss:$24 sps:$4 sm:$0xff]  }
 0x947   :  { %11060 = vmatpush1.bf16.msra.mxu1 %v19716_v50  ;;  %8777 = vmatprep.subr.bf16.mxu0 %v19721_v22  ;;  %v19736_v50 = vld [vmem:[%s27129_s5 + $0x114c] ss:$24 sps:$4 sm:$0xff]   ;;  %v19731_v22 = vld [vmem:[%s27129_s5 + $0x3d0] ss:$24 sps:$4 sm:$0xff]  }
 0x948   :  { %8763 = vmatmul.mubr.bf16.gmra.mrb[76].mxu0 %v23755_v33  ;;  %11061 = vmatprep.subr.bf16.mxu1 %v19724_v49  ;;  %v19734_v49 = vld [vmem:[%s27129_s5 + $0x1148] ss:$24 sps:$4 sm:$0xff]  }
 0x949   :  { %11047 = vmatmul.mubr.bf16.gmra.mrb[132].mxu1 %v23885_v41  ;;  %8805 = vmatprep.mubr.bf16.mxu0 %v27309_v53 }
 0x94a   :  { %8778 = vmatpush1.bf16.msra.mxu0 %v19719_v46  ;;  %11089 = vmatprep.mubr.bf16.mxu1 %v27309_v53  ;;  %v19739_v46 = vld [vmem:[%s27129_s5 + $0x404] ss:$24 sps:$4 sm:$0xff]  }
 0x94b   :  { %11062 = vmatpush1.bf16.msra.mxu1 %v19722_v21  ;;  %8779 = vmatprep.subr.bf16.mxu0 %v19727_v25  ;;  %v19742_v21 = vld [vmem:[%s27129_s5 + $0x117c] ss:$24 sps:$4 sm:$0xff]   ;;  %v19737_v25 = vld [vmem:[%s27129_s5 + $0x400] ss:$24 sps:$4 sm:$0xff]  }
 0x94c   :  { %11063 = vmatprep.subr.bf16.mxu1 %v19730_v44  ;;  %v19740_v44 = vld [vmem:[%s27129_s5 + $0x1178] ss:$24 sps:$4 sm:$0xff]  }
 0x94e   :  { %8780 = vmatpush1.bf16.msra.mxu0 %v19725_v1  ;;  %v19745_v1 = vld [vmem:[%s27129_s5 + $0x434] ss:$24 sps:$4 sm:$0xff]  }
 0x94f   :  { %11064 = vmatpush1.bf16.msra.mxu1 %v19728_v6  ;;  %8781 = vmatprep.subr.bf16.mxu0 %v19733_v48  ;;  %v19748_v6 = vld [vmem:[%s27129_s5 + $0x11ac] ss:$24 sps:$4 sm:$0xff]   ;;  %v19743_v48 = vld [vmem:[%s27129_s5 + $0x430] ss:$24 sps:$4 sm:$0xff]  }
 0x950   :  { %11065 = vmatprep.subr.bf16.mxu1 %v19736_v50  ;;  %v19746_v50 = vld [vmem:[%s27129_s5 + $0x11a8] ss:$24 sps:$4 sm:$0xff]  }
 0x952   :  { %8782 = vmatpush1.bf16.msra.mxu0 %v19731_v22  ;;  %v19751_v22 = vld [vmem:[%s27129_s5 + $0x464] ss:$24 sps:$4 sm:$0xff]  }
 0x953   :  { %11066 = vmatpush1.bf16.msra.mxu1 %v19734_v49  ;;  %8783 = vmatprep.subr.bf16.mxu0 %v19739_v46  ;;  %v19754_v49 = vld [vmem:[%s27129_s5 + $0x11dc] ss:$24 sps:$4 sm:$0xff]   ;;  %v19749_v46 = vld [vmem:[%s27129_s5 + $0x460] ss:$24 sps:$4 sm:$0xff]  }
 0x954   :  { %11067 = vmatprep.subr.bf16.mxu1 %v19742_v21  ;;  %v19752_v21 = vld [vmem:[%s27129_s5 + $0x11d8] ss:$24 sps:$4 sm:$0xff]  }
 0x956   :  { %8784 = vmatpush1.bf16.msra.mxu0 %v19737_v25  ;;  %v19757_v25 = vld [vmem:[%s27129_s5 + $0x904] ss:$24 sps:$4 sm:$0xff]  }
 0x957   :  { %11068 = vmatpush1.bf16.msra.mxu1 %v19740_v44  ;;  %8785 = vmatprep.subr.bf16.mxu0 %v19745_v1  ;;  %v19755_v44 = vld [vmem:[%s27129_s5 + $0x900] ss:$24 sps:$4 sm:$0xff]   ;;  %v19760_v1 = vld [vmem:[%s27129_s5 + $0x934] ss:$24 sps:$4 sm:$0xff]  }
 0x958   :  { %11069 = vmatprep.subr.bf16.mxu1 %v19748_v6  ;;  %v19758_v6 = vld [vmem:[%s27129_s5 + $0x930] ss:$24 sps:$4 sm:$0xff]  }
 0x95a   :  { %8786 = vmatpush1.bf16.msra.mxu0 %v19743_v48  ;;  %v19763_v48 = vld [vmem:[%s27129_s5 + $0x964] ss:$24 sps:$4 sm:$0xff]  }
 0x95b   :  { %11070 = vmatpush1.bf16.msra.mxu1 %v19746_v50  ;;  %8787 = vmatprep.subr.bf16.mxu0 %v19751_v22  ;;  %v19761_v50 = vld [vmem:[%s27129_s5 + $0x960] ss:$24 sps:$4 sm:$0xff]   ;;  %v19766_v22 = vld [vmem:[%s27129_s5 + $0x994] ss:$24 sps:$4 sm:$0xff]  }
 0x95c   :  { %11071 = vmatprep.subr.bf16.mxu1 %v19754_v49  ;;  %v19764_v49 = vld [vmem:[%s27129_s5 + $0x990] ss:$24 sps:$4 sm:$0xff]  }
 0x95e   :  { %8788 = vmatpush1.bf16.msra.mxu0 %v19749_v46  ;;  %v19769_v46 = vld [vmem:[%s27129_s5 + $0x9c4] ss:$24 sps:$4 sm:$0xff]  }
 0x95f   :  { %11072 = vmatpush1.bf16.msra.mxu1 %v19752_v21  ;;  %9691 = vmatprep.subr.bf16.mxu0 %v19757_v25  ;;  %v19767_v21 = vld [vmem:[%s27129_s5 + $0x9c0] ss:$24 sps:$4 sm:$0xff]   ;;  %v19772_v25 = vld [vmem:[%s27129_s5 + $0x9f4] ss:$24 sps:$4 sm:$0xff]  }
 0x961   :  { %8806 = vmatmul.mubr.bf16.vlgmr.msra.gmra.mrb[72].mxu0 %v23889_v45  ;;  %v20121_v45 = vld [vmem:[%s27130_s6 + $0xd0] ss:$8 sps:$4 sm:$0xff]  }
 0x962   :  { %11090 = vmatmul.mubr.bf16.vlgmr.msra.gmra.mrb[128].mxu1 %v24011_v59  ;;  %9692 = vmatpush1.bf16.msra.mxu0 %v19755_v44  ;;  %v19770_v44 = vld [vmem:[%s27129_s5 + $0x9f0] ss:$24 sps:$4 sm:$0xff]  }
 0x963   :  { %9693 = vmatprep.subr.bf16.mxu0 %v19760_v1  ;;  %8815 = vmatprep.mubr.bf16.mxu0 %v27309_v53  ;;  %v19775_v1 = vld [vmem:[%s27129_s5 + $0xa24] ss:$24 sps:$4 sm:$0xff]  }
 0x964   :  { %11099 = vmatprep.mubr.bf16.mxu1 %v27309_v53 }
 0x966   :  { %9694 = vmatpush1.bf16.msra.mxu0 %v19758_v6  ;;  %v19773_v6 = vld [vmem:[%s27129_s5 + $0xa20] ss:$24 sps:$4 sm:$0xff]  }
 0x967   :  { %9695 = vmatprep.subr.bf16.mxu0 %v19763_v48  ;;  %v19778_v48 = vld [vmem:[%s27129_s5 + $0xa54] ss:$24 sps:$4 sm:$0xff]  }
 0x969   :  { %8816 = vmatmul.mubr.bf16.gmra.mrb[76].mxu0 %v23891_v24 }
 0x96a   :  { %11100 = vmatmul.mubr.bf16.gmra.mrb[132].mxu1 %v24037_v51  ;;  %9696 = vmatpush1.bf16.msra.mxu0 %v19761_v50  ;;  %v19776_v50 = vld [vmem:[%s27129_s5 + $0xa50] ss:$24 sps:$4 sm:$0xff]  }
 0x96b   :  { %9723 = vmatprep.mubr.bf16.mxu0 %v23827_v15  ;;  %9697 = vmatprep.subr.bf16.mxu0 %v19766_v22  ;;  %v19781_v22 = vld [vmem:[%s27129_s5 + $0xa84] ss:$24 sps:$4 sm:$0xff]  }
 0x96e   :  { %9698 = vmatpush1.bf16.msra.mxu0 %v19764_v49  ;;  %v19779_v49 = vld [vmem:[%s27129_s5 + $0xa80] ss:$24 sps:$4 sm:$0xff]  }
 0x96f   :  { %9699 = vmatprep.subr.bf16.mxu0 %v19769_v46  ;;  %v19784_v46 = vld [vmem:[%s27129_s5 + $0xab4] ss:$24 sps:$4 sm:$0xff]  }
 0x972   :  { %9700 = vmatpush1.bf16.msra.mxu0 %v19767_v21  ;;  %v19782_v21 = vld [vmem:[%s27129_s5 + $0xab0] ss:$24 sps:$4 sm:$0xff]  }
 0x973   :  { %9701 = vmatprep.subr.bf16.mxu0 %v19772_v25  ;;  %v19787_v25 = vld [vmem:[%s27129_s5 + $0xae4] ss:$24 sps:$4 sm:$0xff]  }
 0x976   :  { %9702 = vmatpush1.bf16.msra.mxu0 %v19770_v44  ;;  %v19785_v44 = vld [vmem:[%s27129_s5 + $0xae0] ss:$24 sps:$4 sm:$0xff]  }
 0x977   :  { %9703 = vmatprep.subr.bf16.mxu0 %v19775_v1  ;;  %v19790_v1 = vld [vmem:[%s27129_s5 + $0xb14] ss:$24 sps:$4 sm:$0xff]  }
 0x97a   :  { %9704 = vmatpush1.bf16.msra.mxu0 %v19773_v6  ;;  %v19788_v6 = vld [vmem:[%s27129_s5 + $0xb10] ss:$24 sps:$4 sm:$0xff]  }
 0x97b   :  { %9705 = vmatprep.subr.bf16.mxu0 %v19778_v48  ;;  %v19793_v48 = vld [vmem:[%s27129_s5 + $0xb44] ss:$24 sps:$4 sm:$0xff]  }
 0x97e   :  { %9706 = vmatpush1.bf16.msra.mxu0 %v19776_v50  ;;  %v19791_v50 = vld [vmem:[%s27129_s5 + $0xb40] ss:$24 sps:$4 sm:$0xff]  }
 0x97f   :  { %9707 = vmatprep.subr.bf16.mxu0 %v19781_v22  ;;  %v19796_v22 = vld [vmem:[%s27129_s5 + $0xb74] ss:$24 sps:$4 sm:$0xff]  }
 0x982   :  { %9708 = vmatpush1.bf16.msra.mxu0 %v19779_v49  ;;  %v19794_v49 = vld [vmem:[%s27129_s5 + $0xb70] ss:$24 sps:$4 sm:$0xff]  }
 0x983   :  { %9709 = vmatprep.subr.bf16.mxu0 %v19784_v46  ;;  %v19799_v46 = vld [vmem:[%s27129_s5 + $0xba4] ss:$24 sps:$4 sm:$0xff]  }
 0x986   :  { %9710 = vmatpush1.bf16.msra.mxu0 %v19782_v21  ;;  %v19797_v21 = vld [vmem:[%s27129_s5 + $0xba0] ss:$24 sps:$4 sm:$0xff]  }
 0x987   :  { %9711 = vmatprep.subr.bf16.mxu0 %v19787_v25  ;;  %v19802_v25 = vld [vmem:[%s27129_s5 + $0xbd4] ss:$24 sps:$4 sm:$0xff]  }
 0x98a   :  { %9712 = vmatpush1.bf16.msra.mxu0 %v19785_v44  ;;  %v19800_v44 = vld [vmem:[%s27129_s5 + $0xbd0] ss:$24 sps:$4 sm:$0xff]  }
 0x98b   :  { %9713 = vmatprep.subr.bf16.mxu0 %v19790_v1  ;;  %v19805_v1 = vld [vmem:[%s27129_s5 + $0xc04] ss:$24 sps:$4 sm:$0xff]  }
 0x98e   :  { %9714 = vmatpush1.bf16.msra.mxu0 %v19788_v6  ;;  %v19803_v6 = vld [vmem:[%s27129_s5 + $0xc00] ss:$24 sps:$4 sm:$0xff]  }
 0x98f   :  { %9715 = vmatprep.subr.bf16.mxu0 %v19793_v48  ;;  %v19808_v48 = vld [vmem:[%s27129_s5 + $0xc34] ss:$24 sps:$4 sm:$0xff]  }
 0x992   :  { %9716 = vmatpush1.bf16.msra.mxu0 %v19791_v50  ;;  %v19806_v50 = vld [vmem:[%s27129_s5 + $0xc30] ss:$24 sps:$4 sm:$0xff]  }
 0x993   :  { %9717 = vmatprep.subr.bf16.mxu0 %v19796_v22  ;;  %v19811_v22 = vld [vmem:[%s27129_s5 + $0xc64] ss:$24 sps:$4 sm:$0xff]  }
 0x996   :  { %9718 = vmatpush1.bf16.msra.mxu0 %v19794_v49  ;;  %v19809_v49 = vld [vmem:[%s27129_s5 + $0xc60] ss:$24 sps:$4 sm:$0xff]  }
 0x997   :  { %9719 = vmatprep.subr.bf16.mxu0 %v19799_v46  ;;  %v19814_v46 = vld [vmem:[%s27129_s5 + $0xc94] ss:$24 sps:$4 sm:$0xff]  }
 0x99a   :  { %9720 = vmatpush1.bf16.msra.mxu0 %v19797_v21  ;;  %v19812_v21 = vld [vmem:[%s27129_s5 + $0xc90] ss:$24 sps:$4 sm:$0xff]  }
 0x99b   :  { %9721 = vmatprep.subr.bf16.mxu0 %v19802_v25  ;;  %v19817_v25 = vld [vmem:[%s27129_s5 + $0xcc4] ss:$24 sps:$4 sm:$0xff]  }
 0x99e   :  { %9722 = vmatpush1.bf16.msra.mxu0 %v19800_v44  ;;  %v19815_v44 = vld [vmem:[%s27129_s5 + $0xcc0] ss:$24 sps:$4 sm:$0xff]  }
 0x99f   :  { %9744 = vmatprep.subr.bf16.mxu0 %v19805_v1  ;;  %v19820_v1 = vld [vmem:[%s27129_s5 + $0xcf4] ss:$24 sps:$4 sm:$0xff]  }
 0x9a1   :  { %9724 = vmatmul.mubr.bf16.vlgmr.msra.gmra.mrb[64].mxu0 %v23825_v61 }
 0x9a2   :  { %9733 = vmatprep.mubr.bf16.mxu0 %v23855_v12  ;;  %9745 = vmatpush1.bf16.msra.mxu0 %v19803_v6  ;;  %v19818_v6 = vld [vmem:[%s27129_s5 + $0xcf0] ss:$24 sps:$4 sm:$0xff]  }
 0x9a3   :  { %9746 = vmatprep.subr.bf16.mxu0 %v19808_v48  ;;  %v19823_v48 = vld [vmem:[%s27129_s5 + $0xd24] ss:$24 sps:$4 sm:$0xff]  }
 0x9a6   :  { %9747 = vmatpush1.bf16.msra.mxu0 %v19806_v50  ;;  %v19821_v50 = vld [vmem:[%s27129_s5 + $0xd20] ss:$24 sps:$4 sm:$0xff]  }
 0x9a7   :  { %9748 = vmatprep.subr.bf16.mxu0 %v19811_v22  ;;  %v19826_v22 = vld [vmem:[%s27129_s5 + $0xd54] ss:$24 sps:$4 sm:$0xff]  }
 0x9a9   :  { %9734 = vmatmul.mubr.bf16.gmra.mrb[68].mxu0 %v23853_v3 }
 0x9aa   :  { %9749 = vmatpush1.bf16.msra.mxu0 %v19809_v49  ;;  %9776 = vmatprep.mubr.bf16.mxu0 %v27309_v53  ;;  %v19824_v49 = vld [vmem:[%s27129_s5 + $0xd50] ss:$24 sps:$4 sm:$0xff]  }
 0x9ab   :  { %9750 = vmatprep.subr.bf16.mxu0 %v19814_v46  ;;  %v19829_v46 = vld [vmem:[%s27129_s5 + $0x914] ss:$24 sps:$4 sm:$0xff]  }
 0x9ae   :  { %9751 = vmatpush1.bf16.msra.mxu0 %v19812_v21  ;;  %v19827_v21 = vld [vmem:[%s27129_s5 + $0x910] ss:$24 sps:$4 sm:$0xff]  }
 0x9af   :  { %9752 = vmatprep.subr.bf16.mxu0 %v19817_v25  ;;  %v19832_v25 = vld [vmem:[%s27129_s5 + $0x944] ss:$24 sps:$4 sm:$0xff]  }
 0x9b2   :  { %9753 = vmatpush1.bf16.msra.mxu0 %v19815_v44  ;;  %v19830_v44 = vld [vmem:[%s27129_s5 + $0x940] ss:$24 sps:$4 sm:$0xff]  }
 0x9b3   :  { %9754 = vmatprep.subr.bf16.mxu0 %v19820_v1  ;;  %v19835_v1 = vld [vmem:[%s27129_s5 + $0x974] ss:$24 sps:$4 sm:$0xff]  }
 0x9b6   :  { %9755 = vmatpush1.bf16.msra.mxu0 %v19818_v6  ;;  %v19833_v6 = vld [vmem:[%s27129_s5 + $0x970] ss:$24 sps:$4 sm:$0xff]  }
 0x9b7   :  { %9756 = vmatprep.subr.bf16.mxu0 %v19823_v48  ;;  %v19838_v48 = vld [vmem:[%s27129_s5 + $0x9a4] ss:$24 sps:$4 sm:$0xff]  }
 0x9ba   :  { %9757 = vmatpush1.bf16.msra.mxu0 %v19821_v50  ;;  %v19836_v50 = vld [vmem:[%s27129_s5 + $0x9a0] ss:$24 sps:$4 sm:$0xff]  }
 0x9bb   :  { %9758 = vmatprep.subr.bf16.mxu0 %v19826_v22  ;;  %v19841_v22 = vld [vmem:[%s27129_s5 + $0x9d4] ss:$24 sps:$4 sm:$0xff]  }
 0x9be   :  { %9759 = vmatpush1.bf16.msra.mxu0 %v19824_v49  ;;  %v19839_v49 = vld [vmem:[%s27129_s5 + $0x9d0] ss:$24 sps:$4 sm:$0xff]  }
 0x9bf   :  { %9903 = vmatprep.subr.bf16.mxu0 %v19829_v46  ;;  %v19844_v46 = vld [vmem:[%s27129_s5 + $0xa04] ss:$24 sps:$4 sm:$0xff]  }
 0x9c1   :  { %9777 = vmatmul.mubr.bf16.vlgmr.msra.gmra.mrb[64].mxu0 %v23959_v60 }
 0x9c2   :  { %9904 = vmatpush1.bf16.msra.mxu0 %v19827_v21  ;;  %9786 = vmatprep.mubr.bf16.mxu0 %v27309_v53  ;;  %v19842_v21 = vld [vmem:[%s27129_s5 + $0xa00] ss:$24 sps:$4 sm:$0xff]  }
 0x9c3   :  { %9905 = vmatprep.subr.bf16.mxu0 %v19832_v25  ;;  %v19847_v25 = vld [vmem:[%s27129_s5 + $0xa34] ss:$24 sps:$4 sm:$0xff]  }
 0x9c6   :  { %9906 = vmatpush1.bf16.msra.mxu0 %v19830_v44  ;;  %v19845_v44 = vld [vmem:[%s27129_s5 + $0xa30] ss:$24 sps:$4 sm:$0xff]  }
 0x9c7   :  { %9907 = vmatprep.subr.bf16.mxu0 %v19835_v1  ;;  %v19850_v1 = vld [vmem:[%s27129_s5 + $0xa64] ss:$24 sps:$4 sm:$0xff]  }
 0x9c9   :  { %9787 = vmatmul.mubr.bf16.gmra.mrb[68].mxu0 %v23985_v47 }
 0x9ca   :  { %9908 = vmatpush1.bf16.msra.mxu0 %v19833_v6  ;;  %9935 = vmatprep.mubr.bf16.mxu0 %v23827_v15  ;;  %v19848_v6 = vld [vmem:[%s27129_s5 + $0xa60] ss:$24 sps:$4 sm:$0xff]  }
 0x9cb   :  { %9909 = vmatprep.subr.bf16.mxu0 %v19838_v48  ;;  %v19853_v48 = vld [vmem:[%s27129_s5 + $0xa94] ss:$24 sps:$4 sm:$0xff]  }
 0x9ce   :  { %9910 = vmatpush1.bf16.msra.mxu0 %v19836_v50  ;;  %v19851_v50 = vld [vmem:[%s27129_s5 + $0xa90] ss:$24 sps:$4 sm:$0xff]  }
 0x9cf   :  { %9911 = vmatprep.subr.bf16.mxu0 %v19841_v22  ;;  %v19856_v22 = vld [vmem:[%s27129_s5 + $0xac4] ss:$24 sps:$4 sm:$0xff]  }
 0x9d2   :  { %9912 = vmatpush1.bf16.msra.mxu0 %v19839_v49  ;;  %v19854_v49 = vld [vmem:[%s27129_s5 + $0xac0] ss:$24 sps:$4 sm:$0xff]  }
 0x9d3   :  { %9913 = vmatprep.subr.bf16.mxu0 %v19844_v46  ;;  %v19859_v46 = vld [vmem:[%s27129_s5 + $0xaf4] ss:$24 sps:$4 sm:$0xff]  }
 0x9d6   :  { %9914 = vmatpush1.bf16.msra.mxu0 %v19842_v21  ;;  %v19857_v21 = vld [vmem:[%s27129_s5 + $0xaf0] ss:$24 sps:$4 sm:$0xff]  }
 0x9d7   :  { %9915 = vmatprep.subr.bf16.mxu0 %v19847_v25  ;;  %v19862_v25 = vld [vmem:[%s27129_s5 + $0xb24] ss:$24 sps:$4 sm:$0xff]  }
 0x9da   :  { %9916 = vmatpush1.bf16.msra.mxu0 %v19845_v44  ;;  %v19860_v44 = vld [vmem:[%s27129_s5 + $0xb20] ss:$24 sps:$4 sm:$0xff]  }
 0x9db   :  { %9917 = vmatprep.subr.bf16.mxu0 %v19850_v1  ;;  %v19865_v1 = vld [vmem:[%s27129_s5 + $0xb54] ss:$24 sps:$4 sm:$0xff]  }
 0x9de   :  { %9918 = vmatpush1.bf16.msra.mxu0 %v19848_v6  ;;  %v19863_v6 = vld [vmem:[%s27129_s5 + $0xb50] ss:$24 sps:$4 sm:$0xff]  }
 0x9df   :  { %9919 = vmatprep.subr.bf16.mxu0 %v19853_v48  ;;  %v19868_v48 = vld [vmem:[%s27129_s5 + $0xb84] ss:$24 sps:$4 sm:$0xff]  }
 0x9e2   :  { %9920 = vmatpush1.bf16.msra.mxu0 %v19851_v50  ;;  %v19866_v50 = vld [vmem:[%s27129_s5 + $0xb80] ss:$24 sps:$4 sm:$0xff]  }
 0x9e3   :  { %9921 = vmatprep.subr.bf16.mxu0 %v19856_v22  ;;  %v19871_v22 = vld [vmem:[%s27129_s5 + $0xbb4] ss:$24 sps:$4 sm:$0xff]  }
 0x9e6   :  { %9922 = vmatpush1.bf16.msra.mxu0 %v19854_v49  ;;  %v19869_v49 = vld [vmem:[%s27129_s5 + $0xbb0] ss:$24 sps:$4 sm:$0xff]  }
 0x9e7   :  { %9923 = vmatprep.subr.bf16.mxu0 %v19859_v46  ;;  %v19874_v46 = vld [vmem:[%s27129_s5 + $0xbe4] ss:$24 sps:$4 sm:$0xff]  }
 0x9ea   :  { %9924 = vmatpush1.bf16.msra.mxu0 %v19857_v21  ;;  %v19872_v21 = vld [vmem:[%s27129_s5 + $0xbe0] ss:$24 sps:$4 sm:$0xff]  }
 0x9eb   :  { %9925 = vmatprep.subr.bf16.mxu0 %v19862_v25  ;;  %v19877_v25 = vld [vmem:[%s27129_s5 + $0xc14] ss:$24 sps:$4 sm:$0xff]  }
 0x9ee   :  { %9926 = vmatpush1.bf16.msra.mxu0 %v19860_v44  ;;  %v19875_v44 = vld [vmem:[%s27129_s5 + $0xc10] ss:$24 sps:$4 sm:$0xff]  }
 0x9ef   :  { %9927 = vmatprep.subr.bf16.mxu0 %v19865_v1  ;;  %v19880_v1 = vld [vmem:[%s27129_s5 + $0xc44] ss:$24 sps:$4 sm:$0xff]  }
 0x9f2   :  { %9928 = vmatpush1.bf16.msra.mxu0 %v19863_v6  ;;  %v19878_v6 = vld [vmem:[%s27129_s5 + $0xc40] ss:$24 sps:$4 sm:$0xff]  }
 0x9f3   :  { %9929 = vmatprep.subr.bf16.mxu0 %v19868_v48  ;;  %v19883_v48 = vld [vmem:[%s27129_s5 + $0xc74] ss:$24 sps:$4 sm:$0xff]  }
 0x9f6   :  { %9930 = vmatpush1.bf16.msra.mxu0 %v19866_v50  ;;  %v19881_v50 = vld [vmem:[%s27129_s5 + $0xc70] ss:$24 sps:$4 sm:$0xff]  }
 0x9f7   :  { %9931 = vmatprep.subr.bf16.mxu0 %v19871_v22  ;;  %v19886_v22 = vld [vmem:[%s27129_s5 + $0xca4] ss:$24 sps:$4 sm:$0xff]  }
 0x9fa   :  { %9932 = vmatpush1.bf16.msra.mxu0 %v19869_v49  ;;  %v19884_v49 = vld [vmem:[%s27129_s5 + $0xca0] ss:$24 sps:$4 sm:$0xff]  }
 0x9fb   :  { %9933 = vmatprep.subr.bf16.mxu0 %v19874_v46  ;;  %v19889_v46 = vld [vmem:[%s27129_s5 + $0xcd4] ss:$24 sps:$4 sm:$0xff]  }
 0x9fe   :  { %9934 = vmatpush1.bf16.msra.mxu0 %v19872_v21  ;;  %v19887_v21 = vld [vmem:[%s27129_s5 + $0xcd0] ss:$24 sps:$4 sm:$0xff]  }
 0x9ff   :  { %9956 = vmatprep.subr.bf16.mxu0 %v19877_v25  ;;  %v19892_v25 = vld [vmem:[%s27129_s5 + $0xd04] ss:$24 sps:$4 sm:$0xff]  }
 0xa01   :  { %9936 = vmatmul.mubr.bf16.vlgmr.msra.gmra.mrb[72].mxu0 %v23825_v61 }
 0xa02   :  { %9945 = vmatprep.mubr.bf16.mxu0 %v23855_v12  ;;  %9957 = vmatpush1.bf16.msra.mxu0 %v19875_v44  ;;  %v19890_v44 = vld [vmem:[%s27129_s5 + $0xd00] ss:$24 sps:$4 sm:$0xff]  }
 0xa03   :  { %9958 = vmatprep.subr.bf16.mxu0 %v19880_v1  ;;  %v19895_v1 = vld [vmem:[%s27129_s5 + $0xd34] ss:$24 sps:$4 sm:$0xff]  }
 0xa06   :  { %9959 = vmatpush1.bf16.msra.mxu0 %v19878_v6  ;;  %v19893_v6 = vld [vmem:[%s27129_s5 + $0xd30] ss:$24 sps:$4 sm:$0xff]  }
 0xa07   :  { %9960 = vmatprep.subr.bf16.mxu0 %v19883_v48  ;;  %v19898_v48 = vld [vmem:[%s27129_s5 + $0xd64] ss:$24 sps:$4 sm:$0xff]  }
 0xa09   :  { %9946 = vmatmul.mubr.bf16.gmra.mrb[76].mxu0 %v23853_v3 }
 0xa0a   :  { %9961 = vmatpush1.bf16.msra.mxu0 %v19881_v50  ;;  %9988 = vmatprep.mubr.bf16.mxu0 %v27309_v53  ;;  %v19896_v50 = vld [vmem:[%s27129_s5 + $0xd60] ss:$24 sps:$4 sm:$0xff]  }
 0xa0b   :  { %9962 = vmatprep.subr.bf16.mxu0 %v19886_v22  ;;  %v19901_v22 = vld [vmem:[%s27129_s5 + $0xd84] ss:$24 sps:$4 sm:$0xff]  }
 0xa0e   :  { %9963 = vmatpush1.bf16.msra.mxu0 %v19884_v49  ;;  %v19899_v49 = vld [vmem:[%s27129_s5 + $0xd80] ss:$24 sps:$4 sm:$0xff]  }
 0xa0f   :  { %9964 = vmatprep.subr.bf16.mxu0 %v19889_v46  ;;  %v19904_v46 = vld [vmem:[%s27129_s5 + $0xdb4] ss:$24 sps:$4 sm:$0xff]  }
 0xa12   :  { %9965 = vmatpush1.bf16.msra.mxu0 %v19887_v21  ;;  %v19902_v21 = vld [vmem:[%s27129_s5 + $0xdb0] ss:$24 sps:$4 sm:$0xff]  }
 0xa13   :  { %9966 = vmatprep.subr.bf16.mxu0 %v19892_v25  ;;  %v19907_v25 = vld [vmem:[%s27129_s5 + $0xde4] ss:$24 sps:$4 sm:$0xff]  }
 0xa16   :  { %9967 = vmatpush1.bf16.msra.mxu0 %v19890_v44  ;;  %v19905_v44 = vld [vmem:[%s27129_s5 + $0xde0] ss:$24 sps:$4 sm:$0xff]  }
 0xa17   :  { %9968 = vmatprep.subr.bf16.mxu0 %v19895_v1  ;;  %v19910_v1 = vld [vmem:[%s27129_s5 + $0xe14] ss:$24 sps:$4 sm:$0xff]  }
 0xa1a   :  { %9969 = vmatpush1.bf16.msra.mxu0 %v19893_v6  ;;  %v19908_v6 = vld [vmem:[%s27129_s5 + $0xe10] ss:$24 sps:$4 sm:$0xff]  }
 0xa1b   :  { %9970 = vmatprep.subr.bf16.mxu0 %v19898_v48  ;;  %v19913_v48 = vld [vmem:[%s27129_s5 + $0xe44] ss:$24 sps:$4 sm:$0xff]  }
 0xa1e   :  { %9971 = vmatpush1.bf16.msra.mxu0 %v19896_v50  ;;  %v19911_v50 = vld [vmem:[%s27129_s5 + $0xe40] ss:$24 sps:$4 sm:$0xff]  }
 0xa1f   :  { %10898 = vmatprep.subr.bf16.mxu0 %v19901_v22  ;;  %v19916_v22 = vld [vmem:[%s27129_s5 + $0xe74] ss:$24 sps:$4 sm:$0xff]  }
 0xa21   :  { %9989 = vmatmul.mubr.bf16.vlgmr.msra.gmra.mrb[72].mxu0 %v23959_v60  ;;  %v19970_v60 = vld [vmem:[%s27129_s5 + $0x11d4] ss:$24 sps:$4 sm:$0xff]  }
 0xa22   :  { %10899 = vmatpush1.bf16.msra.mxu0 %v19899_v49  ;;  %9998 = vmatprep.mubr.bf16.mxu0 %v27309_v53  ;;  %v19914_v49 = vld [vmem:[%s27129_s5 + $0xe70] ss:$24 sps:$4 sm:$0xff]  }
 0xa23   :  { %10900 = vmatprep.subr.bf16.mxu0 %v19904_v46  ;;  %v19919_v46 = vld [vmem:[%s27129_s5 + $0xea4] ss:$24 sps:$4 sm:$0xff]  }
 0xa26   :  { %10901 = vmatpush1.bf16.msra.mxu0 %v19902_v21 }
 0xa27   :  { %10902 = vmatprep.subr.bf16.mxu0 %v19907_v25 }
 0xa29   :  { %9999 = vmatmul.mubr.bf16.gmra.mrb[76].mxu0 %v23985_v47  ;;  %v19925_v47 = vld [vmem:[%s27129_s5 + $0xf04] ss:$24 sps:$4 sm:$0xff]  }
 0xa2a   :  { %10903 = vmatpush1.bf16.msra.mxu0 %v19905_v44  ;;  %10930 = vmatprep.mubr.bf16.mxu0 %v23883_v54  ;;  %v19917_v44 = vld [vmem:[%s27129_s5 + $0xea0] ss:$24 sps:$4 sm:$0xff]  }
 0xa2b   :  { %10904 = vmatprep.subr.bf16.mxu0 %v19910_v1 }
 0xa2e   :  { %10905 = vmatpush1.bf16.msra.mxu0 %v19908_v6  ;;  %v19922_v6 = vld [vmem:[%s27129_s5 + $0xed4] ss:$24 sps:$4 sm:$0xff]  }
 0xa2f   :  { %10906 = vmatprep.subr.bf16.mxu0 %v19913_v48 }
 0xa32   :  { %10907 = vmatpush1.bf16.msra.mxu0 %v19911_v50 }
 0xa33   :  { %10908 = vmatprep.subr.bf16.mxu0 %v19916_v22 }
 0xa35   :  { %v11091_v21 = vpop.f32.mrb[128].mxu1 }
 0xa36   :  { %v11093_v25 = vpop.f32.mrb[129].mxu1  ;;  %10909 = vmatpush1.bf16.msra.mxu0 %v19914_v49  ;;  %v19920_v49 = vld [vmem:[%s27129_s5 + $0xed0] ss:$24 sps:$4 sm:$0xff]  }
 0xa37   :  { %v11095_v1 = vpop.f32.mrb[130].mxu1  ;;  %10910 = vmatprep.subr.bf16.mxu0 %v19919_v46 }
 0xa38   :  { %v25167_v48 = vpack.c.bf16 %v11095_v1, %v11091_v21  ;;  %v11097_v50 = vpop.f32.mrb[131].mxu1  ;;  %v19923_v21 = vld [vmem:[%s27129_s5 + $0xf00] ss:$24 sps:$4 sm:$0xff]  }
 0xa39   :  { %v25169_v22 = vpack.c.bf16 %v11097_v50, %v11093_v25  ;;  %v19928_v25 = vld [vmem:[%s27129_s5 + $0xf34] ss:$24 sps:$4 sm:$0xff]  }
 0xa3a   :  { %10911 = vmatpush1.bf16.msra.mxu0 %v19917_v44 }
 0xa3b   :  { %10912 = vmatprep.subr.bf16.mxu0 %v19922_v6 }
 0xa3d   :  { %v11101_v46 = vpop.f32.mrb[132].mxu1 }
 0xa3e   :  { %v11103_v24 = vpop.f32.mrb[133].mxu1  ;;  %10913 = vmatpush1.bf16.msra.mxu0 %v19920_v49  ;;  %v19926_v49 = vld [vmem:[%s27129_s5 + $0xf30] ss:$24 sps:$4 sm:$0xff]  }
 0xa3f   :  { %v11105_v1 = vpop.f32.mrb[134].mxu1  ;;  %10914 = vmatprep.subr.bf16.mxu0 %v19925_v47  ;;  %v19929_v47 = vld [vmem:[%s27129_s5 + $0xf60] ss:$24 sps:$4 sm:$0xff]  }
 0xa40   :  { %v25183_v44 = vpack.c.bf16 %v11105_v1, %v11101_v46  ;;  %v11107_v6 = vpop.f32.mrb[135].mxu1  ;;  %v19932_v46 = vld [vmem:[%s27129_s5 + $0xf90] ss:$24 sps:$4 sm:$0xff]   ;;  %v19935_v1 = vld [vmem:[%s27129_s5 + $0xfc0] ss:$24 sps:$4 sm:$0xff]  }
 0xa41   :  { %v25185_v50 = vpack.c.bf16 %v11107_v6, %v11103_v24  ;;  %v19934_v24 = vld [vmem:[%s27129_s5 + $0xf94] ss:$24 sps:$4 sm:$0xff]   ;;  %v19943_v6 = vld [vmem:[%s27129_s5 + $0x1024] ss:$24 sps:$4 sm:$0xff]  }
 0xa42   :  { %10915 = vmatpush1.bf16.msra.mxu0 %v19923_v21  ;;  %v19937_v21 = vld [vmem:[%s27129_s5 + $0xfc4] ss:$24 sps:$4 sm:$0xff]  }
 0xa43   :  { %10916 = vmatprep.subr.bf16.mxu0 %v19928_v25  ;;  %v19938_v25 = vld [vmem:[%s27129_s5 + $0xff0] ss:$24 sps:$4 sm:$0xff]  }
 0xa46   :  { %10917 = vmatpush1.bf16.msra.mxu0 %v19926_v49  ;;  %v19941_v49 = vld [vmem:[%s27129_s5 + $0x1020] ss:$24 sps:$4 sm:$0xff]  }
 0xa47   :  { %10918 = vmatprep.subr.bf16.mxu0 %v19931_v39  ;;  %v19940_v39 = vld [vmem:[%s27129_s5 + $0xff4] ss:$24 sps:$4 sm:$0xff]  }
 0xa4a   :  { %10919 = vmatpush1.bf16.msra.mxu0 %v19929_v47  ;;  %v19946_v47 = vld [vmem:[%s27129_s5 + $0x1054] ss:$24 sps:$4 sm:$0xff]  }
 0xa4b   :  { %10920 = vmatprep.subr.bf16.mxu0 %v19934_v24  ;;  %v19944_v24 = vld [vmem:[%s27129_s5 + $0x1050] ss:$24 sps:$4 sm:$0xff]  }
 0xa4e   :  { %10921 = vmatpush1.bf16.msra.mxu0 %v19932_v46  ;;  %v19949_v46 = vld [vmem:[%s27129_s5 + $0x1084] ss:$24 sps:$4 sm:$0xff]  }
 0xa4f   :  { %10922 = vmatprep.subr.bf16.mxu0 %v19937_v21  ;;  %v19947_v21 = vld [vmem:[%s27129_s5 + $0x1080] ss:$24 sps:$4 sm:$0xff]  }
 0xa52   :  { %10923 = vmatpush1.bf16.msra.mxu0 %v19935_v1  ;;  %v19952_v1 = vld [vmem:[%s27129_s5 + $0x10b4] ss:$24 sps:$4 sm:$0xff]  }
 0xa53   :  { %10924 = vmatprep.subr.bf16.mxu0 %v19940_v39  ;;  %v19950_v39 = vld [vmem:[%s27129_s5 + $0x10b0] ss:$24 sps:$4 sm:$0xff]  }
 0xa56   :  { %10925 = vmatpush1.bf16.msra.mxu0 %v19938_v25  ;;  %v19955_v25 = vld [vmem:[%s27129_s5 + $0x10e4] ss:$24 sps:$4 sm:$0xff]  }
 0xa57   :  { %10926 = vmatprep.subr.bf16.mxu0 %v19943_v6  ;;  %v19953_v6 = vld [vmem:[%s27129_s5 + $0x10e0] ss:$24 sps:$4 sm:$0xff]  }
 0xa5a   :  { %10927 = vmatpush1.bf16.msra.mxu0 %v19941_v49  ;;  %v19958_v49 = vld [vmem:[%s27129_s5 + $0x1114] ss:$24 sps:$4 sm:$0xff]  }
 0xa5b   :  { %10928 = vmatprep.subr.bf16.mxu0 %v19946_v47  ;;  %v19956_v47 = vld [vmem:[%s27129_s5 + $0x1110] ss:$24 sps:$4 sm:$0xff]  }
 0xa5e   :  { %10929 = vmatpush1.bf16.msra.mxu0 %v19944_v24  ;;  %v19961_v24 = vld [vmem:[%s27129_s5 + $0x1144] ss:$24 sps:$4 sm:$0xff]  }
 0xa5f   :  { %10951 = vmatprep.subr.bf16.mxu0 %v19949_v46  ;;  %v20043_v46 = vld [vmem:[%s27130_s6] ss:$8 sps:$4 sm:$0xff]  }
 0xa61   :  { %10931 = vmatmul.mubr.bf16.vlgmr.msra.gmra.mrb[64].mxu0 %v23881_v27 }
 0xa62   :  { %10940 = vmatprep.mubr.bf16.mxu0 %v23887_v23  ;;  %10952 = vmatpush1.bf16.msra.mxu0 %v19947_v21  ;;  %v20045_v21 = vld [vmem:[%s27130_s6 + $0x4] ss:$8 sps:$4 sm:$0xff]  }
 0xa63   :  { %10953 = vmatprep.subr.bf16.mxu0 %v19952_v1  ;;  %v19959_v1 = vld [vmem:[%s27129_s5 + $0x1140] ss:$24 sps:$4 sm:$0xff]   ;;  %11840 = vmatprep.subr.bf16.mxu1 %v20045_v21  ;;  %v19962_v21 = vld [vmem:[%s27129_s5 + $0x1170] ss:$24 sps:$4 sm:$0xff]  }
 0xa64   :  { %11841 = vmatpush1.bf16.msra.mxu1 %v20043_v46  ;;  %v20063_v46 = vld [vmem:[%s27130_s6 + $0x34] ss:$8 sps:$4 sm:$0xff]  }
 0xa66   :  { %10954 = vmatpush1.bf16.msra.mxu0 %v19950_v39  ;;  %v20051_v39 = vld [vmem:[%s27130_s6 + $0x14] ss:$8 sps:$4 sm:$0xff]  }
 0xa67   :  { %10955 = vmatprep.subr.bf16.mxu0 %v19955_v25  ;;  %v20049_v25 = vld [vmem:[%s27130_s6 + $0x10] ss:$8 sps:$4 sm:$0xff]   ;;  %11842 = vmatprep.subr.bf16.mxu1 %v20051_v39 }
 0xa68   :  { %11843 = vmatpush1.bf16.msra.mxu1 %v20049_v25  ;;  %v19965_v39 = vld [vmem:[%s27129_s5 + $0x11a0] ss:$24 sps:$4 sm:$0xff]   ;;  %v20069_v25 = vld [vmem:[%s27130_s6 + $0x44] ss:$8 sps:$4 sm:$0xff]  }
 0xa69   :  { %10941 = vmatmul.mubr.bf16.gmra.mrb[68].mxu0 %v23885_v41 }
 0xa6a   :  { %10956 = vmatpush1.bf16.msra.mxu0 %v19953_v6  ;;  %10983 = vmatprep.mubr.bf16.mxu0 %v27309_v53  ;;  %v19964_v6 = vld [vmem:[%s27129_s5 + $0x1174] ss:$24 sps:$4 sm:$0xff]  }
 0xa6b   :  { %10957 = vmatprep.subr.bf16.mxu0 %v19958_v49  ;;  %v20057_v49 = vld [vmem:[%s27130_s6 + $0x24] ss:$8 sps:$4 sm:$0xff]  }
 0xa6c   :  { %11844 = vmatprep.subr.bf16.mxu1 %v20057_v49  ;;  %v19973_v49 = vld [vmem:[%s27129_s5 + $0xd94] ss:$24 sps:$4 sm:$0xff]  }
 0xa6e   :  { %10958 = vmatpush1.bf16.msra.mxu0 %v19956_v47  ;;  %v19967_v47 = vld [vmem:[%s27129_s5 + $0x11a4] ss:$24 sps:$4 sm:$0xff]  }
 0xa6f   :  { %10959 = vmatprep.subr.bf16.mxu0 %v19961_v24  ;;  %v20055_v24 = vld [vmem:[%s27130_s6 + $0x20] ss:$8 sps:$4 sm:$0xff]  }
 0xa70   :  { %11845 = vmatpush1.bf16.msra.mxu1 %v20055_v24  ;;  %v19971_v24 = vld [vmem:[%s27129_s5 + $0xd90] ss:$24 sps:$4 sm:$0xff]  }
 0xa71   :  { %11846 = vmatprep.subr.bf16.mxu1 %v20063_v46  ;;  %v19976_v46 = vld [vmem:[%s27129_s5 + $0xdc4] ss:$24 sps:$4 sm:$0xff]  }
 0xa72   :  { %10960 = vmatpush1.bf16.msra.mxu0 %v19959_v1  ;;  %v20061_v1 = vld [vmem:[%s27130_s6 + $0x30] ss:$8 sps:$4 sm:$0xff]  }
 0xa73   :  { %10961 = vmatprep.subr.bf16.mxu0 %v19964_v6  ;;  %v19968_v6 = vld [vmem:[%s27129_s5 + $0x11d0] ss:$24 sps:$4 sm:$0xff]  }
 0xa74   :  { %11847 = vmatpush1.bf16.msra.mxu1 %v20061_v1  ;;  %v19974_v1 = vld [vmem:[%s27129_s5 + $0xdc0] ss:$24 sps:$4 sm:$0xff]  }
 0xa75   :  { %11848 = vmatprep.subr.bf16.mxu1 %v20069_v25  ;;  %v19979_v25 = vld [vmem:[%s27129_s5 + $0xdf4] ss:$24 sps:$4 sm:$0xff]  }
 0xa76   :  { %10962 = vmatpush1.bf16.msra.mxu0 %v19962_v21  ;;  %v20067_v21 = vld [vmem:[%s27130_s6 + $0x40] ss:$8 sps:$4 sm:$0xff]  }
 0xa77   :  { %10963 = vmatprep.subr.bf16.mxu0 %v19967_v47  ;;  %v20075_v47 = vld [vmem:[%s27130_s6 + $0x54] ss:$8 sps:$4 sm:$0xff]  }
 0xa78   :  { %11849 = vmatpush1.bf16.msra.mxu1 %v20067_v21  ;;  %v19977_v21 = vld [vmem:[%s27129_s5 + $0xdf0] ss:$24 sps:$4 sm:$0xff]  }
 0xa79   :  { %11850 = vmatprep.subr.bf16.mxu1 %v20075_v47  ;;  %v19982_v47 = vld [vmem:[%s27129_s5 + $0xe24] ss:$24 sps:$4 sm:$0xff]  }
 0xa7a   :  { %10964 = vmatpush1.bf16.msra.mxu0 %v19965_v39  ;;  %v20081_v39 = vld [vmem:[%s27130_s6 + $0x64] ss:$8 sps:$4 sm:$0xff]  }
 0xa7b   :  { %10965 = vmatprep.subr.bf16.mxu0 %v19970_v60  ;;  %v20073_v60 = vld [vmem:[%s27130_s6 + $0x50] ss:$8 sps:$4 sm:$0xff]  }
 0xa7c   :  { %11851 = vmatpush1.bf16.msra.mxu1 %v20073_v60  ;;  %v19980_v60 = vld [vmem:[%s27129_s5 + $0xe20] ss:$24 sps:$4 sm:$0xff]  }
 0xa7d   :  { %11852 = vmatprep.subr.bf16.mxu1 %v20081_v39  ;;  %v19985_v39 = vld [vmem:[%s27129_s5 + $0xe54] ss:$24 sps:$4 sm:$0xff]  }
 0xa7e   :  { %10966 = vmatpush1.bf16.msra.mxu0 %v19968_v6  ;;  %v20079_v6 = vld [vmem:[%s27130_s6 + $0x60] ss:$8 sps:$4 sm:$0xff]  }
 0xa7f   :  { %11110 = vmatprep.subr.bf16.mxu0 %v19973_v49  ;;  %v20087_v49 = vld [vmem:[%s27130_s6 + $0x74] ss:$8 sps:$4 sm:$0xff]  }
 0xa80   :  { %11853 = vmatpush1.bf16.msra.mxu1 %v20079_v6  ;;  %v19983_v6 = vld [vmem:[%s27129_s5 + $0xe50] ss:$24 sps:$4 sm:$0xff]  }
 0xa81   :  { %10984 = vmatmul.mubr.bf16.vlgmr.msra.gmra.mrb[64].mxu0 %v24011_v59  ;;  %11854 = vmatprep.subr.bf16.mxu1 %v20087_v49  ;;  %v19988_v49 = vld [vmem:[%s27129_s5 + $0xe84] ss:$24 sps:$4 sm:$0xff]  }
 0xa82   :  { %11111 = vmatpush1.bf16.msra.mxu0 %v19971_v24  ;;  %10993 = vmatprep.mubr.bf16.mxu0 %v27309_v53  ;;  %v20085_v24 = vld [vmem:[%s27130_s6 + $0x70] ss:$8 sps:$4 sm:$0xff]  }
 0xa83   :  { %11112 = vmatprep.subr.bf16.mxu0 %v19976_v46  ;;  %v20093_v46 = vld [vmem:[%s27130_s6 + $0x84] ss:$8 sps:$4 sm:$0xff]  }
 0xa84   :  { %11855 = vmatpush1.bf16.msra.mxu1 %v20085_v24  ;;  %v19986_v24 = vld [vmem:[%s27129_s5 + $0xe80] ss:$24 sps:$4 sm:$0xff]  }
 0xa85   :  { %11856 = vmatprep.subr.bf16.mxu1 %v20093_v46  ;;  %v19991_v46 = vld [vmem:[%s27129_s5 + $0xeb4] ss:$24 sps:$4 sm:$0xff]  }
 0xa86   :  { %11113 = vmatpush1.bf16.msra.mxu0 %v19974_v1  ;;  %v20091_v1 = vld [vmem:[%s27130_s6 + $0x80] ss:$8 sps:$4 sm:$0xff]  }
 0xa87   :  { %11114 = vmatprep.subr.bf16.mxu0 %v19979_v25  ;;  %v20099_v25 = vld [vmem:[%s27130_s6 + $0x94] ss:$8 sps:$4 sm:$0xff]  }
 0xa88   :  { %11857 = vmatpush1.bf16.msra.mxu1 %v20091_v1  ;;  %v19989_v1 = vld [vmem:[%s27129_s5 + $0xeb0] ss:$24 sps:$4 sm:$0xff]  }
 0xa89   :  { %10994 = vmatmul.mubr.bf16.gmra.mrb[68].mxu0 %v24037_v51  ;;  %11858 = vmatprep.subr.bf16.mxu1 %v20099_v25  ;;  %v19994_v25 = vld [vmem:[%s27129_s5 + $0xee4] ss:$24 sps:$4 sm:$0xff]  }
 0xa8a   :  { %11115 = vmatpush1.bf16.msra.mxu0 %v19977_v21  ;;  %11142 = vmatprep.mubr.bf16.mxu0 %v23883_v54  ;;  %v20097_v21 = vld [vmem:[%s27130_s6 + $0x90] ss:$8 sps:$4 sm:$0xff]  }
 0xa8b   :  { %11116 = vmatprep.subr.bf16.mxu0 %v19982_v47  ;;  %v20105_v47 = vld [vmem:[%s27130_s6 + $0xa4] ss:$8 sps:$4 sm:$0xff]  }
 0xa8c   :  { %11859 = vmatpush1.bf16.msra.mxu1 %v20097_v21  ;;  %v19992_v21 = vld [vmem:[%s27129_s5 + $0xee0] ss:$24 sps:$4 sm:$0xff]  }
 0xa8d   :  { %11860 = vmatprep.subr.bf16.mxu1 %v20105_v47  ;;  %v19997_v47 = vld [vmem:[%s27129_s5 + $0xf14] ss:$24 sps:$4 sm:$0xff]  }
 0xa8e   :  { %11117 = vmatpush1.bf16.msra.mxu0 %v19980_v60  ;;  %v20103_v60 = vld [vmem:[%s27130_s6 + $0xa0] ss:$8 sps:$4 sm:$0xff]  }
 0xa8f   :  { %11118 = vmatprep.subr.bf16.mxu0 %v19985_v39  ;;  %v20111_v39 = vld [vmem:[%s27130_s6 + $0xb4] ss:$8 sps:$4 sm:$0xff]  }
 0xa90   :  { %11861 = vmatpush1.bf16.msra.mxu1 %v20103_v60  ;;  %v19995_v60 = vld [vmem:[%s27129_s5 + $0xf10] ss:$24 sps:$4 sm:$0xff]  }
 0xa91   :  { %11862 = vmatprep.subr.bf16.mxu1 %v20111_v39  ;;  %v20000_v39 = vld [vmem:[%s27129_s5 + $0xf44] ss:$24 sps:$4 sm:$0xff]  }
 0xa92   :  { %11119 = vmatpush1.bf16.msra.mxu0 %v19983_v6  ;;  %v20109_v6 = vld [vmem:[%s27130_s6 + $0xb0] ss:$8 sps:$4 sm:$0xff]  }
 0xa93   :  { %11120 = vmatprep.subr.bf16.mxu0 %v19988_v49  ;;  %v20117_v49 = vld [vmem:[%s27130_s6 + $0xc4] ss:$8 sps:$4 sm:$0xff]  }
 0xa94   :  { %11863 = vmatpush1.bf16.msra.mxu1 %v20109_v6  ;;  %v20003_v6 = vld [vmem:[%s27129_s5 + $0xf74] ss:$24 sps:$4 sm:$0xff]  }
 0xa95   :  { %11864 = vmatprep.subr.bf16.mxu1 %v20117_v49  ;;  %v20127_v49 = vld [vmem:[%s27130_s6 + $0xe0] ss:$8 sps:$4 sm:$0xff]  }
 0xa96   :  { %11121 = vmatpush1.bf16.msra.mxu0 %v19986_v24  ;;  %v20115_v24 = vld [vmem:[%s27130_s6 + $0xc0] ss:$8 sps:$4 sm:$0xff]  }
 0xa97   :  { %11122 = vmatprep.subr.bf16.mxu0 %v19991_v46  ;;  %v20123_v46 = vld [vmem:[%s27130_s6 + $0xd4] ss:$8 sps:$4 sm:$0xff]  }
 0xa98   :  { %11865 = vmatpush1.bf16.msra.mxu1 %v20115_v24  ;;  %v20004_v24 = vld [vmem:[%s27129_s5 + $0xfa0] ss:$24 sps:$4 sm:$0xff]  }
 0xa99   :  { %11866 = vmatprep.subr.bf16.mxu1 %v20123_v46  ;;  %v20007_v46 = vld [vmem:[%s27129_s5 + $0xfd0] ss:$24 sps:$4 sm:$0xff]  }
 0xa9a   :  { %11123 = vmatpush1.bf16.msra.mxu0 %v19989_v1  ;;  %v20129_v1 = vld [vmem:[%s27130_s6 + $0xe4] ss:$8 sps:$4 sm:$0xff]  }
 0xa9b   :  { %11124 = vmatprep.subr.bf16.mxu0 %v19994_v25  ;;  %v19998_v25 = vld [vmem:[%s27129_s5 + $0xf40] ss:$24 sps:$4 sm:$0xff]  }
 0xa9c   :  { %11867 = vmatpush1.bf16.msra.mxu1 %v20121_v45  ;;  %v20009_v45 = vld [vmem:[%s27129_s5 + $0xfd4] ss:$24 sps:$4 sm:$0xff]  }
 0xa9d   :  { %11868 = vmatprep.subr.bf16.mxu1 %v20129_v1  ;;  %v20015_v1 = vld [vmem:[%s27129_s5 + $0x1034] ss:$24 sps:$4 sm:$0xff]  }
 0xa9e   :  { %11125 = vmatpush1.bf16.msra.mxu0 %v19992_v21  ;;  %v20001_v21 = vld [vmem:[%s27129_s5 + $0xf70] ss:$24 sps:$4 sm:$0xff]  }
 0xa9f   :  { %11126 = vmatprep.subr.bf16.mxu0 %v19997_v47  ;;  %v20006_v47 = vld [vmem:[%s27129_s5 + $0xfa4] ss:$24 sps:$4 sm:$0xff]  }
 0xaa0   :  { %11869 = vmatpush1.bf16.msra.mxu1 %v20127_v49  ;;  %v20016_v49 = vld [vmem:[%s27129_s5 + $0x1060] ss:$24 sps:$4 sm:$0xff]  }
 0xaa2   :  { %11127 = vmatpush1.bf16.msra.mxu0 %v19995_v60  ;;  %v20012_v60 = vld [vmem:[%s27129_s5 + $0x1004] ss:$24 sps:$4 sm:$0xff]  }
 0xaa3   :  { %11128 = vmatprep.subr.bf16.mxu0 %v20000_v39  ;;  %v20010_v39 = vld [vmem:[%s27129_s5 + $0x1000] ss:$24 sps:$4 sm:$0xff]  }
 0xaa6   :  { %11129 = vmatpush1.bf16.msra.mxu0 %v19998_v25  ;;  %v20013_v25 = vld [vmem:[%s27129_s5 + $0x1030] ss:$24 sps:$4 sm:$0xff]  }
 0xaa7   :  { %11130 = vmatprep.subr.bf16.mxu0 %v20003_v6  ;;  %v20018_v6 = vld [vmem:[%s27129_s5 + $0x1064] ss:$24 sps:$4 sm:$0xff]  }
 0xaaa   :  { %11131 = vmatpush1.bf16.msra.mxu0 %v20001_v21  ;;  %v20021_v21 = vld [vmem:[%s27129_s5 + $0x1094] ss:$24 sps:$4 sm:$0xff]  }
 0xaab   :  { %11132 = vmatprep.subr.bf16.mxu0 %v20006_v47  ;;  %v20019_v47 = vld [vmem:[%s27129_s5 + $0x1090] ss:$24 sps:$4 sm:$0xff]  }
 0xaae   :  { %11133 = vmatpush1.bf16.msra.mxu0 %v20004_v24  ;;  %v20024_v24 = vld [vmem:[%s27129_s5 + $0x10c4] ss:$24 sps:$4 sm:$0xff]  }
 0xaaf   :  { %11134 = vmatprep.subr.bf16.mxu0 %v20009_v45  ;;  %v20022_v45 = vld [vmem:[%s27129_s5 + $0x10c0] ss:$24 sps:$4 sm:$0xff]  }
 0xab2   :  { %11135 = vmatpush1.bf16.msra.mxu0 %v20007_v46  ;;  %v20027_v46 = vld [vmem:[%s27129_s5 + $0x10f4] ss:$24 sps:$4 sm:$0xff]  }
 0xab3   :  { %11136 = vmatprep.subr.bf16.mxu0 %v20012_v60  ;;  %v20025_v60 = vld [vmem:[%s27129_s5 + $0x10f0] ss:$24 sps:$4 sm:$0xff]  }
 0xab6   :  { %11137 = vmatpush1.bf16.msra.mxu0 %v20010_v39  ;;  %v20030_v39 = vld [vmem:[%s27129_s5 + $0x1124] ss:$24 sps:$4 sm:$0xff]  }
 0xab7   :  { %11138 = vmatprep.subr.bf16.mxu0 %v20015_v1  ;;  %v20028_v1 = vld [vmem:[%s27129_s5 + $0x1120] ss:$24 sps:$4 sm:$0xff]  }
 0xaba   :  { %11139 = vmatpush1.bf16.msra.mxu0 %v20013_v25  ;;  %v20033_v25 = vld [vmem:[%s27129_s5 + $0x1154] ss:$24 sps:$4 sm:$0xff]  }
 0xabb   :  { %11140 = vmatprep.subr.bf16.mxu0 %v20018_v6  ;;  %v20031_v6 = vld [vmem:[%s27129_s5 + $0x1150] ss:$24 sps:$4 sm:$0xff]  }
 0xabe   :  { %11141 = vmatpush1.bf16.msra.mxu0 %v20016_v49  ;;  %v20036_v49 = vld [vmem:[%s27129_s5 + $0x1184] ss:$24 sps:$4 sm:$0xff]  }
 0xabf   :  { %11163 = vmatprep.subr.bf16.mxu0 %v20021_v21  ;;  %v20034_v21 = vld [vmem:[%s27129_s5 + $0x1180] ss:$24 sps:$4 sm:$0xff]  }
 0xac1   :  { %11143 = vmatmul.mubr.bf16.vlgmr.msra.gmra.mrb[72].mxu0 %v23881_v27 }
 0xac2   :  { %11152 = vmatprep.mubr.bf16.mxu0 %v23887_v23  ;;  %11164 = vmatpush1.bf16.msra.mxu0 %v20019_v47  ;;  %v20039_v47 = vld [vmem:[%s27129_s5 + $0x11b4] ss:$24 sps:$4 sm:$0xff]  }
 0xac3   :  { %11165 = vmatprep.subr.bf16.mxu0 %v20024_v24  ;;  %v20135_v24 = vld [vmem:[%s27130_s6 + $0xf4] ss:$8 sps:$4 sm:$0xff]  }
 0xac4   :  { %11870 = vmatprep.subr.bf16.mxu1 %v20135_v24  ;;  %v20058_v24 = vld [vmem:[%s27130_s6 + $0x320] ss:$8 sps:$4 sm:$0xff]  }
 0xac6   :  { %11166 = vmatpush1.bf16.msra.mxu0 %v20022_v45  ;;  %v20037_v45 = vld [vmem:[%s27129_s5 + $0x11b0] ss:$24 sps:$4 sm:$0xff]  }
 0xac7   :  { %11167 = vmatprep.subr.bf16.mxu0 %v20027_v46  ;;  %v20133_v46 = vld [vmem:[%s27130_s6 + $0xf0] ss:$8 sps:$4 sm:$0xff]  }
 0xac8   :  { %11871 = vmatpush1.bf16.msra.mxu1 %v20133_v46  ;;  %v20064_v46 = vld [vmem:[%s27130_s6 + $0x330] ss:$8 sps:$4 sm:$0xff]  }
 0xac9   :  { %11153 = vmatmul.mubr.bf16.gmra.mrb[76].mxu0 %v23885_v41 }
 0xaca   :  { %11168 = vmatpush1.bf16.msra.mxu0 %v20025_v60  ;;  %11195 = vmatprep.mubr.bf16.mxu0 %v27309_v53  ;;  %v20042_v60 = vld [vmem:[%s27129_s5 + $0x11e4] ss:$24 sps:$4 sm:$0xff]  }
 0xacb   :  { %11169 = vmatprep.subr.bf16.mxu0 %v20030_v39  ;;  %v20141_v39 = vld [vmem:[%s27130_s6 + $0x104] ss:$8 sps:$4 sm:$0xff]  }
 0xacc   :  { %11893 = vmatprep.subr.bf16.mxu1 %v20141_v39  ;;  %v20070_v39 = vld [vmem:[%s27130_s6 + $0x340] ss:$8 sps:$4 sm:$0xff]  }
 0xace   :  { %11170 = vmatpush1.bf16.msra.mxu0 %v20028_v1  ;;  %v20040_v1 = vld [vmem:[%s27129_s5 + $0x11e0] ss:$24 sps:$4 sm:$0xff]  }
 0xacf   :  { %11171 = vmatprep.subr.bf16.mxu0 %v20033_v25  ;;  %v20048_v25 = vld [vmem:[%s27130_s6 + $0x304] ss:$8 sps:$4 sm:$0xff]  }
 0xad2   :  { %11172 = vmatpush1.bf16.msra.mxu0 %v20031_v6  ;;  %v20046_v6 = vld [vmem:[%s27130_s6 + $0x300] ss:$8 sps:$4 sm:$0xff]  }
 0xad3   :  { %11173 = vmatprep.subr.bf16.mxu0 %v20036_v49  ;;  %v20054_v49 = vld [vmem:[%s27130_s6 + $0x314] ss:$8 sps:$4 sm:$0xff]  }
 0xad6   :  { %11174 = vmatpush1.bf16.msra.mxu0 %v20034_v21  ;;  %v20052_v21 = vld [vmem:[%s27130_s6 + $0x310] ss:$8 sps:$4 sm:$0xff]  }
 0xad7   :  { %11175 = vmatprep.subr.bf16.mxu0 %v20039_v47  ;;  %v20060_v47 = vld [vmem:[%s27130_s6 + $0x324] ss:$8 sps:$4 sm:$0xff]  }
 0xada   :  { %11176 = vmatpush1.bf16.msra.mxu0 %v20037_v45  ;;  %v20066_v45 = vld [vmem:[%s27130_s6 + $0x334] ss:$8 sps:$4 sm:$0xff]  }
 0xadb   :  { %11177 = vmatprep.subr.bf16.mxu0 %v20042_v60  ;;  %v20072_v60 = vld [vmem:[%s27130_s6 + $0x344] ss:$8 sps:$4 sm:$0xff]  }
 0xade   :  { %11178 = vmatpush1.bf16.msra.mxu0 %v20040_v1  ;;  %v20078_v1 = vld [vmem:[%s27130_s6 + $0x354] ss:$8 sps:$4 sm:$0xff]  }
 0xadf   :  { %13973 = vmatprep.subr.bf16.mxu0 %v20048_v25  ;;  %v20076_v25 = vld [vmem:[%s27130_s6 + $0x350] ss:$8 sps:$4 sm:$0xff]  }
 0xae1   :  { %11196 = vmatmul.mubr.bf16.vlgmr.msra.gmra.mrb[72].mxu0 %v24011_v59  ;;  %v20159_v59 = vld [vmem:[%s27130_s6 + $0x134] ss:$8 sps:$4 sm:$0xff]  }
 0xae2   :  { %11205 = vmatprep.mubr.bf16.mxu0 %v27309_v53  ;;  %13974 = vmatpush1.bf16.msra.mxu0 %v20046_v6  ;;  %v20084_v6 = vld [vmem:[%s27130_s6 + $0x364] ss:$8 sps:$4 sm:$0xff]  }
 0xae3   :  { %13975 = vmatprep.subr.bf16.mxu0 %v20054_v49  ;;  %v20082_v49 = vld [vmem:[%s27130_s6 + $0x360] ss:$8 sps:$4 sm:$0xff]  }
 0xae6   :  { %13976 = vmatpush1.bf16.msra.mxu0 %v20052_v21  ;;  %v20090_v21 = vld [vmem:[%s27130_s6 + $0x374] ss:$8 sps:$4 sm:$0xff]  }
 0xae7   :  { %13977 = vmatprep.subr.bf16.mxu0 %v20060_v47  ;;  %v20088_v47 = vld [vmem:[%s27130_s6 + $0x370] ss:$8 sps:$4 sm:$0xff]  }
 0xae9   :  { %11206 = vmatmul.mubr.bf16.gmra.mrb[76].mxu0 %v24037_v51 }
 0xaea   :  { %13978 = vmatpush1.bf16.msra.mxu0 %v20058_v24  ;;  %v20096_v24 = vld [vmem:[%s27130_s6 + $0x384] ss:$8 sps:$4 sm:$0xff]  }
 0xaeb   :  { %13979 = vmatprep.subr.bf16.mxu0 %v20066_v45  ;;  %v20094_v45 = vld [vmem:[%s27130_s6 + $0x380] ss:$8 sps:$4 sm:$0xff]  }
 0xaee   :  { %13980 = vmatpush1.bf16.msra.mxu0 %v20064_v46  ;;  %v20102_v46 = vld [vmem:[%s27130_s6 + $0x394] ss:$8 sps:$4 sm:$0xff]  }
 0xaef   :  { %13981 = vmatprep.subr.bf16.mxu0 %v20072_v60  ;;  %v20100_v60 = vld [vmem:[%s27130_s6 + $0x390] ss:$8 sps:$4 sm:$0xff]  }
 0xaf2   :  { %13982 = vmatpush1.bf16.msra.mxu0 %v20070_v39  ;;  %v20108_v39 = vld [vmem:[%s27130_s6 + $0x3a4] ss:$8 sps:$4 sm:$0xff]  }
 0xaf3   :  { %13983 = vmatprep.subr.bf16.mxu0 %v20078_v1  ;;  %v20106_v1 = vld [vmem:[%s27130_s6 + $0x3a0] ss:$8 sps:$4 sm:$0xff]  }
 0xaf6   :  { %13984 = vmatpush1.bf16.msra.mxu0 %v20076_v25  ;;  %v20114_v25 = vld [vmem:[%s27130_s6 + $0x3b4] ss:$8 sps:$4 sm:$0xff]  }
 0xaf7   :  { %13985 = vmatprep.subr.bf16.mxu0 %v20084_v6  ;;  %v20112_v6 = vld [vmem:[%s27130_s6 + $0x3b0] ss:$8 sps:$4 sm:$0xff]  }
 0xafa   :  { %13986 = vmatpush1.bf16.msra.mxu0 %v20082_v49  ;;  %v20120_v49 = vld [vmem:[%s27130_s6 + $0x3c4] ss:$8 sps:$4 sm:$0xff]  }
 0xafb   :  { %13987 = vmatprep.subr.bf16.mxu0 %v20090_v21  ;;  %v20118_v21 = vld [vmem:[%s27130_s6 + $0x3c0] ss:$8 sps:$4 sm:$0xff]  }
 0xafe   :  { %13988 = vmatpush1.bf16.msra.mxu0 %v20088_v47  ;;  %v20126_v47 = vld [vmem:[%s27130_s6 + $0x3d4] ss:$8 sps:$4 sm:$0xff]  }
 0xaff   :  { %13989 = vmatprep.subr.bf16.mxu0 %v20096_v24  ;;  %v20124_v24 = vld [vmem:[%s27130_s6 + $0x3d0] ss:$8 sps:$4 sm:$0xff]  }
 0xb02   :  { %13990 = vmatpush1.bf16.msra.mxu0 %v20094_v45  ;;  %v20132_v45 = vld [vmem:[%s27130_s6 + $0x3e4] ss:$8 sps:$4 sm:$0xff]  }
 0xb03   :  { %13991 = vmatprep.subr.bf16.mxu0 %v20102_v46  ;;  %v20130_v46 = vld [vmem:[%s27130_s6 + $0x3e0] ss:$8 sps:$4 sm:$0xff]  }
 0xb06   :  { %13992 = vmatpush1.bf16.msra.mxu0 %v20100_v60  ;;  %v20138_v60 = vld [vmem:[%s27130_s6 + $0x3f4] ss:$8 sps:$4 sm:$0xff]  }
 0xb07   :  { %13993 = vmatprep.subr.bf16.mxu0 %v20108_v39  ;;  %v20136_v39 = vld [vmem:[%s27130_s6 + $0x3f0] ss:$8 sps:$4 sm:$0xff]  }
 0xb0a   :  { %13994 = vmatpush1.bf16.msra.mxu0 %v20106_v1  ;;  %v20144_v1 = vld [vmem:[%s27130_s6 + $0x404] ss:$8 sps:$4 sm:$0xff]  }
 0xb0b   :  { %13995 = vmatprep.subr.bf16.mxu0 %v20114_v25 }
 0xb0e   :  { %13996 = vmatpush1.bf16.msra.mxu0 %v20112_v6 }
 0xb0f   :  { %13997 = vmatprep.subr.bf16.mxu0 %v20120_v49 }
 0xb12   :  { %13998 = vmatpush1.bf16.msra.mxu0 %v20118_v21 }
 0xb13   :  { %13999 = vmatprep.subr.bf16.mxu0 %v20126_v47 }
 0xb16   :  { %14000 = vmatpush1.bf16.msra.mxu0 %v20124_v24 }
 0xb17   :  { %14001 = vmatprep.subr.bf16.mxu0 %v20132_v45  ;;  %v20139_v45 = vld [vmem:[%s27130_s6 + $0x100] ss:$8 sps:$4 sm:$0xff]  }
 0xb1a   :  { %14002 = vmatpush1.bf16.msra.mxu0 %v20130_v46  ;;  %v20142_v46 = vld [vmem:[%s27130_s6 + $0x400] ss:$8 sps:$4 sm:$0xff]  }
 0xb1b   :  { %14003 = vmatprep.subr.bf16.mxu0 %v20138_v60  ;;  %v20147_v60 = vld [vmem:[%s27130_s6 + $0x114] ss:$8 sps:$4 sm:$0xff]  }
 0xb1e   :  { %14004 = vmatpush1.bf16.msra.mxu0 %v20136_v39  ;;  %v20150_v39 = vld [vmem:[%s27130_s6 + $0x414] ss:$8 sps:$4 sm:$0xff]  }
 0xb1f   :  { %14026 = vmatprep.subr.bf16.mxu0 %v20144_v1  ;;  %v20145_v1 = vld [vmem:[%s27130_s6 + $0x110] ss:$8 sps:$4 sm:$0xff]  }
 0xb54   :  { %v10985_v25 = vpop.f32.mrb[64].mxu0 }
 0xb55   :  { %v10987_v6 = vpop.f32.mrb[65].mxu0 }
 0xb56   :  { %v10989_v49 = vpop.f32.mrb[66].mxu0 }
 0xb57   :  { %v11240_v21 = vpack.c.bf16 %v10989_v49, %v10985_v25  ;;  %v10991_v47 = vpop.f32.mrb[67].mxu0  ;;  %v20148_v25 = vld [vmem:[%s27130_s6 + $0x410] ss:$8 sps:$4 sm:$0xff]  }
 0xb58   :  { %v11241_v24 = vpack.c.bf16 %v10991_v47, %v10987_v6  ;;  %v20153_v47 = vld [vmem:[%s27130_s6 + $0x124] ss:$8 sps:$4 sm:$0xff]  }
 0xb5a   :  { %11872 = vmatprep.mubr.bf16.mxu1 %v11241_v24  ;;  %14005 = vmatprep.mubr.bf16.mxu0 %v11241_v24  ;;  %v20156_v24 = vld [vmem:[%s27130_s6 + $0x424] ss:$8 sps:$4 sm:$0xff]  }
 0xb5b   :  { %11873 = vmatmul.mubr.bf16.vlgmr.msra.gmra.mrb[136].mxu1 %v11240_v21  ;;  %14006 = vmatmul.mubr.bf16.vlgmr.msra.gmra.mrb[80].mxu0 %v11240_v21  ;;  %v20151_v21 = vld [vmem:[%s27130_s6 + $0x120] ss:$8 sps:$4 sm:$0xff]  }
 0xb5c   :  { %11894 = vmatpush1.bf16.msra.mxu1 %v20139_v45  ;;  %14027 = vmatpush1.bf16.msra.mxu0 %v20142_v46  ;;  %v10995_v6 = vpop.f32.mrb[68].mxu0  ;;  %v20154_v45 = vld [vmem:[%s27130_s6 + $0x420] ss:$8 sps:$4 sm:$0xff]  }
 0xb5d   :  { %v10997_v49 = vpop.f32.mrb[69].mxu0  ;;  %11895 = vmatprep.subr.bf16.mxu1 %v20147_v60  ;;  %14028 = vmatprep.subr.bf16.mxu0 %v20150_v39 }
 0xb5e   :  { %v10999_v51 = vpop.f32.mrb[70].mxu0 }
 0xb5f   :  { %v11246_v46 = vpack.c.bf16 %v10999_v51, %v10995_v6  ;;  %v11001_v60 = vpop.f32.mrb[71].mxu0  ;;  %v20162_v51 = vld [vmem:[%s27130_s6 + $0x434] ss:$8 sps:$4 sm:$0xff]   ;;  %v20168_v6 = vld [vmem:[%s27130_s6 + $0x444] ss:$8 sps:$4 sm:$0xff]  }
 0xb60   :  { %v11247_v39 = vpack.c.bf16 %v11001_v60, %v10997_v49  ;;  %11896 = vmatpush1.bf16.msra.mxu1 %v20145_v1  ;;  %14029 = vmatpush1.bf16.msra.mxu0 %v20148_v25  ;;  %v20160_v1 = vld [vmem:[%s27130_s6 + $0x430] ss:$8 sps:$4 sm:$0xff]   ;;  %v20165_v25 = vld [vmem:[%s27130_s6 + $0x144] ss:$8 sps:$4 sm:$0xff]   ;;  %v20163_v49 = vld [vmem:[%s27130_s6 + $0x140] ss:$8 sps:$4 sm:$0xff]  }
 0xb61   :  { %11897 = vmatprep.subr.bf16.mxu1 %v20153_v47  ;;  %14030 = vmatprep.subr.bf16.mxu0 %v20156_v24  ;;  %v20166_v47 = vld [vmem:[%s27130_s6 + $0x440] ss:$8 sps:$4 sm:$0xff]   ;;  %v20169_v24 = vld [vmem:[%s27130_s6 + $0x150] ss:$8 sps:$4 sm:$0xff]  }
 0xb62   :  { %11882 = vmatprep.mubr.bf16.mxu1 %v11247_v39  ;;  %14015 = vmatprep.mubr.bf16.mxu0 %v11247_v39  ;;  %v20178_v60 = vld [vmem:[%s27130_s6 + $0x460] ss:$8 sps:$4 sm:$0xff]   ;;  %v20183_v39 = vld [vmem:[%s27130_s6 + $0x174] ss:$8 sps:$4 sm:$0xff]  }
 0xb63   :  { %11883 = vmatmul.mubr.bf16.gmra.mrb[140].mxu1 %v11246_v46  ;;  %14016 = vmatmul.mubr.bf16.gmra.mrb[84].mxu0 %v11246_v46  ;;  %v20175_v46 = vld [vmem:[%s27130_s6 + $0x160] ss:$8 sps:$4 sm:$0xff]  }
 0xb64   :  { %11898 = vmatpush1.bf16.msra.mxu1 %v20151_v21  ;;  %14031 = vmatpush1.bf16.msra.mxu0 %v20154_v45  ;;  %v20172_v21 = vld [vmem:[%s27130_s6 + $0x450] ss:$8 sps:$4 sm:$0xff]   ;;  %v20180_v45 = vld [vmem:[%s27130_s6 + $0x464] ss:$8 sps:$4 sm:$0xff]  }
 0xb65   :  { %11925 = vmatprep.mubr.bf16.mxu1 %v25169_v22  ;;  %14058 = vmatprep.mubr.bf16.mxu0 %v25169_v22  ;;  %v20171_v22 = vld [vmem:[%s27130_s6 + $0x154] ss:$8 sps:$4 sm:$0xff]  }
 0xb66   :  { %11899 = vmatprep.subr.bf16.mxu1 %v20159_v59  ;;  %14032 = vmatprep.subr.bf16.mxu0 %v20162_v51  ;;  %v20174_v59 = vld [vmem:[%s27130_s6 + $0x454] ss:$8 sps:$4 sm:$0xff]  }
 0xb67   :  { %v20186_v51 = vld [vmem:[%s27130_s6 + $0x474] ss:$8 sps:$4 sm:$0xff]  }
 0xb68   :  { %11900 = vmatpush1.bf16.msra.mxu1 %v20157_v8  ;;  %14033 = vmatpush1.bf16.msra.mxu0 %v20160_v1  ;;  %v20177_v8 = vld [vmem:[%s27130_s6 + $0x164] ss:$8 sps:$4 sm:$0xff]   ;;  %v20181_v1 = vld [vmem:[%s27130_s6 + $0x170] ss:$8 sps:$4 sm:$0xff]  }
 0xb69   :  { %11901 = vmatprep.subr.bf16.mxu1 %v20165_v25  ;;  %14034 = vmatprep.subr.bf16.mxu0 %v20168_v6  ;;  %v20184_v25 = vld [vmem:[%s27130_s6 + $0x470] ss:$8 sps:$4 sm:$0xff]   ;;  %v20189_v6 = vld [vmem:[%s27130_s6 + $0x184] ss:$8 sps:$4 sm:$0xff]  }
 0xb6c   :  { %11902 = vmatpush1.bf16.msra.mxu1 %v20163_v49  ;;  %14035 = vmatpush1.bf16.msra.mxu0 %v20166_v47  ;;  %v20192_v49 = vld [vmem:[%s27130_s6 + $0x484] ss:$8 sps:$4 sm:$0xff]   ;;  %v20187_v47 = vld [vmem:[%s27130_s6 + $0x180] ss:$8 sps:$4 sm:$0xff]  }
 0xb6d   :  { %11903 = vmatprep.subr.bf16.mxu1 %v20171_v22  ;;  %14036 = vmatprep.subr.bf16.mxu0 %v20174_v59  ;;  %v20190_v22 = vld [vmem:[%s27130_s6 + $0x480] ss:$8 sps:$4 sm:$0xff]   ;;  %v20195_v59 = vld [vmem:[%s27130_s6 + $0x194] ss:$8 sps:$4 sm:$0xff]  }
 0xb70   :  { %11904 = vmatpush1.bf16.msra.mxu1 %v20169_v24  ;;  %14037 = vmatpush1.bf16.msra.mxu0 %v20172_v21  ;;  %v20198_v24 = vld [vmem:[%s27130_s6 + $0x494] ss:$8 sps:$4 sm:$0xff]   ;;  %v20193_v21 = vld [vmem:[%s27130_s6 + $0x190] ss:$8 sps:$4 sm:$0xff]  }
 0xb71   :  { %11905 = vmatprep.subr.bf16.mxu1 %v20177_v8  ;;  %14038 = vmatprep.subr.bf16.mxu0 %v20180_v45  ;;  %v20196_v8 = vld [vmem:[%s27130_s6 + $0x490] ss:$8 sps:$4 sm:$0xff]   ;;  %v20201_v45 = vld [vmem:[%s27130_s6 + $0x1a4] ss:$8 sps:$4 sm:$0xff]  }
 0xb74   :  { %11906 = vmatpush1.bf16.msra.mxu1 %v20175_v46  ;;  %14039 = vmatpush1.bf16.msra.mxu0 %v20178_v60  ;;  %v20204_v46 = vld [vmem:[%s27130_s6 + $0x4a4] ss:$8 sps:$4 sm:$0xff]   ;;  %v20199_v60 = vld [vmem:[%s27130_s6 + $0x1a0] ss:$8 sps:$4 sm:$0xff]  }
 0xb75   :  { %11907 = vmatprep.subr.bf16.mxu1 %v20183_v39  ;;  %14040 = vmatprep.subr.bf16.mxu0 %v20186_v51  ;;  %v20202_v39 = vld [vmem:[%s27130_s6 + $0x4a0] ss:$8 sps:$4 sm:$0xff]   ;;  %v20207_v51 = vld [vmem:[%s27130_s6 + $0x1b4] ss:$8 sps:$4 sm:$0xff]  }
 0xb78   :  { %11908 = vmatpush1.bf16.msra.mxu1 %v20181_v1  ;;  %14041 = vmatpush1.bf16.msra.mxu0 %v20184_v25  ;;  %v20210_v1 = vld [vmem:[%s27130_s6 + $0x4b4] ss:$8 sps:$4 sm:$0xff]   ;;  %v20205_v25 = vld [vmem:[%s27130_s6 + $0x1b0] ss:$8 sps:$4 sm:$0xff]  }
 0xb79   :  { %11909 = vmatprep.subr.bf16.mxu1 %v20189_v6  ;;  %14042 = vmatprep.subr.bf16.mxu0 %v20192_v49  ;;  %v20208_v6 = vld [vmem:[%s27130_s6 + $0x4b0] ss:$8 sps:$4 sm:$0xff]   ;;  %v20213_v49 = vld [vmem:[%s27130_s6 + $0x1c4] ss:$8 sps:$4 sm:$0xff]  }
 0xb7c   :  { %11910 = vmatpush1.bf16.msra.mxu1 %v20187_v47  ;;  %14043 = vmatpush1.bf16.msra.mxu0 %v20190_v22  ;;  %v20216_v47 = vld [vmem:[%s27130_s6 + $0x4c4] ss:$8 sps:$4 sm:$0xff]   ;;  %v20211_v22 = vld [vmem:[%s27130_s6 + $0x1c0] ss:$8 sps:$4 sm:$0xff]  }
 0xb7d   :  { %11911 = vmatprep.subr.bf16.mxu1 %v20195_v59  ;;  %14044 = vmatprep.subr.bf16.mxu0 %v20198_v24  ;;  %v20214_v59 = vld [vmem:[%s27130_s6 + $0x4c0] ss:$8 sps:$4 sm:$0xff]   ;;  %v20219_v24 = vld [vmem:[%s27130_s6 + $0x1d4] ss:$8 sps:$4 sm:$0xff]  }
 0xb80   :  { %11912 = vmatpush1.bf16.msra.mxu1 %v20193_v21  ;;  %14045 = vmatpush1.bf16.msra.mxu0 %v20196_v8  ;;  %v20222_v21 = vld [vmem:[%s27130_s6 + $0x4d4] ss:$8 sps:$4 sm:$0xff]   ;;  %v20217_v8 = vld [vmem:[%s27130_s6 + $0x1d0] ss:$8 sps:$4 sm:$0xff]  }
 0xb81   :  { %11913 = vmatprep.subr.bf16.mxu1 %v20201_v45  ;;  %14046 = vmatprep.subr.bf16.mxu0 %v20204_v46  ;;  %v20220_v45 = vld [vmem:[%s27130_s6 + $0x4d0] ss:$8 sps:$4 sm:$0xff]   ;;  %v20225_v46 = vld [vmem:[%s27130_s6 + $0x1e4] ss:$8 sps:$4 sm:$0xff]  }
 0xb84   :  { %11914 = vmatpush1.bf16.msra.mxu1 %v20199_v60  ;;  %14047 = vmatpush1.bf16.msra.mxu0 %v20202_v39  ;;  %v20228_v60 = vld [vmem:[%s27130_s6 + $0x4e4] ss:$8 sps:$4 sm:$0xff]   ;;  %v20223_v39 = vld [vmem:[%s27130_s6 + $0x1e0] ss:$8 sps:$4 sm:$0xff]  }
 0xb85   :  { %11915 = vmatprep.subr.bf16.mxu1 %v20207_v51  ;;  %14048 = vmatprep.subr.bf16.mxu0 %v20210_v1  ;;  %v20226_v51 = vld [vmem:[%s27130_s6 + $0x4e0] ss:$8 sps:$4 sm:$0xff]   ;;  %v20231_v1 = vld [vmem:[%s27130_s6 + $0x1f4] ss:$8 sps:$4 sm:$0xff]  }
 0xb88   :  { %11916 = vmatpush1.bf16.msra.mxu1 %v20205_v25  ;;  %14049 = vmatpush1.bf16.msra.mxu0 %v20208_v6  ;;  %v20234_v25 = vld [vmem:[%s27130_s6 + $0x4f4] ss:$8 sps:$4 sm:$0xff]   ;;  %v20229_v6 = vld [vmem:[%s27130_s6 + $0x1f0] ss:$8 sps:$4 sm:$0xff]  }
 0xb89   :  { %11917 = vmatprep.subr.bf16.mxu1 %v20213_v49  ;;  %14050 = vmatprep.subr.bf16.mxu0 %v20216_v47  ;;  %v20232_v49 = vld [vmem:[%s27130_s6 + $0x4f0] ss:$8 sps:$4 sm:$0xff]   ;;  %v20237_v47 = vld [vmem:[%s27130_s6 + $0x204] ss:$8 sps:$4 sm:$0xff]  }
 0xb8c   :  { %11918 = vmatpush1.bf16.msra.mxu1 %v20211_v22  ;;  %14051 = vmatpush1.bf16.msra.mxu0 %v20214_v59  ;;  %v20240_v22 = vld [vmem:[%s27130_s6 + $0x504] ss:$8 sps:$4 sm:$0xff]   ;;  %v20235_v59 = vld [vmem:[%s27130_s6 + $0x200] ss:$8 sps:$4 sm:$0xff]  }
 0xb8d   :  { %11919 = vmatprep.subr.bf16.mxu1 %v20219_v24  ;;  %14052 = vmatprep.subr.bf16.mxu0 %v20222_v21  ;;  %v20238_v24 = vld [vmem:[%s27130_s6 + $0x500] ss:$8 sps:$4 sm:$0xff]   ;;  %v20243_v21 = vld [vmem:[%s27130_s6 + $0x214] ss:$8 sps:$4 sm:$0xff]  }
 0xb90   :  { %11920 = vmatpush1.bf16.msra.mxu1 %v20217_v8  ;;  %14053 = vmatpush1.bf16.msra.mxu0 %v20220_v45  ;;  %v20246_v8 = vld [vmem:[%s27130_s6 + $0x514] ss:$8 sps:$4 sm:$0xff]   ;;  %v20241_v45 = vld [vmem:[%s27130_s6 + $0x210] ss:$8 sps:$4 sm:$0xff]  }
 0xb91   :  { %11921 = vmatprep.subr.bf16.mxu1 %v20225_v46  ;;  %14054 = vmatprep.subr.bf16.mxu0 %v20228_v60  ;;  %v20244_v46 = vld [vmem:[%s27130_s6 + $0x510] ss:$8 sps:$4 sm:$0xff]   ;;  %v20249_v60 = vld [vmem:[%s27130_s6 + $0x224] ss:$8 sps:$4 sm:$0xff]  }
 0xb94   :  { %11922 = vmatpush1.bf16.msra.mxu1 %v20223_v39  ;;  %14055 = vmatpush1.bf16.msra.mxu0 %v20226_v51  ;;  %v20250_v39 = vld [vmem:[%s27130_s6 + $0x520] ss:$8 sps:$4 sm:$0xff]   ;;  %v20255_v51 = vld [vmem:[%s27130_s6 + $0x234] ss:$8 sps:$4 sm:$0xff]  }
 0xb95   :  { %11923 = vmatprep.subr.bf16.mxu1 %v20231_v1  ;;  %14056 = vmatprep.subr.bf16.mxu0 %v20234_v25  ;;  %v20258_v1 = vld [vmem:[%s27130_s6 + $0x534] ss:$8 sps:$4 sm:$0xff]   ;;  %v20253_v25 = vld [vmem:[%s27130_s6 + $0x230] ss:$8 sps:$4 sm:$0xff]  }
 0xb98   :  { %11924 = vmatpush1.bf16.msra.mxu1 %v20229_v6  ;;  %14057 = vmatpush1.bf16.msra.mxu0 %v20232_v49  ;;  %v20256_v6 = vld [vmem:[%s27130_s6 + $0x530] ss:$8 sps:$4 sm:$0xff]   ;;  %v20261_v49 = vld [vmem:[%s27130_s6 + $0x244] ss:$8 sps:$4 sm:$0xff]  }
 0xb99   :  { %11946 = vmatprep.subr.bf16.mxu1 %v20237_v47  ;;  %14079 = vmatprep.subr.bf16.mxu0 %v20240_v22  ;;  %v20259_v47 = vld [vmem:[%s27130_s6 + $0x240] ss:$8 sps:$4 sm:$0xff]  }
 0xb9a   :  { %v20262_v22 = vld [vmem:[%s27130_s6 + $0x540] ss:$8 sps:$4 sm:$0xff]  }
 0xb9b   :  { %11926 = vmatmul.mubr.bf16.vlgmr.msra.gmra.mrb[136].mxu1 %v25167_v48  ;;  %14059 = vmatmul.mubr.bf16.vlgmr.msra.gmra.mrb[80].mxu0 %v25167_v48  ;;  %v20252_v48 = vld [vmem:[%s27130_s6 + $0x524] ss:$8 sps:$4 sm:$0xff]  }
 0xb9c   :  { %11935 = vmatprep.mubr.bf16.mxu1 %v25185_v50  ;;  %11947 = vmatpush1.bf16.msra.mxu1 %v20235_v59  ;;  %v20267_v59 = vld [vmem:[%s27130_s6 + $0x254] ss:$8 sps:$4 sm:$0xff]  }
 0xb9d   :  { %14068 = vmatprep.mubr.bf16.mxu0 %v25185_v50  ;;  %14080 = vmatpush1.bf16.msra.mxu0 %v20238_v24  ;;  %v20247_v50 = vld [vmem:[%s27130_s6 + $0x220] ss:$8 sps:$4 sm:$0xff]   ;;  %v20270_v24 = vld [vmem:[%s27130_s6 + $0x554] ss:$8 sps:$4 sm:$0xff]  }
 0xb9e   :  { %11948 = vmatprep.subr.bf16.mxu1 %v20243_v21  ;;  %14081 = vmatprep.subr.bf16.mxu0 %v20246_v8  ;;  %v20265_v21 = vld [vmem:[%s27130_s6 + $0x250] ss:$8 sps:$4 sm:$0xff]  }
 0xb9f   :  { %v20268_v8 = vld [vmem:[%s27130_s6 + $0x550] ss:$8 sps:$4 sm:$0xff]  }
 0xba0   :  { %11949 = vmatpush1.bf16.msra.mxu1 %v20241_v45  ;;  %v20273_v45 = vld [vmem:[%s27130_s6 + $0x264] ss:$8 sps:$4 sm:$0xff]  }
 0xba1   :  { %14082 = vmatpush1.bf16.msra.mxu0 %v20244_v46  ;;  %11950 = vmatprep.subr.bf16.mxu1 %v20249_v60  ;;  %v20276_v46 = vld [vmem:[%s27130_s6 + $0x564] ss:$8 sps:$4 sm:$0xff]   ;;  %v20271_v60 = vld [vmem:[%s27130_s6 + $0x260] ss:$8 sps:$4 sm:$0xff]  }
 0xba2   :  { %14083 = vmatprep.subr.bf16.mxu0 %v20252_v48  ;;  %v20274_v48 = vld [vmem:[%s27130_s6 + $0x560] ss:$8 sps:$4 sm:$0xff]  }
 0xba3   :  { %11936 = vmatmul.mubr.bf16.gmra.mrb[140].mxu1 %v25183_v44  ;;  %14069 = vmatmul.mubr.bf16.gmra.mrb[84].mxu0 %v25183_v44  ;;  %v20264_v44 = vld [vmem:[%s27130_s6 + $0x544] ss:$8 sps:$4 sm:$0xff]  }
 0xba4   :  { %11951 = vmatpush1.bf16.msra.mxu1 %v20247_v50  ;;  %v20279_v50 = vld [vmem:[%s27130_s6 + $0x274] ss:$8 sps:$4 sm:$0xff]  }
 0xba5   :  { %14084 = vmatpush1.bf16.msra.mxu0 %v20250_v39  ;;  %11952 = vmatprep.subr.bf16.mxu1 %v20255_v51  ;;  %v20282_v39 = vld [vmem:[%s27130_s6 + $0x574] ss:$8 sps:$4 sm:$0xff]  }
 0xba6   :  { %14085 = vmatprep.subr.bf16.mxu0 %v20258_v1  ;;  %v20277_v1 = vld [vmem:[%s27130_s6 + $0x270] ss:$8 sps:$4 sm:$0xff]  }
 0xba8   :  { %11953 = vmatpush1.bf16.msra.mxu1 %v20253_v25 }
 0xba9   :  { %14086 = vmatpush1.bf16.msra.mxu0 %v20256_v6  ;;  %11954 = vmatprep.subr.bf16.mxu1 %v20261_v49  ;;  %v20280_v6 = vld [vmem:[%s27130_s6 + $0x570] ss:$8 sps:$4 sm:$0xff]   ;;  %v20285_v49 = vld [vmem:[%s27130_s6 + $0x284] ss:$8 sps:$4 sm:$0xff]  }
 0xbaa   :  { %14087 = vmatprep.subr.bf16.mxu0 %v20264_v44 }
 0xbac   :  { %11955 = vmatpush1.bf16.msra.mxu1 %v20259_v47  ;;  %v20288_v47 = vld [vmem:[%s27130_s6 + $0x584] ss:$8 sps:$4 sm:$0xff]  }
 0xbad   :  { %14088 = vmatpush1.bf16.msra.mxu0 %v20262_v22  ;;  %11956 = vmatprep.subr.bf16.mxu1 %v20267_v59 }
 0xbae   :  { %14089 = vmatprep.subr.bf16.mxu0 %v20270_v24 }
 0xbb0   :  { %11957 = vmatpush1.bf16.msra.mxu1 %v20265_v21  ;;  %v20283_v21 = vld [vmem:[%s27130_s6 + $0x280] ss:$8 sps:$4 sm:$0xff]  }
 0xbb1   :  { %14090 = vmatpush1.bf16.msra.mxu0 %v20268_v8  ;;  %11958 = vmatprep.subr.bf16.mxu1 %v20273_v45  ;;  %v20286_v8 = vld [vmem:[%s27130_s6 + $0x580] ss:$8 sps:$4 sm:$0xff]   ;;  %v20291_v45 = vld [vmem:[%s27130_s6 + $0x294] ss:$8 sps:$4 sm:$0xff]  }
 0xbb2   :  { %14091 = vmatprep.subr.bf16.mxu0 %v20276_v46  ;;  %v20294_v46 = vld [vmem:[%s27130_s6 + $0x594] ss:$8 sps:$4 sm:$0xff]  }
 0xbb4   :  { %11959 = vmatpush1.bf16.msra.mxu1 %v20271_v60  ;;  %v11197_v51 = vpop.f32.mrb[72].mxu0 }
 0xbb5   :  { %14092 = vmatpush1.bf16.msra.mxu0 %v20274_v48  ;;  %v11199_v25 = vpop.f32.mrb[73].mxu0  ;;  %11960 = vmatprep.subr.bf16.mxu1 %v20279_v50  ;;  %v20289_v48 = vld [vmem:[%s27130_s6 + $0x290] ss:$8 sps:$4 sm:$0xff]  }
 0xbb6   :  { %v11201_v44 = vpop.f32.mrb[74].mxu0  ;;  %14093 = vmatprep.subr.bf16.mxu0 %v20282_v39  ;;  %v20292_v39 = vld [vmem:[%s27130_s6 + $0x590] ss:$8 sps:$4 sm:$0xff]  }
 0xbb7   :  { %v25927_v22 = vpack.c.bf16 %v11201_v44, %v11197_v51  ;;  %v11203_v59 = vpop.f32.mrb[75].mxu0  ;;  %v20297_v51 = vld [vmem:[%s27130_s6 + $0x2a4] ss:$8 sps:$4 sm:$0xff]  }
 0xbb8   :  { %v11245_v24 = vpack.c.bf16 %v11203_v59, %v11199_v25  ;;  %11961 = vmatpush1.bf16.msra.mxu1 %v20277_v1  ;;  %v20300_v25 = vld [vmem:[%s27130_s6 + $0x5a4] ss:$8 sps:$4 sm:$0xff]   ;;  %v20298_v59 = vld [vmem:[%s27130_s6 + $0x5a0] ss:$8 sps:$4 sm:$0xff]  }
 0xbb9   :  { %14094 = vmatpush1.bf16.msra.mxu0 %v20280_v6  ;;  %11962 = vmatprep.subr.bf16.mxu1 %v20285_v49 }
 0xbba   :  { %11978 = vmatprep.mubr.bf16.mxu1 %v11245_v24  ;;  %14095 = vmatprep.subr.bf16.mxu0 %v20288_v47  ;;  %v20295_v47 = vld [vmem:[%s27130_s6 + $0x2a0] ss:$8 sps:$4 sm:$0xff]  }
 0xbbb   :  { %14111 = vmatprep.mubr.bf16.mxu0 %v11245_v24  ;;  %v20303_v24 = vld [vmem:[%s27130_s6 + $0x2b4] ss:$8 sps:$4 sm:$0xff]  }
 0xbbc   :  { %11963 = vmatpush1.bf16.msra.mxu1 %v20283_v21  ;;  %v11207_v60 = vpop.f32.mrb[76].mxu0  ;;  %v20306_v21 = vld [vmem:[%s27130_s6 + $0x5b4] ss:$8 sps:$4 sm:$0xff]  }
 0xbbd   :  { %14096 = vmatpush1.bf16.msra.mxu0 %v20286_v8  ;;  %v11209_v50 = vpop.f32.mrb[77].mxu0  ;;  %11964 = vmatprep.subr.bf16.mxu1 %v20291_v45  ;;  %v20301_v8 = vld [vmem:[%s27130_s6 + $0x2b0] ss:$8 sps:$4 sm:$0xff]  }
 0xbbe   :  { %v11211_v1 = vpop.f32.mrb[78].mxu0  ;;  %14097 = vmatprep.subr.bf16.mxu0 %v20294_v46  ;;  %v20304_v45 = vld [vmem:[%s27130_s6 + $0x5b0] ss:$8 sps:$4 sm:$0xff]   ;;  %v20309_v46 = vld [vmem:[%s27130_s6 + $0x2c4] ss:$8 sps:$4 sm:$0xff]  }
 0xbbf   :  { %v25953_v6 = vpack.c.bf16 %v11211_v1, %v11207_v60  ;;  %v11213_v49 = vpop.f32.mrb[79].mxu0  ;;  %v20312_v60 = vld [vmem:[%s27130_s6 + $0x5c4] ss:$8 sps:$4 sm:$0xff]   ;;  %v20313_v1 = vld [vmem:[%s27130_s6 + $0x2d0] ss:$8 sps:$4 sm:$0xff]  }
 0xbc0   :  { %v25955_v44 = vpack.c.bf16 %v11213_v49, %v11209_v50  ;;  %11965 = vmatpush1.bf16.msra.mxu1 %v20289_v48  ;;  %v20307_v48 = vld [vmem:[%s27130_s6 + $0x2c0] ss:$8 sps:$4 sm:$0xff]   ;;  %v20321_v49 = vld [vmem:[%s27130_s6 + $0x2e4] ss:$8 sps:$4 sm:$0xff]  }
 0xbc1   :  { %14098 = vmatpush1.bf16.msra.mxu0 %v20292_v39  ;;  %11966 = vmatprep.subr.bf16.mxu1 %v20297_v51  ;;  %v20310_v50 = vld [vmem:[%s27130_s6 + $0x5c0] ss:$8 sps:$4 sm:$0xff]   ;;  %v20315_v39 = vld [vmem:[%s27130_s6 + $0x2d4] ss:$8 sps:$4 sm:$0xff]  }
 0xbc2   :  { %14099 = vmatprep.subr.bf16.mxu0 %v20300_v25  ;;  %v20318_v51 = vld [vmem:[%s27130_s6 + $0x5d4] ss:$8 sps:$4 sm:$0xff]   ;;  %v20316_v25 = vld [vmem:[%s27130_s6 + $0x5d0] ss:$8 sps:$4 sm:$0xff]  }
 0xbc4   :  { %11967 = vmatpush1.bf16.msra.mxu1 %v20295_v47  ;;  %v20324_v47 = vld [vmem:[%s27130_s6 + $0x5e4] ss:$8 sps:$4 sm:$0xff]  }
 0xbc5   :  { %14100 = vmatpush1.bf16.msra.mxu0 %v20298_v59  ;;  %11968 = vmatprep.subr.bf16.mxu1 %v20303_v24  ;;  %v20319_v59 = vld [vmem:[%s27130_s6 + $0x2e0] ss:$8 sps:$4 sm:$0xff]  }
 0xbc6   :  { %14101 = vmatprep.subr.bf16.mxu0 %v20306_v21  ;;  %v20322_v24 = vld [vmem:[%s27130_s6 + $0x5e0] ss:$8 sps:$4 sm:$0xff]   ;;  %v20327_v21 = vld [vmem:[%s27130_s6 + $0x2f4] ss:$8 sps:$4 sm:$0xff]  }
 0xbc8   :  { %11969 = vmatpush1.bf16.msra.mxu1 %v20301_v8  ;;  %v12040_v8 = vunpack.c.l.bf16 %v22860_v38 }
 0xbc9   :  { %14102 = vmatpush1.bf16.msra.mxu0 %v20304_v45  ;;  %11970 = vmatprep.subr.bf16.mxu1 %v20309_v46  ;;  %v12042_v45 = vunpack.c.h.bf16 %v22860_v38  ;;  %v20330_v46 = vld [vmem:[%s27130_s6 + $0x5f4] ss:$8 sps:$4 sm:$0xff]   ;;  %v20328_v38 = vld [vmem:[%s27130_s6 + $0x5f0] ss:$8 sps:$4 sm:$0xff]  }
 0xbca   :  { %14103 = vmatprep.subr.bf16.mxu0 %v20312_v60  ;;  %v12008_v60 = vunpack.c.l.bf16 %v22815_v55 }
 0xbcc   :  { %11971 = vmatpush1.bf16.msra.mxu1 %v20307_v48  ;;  %v12010_v48 = vunpack.c.h.bf16 %v22815_v55  ;;  %v12072_v55 = vadd.f32 %v12040_v8, %v12008_v60 }
 0xbcd   :  { %14104 = vmatpush1.bf16.msra.mxu0 %v20310_v50  ;;  %11972 = vmatprep.subr.bf16.mxu1 %v20315_v39  ;;  %v12104_v50 = vunpack.c.l.bf16 %v22968_v42  ;;  %v12106_v39 = vunpack.c.h.bf16 %v22968_v42  ;;  %v12170_v42 = vunpack.c.h.bf16 %v23094_v28 }
 0xbce   :  { %14105 = vmatprep.subr.bf16.mxu0 %v20318_v51  ;;  %v20325_v51 = vld [vmem:[%s27130_s6 + $0x2f0] ss:$8 sps:$4 sm:$0xff]  }
 0xbd0   :  { %11973 = vmatpush1.bf16.msra.mxu1 %v20313_v1  ;;  %v20333_v1 = vld [vmem:[%s27131_s8 + $0x4] ss:$8 sps:$4 sm:$0xff]  }
 0xbd1   :  { %14106 = vmatpush1.bf16.msra.mxu0 %v20316_v25  ;;  %11974 = vmatprep.subr.bf16.mxu1 %v20321_v49  ;;  %v12074_v25 = vadd.f32 %v12042_v45, %v12010_v48  ;;  %v12168_v49 = vunpack.c.l.bf16 %v23094_v28  ;;  %v20334_v28 = vld [vmem:[%s27131_s8 + $0x10] ss:$8 sps:$4 sm:$0xff]  }
 0xbd2   :  { %14107 = vmatprep.subr.bf16.mxu0 %v20324_v47  ;;  %v12136_v47 = vadd.f32 %v12104_v50, %v12072_v55  ;;  %v20351_v55 = vld [vmem:[%s27131_s8 + $0x64] ss:$8 sps:$4 sm:$0xff]  }
 0xbd4   :  { %11975 = vmatpush1.bf16.msra.mxu1 %v20319_v59  ;;  %v12138_v59 = vadd.f32 %v12106_v39, %v12074_v25  ;;  %v12200_v8 = vadd.f32 %v12168_v49, %v12136_v47  ;;  %v20340_v39 = vld [vmem:[%s27131_s8 + $0x30] ss:$8 sps:$4 sm:$0xff]   ;;  %v20349_v25 = vld [vmem:[%s27131_s8 + $0x60] ss:$8 sps:$4 sm:$0xff]   ;;  %v20354_v49 = vld [vmem:[%s27131_s8 + $0x74] ss:$8 sps:$4 sm:$0xff]  }
 0xbd5   :  { %14108 = vmatpush1.bf16.msra.mxu0 %v20322_v24  ;;  %11976 = vmatprep.subr.bf16.mxu1 %v20327_v21  ;;  %v20331_v24 = vld [vmem:[%s27131_s8] ss:$8 sps:$4 sm:$0xff]   ;;  %v20336_v21 = vld [vmem:[%s27131_s8 + $0x14] ss:$8 sps:$4 sm:$0xff]   ;;  %v20357_v47 = vld [vmem:[%s27131_s8 + $0x84] ss:$8 sps:$4 sm:$0xff]  }
 0xbd6   :  { %14109 = vmatprep.subr.bf16.mxu0 %v20330_v46  ;;  %v12202_v45 = vadd.f32 %v12170_v42, %v12138_v59  ;;  %v20339_v46 = vld [vmem:[%s27131_s8 + $0x24] ss:$8 sps:$4 sm:$0xff]   ;;  %v12232_v60 = vmul.f32 0.25, %v12200_v8  ;;  %v20352_v42 = vld [vmem:[%s27131_s8 + $0x70] ss:$8 sps:$4 sm:$0xff]   ;;  %v12007_v59 = vunpack.c.l.bf16 %v22813_v26  ;;  %v12013_v8 = vunpack.c.h.bf16 %v22821_v19 }
 0xbd8   :  { %11977 = vmatpush1.bf16.msra.mxu1 %v20325_v51  ;;  %v12234_v48 = vmul.f32 0.25, %v12202_v45  ;;  %v20345_v51 = vld [vmem:[%s27131_s8 + $0x44] ss:$8 sps:$4 sm:$0xff]   ;;  %v12012_v45 = vunpack.c.l.bf16 %v22823_v32 }
 0xbd9   :  { %14110 = vmatpush1.bf16.msra.mxu0 %v20328_v38  ;;  %12460 = vmatprep.subr.bf16.mxu1 %v20333_v1  ;;  %v20343_v38 = vld [vmem:[%s27131_s8 + $0x40] ss:$8 sps:$4 sm:$0xff]   ;;  %v20346_v1 = vld [vmem:[%s27131_s8 + $0x50] ss:$8 sps:$4 sm:$0xff]  }
 0xbda   :  { %15245 = vmatprep.subr.bf16.mxu0 %v27309_v53  ;;  %v12264_v50 = vpack.c.bf16 %v12234_v48, %v12232_v60  ;;  %v12015_v60 = vunpack.c.l.bf16 %v22826_v7 }
 0xbdb   :  { %11979 = vmatmul.mubr.bf16.vlgmr.msra.gmra.mrb[136].mxu1 %v25927_v22 }
 0xbdc   :  { %14112 = vmatmul.mubr.bf16.vlgmr.msra.gmra.mrb[80].mxu0 %v25927_v22  ;;  %11988 = vmatprep.mubr.bf16.mxu1 %v25955_v44  ;;  %v20337_v22 = vld [vmem:[%s27131_s8 + $0x20] ss:$8 sps:$4 sm:$0xff]  }
 0xbdd   :  { %12461 = vmatpush1.bf16.msra.mxu1 %v20331_v24  ;;  %14121 = vmatprep.mubr.bf16.mxu0 %v25955_v44  ;;  %v20342_v44 = vld [vmem:[%s27131_s8 + $0x34] ss:$8 sps:$4 sm:$0xff]   ;;  %v12009_v24 = vunpack.c.h.bf16 %v22813_v26  ;;  %v12041_v26 = vunpack.c.h.bf16 %v22858_v16 }
 0xbde   :  { %12462 = vmatprep.subr.bf16.mxu1 %v20336_v21  ;;  %v12011_v21 = vunpack.c.l.bf16 %v22821_v19  ;;  %v20360_v19 = vld [vmem:[%s27131_s8 + $0x94] ss:$8 sps:$4 sm:$0xff]  }
 0xbe1   :  { %12463 = vmatpush1.bf16.msra.mxu1 %v20334_v28  ;;  %v12014_v28 = vunpack.c.h.bf16 %v22823_v32  ;;  %v12016_v32 = vunpack.c.l.bf16 %v22828_v9 }
 0xbe2   :  { %12464 = vmatprep.subr.bf16.mxu1 %v20339_v46  ;;  %v20355_v46 = vld [vmem:[%s27131_s8 + $0x80] ss:$8 sps:$4 sm:$0xff]  }
 0xbe3   :  { %11989 = vmatmul.mubr.bf16.gmra.mrb[140].mxu1 %v25953_v6 }
 0xbe4   :  { %14122 = vmatmul.mubr.bf16.gmra.mrb[84].mxu0 %v25953_v6  ;;  %17020 = vmatprep.mubr.msk.bf16.mxu1 %vm4730_vm0, %v12264_v50  ;;  %v20348_v6 = vld [vmem:[%s27131_s8 + $0x54] ss:$8 sps:$4 sm:$0xff]   ;;  %v12018_v50 = vunpack.c.h.bf16 %v22828_v9  ;;  %v12110_v9 = vunpack.c.h.bf16 %v22987_v43 }
 0xbe5   :  { %12465 = vmatpush1.bf16.msra.mxu1 %v20337_v22  ;;  %v12039_v22 = vunpack.c.l.bf16 %v22858_v16  ;;  %v12105_v16 = vunpack.c.h.bf16 %v22966_v35 }
 0xbe6   :  { %12466 = vmatprep.subr.bf16.mxu1 %v20342_v44  ;;  %v12044_v44 = vunpack.c.l.bf16 %v22874_v5 }
 0xbe9   :  { %12467 = vmatpush1.bf16.msra.mxu1 %v20340_v39  ;;  %v12046_v39 = vunpack.c.h.bf16 %v22874_v5  ;;  %v20358_v5 = vld [vmem:[%s27131_s8 + $0x90] ss:$8 sps:$4 sm:$0xff]  }
 0xbea   :  { %12468 = vmatprep.subr.bf16.mxu1 %v20345_v51  ;;  %v12076_v51 = vadd.f32 %v12044_v44, %v12012_v45  ;;  %v20361_v45 = vld [vmem:[%s27131_s8 + $0xa0] ss:$8 sps:$4 sm:$0xff]  }
 0xbed   :  { %12469 = vmatpush1.bf16.msra.mxu1 %v20343_v38  ;;  %v12169_v38 = vunpack.c.h.bf16 %v23092_v62 }
 0xbee   :  { %12470 = vmatprep.subr.bf16.mxu1 %v20348_v6  ;;  %v12103_v6 = vunpack.c.l.bf16 %v22966_v35  ;;  %v20363_v35 = vld [vmem:[%s27131_s8 + $0xa4] ss:$8 sps:$4 sm:$0xff]  }
 0xbf1   :  { %12471 = vmatpush1.bf16.msra.mxu1 %v20346_v1  ;;  %v12043_v1 = vunpack.c.l.bf16 %v22872_v40 }
 0xbf2   :  { %12472 = vmatprep.subr.bf16.mxu1 %v20351_v55  ;;  %v12078_v55 = vadd.f32 %v12046_v39, %v12014_v28 }
 0xbf4   :  { %v12142_v48 = vadd.f32 %v12110_v9, %v12078_v55  ;;  %v12107_v55 = vunpack.c.l.bf16 %v22985_v34  ;;  %v12075_v9 = vadd.f32 %v12043_v1, %v12011_v21  ;;  %v12176_v21 = vunpack.c.l.bf16 %v23123_v18  ;;  %v27446_v1 = vld [vmem:[#allocation4_spill] sm:$0xff] }
 0xbf5   :  { %12473 = vmatpush1.bf16.msra.mxu1 %v20349_v25  ;;  %v12108_v25 = vunpack.c.l.bf16 %v22987_v43  ;;  %v12172_v43 = vunpack.c.l.bf16 %v23108_v29 }
 0xbf6   :  { %12474 = vmatprep.subr.bf16.mxu1 %v20354_v49  ;;  %v12071_v49 = vadd.f32 %v12039_v22, %v12007_v59  ;;  %v12045_v59 = vunpack.c.h.bf16 %v22872_v40  ;;  %v20366_v40 = vld [vmem:[%s27131_s8 + $0xb4] ss:$8 sps:$4 sm:$0xff]  }
 0xbf9   :  { %12475 = vmatpush1.bf16.msra.mxu1 %v20352_v42  ;;  %v12073_v42 = vadd.f32 %v12041_v26, %v12009_v24  ;;  %v12135_v24 = vadd.f32 %v12103_v6, %v12071_v49  ;;  %v12048_v26 = vunpack.c.l.bf16 %v22889_v14 }
 0xbfa   :  { %12476 = vmatprep.subr.bf16.mxu1 %v20357_v47  ;;  %v12167_v47 = vunpack.c.l.bf16 %v23092_v62  ;;  %v12050_v62 = vunpack.c.h.bf16 %v22889_v14  ;;  %v12024_v14 = vunpack.c.l.bf16 %v22841_v11 }
 0xbfb   :  { %v12137_v22 = vadd.f32 %v12105_v16, %v12073_v42  ;;  %v12080_v49 = vadd.f32 %v12048_v26, %v12016_v32  ;;  %v27447_v26 = vld [vmem:[#allocation10_spill] sm:$0xff] }
 0xbfc   :  { %v12199_v44 = vadd.f32 %v12167_v47, %v12135_v24  ;;  %v12082_v42 = vadd.f32 %v12050_v62, %v12018_v50  ;;  %v12114_v47 = vunpack.c.h.bf16 %v23006_v17  ;;  %v12052_v62 = vunpack.c.l.bf16 %v27447_v26 }
 0xbfd   :  { %12477 = vmatpush1.bf16.msra.mxu1 %v20355_v46  ;;  %v12174_v46 = vunpack.c.h.bf16 %v23108_v29  ;;  %v12201_v39 = vadd.f32 %v12169_v38, %v12137_v22  ;;  %v12112_v38 = vunpack.c.l.bf16 %v23006_v17  ;;  %v12047_v17 = vunpack.c.l.bf16 %v27446_v1 }
 0xbfe   :  { %12478 = vmatprep.subr.bf16.mxu1 %v20360_v19  ;;  %v12140_v19 = vadd.f32 %v12108_v25, %v12076_v51  ;;  %v12026_v51 = vunpack.c.h.bf16 %v22841_v11  ;;  %v12109_v25 = vunpack.c.h.bf16 %v22985_v34  ;;  %v12231_v24 = vmul.f32 0.25, %v12199_v44  ;;  %v27460_v11 = vld [vmem:[#allocation9_spill] sm:$0xff] }
 0xbff   :  { %v12206_v16 = vadd.f32 %v12174_v46, %v12142_v48  ;;  %v12171_v48 = vunpack.c.l.bf16 %v23106_v36  ;;  %v12173_v34 = vunpack.c.h.bf16 %v23106_v36  ;;  %v12049_v46 = vunpack.c.h.bf16 %v27446_v1 }
 0xc00   :  { %v12204_v6 = vadd.f32 %v12172_v43, %v12140_v19  ;;  %v12233_v43 = vmul.f32 0.25, %v12201_v39  ;;  %v12054_v19 = vunpack.c.h.bf16 %v27447_v26  ;;  %v12146_v44 = vadd.f32 %v12114_v47, %v12082_v42 }
 0xc01   :  { %12479 = vmatpush1.bf16.msra.mxu1 %v20358_v5  ;;  %v12077_v5 = vadd.f32 %v12045_v59, %v12013_v8  ;;  %v12178_v8 = vunpack.c.h.bf16 %v23123_v18  ;;  %v12238_v50 = vmul.f32 0.25, %v12206_v16  ;;  %v12139_v59 = vadd.f32 %v12107_v55, %v12075_v9 }
 0xc02   :  { %12480 = vmatprep.subr.bf16.mxu1 %v20363_v35  ;;  %v20364_v35 = vld [vmem:[%s27131_s8 + $0xb0] ss:$8 sps:$4 sm:$0xff]   ;;  %v12236_v32 = vmul.f32 0.25, %v12204_v6  ;;  %v12027_v36 = vunpack.c.l.bf16 %v22846_v20  ;;  %v12263_v39 = vpack.c.bf16 %v12233_v43, %v12231_v24  ;;  %v12029_v6 = vunpack.c.h.bf16 %v22846_v20 }
 0xc03   :  { %v12141_v22 = vadd.f32 %v12109_v25, %v12077_v5  ;;  %v12210_v28 = vadd.f32 %v12178_v8, %v12146_v44  ;;  %v12111_v55 = vunpack.c.l.bf16 %v23004_v58  ;;  %v12113_v25 = vunpack.c.h.bf16 %v23004_v58 }
 0xc04   :  { %v12266_v16 = vpack.c.bf16 %v12238_v50, %v12236_v32  ;;  %v12079_v9 = vadd.f32 %v12047_v17, %v12015_v60  ;;  %v27448_v5 = vunpack.c.h.bf16 %v22826_v7  ;;  %v27449_v42 = vunpack.c.l.bf16 %v22836_v13 }
 0xc05   :  { %12481 = vmatpush1.bf16.msra.mxu1 %v20361_v45  ;;  %v12144_v45 = vadd.f32 %v12112_v38, %v12080_v49  ;;  %v12205_v18 = vadd.f32 %v12173_v34, %v12141_v22  ;;  %v27450_v47 = vunpack.c.h.bf16 %v22836_v13  ;;  %v12116_v24 = vunpack.c.l.bf16 %v23025_v10  ;;  %v27451_v13 = vld [vmem:[#allocation11_spill] sm:$0xff] }
 0xc06   :  { %12482 = vmatprep.subr.bf16.mxu1 %v20366_v40  ;;  %v12203_v40 = vadd.f32 %v12171_v48, %v12139_v59  ;;  %v12081_v49 = vadd.f32 %v12049_v46, %v27448_v5  ;;  %v12084_v38 = vadd.f32 %v12052_v62, %v27449_v42  ;;  %v12118_v43 = vunpack.c.h.bf16 %v23025_v10  ;;  %v27452_v46 = vld [vmem:[#allocation8_spill] sm:$0xff] }
 0xc07   :  { %v12208_v29 = vadd.f32 %v12176_v21, %v12144_v45  ;;  %v12237_v48 = vmul.f32 0.25, %v12205_v18  ;;  %v12175_v34 = vunpack.c.l.bf16 %v23121_v56  ;;  %v12177_v60 = vunpack.c.h.bf16 %v23121_v56  ;;  %v27454_v18 = vld [vmem:[#allocation17_spill] sm:$0xff] }
 0xc08   :  { %v12235_v58 = vmul.f32 0.25, %v12203_v40  ;;  %v12180_v7 = vunpack.c.l.bf16 %v23138_v2  ;;  %v12182_v21 = vunpack.c.h.bf16 %v23138_v2  ;;  %v12242_v32 = vmul.f32 0.25, %v12210_v28 }
 0xc09   :  { %12483 = vmatpush1.bf16.msra.mxu1 %v20364_v35  ;;  %v12086_v35 = vadd.f32 %v12054_v19, %v27450_v47  ;;  %v12240_v8 = vmul.f32 0.25, %v12208_v29  ;;  %v12051_v50 = vunpack.c.l.bf16 %v27451_v13  ;;  %v12053_v1 = vunpack.c.h.bf16 %v27451_v13  ;;  %v27453_v19 = vld [vmem:[#allocation3_spill] sm:$0xff] }
 0xc0a   :  { %v12143_v17 = vadd.f32 %v12111_v55, %v12079_v9  ;;  %v12145_v10 = vadd.f32 %v12113_v25, %v12081_v49  ;;  %v12056_v59 = vunpack.c.l.bf16 %v27452_v46  ;;  %v12058_v22 = vunpack.c.h.bf16 %v27452_v46  ;;  %v27457_v47 = vld [vmem:[#allocation23_spill] sm:$0xff] }
 0xc0b   :  { %v12148_v26 = vadd.f32 %v12116_v24, %v12084_v38  ;;  %v12150_v62 = vadd.f32 %v12118_v43, %v12086_v35  ;;  %v12028_v56 = vunpack.c.l.bf16 %v27453_v19  ;;  %v12265_v45 = vpack.c.bf16 %v12237_v48, %v12235_v58  ;;  %v27458_v48 = vld [vmem:[#allocation24_spill] sm:$0xff] }
 0xc0c   :  { %12493 = vmatmul.mubr.bf16.vlgmr.msra.gmra.mrb[144].mxu1 %v12263_v39  ;;  %v12207_v44 = vadd.f32 %v12175_v34, %v12143_v17  ;;  %v12209_v39 = vadd.f32 %v12177_v60, %v12145_v10  ;;  %v12030_v2 = vunpack.c.h.bf16 %v27453_v19  ;;  %v12268_v28 = vpack.c.bf16 %v12242_v32, %v12240_v8 }
 0xc0d   :  { %17021 = vmatprep.mubr.msk.bf16.mxu1 %vm4730_vm0, %v12266_v16  ;;  %v12212_v29 = vadd.f32 %v12180_v7, %v12148_v26  ;;  %v12214_v40 = vadd.f32 %v12182_v21, %v12150_v62  ;;  %v12115_v16 = vunpack.c.l.bf16 %v27454_v18  ;;  %v12117_v55 = vunpack.c.h.bf16 %v27454_v18 }
 0xc0e   :  { %v27455_v25 = vunpack.c.l.bf16 %v22834_v63  ;;  %v27456_v5 = vunpack.c.h.bf16 %v22834_v63  ;;  %v12088_v42 = vadd.f32 %v12056_v59, %v12024_v14  ;;  %v12090_v38 = vadd.f32 %v12058_v22, %v12026_v51  ;;  %v27459_v63 = vld [vmem:[#allocation30_spill] sm:$0xff] }
 0xc0f   :  { %v12120_v35 = vunpack.c.l.bf16 %v27457_v47  ;;  %v12122_v24 = vunpack.c.h.bf16 %v27457_v47  ;;  %v12239_v43 = vmul.f32 0.25, %v12207_v44  ;;  %v12241_v58 = vmul.f32 0.25, %v12209_v39  ;;  %v27462_v22 = vld [vmem:[#allocation2_spill] sm:$0xff] }
 0xc10   :  { %v12083_v9 = vadd.f32 %v12051_v50, %v27455_v25  ;;  %v12085_v49 = vadd.f32 %v12053_v1, %v27456_v5  ;;  %v12179_v34 = vunpack.c.l.bf16 %v27458_v48  ;;  %v12181_v60 = vunpack.c.h.bf16 %v27458_v48  ;;  %v27461_v1 = vld [vmem:[#allocation14_spill] sm:$0xff] }
 0xc11   :  { %v12184_v7 = vunpack.c.l.bf16 %v27459_v63  ;;  %v12186_v21 = vunpack.c.h.bf16 %v27459_v63  ;;  %v12244_v14 = vmul.f32 0.25, %v12212_v29  ;;  %v12246_v8 = vmul.f32 0.25, %v12214_v40  ;;  %v27463_v40 = vld [vmem:[#allocation16_spill] sm:$0xff] }
 0xc12   :  { %v12055_v51 = vunpack.c.l.bf16 %v27460_v11  ;;  %v12057_v32 = vunpack.c.h.bf16 %v27460_v11  ;;  %v12147_v13 = vadd.f32 %v12115_v16, %v12083_v9  ;;  %v12149_v50 = vadd.f32 %v12117_v55, %v12085_v49 }
 0xc13   :  { %v12060_v17 = vunpack.c.l.bf16 %v27461_v1  ;;  %v12062_v10 = vunpack.c.h.bf16 %v27461_v1  ;;  %v12152_v46 = vadd.f32 %v12120_v35, %v12088_v42  ;;  %v12154_v59 = vadd.f32 %v12122_v24, %v12090_v38  ;;  %v27466_v38 = vld [vmem:[#allocation21_spill] sm:$0xff] }
 0xc14   :  { %12503 = vmatmul.mubr.bf16.gmra.mrb[148].mxu1 %v12265_v45  ;;  %v12031_v26 = vunpack.c.l.bf16 %v27462_v22  ;;  %v12267_v62 = vpack.c.bf16 %v12241_v58, %v12239_v43  ;;  %v12211_v19 = vadd.f32 %v12179_v34, %v12147_v13  ;;  %v12213_v45 = vadd.f32 %v12181_v60, %v12149_v50  ;;  %v27467_v58 = vld [vmem:[#allocation31_spill] sm:$0xff]  ;;  %v27468_v60 = vld [vmem:[#allocation28_spill] sm:$0xff] }
 0xc15   :  { %17022 = vmatprep.mubr.msk.bf16.mxu1 %vm4730_vm0, %v12268_v28  ;;  %v12033_v44 = vunpack.c.h.bf16 %v27462_v22  ;;  %v12270_v39 = vpack.c.bf16 %v12246_v8, %v12244_v14  ;;  %v12216_v28 = vadd.f32 %v12184_v7, %v12152_v46  ;;  %v12218_v29 = vadd.f32 %v12186_v21, %v12154_v59 }
 0xc16   :  { %v12119_v18 = vunpack.c.l.bf16 %v27463_v40  ;;  %v12121_v16 = vunpack.c.h.bf16 %v27463_v40  ;;  %v27464_v55 = vunpack.c.l.bf16 %v22839_v4  ;;  %v27465_v9 = vunpack.c.h.bf16 %v22839_v4 }
 0xc17   :  { %v12092_v49 = vadd.f32 %v12060_v17, %v12028_v56  ;;  %v12094_v42 = vadd.f32 %v12062_v10, %v12030_v2  ;;  %v12124_v47 = vunpack.c.l.bf16 %v27466_v38  ;;  %v12126_v35 = vunpack.c.h.bf16 %v27466_v38  ;;  %v27469_v56 = vld [vmem:[#allocation15_spill] sm:$0xff] }
 0xc18   :  { %v12087_v25 = vadd.f32 %v12055_v51, %v27464_v55  ;;  %v12089_v5 = vadd.f32 %v12057_v32, %v27465_v9  ;;  %v12243_v24 = vmul.f32 0.25, %v12211_v19  ;;  %v12245_v43 = vmul.f32 0.25, %v12213_v45  ;;  %v27470_v51 = vld [vmem:[#allocation12_spill] sm:$0xff]  ;;  %v27471_v17 = vld [vmem:[#allocation7_spill] sm:$0xff] }
 0xc19   :  { %v12183_v48 = vunpack.c.l.bf16 %v27467_v58  ;;  %v12185_v34 = vunpack.c.h.bf16 %v27467_v58  ;;  %v12188_v63 = vunpack.c.l.bf16 %v27468_v60  ;;  %v12190_v7 = vunpack.c.h.bf16 %v27468_v60  ;;  %v27475_v58 = vld [vmem:[#allocation34_spill] sm:$0xff] }
 0xc1a   :  { %v12248_v4 = vmul.f32 0.25, %v12216_v28  ;;  %v12250_v21 = vmul.f32 0.25, %v12218_v29  ;;  %v12059_v2 = vunpack.c.l.bf16 %v27469_v56  ;;  %v12061_v14 = vunpack.c.h.bf16 %v27469_v56  ;;  %v27472_v29 = vld [vmem:[#allocation22_spill] sm:$0xff] }
 0xc1b   :  { %v12151_v8 = vadd.f32 %v12119_v18, %v12087_v25  ;;  %v12153_v11 = vadd.f32 %v12121_v16, %v12089_v5  ;;  %v12064_v32 = vunpack.c.l.bf16 %v27470_v51  ;;  %v12066_v13 = vunpack.c.h.bf16 %v27470_v51  ;;  %v27473_v5 = vld [vmem:[#allocation27_spill] sm:$0xff] }
 0xc1c   :  { %12513 = vmatmul.mubr.bf16.gmra.mrb[152].mxu1 %v12267_v62  ;;  %v12156_v50 = vadd.f32 %v12124_v47, %v12092_v49  ;;  %v12158_v1 = vadd.f32 %v12126_v35, %v12094_v42  ;;  %v12032_v10 = vunpack.c.l.bf16 %v27471_v17  ;;  %v12269_v46 = vpack.c.bf16 %v12245_v43, %v12243_v24  ;;  %v27474_v35 = vld [vmem:[#allocation29_spill] sm:$0xff] }
 0xc1d   :  { %17023 = vmatprep.mubr.msk.bf16.mxu1 %vm4730_vm0, %v12270_v39  ;;  %v12215_v59 = vadd.f32 %v12183_v48, %v12151_v8  ;;  %v12217_v62 = vadd.f32 %v12185_v34, %v12153_v11  ;;  %v12034_v19 = vunpack.c.h.bf16 %v27471_v17  ;;  %v12272_v45 = vpack.c.bf16 %v12250_v21, %v12248_v4  ;;  %v27476_v34 = vld [vmem:[#allocation13_spill] sm:$0xff]  ;;  %v27477_v21 = vld [vmem:[#allocation18_spill] sm:$0xff] }
 0xc1e   :  { %v12220_v39 = vadd.f32 %v12188_v63, %v12156_v50  ;;  %v12222_v28 = vadd.f32 %v12190_v7, %v12158_v1  ;;  %v12123_v40 = vunpack.c.l.bf16 %v27472_v29  ;;  %v12125_v18 = vunpack.c.h.bf16 %v27472_v29  ;;  %v27478_v11 = vld [vmem:[#allocation5_spill] sm:$0xff] }
 0xc1f   :  { %v12091_v16 = vadd.f32 %v12059_v2, %v12027_v36  ;;  %v12093_v55 = vadd.f32 %v12061_v14, %v12029_v6  ;;  %v12096_v25 = vadd.f32 %v12064_v32, %v12032_v10  ;;  %v12098_v9 = vadd.f32 %v12066_v13, %v12034_v19 }
 0xc20   :  { %v12128_v49 = vunpack.c.l.bf16 %v27473_v5  ;;  %v12130_v42 = vunpack.c.h.bf16 %v27473_v5  ;;  %v12247_v38 = vmul.f32 0.25, %v12215_v59  ;;  %v12249_v47 = vmul.f32 0.25, %v12217_v62  ;;  %v27479_v59 = vld [vmem:[#allocation20_spill] sm:$0xff] }
 0xc21   :  { %v12187_v24 = vunpack.c.l.bf16 %v27474_v35  ;;  %v12189_v43 = vunpack.c.h.bf16 %v27474_v35  ;;  %v12192_v48 = vunpack.c.l.bf16 %v27475_v58  ;;  %v12194_v36 = vunpack.c.h.bf16 %v27475_v58 }
 0xc22   :  { %v12252_v20 = vmul.f32 0.25, %v12220_v39  ;;  %v12254_v6 = vmul.f32 0.25, %v12222_v28  ;;  %v12063_v60 = vunpack.c.l.bf16 %v27476_v34  ;;  %v12065_v63 = vunpack.c.h.bf16 %v27476_v34 }
 0xc23   :  { %v12155_v7 = vadd.f32 %v12123_v40, %v12091_v16  ;;  %v12157_v4 = vadd.f32 %v12125_v18, %v12093_v55  ;;  %v12068_v56 = vunpack.c.l.bf16 %v27477_v21  ;;  %v12070_v2 = vunpack.c.h.bf16 %v27477_v21  ;;  %v27480_v40 = vld [vmem:[#allocation25_spill] sm:$0xff] }
 0xc24   :  { %12523 = vmatmul.mubr.bf16.gmra.mrb[156].mxu1 %v12269_v46  ;;  %v12160_v14 = vadd.f32 %v12128_v49, %v12096_v25  ;;  %v12162_v8 = vadd.f32 %v12130_v42, %v12098_v9  ;;  %v12036_v51 = vunpack.c.l.bf16 %v27478_v11  ;;  %v12271_v32 = vpack.c.bf16 %v12249_v47, %v12247_v38  ;;  %v27481_v9 = vld [vmem:[#allocation35_spill] sm:$0xff]  ;;  %v27482_v42 = vld [vmem:[#allocation32_spill] sm:$0xff] }
 0xc25   :  { %17024 = vmatprep.mubr.msk.bf16.mxu1 %vm4730_vm0, %v12272_v45  ;;  %v12219_v13 = vadd.f32 %v12187_v24, %v12155_v7  ;;  %v12221_v50 = vadd.f32 %v12189_v43, %v12157_v4  ;;  %v12038_v1 = vunpack.c.h.bf16 %v27478_v11  ;;  %v12274_v17 = vpack.c.bf16 %v12254_v6, %v12252_v20  ;;  %v27483_v24 = vld [vmem:[#allocation19_spill] sm:$0xff]  ;;  %v27484_v20 = vld [vmem:[#allocation6_spill] sm:$0xff] }
 0xc26   :  { %v12224_v10 = vadd.f32 %v12192_v48, %v12160_v14  ;;  %v12226_v46 = vadd.f32 %v12194_v36, %v12162_v8  ;;  %v12127_v62 = vunpack.c.l.bf16 %v27479_v59  ;;  %v12129_v19 = vunpack.c.h.bf16 %v27479_v59 }
 0xc27   :  { %v12095_v45 = vadd.f32 %v12063_v60, %v12031_v26  ;;  %v12097_v39 = vadd.f32 %v12065_v63, %v12033_v44  ;;  %v12100_v28 = vadd.f32 %v12068_v56, %v12036_v51  ;;  %v12102_v29 = vadd.f32 %v12070_v2, %v12038_v1  ;;  %v27485_v2 = vld [vmem:[#allocation26_spill] sm:$0xff] }
 0xc28   :  { %v12132_v18 = vunpack.c.l.bf16 %v27480_v40  ;;  %v12134_v16 = vunpack.c.h.bf16 %v27480_v40  ;;  %v12251_v55 = vmul.f32 0.25, %v12219_v13  ;;  %v12253_v25 = vmul.f32 0.25, %v12221_v50  ;;  %v27486_v50 = vld [vmem:[#allocation33_spill] sm:$0xff] }
 0xc29   :  { %v12191_v5 = vunpack.c.l.bf16 %v27481_v9  ;;  %v12193_v49 = vunpack.c.h.bf16 %v27481_v9  ;;  %v12196_v38 = vunpack.c.l.bf16 %v27482_v42  ;;  %v12198_v26 = vunpack.c.h.bf16 %v27482_v42  ;;  %v20372_v9 = vld [vmem:[%s27131_s8 + $0xd4] ss:$8 sps:$4 sm:$0xff]  }
 0xc2a   :  { %v12256_v22 = vmul.f32 0.25, %v12224_v10  ;;  %v12258_v44 = vmul.f32 0.25, %v12226_v46  ;;  %v12159_v47 = vadd.f32 %v12127_v62, %v12095_v45  ;;  %v12161_v35 = vadd.f32 %v12129_v19, %v12097_v39  ;;  %v20378_v42 = vld [vmem:[%s27131_s8 + $0xf4] ss:$8 sps:$4 sm:$0xff]  }
 0xc2b   :  { %v12067_v43 = vunpack.c.l.bf16 %v27483_v24  ;;  %v12069_v58 = vunpack.c.h.bf16 %v27483_v24  ;;  %v12164_v48 = vadd.f32 %v12132_v18, %v12100_v28  ;;  %v12166_v36 = vadd.f32 %v12134_v16, %v12102_v29  ;;  %v20367_v18 = vld [vmem:[%s27131_s8 + $0xc0] ss:$8 sps:$4 sm:$0xff]   ;;  %v20369_v16 = vld [vmem:[%s27131_s8 + $0xc4] ss:$8 sps:$4 sm:$0xff]  }
 0xc2c   :  { %12533 = vmatmul.mubr.bf16.gmra.mrb[160].mxu1 %v12271_v32  ;;  %v12035_v6 = vunpack.c.l.bf16 %v27484_v20  ;;  %v12273_v34 = vpack.c.bf16 %v12253_v25, %v12251_v55  ;;  %v12223_v60 = vadd.f32 %v12191_v5, %v12159_v47  ;;  %v12225_v63 = vadd.f32 %v12193_v49, %v12161_v35  ;;  %12805 = vmatprep.subr.bf16.mxu1 %v20369_v16  ;;  %v20370_v25 = vld [vmem:[%s27131_s8 + $0xd0] ss:$8 sps:$4 sm:$0xff]   ;;  %v20373_v5 = vld [vmem:[%s27131_s8 + $0xe0] ss:$8 sps:$4 sm:$0xff]   ;;  %v20375_v49 = vld [vmem:[%s27131_s8 + $0xe4] ss:$8 sps:$4 sm:$0xff]  }
 0xc2d   :  { %17025 = vmatprep.mubr.msk.bf16.mxu1 %vm4730_vm0, %v12274_v17  ;;  %v12037_v7 = vunpack.c.h.bf16 %v27484_v20  ;;  %v12276_v4 = vpack.c.bf16 %v12258_v44, %v12256_v22  ;;  %v12228_v21 = vadd.f32 %v12196_v38, %v12164_v48  ;;  %v12230_v56 = vadd.f32 %v12198_v26, %v12166_v36  ;;  %12806 = vmatpush1.bf16.msra.mxu1 %v20367_v18  ;;  %v20376_v38 = vld [vmem:[%s27131_s8 + $0xf0] ss:$8 sps:$4 sm:$0xff]   ;;  %v20379_v26 = vld [vmem:[%s27131_s8 + $0x100] ss:$8 sps:$4 sm:$0xff]   ;;  %v20381_v22 = vld [vmem:[%s27131_s8 + $0x104] ss:$8 sps:$4 sm:$0xff]  }
 0xc2e   :  { %v12131_v14 = vunpack.c.l.bf16 %v27485_v2  ;;  %v12133_v8 = vunpack.c.h.bf16 %v27485_v2  ;;  %v12099_v11 = vadd.f32 %v12067_v43, %v12035_v6  ;;  %v12255_v32 = vmul.f32 0.25, %v12223_v60  ;;  %12807 = vmatprep.subr.bf16.mxu1 %v20372_v9  ;;  %v20382_v44 = vld [vmem:[%s27131_s8 + $0x110] ss:$8 sps:$4 sm:$0xff]   ;;  %v20384_v47 = vld [vmem:[%s27131_s8 + $0x114] ss:$8 sps:$4 sm:$0xff]  }
 0xc2f   :  { %v12101_v51 = vadd.f32 %v12069_v58, %v12037_v7  ;;  %v12257_v13 = vmul.f32 0.25, %v12225_v63  ;;  %v12195_v1 = vunpack.c.l.bf16 %v27486_v50  ;;  %v12197_v17 = vunpack.c.h.bf16 %v27486_v50  ;;  %v20387_v35 = vld [vmem:[%s27131_s8 + $0x124] ss:$8 sps:$4 sm:$0xff]   ;;  %v20385_v24 = vld [vmem:[%s27131_s8 + $0x120] ss:$8 sps:$4 sm:$0xff]  }
 0xc30   :  { %v12260_v10 = vmul.f32 0.25, %v12228_v21  ;;  %v12262_v46 = vmul.f32 0.25, %v12230_v56  ;;  %v12163_v59 = vadd.f32 %v12131_v14, %v12099_v11  ;;  %v20388_v43 = vld [vmem:[%s27131_s8 + $0x130] ss:$8 sps:$4 sm:$0xff]   ;;  %v20390_v58 = vld [vmem:[%s27131_s8 + $0x134] ss:$8 sps:$4 sm:$0xff]   ;;  %v11350_v21 = vlaneseq }
 0xc31   :  { %v12165_v62 = vadd.f32 %v12133_v8, %v12101_v51  ;;  %v12275_v19 = vpack.c.bf16 %v12257_v13, %v12255_v32  ;;  %12808 = vmatpush1.bf16.msra.mxu1 %v20370_v25  ;;  %v20393_v48 = vld [vmem:[%s27131_s8 + $0x144] ss:$8 sps:$4 sm:$0xff]   ;;  %v20391_v36 = vld [vmem:[%s27131_s8 + $0x140] ss:$8 sps:$4 sm:$0xff]   ;;  %v20394_v20 = vld [vmem:[%s27131_s8 + $0x150] ss:$8 sps:$4 sm:$0xff]  }
 0xc32   :  { %v12227_v45 = vadd.f32 %v12195_v1, %v12163_v59  ;;  %v12278_v28 = vpack.c.bf16 %v12262_v46, %v12260_v10  ;;  %12809 = vmatprep.subr.bf16.mxu1 %v20375_v49  ;;  %v20396_v6 = vld [vmem:[%s27131_s8 + $0x154] ss:$8 sps:$4 sm:$0xff]   ;;  %v20397_v60 = vld [vmem:[%s27131_s8 + $0x160] ss:$8 sps:$4 sm:$0xff]   ;;  %v20400_v7 = vld [vmem:[%s27131_s8 + $0x170] ss:$8 sps:$4 sm:$0xff]  }
 0xc33   :  { %v12229_v39 = vadd.f32 %v12197_v17, %v12165_v62  ;;  %v20402_v63 = vld [vmem:[%s27131_s8 + $0x174] ss:$8 sps:$4 sm:$0xff]   ;;  %v11351_v56 = vshrl.u32 %v11350_v21, 7  ;;  %v11348_v2 = vld [vmem:[%s27133_s9] sm:$0x3] }
 0xc34   :  { %12543 = vmatmul.mubr.bf16.gmra.mrb[164].mxu1 %v12273_v34  ;;  %v12259_v29 = vmul.f32 0.25, %v12227_v45  ;;  %v20399_v34 = vld [vmem:[%s27131_s8 + $0x164] ss:$8 sps:$4 sm:$0xff]  }
 0xc35   :  { %17026 = vmatprep.mubr.msk.bf16.mxu1 %vm4730_vm0, %v12276_v4  ;;  %v12261_v40 = vmul.f32 0.25, %v12229_v39  ;;  %12810 = vmatpush1.bf16.msra.mxu1 %v20373_v5  ;;  %v20405_v4 = vld [vmem:[%s27132_s7 + $0x4] ss:$8 sps:$4 sm:$0xff]   ;;  %v26344_v14 = vsub.s32 0, %v11351_v56  ;;  %v26346_v8 = vsub.s32 1, %v11351_v56 }
 0xc36   :  { %12811 = vmatprep.subr.bf16.mxu1 %v20378_v42 }
 0xc37   :  { %v12277_v55 = vpack.c.bf16 %v12261_v40, %v12259_v29  ;;  %v11353_v11 = vrot.slane %v11348_v2, %v26344_v14  ;;  %v11357_v51 = vrot.slane %v11348_v2, %v26346_v8 }
 0xc39   :  { %12812 = vmatpush1.bf16.msra.mxu1 %v20376_v38 }
 0xc3a   :  { %12813 = vmatprep.subr.bf16.mxu1 %v20381_v22 }
 0xc3c   :  { %12553 = vmatmul.mubr.bf16.gmra.mrb[168].mxu1 %v12275_v19 }
 0xc3d   :  { %17027 = vmatprep.mubr.msk.bf16.mxu1 %vm4730_vm0, %v12278_v28  ;;  %12814 = vmatpush1.bf16.msra.mxu1 %v20379_v26 }
 0xc3e   :  { %12815 = vmatprep.subr.bf16.mxu1 %v20384_v47 }
 0xc41   :  { %12816 = vmatpush1.bf16.msra.mxu1 %v20382_v44 }
 0xc42   :  { %12817 = vmatprep.subr.bf16.mxu1 %v20387_v35 }
 0xc44   :  { %12563 = vmatmul.mubr.bf16.gmra.mrb[172].mxu1 %v12277_v55 }
 0xc45   :  { %12818 = vmatpush1.bf16.msra.mxu1 %v20385_v24 }
 0xc46   :  { %12819 = vmatprep.subr.bf16.mxu1 %v20390_v58 }
 0xc49   :  { %12820 = vmatpush1.bf16.msra.mxu1 %v20388_v43 }
 0xc4a   :  { %12821 = vmatprep.subr.bf16.mxu1 %v20393_v48 }
 0xc4d   :  { %12822 = vmatpush1.bf16.msra.mxu1 %v20391_v36 }
 0xc4e   :  { %12823 = vmatprep.subr.bf16.mxu1 %v20396_v6 }
 0xc51   :  { %12824 = vmatpush1.bf16.msra.mxu1 %v20394_v20 }
 0xc52   :  { %12825 = vmatprep.subr.bf16.mxu1 %v20399_v34 }
 0xc55   :  { %12826 = vmatpush1.bf16.msra.mxu1 %v20397_v60 }
 0xc56   :  { %12827 = vmatprep.subr.bf16.mxu1 %v20402_v63 }
 0xc59   :  { %12828 = vmatpush1.bf16.msra.mxu1 %v20400_v7 }
 0xc5a   :  { %13269 = vmatprep.subr.bf16.mxu1 %v20405_v4  ;;  %v16995_v4 = vld [vmem:[%s27133_s9 + $0x6] sm:$0x3] }
 0xcae   :  { %v11980_v32 = vpop.f32.mrb[136].mxu1 }
 0xcaf   :  { %v17946_v13 = vadd.f32 %v11980_v32, %v11353_v11  ;;  %v26350_v50 = vpop.f32.mrb[80].mxu0  ;;  %v11982_v1 = vpop.f32.mrb[137].mxu1  ;;  %v26381_v32 = vrot.slane %v16995_v4, %v26346_v8 }
 0xcb0   :  { %v17947_v17 = vadd.f32 %v11982_v1, %v11357_v51  ;;  %v26352_v10 = vpop.f32.mrb[81].mxu0  ;;  %v11984_v46 = vpop.f32.mrb[138].mxu1 }
 0xcb1   :  { %v17948_v59 = vadd.f32 %v11984_v46, %v11353_v11  ;;  %v26354_v62 = vpop.f32.mrb[82].mxu0  ;;  %v11986_v19 = vpop.f32.mrb[139].mxu1  ;;  %v11999_v28 = vmax.f32 %v17946_v13, 0.0 }
 0xcb2   :  { %v17949_v45 = vadd.f32 %v11986_v19, %v11357_v51  ;;  %v26356_v39 = vpop.f32.mrb[83].mxu0  ;;  %v12000_v40 = vmax.f32 %v17947_v17, 0.0 }
 0xcb3   :  { %v12001_v29 = vmax.f32 %v17948_v59, 0.0 }
 0xcb4   :  { %v12002_v18 = vmax.f32 %v17949_v45, 0.0 }
 0xcb5   :  { %v26358_v16 = vpack.c.bf16 %v12001_v29, %v11999_v28 }
 0xcb6   :  { %v26360_v55 = vpack.c.bf16 %v12002_v18, %v12000_v40  ;;  %v11990_v25 = vpop.f32.mrb[140].mxu1 }
 0xcb7   :  { %v17950_v9 = vadd.f32 %v11990_v25, %v11353_v11  ;;  %v26362_v5 = vpop.f32.mrb[84].mxu0  ;;  %v11992_v49 = vpop.f32.mrb[141].mxu1 }
 0xcb8   :  { %v17951_v42 = vadd.f32 %v11992_v49, %v11357_v51  ;;  %v26364_v38 = vpop.f32.mrb[85].mxu0  ;;  %v11994_v26 = vpop.f32.mrb[142].mxu1 }
 0xcb9   :  { %v17952_v22 = vadd.f32 %v11994_v26, %v11353_v11  ;;  %v26366_v44 = vpop.f32.mrb[86].mxu0  ;;  %v11996_v47 = vpop.f32.mrb[143].mxu1  ;;  %v12003_v43 = vmax.f32 %v17950_v9, 0.0  ;;  %v26378_v11 = vrot.slane %v16995_v4, %v26344_v14 }
 0xcba   :  { %v17953_v35 = vadd.f32 %v11996_v47, %v11357_v51  ;;  %v26368_v24 = vpop.f32.mrb[87].mxu0  ;;  %v12004_v48 = vmax.f32 %v17951_v42, 0.0 }
 0xcbb   :  { %v12005_v58 = vmax.f32 %v17952_v22, 0.0 }
 0xcbc   :  { %v12006_v36 = vmax.f32 %v17953_v35, 0.0 }
 0xcbd   :  { %v26370_v20 = vpack.c.bf16 %v12005_v58, %v12003_v43 }
 0xcbe   :  { %v26372_v6 = vpack.c.bf16 %v12006_v36, %v12004_v48 }
 0xcdf   :  { %v12494_v34 = vpop.f32.mrb[144].mxu1 }
 0xce0   :  { %v12496_v60 = vpop.f32.mrb[145].mxu1  ;;  %v12495_v13 = vadd.f32 %v12494_v34, %v26378_v11 }
 0xce1   :  { %v12498_v63 = vpop.f32.mrb[146].mxu1  ;;  %v12497_v1 = vadd.f32 %v12496_v60, %v26381_v32 }
 0xce2   :  { %v12500_v7 = vpop.f32.mrb[147].mxu1  ;;  %v12499_v46 = vadd.f32 %v12498_v63, %v26378_v11  ;;  %v12573_v40 = vmax.f32 %v12495_v13, 0.0 }
 0xce3   :  { %v12501_v45 = vadd.f32 %v12500_v7, %v26381_v32  ;;  %v12574_v49 = vmax.f32 %v12497_v1, 0.0 }
 0xce4   :  { %v12575_v22 = vmax.f32 %v12499_v46, 0.0 }
 0xce5   :  { %v12576_v43 = vmax.f32 %v12501_v45, 0.0 }
 0xce7   :  { %v12504_v21 = vpop.f32.mrb[148].mxu1 }
 0xce8   :  { %v12506_v56 = vpop.f32.mrb[149].mxu1  ;;  %v12505_v36 = vadd.f32 %v12504_v21, %v26378_v11 }
 0xce9   :  { %v12508_v2 = vpop.f32.mrb[150].mxu1  ;;  %v12507_v60 = vadd.f32 %v12506_v56, %v26381_v32 }
 0xcea   :  { %v12510_v51 = vpop.f32.mrb[151].mxu1  ;;  %v12509_v4 = vadd.f32 %v12508_v2, %v26378_v11 }
 0xcef   :  { %v12514_v17 = vpop.f32.mrb[152].mxu1 }
 0xcf0   :  { %v12515_v59 = vadd.f32 %v12514_v17, %v26378_v11  ;;  %v12516_v19 = vpop.f32.mrb[153].mxu1  ;;  %v12511_v17 = vadd.f32 %v12510_v51, %v26381_v32 }
 0xcf1   :  { %v12517_v28 = vadd.f32 %v12516_v19, %v26381_v32  ;;  %v12518_v29 = vpop.f32.mrb[154].mxu1  ;;  %v12577_v19 = vmax.f32 %v12505_v36, 0.0 }
 0xcf2   :  { %v12581_v18 = vmax.f32 %v12515_v59, 0.0  ;;  %v12519_v25 = vadd.f32 %v12518_v29, %v26378_v11  ;;  %v12520_v9 = vpop.f32.mrb[155].mxu1  ;;  %v12578_v29 = vmax.f32 %v12507_v60, 0.0 }
 0xcf3   :  { %v12582_v42 = vmax.f32 %v12517_v28, 0.0  ;;  %v12521_v26 = vadd.f32 %v12520_v9, %v26381_v32  ;;  %v12580_v9 = vmax.f32 %v12511_v17, 0.0 }
 0xcf4   :  { %v12605_v47 = vadd.f32 %v12581_v18, %v12573_v40  ;;  %v12583_v35 = vmax.f32 %v12519_v25, 0.0  ;;  %v12579_v18 = vmax.f32 %v12509_v4, 0.0 }
 0xcf5   :  { %v12606_v58 = vadd.f32 %v12582_v42, %v12574_v49  ;;  %v12584_v48 = vmax.f32 %v12521_v26, 0.0 }
 0xcf6   :  { %v12607_v34 = vadd.f32 %v12583_v35, %v12575_v22 }
 0xcf7   :  { %v12608_v63 = vadd.f32 %v12584_v48, %v12576_v43  ;;  %v12524_v7 = vpop.f32.mrb[156].mxu1 }
 0xcf8   :  { %v12525_v13 = vadd.f32 %v12524_v7, %v26378_v11  ;;  %v12526_v1 = vpop.f32.mrb[157].mxu1 }
 0xcf9   :  { %v12527_v46 = vadd.f32 %v12526_v1, %v26381_v32  ;;  %v12528_v59 = vpop.f32.mrb[158].mxu1 }
 0xcfa   :  { %v12585_v45 = vmax.f32 %v12525_v13, 0.0  ;;  %v12529_v28 = vadd.f32 %v12528_v59, %v26378_v11  ;;  %v12530_v21 = vpop.f32.mrb[159].mxu1 }
 0xcfb   :  { %v12586_v40 = vmax.f32 %v12527_v46, 0.0  ;;  %v12531_v56 = vadd.f32 %v12530_v21, %v26381_v32 }
 0xcfc   :  { %v12609_v25 = vadd.f32 %v12585_v45, %v12577_v19  ;;  %v12587_v2 = vmax.f32 %v12529_v28, 0.0 }
 0xcfd   :  { %v12610_v49 = vadd.f32 %v12586_v40, %v12578_v29  ;;  %v12588_v42 = vmax.f32 %v12531_v56, 0.0 }
 0xcfe   :  { %v12611_v26 = vadd.f32 %v12587_v2, %v12579_v18 }
 0xcff   :  { %v12612_v51 = vadd.f32 %v12588_v42, %v12580_v9  ;;  %v12534_v22 = vpop.f32.mrb[160].mxu1 }
 0xd00   :  { %v12535_v35 = vadd.f32 %v12534_v22, %v26378_v11  ;;  %v12536_v43 = vpop.f32.mrb[161].mxu1 }
 0xd01   :  { %v12537_v48 = vadd.f32 %v12536_v43, %v26381_v32  ;;  %v12538_v36 = vpop.f32.mrb[162].mxu1 }
 0xd02   :  { %v12589_v7 = vmax.f32 %v12535_v35, 0.0  ;;  %v12539_v60 = vadd.f32 %v12538_v36, %v26378_v11  ;;  %v12540_v13 = vpop.f32.mrb[163].mxu1 }
 0xd03   :  { %v12590_v1 = vmax.f32 %v12537_v48, 0.0  ;;  %v12541_v4 = vadd.f32 %v12540_v13, %v26381_v32 }
 0xd04   :  { %v12613_v46 = vadd.f32 %v12605_v47, %v12589_v7  ;;  %v12591_v17 = vmax.f32 %v12539_v60, 0.0 }
 0xd05   :  { %v12614_v59 = vadd.f32 %v12606_v58, %v12590_v1  ;;  %v12592_v19 = vmax.f32 %v12541_v4, 0.0 }
 0xd06   :  { %v12615_v45 = vadd.f32 %v12607_v34, %v12591_v17 }
 0xd07   :  { %v12616_v28 = vadd.f32 %v12608_v63, %v12592_v19  ;;  %v12544_v21 = vpop.f32.mrb[164].mxu1 }
 0xd08   :  { %v12545_v29 = vadd.f32 %v12544_v21, %v26378_v11  ;;  %v12546_v40 = vpop.f32.mrb[165].mxu1 }
 0xd09   :  { %v12547_v56 = vadd.f32 %v12546_v40, %v26381_v32  ;;  %v12548_v18 = vpop.f32.mrb[166].mxu1 }
 0xd0a   :  { %v12593_v2 = vmax.f32 %v12545_v29, 0.0  ;;  %v12549_v9 = vadd.f32 %v12548_v18, %v26378_v11  ;;  %v12550_v42 = vpop.f32.mrb[167].mxu1 }
 0xd0b   :  { %v12594_v22 = vmax.f32 %v12547_v56, 0.0  ;;  %v12551_v35 = vadd.f32 %v12550_v42, %v26381_v32 }
 0xd0c   :  { %v12617_v47 = vadd.f32 %v12609_v25, %v12593_v2  ;;  %v12595_v43 = vmax.f32 %v12549_v9, 0.0  ;;  %v27487_v25 = vld [vmem:[#allocation39_spill] sm:$0xff]  ;;  %v12867_v2 = vunpack.c.l.bf16 %v23753_v57  ;;  %v12870_v9 = vunpack.c.h.bf16 %v23753_v57 }
 0xd0d   :  { %v12618_v58 = vadd.f32 %v12610_v49, %v12594_v22  ;;  %v12596_v48 = vmax.f32 %v12551_v35, 0.0  ;;  %v12879_v40 = vunpack.c.l.bf16 %v27487_v25  ;;  %v12882_v49 = vunpack.c.h.bf16 %v27487_v25 }
 0xd0e   :  { %v12619_v34 = vadd.f32 %v12611_v26, %v12595_v43  ;;  %v12903_v22 = vunpack.c.l.bf16 %v23827_v15 }
 0xd0f   :  { %v12620_v63 = vadd.f32 %v12612_v51, %v12596_v48  ;;  %v12554_v36 = vpop.f32.mrb[168].mxu1  ;;  %v12891_v48 = vadd.f32 %v12879_v40, %v12867_v2 }
 0xd10   :  { %v12555_v7 = vadd.f32 %v12554_v36, %v26378_v11  ;;  %v12556_v60 = vpop.f32.mrb[169].mxu1  ;;  %v12894_v36 = vadd.f32 %v12882_v49, %v12870_v9 }
 0xd11   :  { %v12557_v13 = vadd.f32 %v12556_v60, %v26381_v32  ;;  %v12558_v1 = vpop.f32.mrb[170].mxu1 }
 0xd12   :  { %v12597_v4 = vmax.f32 %v12555_v7, 0.0  ;;  %v12559_v17 = vadd.f32 %v12558_v1, %v26378_v11  ;;  %v12560_v19 = vpop.f32.mrb[171].mxu1  ;;  %v12906_v7 = vunpack.c.h.bf16 %v23827_v15  ;;  %v12915_v15 = vadd.f32 %v12903_v22, %v12891_v48 }
 0xd13   :  { %v12598_v21 = vmax.f32 %v12557_v13, 0.0  ;;  %v12561_v29 = vadd.f32 %v12560_v19, %v26381_v32  ;;  %v12930_v19 = vunpack.c.h.bf16 %v23883_v54 }
 0xd14   :  { %v12621_v26 = vadd.f32 %v12613_v46, %v12597_v4  ;;  %v12599_v51 = vmax.f32 %v12559_v17, 0.0 }
 0xd15   :  { %v12622_v56 = vadd.f32 %v12614_v59, %v12598_v21  ;;  %v12600_v18 = vmax.f32 %v12561_v29, 0.0  ;;  %v12927_v59 = vunpack.c.l.bf16 %v23883_v54  ;;  %v20408_v54 = vld [vmem:[%s27132_s7 + $0x14] ss:$8 sps:$4 sm:$0xff]  }
 0xd16   :  { %v12623_v42 = vadd.f32 %v12615_v45, %v12599_v51  ;;  %v12629_v60 = vmul.f32 0.25, %v12621_v26  ;;  %v20403_v51 = vld [vmem:[%s27132_s7] ss:$8 sps:$4 sm:$0xff]  }
 0xd17   :  { %v12624_v35 = vadd.f32 %v12616_v28, %v12600_v18  ;;  %v12564_v43 = vpop.f32.mrb[172].mxu1  ;;  %v12630_v4 = vmul.f32 0.25, %v12622_v56  ;;  %v12918_v56 = vadd.f32 %v12906_v7, %v12894_v36 }
 0xd18   :  { %v12631_v13 = vmul.f32 0.25, %v12623_v42  ;;  %v12565_v46 = vadd.f32 %v12564_v43, %v26378_v11  ;;  %v12566_v1 = vpop.f32.mrb[173].mxu1  ;;  %v20406_v43 = vld [vmem:[%s27132_s7 + $0x10] ss:$8 sps:$4 sm:$0xff]  }
 0xd19   :  { %v12632_v17 = vmul.f32 0.25, %v12624_v35  ;;  %v12567_v57 = vadd.f32 %v12566_v1, %v26381_v32  ;;  %v12568_v45 = vpop.f32.mrb[174].mxu1  ;;  %v12942_v22 = vadd.f32 %v12930_v19, %v12918_v56  ;;  %v20414_v1 = vld [vmem:[%s27132_s7 + $0x34] ss:$8 sps:$4 sm:$0xff]   ;;  %v20418_v19 = vld [vmem:[%s27132_s7 + $0x50] ss:$8 sps:$4 sm:$0xff]  }
 0xd1a   :  { %v12637_v28 = vpack.c.bf16 %v12631_v13, %v12629_v60  ;;  %v12601_v21 = vmax.f32 %v12565_v46, 0.0  ;;  %v12569_v29 = vadd.f32 %v12568_v45, %v26378_v11  ;;  %v12570_v25 = vpop.f32.mrb[175].mxu1  ;;  %v12939_v11 = vadd.f32 %v12927_v59, %v12915_v15  ;;  %v20420_v45 = vld [vmem:[%s27132_s7 + $0x54] ss:$8 sps:$4 sm:$0xff]   ;;  %v20429_v15 = vld [vmem:[%s27132_s7 + $0x84] ss:$8 sps:$4 sm:$0xff]  }
 0xd1b   :  { %v12638_v40 = vpack.c.bf16 %v12632_v17, %v12630_v4  ;;  %v12602_v49 = vmax.f32 %v12567_v57, 0.0  ;;  %v12571_v26 = vadd.f32 %v12570_v25, %v26381_v32  ;;  %v12954_v13 = vmul.f32 0.25, %v12942_v22  ;;  %v20412_v4 = vld [vmem:[%s27132_s7 + $0x30] ss:$8 sps:$4 sm:$0xff]   ;;  %v20417_v17 = vld [vmem:[%s27132_s7 + $0x44] ss:$8 sps:$4 sm:$0xff]  }
 0xd1c   :  { %v12625_v18 = vadd.f32 %v12617_v47, %v12601_v21  ;;  %v12603_v2 = vmax.f32 %v12569_v29, 0.0  ;;  %v12951_v60 = vmul.f32 0.25, %v12939_v11  ;;  %v20415_v57 = vld [vmem:[%s27132_s7 + $0x40] ss:$8 sps:$4 sm:$0xff]   ;;  %v20426_v29 = vld [vmem:[%s27132_s7 + $0x74] ss:$8 sps:$4 sm:$0xff]   ;;  %v12881_v11 = vunpack.c.h.bf16 %v23759_v37 }
 0xd1d   :  { %v12626_v9 = vadd.f32 %v12618_v58, %v12602_v49  ;;  %v12604_v42 = vmax.f32 %v12571_v26, 0.0  ;;  %17077 = vmatprep.mubr.msk.bf16.mxu1 %vm4730_vm0, %v12638_v40  ;;  %v20411_v58 = vld [vmem:[%s27132_s7 + $0x24] ss:$8 sps:$4 sm:$0xff]   ;;  %v20421_v21 = vld [vmem:[%s27132_s7 + $0x60] ss:$8 sps:$4 sm:$0xff]  }
 0xd1e   :  { %v12627_v35 = vadd.f32 %v12619_v34, %v12603_v2  ;;  %12838 = vmatmul.mubr.bf16.vlgmr.msra.gmra.mrb[176].mxu1 %v12637_v28  ;;  %v12633_v47 = vmul.f32 0.25, %v12625_v18  ;;  %v12963_v59 = vpack.c.bf16 %v12954_v13, %v12951_v60  ;;  %v20423_v28 = vld [vmem:[%s27132_s7 + $0x64] ss:$8 sps:$4 sm:$0xff]   ;;  %v20424_v25 = vld [vmem:[%s27132_s7 + $0x70] ss:$8 sps:$4 sm:$0xff]   ;;  %v12909_v60 = vunpack.c.l.bf16 %v23855_v12 }
 0xd1f   :  { %v12628_v32 = vadd.f32 %v12620_v63, %v12604_v42  ;;  %13270 = vmatpush1.bf16.msra.mxu1 %v20403_v51  ;;  %v12634_v36 = vmul.f32 0.25, %v12626_v9  ;;  %v20409_v63 = vld [vmem:[%s27132_s7 + $0x20] ss:$8 sps:$4 sm:$0xff]   ;;  %v20432_v49 = vld [vmem:[%s27132_s7 + $0x94] ss:$8 sps:$4 sm:$0xff]   ;;  %v12878_v42 = vunpack.c.l.bf16 %v23759_v37 }
 0xd20   :  { %v12635_v48 = vmul.f32 0.25, %v12627_v35  ;;  %13271 = vmatprep.subr.bf16.mxu1 %v20408_v54  ;;  %v20427_v40 = vld [vmem:[%s27132_s7 + $0x80] ss:$8 sps:$4 sm:$0xff]   ;;  %v20430_v26 = vld [vmem:[%s27132_s7 + $0x90] ss:$8 sps:$4 sm:$0xff]   ;;  %v12885_v35 = vunpack.c.l.bf16 %v23793_v52 }
 0xd21   :  { %v12636_v7 = vmul.f32 0.25, %v12628_v32  ;;  %v20435_v51 = vld [vmem:[%s27132_s7 + $0xa4] ss:$8 sps:$4 sm:$0xff]   ;;  %v20433_v56 = vld [vmem:[%s27132_s7 + $0xa0] ss:$8 sps:$4 sm:$0xff]   ;;  %v12888_v32 = vunpack.c.h.bf16 %v23793_v52  ;;  %v12912_v52 = vunpack.c.h.bf16 %v23855_v12 }
 0xd22   :  { %v12639_v46 = vpack.c.bf16 %v12635_v48, %v12633_v47  ;;  %v20438_v18 = vld [vmem:[%s27132_s7 + $0xb4] ss:$8 sps:$4 sm:$0xff]   ;;  %v20436_v2 = vld [vmem:[%s27132_s7 + $0xb0] ss:$8 sps:$4 sm:$0xff]   ;;  %v20441_v54 = vld [vmem:[%s27132_s7 + $0xc4] ss:$8 sps:$4 sm:$0xff]   ;;  %v12869_v47 = vunpack.c.h.bf16 %v23751_v30  ;;  %v12902_v48 = vunpack.c.l.bf16 %v23825_v61 }
 0xd23   :  { %v12640_v34 = vpack.c.bf16 %v12636_v7, %v12634_v36  ;;  %13272 = vmatpush1.bf16.msra.mxu1 %v20406_v43  ;;  %v20439_v9 = vld [vmem:[%s27132_s7 + $0xc0] ss:$8 sps:$4 sm:$0xff]   ;;  %v20444_v22 = vld [vmem:[%s27132_s7 + $0xd4] ss:$8 sps:$4 sm:$0xff]   ;;  %v12866_v43 = vunpack.c.l.bf16 %v23751_v30  ;;  %v20442_v37 = vld [vmem:[%s27132_s7 + $0xd0] ss:$8 sps:$4 sm:$0xff]   ;;  %v12873_v36 = vunpack.c.l.bf16 %v23757_v0  ;;  %v12876_v7 = vunpack.c.h.bf16 %v23757_v0 }
 0xd24   :  { %13273 = vmatprep.subr.bf16.mxu1 %v20411_v58  ;;  %v12905_v58 = vunpack.c.h.bf16 %v23825_v61  ;;  %v12926_v30 = vunpack.c.l.bf16 %v23881_v27  ;;  %v20447_v61 = vld [vmem:[%s27132_s7 + $0xe4] ss:$8 sps:$4 sm:$0xff]   ;;  %v12936_v0 = vunpack.c.h.bf16 %v23887_v23  ;;  %v20445_v12 = vld [vmem:[%s27132_s7 + $0xe0] ss:$8 sps:$4 sm:$0xff]  }
 0xd25   :  { %17078 = vmatprep.mubr.msk.bf16.mxu1 %vm4730_vm0, %v12640_v34  ;;  %v12890_v13 = vadd.f32 %v12878_v42, %v12866_v43  ;;  %v12929_v34 = vunpack.c.h.bf16 %v23881_v27  ;;  %v20456_v43 = vld [vmem:[%s27132_s7 + $0x114] ss:$8 sps:$4 sm:$0xff]  }
 0xd26   :  { %12848 = vmatmul.mubr.bf16.gmra.mrb[180].mxu1 %v12639_v46  ;;  %v12893_v46 = vadd.f32 %v12881_v11, %v12869_v47 }
 0xd27   :  { %13274 = vmatpush1.bf16.msra.mxu1 %v20409_v63  ;;  %13301 = vmatprep.mubr.bf16.mxu1 %v12963_v59  ;;  %v12897_v63 = vadd.f32 %v12885_v35, %v12873_v36  ;;  %v12933_v59 = vunpack.c.l.bf16 %v23887_v23  ;;  %v20451_v35 = vld [vmem:[%s27132_s7 + $0x100] ss:$8 sps:$4 sm:$0xff]  }
 0xd28   :  { %13275 = vmatprep.subr.bf16.mxu1 %v20414_v1  ;;  %v12900_v1 = vadd.f32 %v12888_v32, %v12876_v7  ;;  %v20459_v7 = vld [vmem:[%s27132_s7 + $0x124] ss:$8 sps:$4 sm:$0xff]  }
 0xd2a   :  { %v12924_v27 = vadd.f32 %v12912_v52, %v12900_v1 }
 0xd2b   :  { %13276 = vmatpush1.bf16.msra.mxu1 %v20412_v4  ;;  %v12914_v4 = vadd.f32 %v12902_v48, %v12890_v13  ;;  %v20462_v13 = vld [vmem:[%s27132_s7 + $0x134] ss:$8 sps:$4 sm:$0xff]  }
 0xd2c   :  { %13277 = vmatprep.subr.bf16.mxu1 %v20417_v17  ;;  %v12917_v17 = vadd.f32 %v12905_v58, %v12893_v46  ;;  %v20460_v46 = vld [vmem:[%s27132_s7 + $0x130] ss:$8 sps:$4 sm:$0xff]  }
 0xd2e   :  { %v12941_v23 = vadd.f32 %v12929_v34, %v12917_v17  ;;  %v20463_v34 = vld [vmem:[%s27132_s7 + $0x140] ss:$8 sps:$4 sm:$0xff]  }
 0xd2f   :  { %13278 = vmatpush1.bf16.msra.mxu1 %v20415_v57  ;;  %v12921_v57 = vadd.f32 %v12909_v60, %v12897_v63  ;;  %v20457_v60 = vld [vmem:[%s27132_s7 + $0x120] ss:$8 sps:$4 sm:$0xff]  }
 0xd30   :  { %13279 = vmatprep.subr.bf16.mxu1 %v20420_v45  ;;  %v12884_v45 = vunpack.c.l.bf16 %v23791_v31 }
 0xd33   :  { %13280 = vmatpush1.bf16.msra.mxu1 %v20418_v19  ;;  %v12887_v19 = vunpack.c.h.bf16 %v23791_v31  ;;  %v20448_v31 = vld [vmem:[%s27132_s7 + $0xf0] ss:$8 sps:$4 sm:$0xff]  }
 0xd34   :  { %13281 = vmatprep.subr.bf16.mxu1 %v20423_v28  ;;  %v20450_v28 = vld [vmem:[%s27132_s7 + $0xf4] ss:$8 sps:$4 sm:$0xff]  }
 0xd37   :  { %13282 = vmatpush1.bf16.msra.mxu1 %v20421_v21  ;;  %v12938_v21 = vadd.f32 %v12926_v30, %v12914_v4  ;;  %v20465_v30 = vld [vmem:[%s27132_s7 + $0x144] ss:$8 sps:$4 sm:$0xff]  }
 0xd38   :  { %13283 = vmatprep.subr.bf16.mxu1 %v20426_v29  ;;  %v12945_v29 = vadd.f32 %v12933_v59, %v12921_v57  ;;  %v20468_v59 = vld [vmem:[%s27132_s7 + $0x154] ss:$8 sps:$4 sm:$0xff]  }
 0xd3a   :  { %v12957_v42 = vmul.f32 0.25, %v12945_v29 }
 0xd3b   :  { %13284 = vmatpush1.bf16.msra.mxu1 %v20424_v25  ;;  %v12948_v25 = vadd.f32 %v12936_v0, %v12924_v27  ;;  %v27489_v0 = vld [vmem:[#allocation38_spill] sm:$0xff] }
 0xd3c   :  { %13285 = vmatprep.subr.bf16.mxu1 %v20429_v15  ;;  %v12872_v15 = vunpack.c.l.bf16 %v23755_v33  ;;  %v12868_v4 = vunpack.c.l.bf16 %v27489_v0  ;;  %v12871_v17 = vunpack.c.h.bf16 %v27489_v0 }
 0xd3f   :  { %13286 = vmatpush1.bf16.msra.mxu1 %v20427_v40  ;;  %v12875_v40 = vunpack.c.h.bf16 %v23755_v33  ;;  %v12932_v33 = vunpack.c.l.bf16 %v23885_v41 }
 0xd40   :  { %13287 = vmatprep.subr.bf16.mxu1 %v20432_v49  ;;  %v12908_v49 = vunpack.c.l.bf16 %v23853_v3 }
 0xd43   :  { %13288 = vmatpush1.bf16.msra.mxu1 %v20430_v26  ;;  %v12911_v26 = vunpack.c.h.bf16 %v23853_v3  ;;  %v12960_v3 = vmul.f32 0.25, %v12948_v25  ;;  %v20471_v25 = vld [vmem:[%s27132_s7 + $0x164] ss:$8 sps:$4 sm:$0xff]  }
 0xd44   :  { %13289 = vmatprep.subr.bf16.mxu1 %v20435_v51  ;;  %v12896_v51 = vadd.f32 %v12884_v45, %v12872_v15  ;;  %v20466_v45 = vld [vmem:[%s27132_s7 + $0x150] ss:$8 sps:$4 sm:$0xff]  }
 0xd45   :  { %v12966_v58 = vpack.c.bf16 %v12960_v3, %v12957_v42  ;;  %v27494_v42 = vld [vmem:[#allocation41_spill] sm:$0xff] }
 0xd46   :  { %v12920_v11 = vadd.f32 %v12908_v49, %v12896_v51  ;;  %v20469_v49 = vld [vmem:[%s27132_s7 + $0x160] ss:$8 sps:$4 sm:$0xff]   ;;  %v12910_v3 = vunpack.c.l.bf16 %v27494_v42 }
 0xd47   :  { %13290 = vmatpush1.bf16.msra.mxu1 %v20433_v56  ;;  %v12899_v56 = vadd.f32 %v12887_v19, %v12875_v40 }
 0xd48   :  { %13291 = vmatprep.subr.bf16.mxu1 %v20438_v18  ;;  %v12950_v18 = vmul.f32 0.25, %v12938_v21  ;;  %v12944_v47 = vadd.f32 %v12932_v33, %v12920_v11  ;;  %v27491_v21 = vld [vmem:[#allocation40_spill] sm:$0xff]  ;;  %v12913_v11 = vunpack.c.h.bf16 %v27494_v42 }
 0xd49   :  { %v12931_v29 = vunpack.c.h.bf16 %v27491_v21  ;;  %v20528_v42 = vld [vmem:[%s27131_s8 + $0x294] ss:$8 sps:$4 sm:$0xff]  }
 0xd4b   :  { %13292 = vmatpush1.bf16.msra.mxu1 %v20436_v2  ;;  %v12953_v2 = vmul.f32 0.25, %v12941_v23  ;;  %v12928_v23 = vunpack.c.l.bf16 %v27491_v21  ;;  %v20496_v21 = vld [vmem:[%s27131_s8 + $0x1f0] ss:$8 sps:$4 sm:$0xff]  }
 0xd4c   :  { %13293 = vmatprep.subr.bf16.mxu1 %v20441_v54  ;;  %v20453_v54 = vld [vmem:[%s27132_s7 + $0x104] ss:$8 sps:$4 sm:$0xff]  }
 0xd4d   :  { %v12962_v32 = vpack.c.bf16 %v12953_v2, %v12950_v18 }
 0xd4f   :  { %13294 = vmatpush1.bf16.msra.mxu1 %v20439_v9  ;;  %v12935_v9 = vunpack.c.h.bf16 %v23885_v41  ;;  %v20454_v41 = vld [vmem:[%s27132_s7 + $0x110] ss:$8 sps:$4 sm:$0xff]  }
 0xd50   :  { %13295 = vmatprep.subr.bf16.mxu1 %v20444_v22  ;;  %v12923_v22 = vadd.f32 %v12911_v26, %v12899_v56  ;;  %v27492_v26 = vld [vmem:[#allocation43_spill] sm:$0xff]  ;;  %v20474_v56 = vld [vmem:[%s27132_s7 + $0x174] ss:$8 sps:$4 sm:$0xff]  }
 0xd51   :  { %v12889_v51 = vunpack.c.h.bf16 %v27492_v26 }
 0xd52   :  { %v12947_v48 = vadd.f32 %v12935_v9, %v12923_v22  ;;  %v20472_v22 = vld [vmem:[%s27132_s7 + $0x170] ss:$8 sps:$4 sm:$0xff]  }
 0xd53   :  { %13296 = vmatpush1.bf16.msra.mxu1 %v20442_v37  ;;  %v12956_v37 = vmul.f32 0.25, %v12944_v47 }
 0xd54   :  { %13297 = vmatprep.subr.bf16.mxu1 %v20447_v61  ;;  %v12959_v36 = vmul.f32 0.25, %v12947_v48  ;;  %v27488_v61 = vld [vmem:[#allocation36_spill] sm:$0xff]  ;;  %v20477_v48 = vld [vmem:[%s27131_s8 + $0x184] ss:$8 sps:$4 sm:$0xff]  }
 0xd55   :  { %v12880_v63 = vunpack.c.l.bf16 %v27488_v61  ;;  %v12883_v1 = vunpack.c.h.bf16 %v27488_v61 }
 0xd56   :  { %v12965_v52 = vpack.c.bf16 %v12959_v36, %v12956_v37 }
 0xd57   :  { %13298 = vmatpush1.bf16.msra.mxu1 %v20445_v12  ;;  %v27490_v12 = vld [vmem:[#allocation42_spill] sm:$0xff]  ;;  %v12892_v19 = vadd.f32 %v12880_v63, %v12868_v4  ;;  %v20486_v4 = vld [vmem:[%s27131_s8 + $0x1b4] ss:$8 sps:$4 sm:$0xff]  }
 0xd58   :  { %13299 = vmatprep.subr.bf16.mxu1 %v20450_v28  ;;  %v12904_v57 = vunpack.c.l.bf16 %v27490_v12  ;;  %v12907_v27 = vunpack.c.h.bf16 %v27490_v12  ;;  %v12895_v28 = vadd.f32 %v12883_v1, %v12871_v17  ;;  %v20483_v1 = vld [vmem:[%s27131_s8 + $0x1a4] ss:$8 sps:$4 sm:$0xff]   ;;  %v20484_v17 = vld [vmem:[%s27131_s8 + $0x1b0] ss:$8 sps:$4 sm:$0xff]  }
 0xd59   :  { %v20489_v12 = vld [vmem:[%s27131_s8 + $0x1c4] ss:$8 sps:$4 sm:$0xff]  }
 0xd5a   :  { %v12916_v15 = vadd.f32 %v12904_v57, %v12892_v19  ;;  %v12919_v40 = vadd.f32 %v12907_v27, %v12895_v28  ;;  %v20487_v57 = vld [vmem:[%s27131_s8 + $0x1c0] ss:$8 sps:$4 sm:$0xff]   ;;  %v20492_v27 = vld [vmem:[%s27131_s8 + $0x1d4] ss:$8 sps:$4 sm:$0xff]  }
 0xd5b   :  { %13300 = vmatpush1.bf16.msra.mxu1 %v20448_v31  ;;  %v12886_v31 = vunpack.c.l.bf16 %v27492_v26  ;;  %v20493_v19 = vld [vmem:[%s27131_s8 + $0x1e0] ss:$8 sps:$4 sm:$0xff]   ;;  %v20498_v28 = vld [vmem:[%s27131_s8 + $0x1f4] ss:$8 sps:$4 sm:$0xff]  }
 0xd5c   :  { %13322 = vmatprep.subr.bf16.mxu1 %v20453_v54  ;;  %v12940_v18 = vadd.f32 %v12928_v23, %v12916_v15  ;;  %v12943_v2 = vadd.f32 %v12931_v29, %v12919_v40  ;;  %v27493_v54 = vld [vmem:[#allocation37_spill] sm:$0xff]  ;;  %v20501_v23 = vld [vmem:[%s27131_s8 + $0x204] ss:$8 sps:$4 sm:$0xff]   ;;  %v20499_v29 = vld [vmem:[%s27131_s8 + $0x200] ss:$8 sps:$4 sm:$0xff]  }
 0xd5d   :  { %v12874_v33 = vunpack.c.l.bf16 %v27493_v54  ;;  %v12877_v9 = vunpack.c.h.bf16 %v27493_v54  ;;  %v20502_v15 = vld [vmem:[%s27131_s8 + $0x210] ss:$8 sps:$4 sm:$0xff]   ;;  %v20507_v40 = vld [vmem:[%s27131_s8 + $0x224] ss:$8 sps:$4 sm:$0xff]   ;;  %v20510_v26 = vld [vmem:[%s27131_s8 + $0x234] ss:$8 sps:$4 sm:$0xff]  }
 0xd5e   :  { %13302 = vmatmul.mubr.bf16.vlgmr.msra.gmra.mrb[184].mxu1 %v12962_v32  ;;  %v12955_v47 = vmul.f32 0.25, %v12943_v2  ;;  %v20522_v2 = vld [vmem:[%s27131_s8 + $0x274] ss:$8 sps:$4 sm:$0xff]   ;;  %v20520_v54 = vld [vmem:[%s27131_s8 + $0x270] ss:$8 sps:$4 sm:$0xff]  }
 0xd5f   :  { %13311 = vmatprep.mubr.bf16.mxu1 %v12966_v58  ;;  %13323 = vmatpush1.bf16.msra.mxu1 %v20451_v35  ;;  %v12898_v35 = vadd.f32 %v12886_v31, %v12874_v33  ;;  %v12901_v32 = vadd.f32 %v12889_v51, %v12877_v9  ;;  %v27495_v58 = vld [vmem:[#allocation44_spill] sm:$0xff]  ;;  %v20513_v51 = vld [vmem:[%s27131_s8 + $0x244] ss:$8 sps:$4 sm:$0xff]   ;;  %v20523_v9 = vld [vmem:[%s27131_s8 + $0x280] ss:$8 sps:$4 sm:$0xff]  }
 0xd60   :  { %13324 = vmatprep.subr.bf16.mxu1 %v20456_v43  ;;  %v12952_v43 = vmul.f32 0.25, %v12940_v18  ;;  %v12937_v37 = vunpack.c.h.bf16 %v27495_v58  ;;  %v20508_v31 = vld [vmem:[%s27131_s8 + $0x230] ss:$8 sps:$4 sm:$0xff]   ;;  %v20525_v33 = vld [vmem:[%s27131_s8 + $0x284] ss:$8 sps:$4 sm:$0xff]  }
 0xd61   :  { %v12922_v36 = vadd.f32 %v12910_v3, %v12898_v35  ;;  %v20514_v18 = vld [vmem:[%s27131_s8 + $0x250] ss:$8 sps:$4 sm:$0xff]  }
 0xd62   :  { %v20526_v3 = vld [vmem:[%s27131_s8 + $0x290] ss:$8 sps:$4 sm:$0xff]  }
 0xd63   :  { %13325 = vmatpush1.bf16.msra.mxu1 %v20454_v41  ;;  %v12934_v41 = vunpack.c.l.bf16 %v27495_v58  ;;  %v20532_v58 = vld [vmem:[%s27131_s8 + $0x2b0] ss:$8 sps:$4 sm:$0xff]  }
 0xd64   :  { %13326 = vmatprep.subr.bf16.mxu1 %v20459_v7  ;;  %v12925_v7 = vadd.f32 %v12913_v11, %v12901_v32  ;;  %v20531_v11 = vld [vmem:[%s27131_s8 + $0x2a4] ss:$8 sps:$4 sm:$0xff]  }
 0xd66   :  { %13312 = vmatmul.mubr.bf16.gmra.mrb[188].mxu1 %v12965_v52  ;;  %v12964_v52 = vpack.c.bf16 %v12955_v47, %v12952_v43  ;;  %v20529_v43 = vld [vmem:[%s27131_s8 + $0x2a0] ss:$8 sps:$4 sm:$0xff]  }
 0xd67   :  { %13327 = vmatpush1.bf16.msra.mxu1 %v20457_v60  ;;  %13354 = vmatprep.mubr.bf16.mxu1 %v27309_v53  ;;  %v20475_v60 = vld [vmem:[%s27131_s8 + $0x180] ss:$8 sps:$4 sm:$0xff]  }
 0xd68   :  { %13328 = vmatprep.subr.bf16.mxu1 %v20462_v13  ;;  %v20480_v13 = vld [vmem:[%s27131_s8 + $0x194] ss:$8 sps:$4 sm:$0xff]  }
 0xd6b   :  { %13329 = vmatpush1.bf16.msra.mxu1 %v20460_v46  ;;  %v12946_v46 = vadd.f32 %v12934_v41, %v12922_v36  ;;  %v20537_v41 = vld [vmem:[%s27131_s8 + $0x2c4] ss:$8 sps:$4 sm:$0xff]  }
 0xd6c   :  { %13330 = vmatprep.subr.bf16.mxu1 %v20465_v30  ;;  %v12949_v30 = vadd.f32 %v12937_v37, %v12925_v7 }
 0xd6d   :  { %v12958_v61 = vmul.f32 0.25, %v12946_v46  ;;  %v20538_v46 = vld [vmem:[%s27131_s8 + $0x2d0] ss:$8 sps:$4 sm:$0xff]  }
 0xd6e   :  { %v12961_v63 = vmul.f32 0.25, %v12949_v30  ;;  %v20543_v30 = vld [vmem:[%s27131_s8 + $0x2e4] ss:$8 sps:$4 sm:$0xff]  }
 0xd6f   :  { %13331 = vmatpush1.bf16.msra.mxu1 %v20463_v34  ;;  %v20478_v34 = vld [vmem:[%s27131_s8 + $0x190] ss:$8 sps:$4 sm:$0xff]  }
 0xd70   :  { %13332 = vmatprep.subr.bf16.mxu1 %v20468_v59  ;;  %v20481_v59 = vld [vmem:[%s27131_s8 + $0x1a0] ss:$8 sps:$4 sm:$0xff]   ;;  %v12967_v0 = vpack.c.bf16 %v12961_v63, %v12958_v61  ;;  %v20546_v61 = vld [vmem:[%s27131_s8 + $0x2f4] ss:$8 sps:$4 sm:$0xff]   ;;  %v20544_v63 = vld [vmem:[%s27131_s8 + $0x2f0] ss:$8 sps:$4 sm:$0xff]  }
 0xd73   :  { %13333 = vmatpush1.bf16.msra.mxu1 %v20466_v45  ;;  %v20495_v45 = vld [vmem:[%s27131_s8 + $0x1e4] ss:$8 sps:$4 sm:$0xff]  }
 0xd74   :  { %13334 = vmatprep.subr.bf16.mxu1 %v20471_v25  ;;  %v20504_v25 = vld [vmem:[%s27131_s8 + $0x214] ss:$8 sps:$4 sm:$0xff]  }
 0xd77   :  { %13335 = vmatpush1.bf16.msra.mxu1 %v20469_v49  ;;  %v20505_v49 = vld [vmem:[%s27131_s8 + $0x220] ss:$8 sps:$4 sm:$0xff]  }
 0xd78   :  { %13336 = vmatprep.subr.bf16.mxu1 %v20474_v56  ;;  %v20511_v56 = vld [vmem:[%s27131_s8 + $0x240] ss:$8 sps:$4 sm:$0xff]  }
 0xd7b   :  { %13337 = vmatpush1.bf16.msra.mxu1 %v20472_v22 }
 0xd7c   :  { %14308 = vmatprep.subr.bf16.mxu1 %v20477_v48  ;;  %v20534_v48 = vld [vmem:[%s27131_s8 + $0x2b4] ss:$8 sps:$4 sm:$0xff]  }
 0xd7e   :  { %13355 = vmatmul.mubr.bf16.vlgmr.msra.gmra.mrb[184].mxu1 %v12964_v52 }
 0xd7f   :  { %14309 = vmatpush1.bf16.msra.mxu1 %v20475_v60  ;;  %13364 = vmatprep.mubr.bf16.mxu1 %v27309_v53  ;;  %v20535_v60 = vld [vmem:[%s27131_s8 + $0x2c0] ss:$8 sps:$4 sm:$0xff]  }
 0xd80   :  { %14310 = vmatprep.subr.bf16.mxu1 %v20480_v13  ;;  %v20540_v13 = vld [vmem:[%s27131_s8 + $0x2d4] ss:$8 sps:$4 sm:$0xff]  }
 0xd83   :  { %14311 = vmatpush1.bf16.msra.mxu1 %v20478_v34  ;;  %v20541_v34 = vld [vmem:[%s27131_s8 + $0x2e0] ss:$8 sps:$4 sm:$0xff]  }
 0xd84   :  { %14312 = vmatprep.subr.bf16.mxu1 %v20483_v1  ;;  %v20549_v1 = vld [vmem:[%s27131_s8 + $0x304] ss:$8 sps:$4 sm:$0xff]  }
 0xd86   :  { %13365 = vmatmul.mubr.bf16.gmra.mrb[188].mxu1 %v12967_v0 }
 0xd87   :  { %14313 = vmatpush1.bf16.msra.mxu1 %v20481_v59  ;;  %17370 = vmatprep.mubr.msk.bf16.mxu1 %vm4730_vm0, %v26360_v55  ;;  %v20490_v55 = vld [vmem:[%s27131_s8 + $0x1d0] ss:$8 sps:$4 sm:$0xff]  }
 0xd88   :  { %14314 = vmatprep.subr.bf16.mxu1 %v20486_v4 }
 0xd8b   :  { %14315 = vmatpush1.bf16.msra.mxu1 %v20484_v17 }
 0xd8c   :  { %14316 = vmatprep.subr.bf16.mxu1 %v20489_v12 }
 0xd8f   :  { %14317 = vmatpush1.bf16.msra.mxu1 %v20487_v57 }
 0xd90   :  { %14318 = vmatprep.subr.bf16.mxu1 %v20492_v27 }
 0xd93   :  { %14319 = vmatpush1.bf16.msra.mxu1 %v20490_v55 }
 0xd94   :  { %14320 = vmatprep.subr.bf16.mxu1 %v20495_v45  ;;  %v17224_v45 = vld [vmem:[%s27133_s9 + $0x2] sm:$0x3] }
 0xd97   :  { %14321 = vmatpush1.bf16.msra.mxu1 %v20493_v19  ;;  %v17345_v19 = vld [vmem:[%s27133_s9 + $0xa] sm:$0x3] }
 0xd98   :  { %14322 = vmatprep.subr.bf16.mxu1 %v20498_v28  ;;  %v13486_v28 = vrot.slane %v17224_v45, %v26344_v14 }
 0xd9b   :  { %14323 = vmatpush1.bf16.msra.mxu1 %v20496_v21  ;;  %v13490_v21 = vrot.slane %v17224_v45, %v26346_v8 }
 0xd9c   :  { %14324 = vmatprep.subr.bf16.mxu1 %v20501_v23  ;;  %v14175_v23 = vrot.slane %v17345_v19, %v26344_v14 }
 0xd9f   :  { %14325 = vmatpush1.bf16.msra.mxu1 %v20499_v29  ;;  %v14179_v29 = vrot.slane %v17345_v19, %v26346_v8 }
 0xda0   :  { %14326 = vmatprep.subr.bf16.mxu1 %v20504_v25  ;;  %v17962_v25 = vadd.f32 %v26350_v50, %v13486_v28 }
 0xda3   :  { %14327 = vmatpush1.bf16.msra.mxu1 %v20502_v15  ;;  %v17963_v15 = vadd.f32 %v26352_v10, %v13490_v21 }
 0xda4   :  { %14328 = vmatprep.subr.bf16.mxu1 %v20507_v40 }
 0xda7   :  { %14329 = vmatpush1.bf16.msra.mxu1 %v20505_v49  ;;  %v17964_v49 = vadd.f32 %v26354_v62, %v13486_v28 }
 0xda8   :  { %14330 = vmatprep.subr.bf16.mxu1 %v20510_v26 }
 0xdab   :  { %14331 = vmatpush1.bf16.msra.mxu1 %v20508_v31 }
 0xdac   :  { %14545 = vmatprep.subr.bf16.mxu1 %v20513_v51  ;;  %v17965_v51 = vadd.f32 %v26356_v39, %v13490_v21 }
 0xdae   :  { %14341 = vmatmul.mubr.bf16.vlgmr.msra.gmra.mrb[192].mxu1 %v26358_v16  ;;  %v20516_v16 = vld [vmem:[%s27131_s8 + $0x254] ss:$8 sps:$4 sm:$0xff]  }
 0xdaf   :  { %17371 = vmatprep.mubr.msk.bf16.mxu1 %vm4730_vm0, %v26372_v6  ;;  %14546 = vmatpush1.bf16.msra.mxu1 %v20511_v56  ;;  %v20517_v6 = vld [vmem:[%s27131_s8 + $0x260] ss:$8 sps:$4 sm:$0xff]  }
 0xdb0   :  { %14547 = vmatprep.subr.bf16.mxu1 %v20516_v16  ;;  %v14132_v16 = vmax.f32 %v17962_v25, 0.0 }
 0xdb3   :  { %14548 = vmatpush1.bf16.msra.mxu1 %v20514_v18 }
 0xdb6   :  { %14351 = vmatmul.mubr.bf16.gmra.mrb[196].mxu1 %v26370_v20  ;;  %v20519_v20 = vld [vmem:[%s27131_s8 + $0x264] ss:$8 sps:$4 sm:$0xff]  }
 0xdb7   :  { %14549 = vmatprep.subr.bf16.mxu1 %v20519_v20 }
 0xdb8   :  { %14550 = vmatpush1.bf16.msra.mxu1 %v20517_v6 }
 0xdb9   :  { %14551 = vmatprep.subr.bf16.mxu1 %v20522_v2 }
 0xdbc   :  { %14552 = vmatpush1.bf16.msra.mxu1 %v20520_v54  ;;  %v14133_v54 = vmax.f32 %v17963_v15, 0.0 }
 0xdbd   :  { %14553 = vmatprep.subr.bf16.mxu1 %v20525_v33 }
 0xdc0   :  { %14554 = vmatpush1.bf16.msra.mxu1 %v20523_v9 }
 0xdc1   :  { %14555 = vmatprep.subr.bf16.mxu1 %v20528_v42  ;;  %v14134_v42 = vmax.f32 %v17964_v49, 0.0 }
 0xdc4   :  { %14556 = vmatpush1.bf16.msra.mxu1 %v20526_v3  ;;  %v14135_v3 = vmax.f32 %v17965_v51, 0.0 }
 0xdc5   :  { %14557 = vmatprep.subr.bf16.mxu1 %v20531_v11 }
 0xdc8   :  { %14558 = vmatpush1.bf16.msra.mxu1 %v20529_v43  ;;  %v17966_v43 = vadd.f32 %v26362_v5, %v13486_v28  ;;  %v20547_v5 = vld [vmem:[%s27131_s8 + $0x300] ss:$8 sps:$4 sm:$0xff]  }
 0xdc9   :  { %14559 = vmatprep.subr.bf16.mxu1 %v20534_v48  ;;  %v17967_v48 = vadd.f32 %v26364_v38, %v13490_v21 }
 0xdcc   :  { %14560 = vmatpush1.bf16.msra.mxu1 %v20532_v58 }
 0xdcd   :  { %14561 = vmatprep.subr.bf16.mxu1 %v20537_v41 }
 0xdd0   :  { %14562 = vmatpush1.bf16.msra.mxu1 %v20535_v60  ;;  %v17968_v60 = vadd.f32 %v26366_v44, %v13486_v28  ;;  %v14137_v28 = vmax.f32 %v17967_v48, 0.0  ;;  %v20568_v48 = vld [vmem:[%s27131_s8 + $0x370] ss:$8 sps:$4 sm:$0xff]  }
 0xdd1   :  { %14563 = vmatprep.subr.bf16.mxu1 %v20540_v13 }
 0xdd2   :  { %v14138_v15 = vmax.f32 %v17968_v60, 0.0  ;;  %v20571_v60 = vld [vmem:[%s27131_s8 + $0x380] ss:$8 sps:$4 sm:$0xff]  }
 0xdd4   :  { %14564 = vmatpush1.bf16.msra.mxu1 %v20538_v46 }
 0xdd5   :  { %14565 = vmatprep.subr.bf16.mxu1 %v20543_v30  ;;  %v17969_v30 = vadd.f32 %v26368_v24, %v13490_v21  ;;  %v20552_v24 = vld [vmem:[%s27131_s8 + $0x314] ss:$8 sps:$4 sm:$0xff]  }
 0xdd8   :  { %14566 = vmatpush1.bf16.msra.mxu1 %v20541_v34 }
 0xdd9   :  { %14567 = vmatprep.subr.bf16.mxu1 %v20546_v61 }
 0xddc   :  { %14568 = vmatpush1.bf16.msra.mxu1 %v20544_v63 }
 0xddd   :  { %14782 = vmatprep.subr.bf16.mxu1 %v20549_v1  ;;  %v14136_v1 = vmax.f32 %v17966_v43, 0.0  ;;  %v20570_v43 = vld [vmem:[%s27131_s8 + $0x374] ss:$8 sps:$4 sm:$0xff]  }
 0xdf1   :  { %v26725_v22 = vpop.f32.mrb[176].mxu1 }
 0xdf2   :  { %v26727_v35 = vpop.f32.mrb[177].mxu1 }
 0xdf3   :  { %v26729_v32 = vpop.f32.mrb[178].mxu1 }
 0xdf4   :  { %v26734_v47 = vpop.f32.mrb[179].mxu1 }
 0xdf9   :  { %v26745_v37 = vpop.f32.mrb[180].mxu1 }
 0xdfa   :  { %v26747_v36 = vpop.f32.mrb[181].mxu1 }
 0xdfb   :  { %v26749_v7 = vpop.f32.mrb[182].mxu1 }
 0xdfc   :  { %v26754_v52 = vpop.f32.mrb[183].mxu1 }
 0xe51   :  { %v26777_v59 = vpop.f32.mrb[184].mxu1 }
 0xe52   :  { %v26779_v0 = vpop.f32.mrb[185].mxu1 }
 0xe53   :  { %v26781_v4 = vpop.f32.mrb[186].mxu1 }
 0xe54   :  { %v26783_v17 = vpop.f32.mrb[187].mxu1 }
 0xe59   :  { %v26785_v12 = vpop.f32.mrb[188].mxu1 }
 0xe5a   :  { %v26787_v57 = vpop.f32.mrb[189].mxu1 }
 0xe5b   :  { %v26789_v27 = vpop.f32.mrb[190].mxu1 }
 0xe5c   :  { %v26791_v55 = vpop.f32.mrb[191].mxu1 }
 0xe81   :  { %v14342_v40 = vpop.f32.mrb[192].mxu1 }
 0xe82   :  { %v14343_v26 = vadd.f32 %v14342_v40, %v14175_v23  ;;  %v14344_v31 = vpop.f32.mrb[193].mxu1 }
 0xe83   :  { %v14345_v56 = vadd.f32 %v14344_v31, %v14179_v29  ;;  %v14346_v18 = vpop.f32.mrb[194].mxu1 }
 0xe84   :  { %v14361_v20 = vmax.f32 %v14343_v26, 0.0  ;;  %v14347_v6 = vadd.f32 %v14346_v18, %v14175_v23  ;;  %v14348_v2 = vpop.f32.mrb[195].mxu1  ;;  %v14139_v26 = vmax.f32 %v17969_v30, 0.0  ;;  %v20579_v30 = vld [vmem:[%s27131_s8 + $0x3a4] ss:$8 sps:$4 sm:$0xff]  }
 0xe85   :  { %v14362_v33 = vmax.f32 %v14345_v56, 0.0  ;;  %v14349_v9 = vadd.f32 %v14348_v2, %v14179_v29  ;;  %v20558_v2 = vld [vmem:[%s27131_s8 + $0x334] ss:$8 sps:$4 sm:$0xff]  }
 0xe86   :  { %v26807_v50 = vadd.f32 %v14361_v20, %v14132_v16  ;;  %v14363_v10 = vmax.f32 %v14347_v6, 0.0  ;;  %v20553_v20 = vld [vmem:[%s27131_s8 + $0x320] ss:$8 sps:$4 sm:$0xff]  }
 0xe87   :  { %v26809_v11 = vadd.f32 %v14362_v33, %v14133_v54  ;;  %v14364_v62 = vmax.f32 %v14349_v9, 0.0  ;;  %v20556_v54 = vld [vmem:[%s27131_s8 + $0x330] ss:$8 sps:$4 sm:$0xff]   ;;  %v20561_v33 = vld [vmem:[%s27131_s8 + $0x344] ss:$8 sps:$4 sm:$0xff]  }
 0xe88   :  { %v26812_v39 = vadd.f32 %v14363_v10, %v14134_v42  ;;  %v20559_v9 = vld [vmem:[%s27131_s8 + $0x340] ss:$8 sps:$4 sm:$0xff]   ;;  %v20564_v42 = vld [vmem:[%s27131_s8 + $0x354] ss:$8 sps:$4 sm:$0xff]   ;;  %v20562_v10 = vld [vmem:[%s27131_s8 + $0x350] ss:$8 sps:$4 sm:$0xff]  }
 0xe89   :  { %v26815_v58 = vadd.f32 %v14364_v62, %v14135_v3  ;;  %v14352_v41 = vpop.f32.mrb[196].mxu1  ;;  %v20567_v3 = vld [vmem:[%s27131_s8 + $0x364] ss:$8 sps:$4 sm:$0xff]   ;;  %v20565_v62 = vld [vmem:[%s27131_s8 + $0x360] ss:$8 sps:$4 sm:$0xff]  }
 0xe8a   :  { %v14353_v13 = vadd.f32 %v14352_v41, %v14175_v23  ;;  %v14354_v46 = vpop.f32.mrb[197].mxu1  ;;  %v14402_v38 = vpack.c.bf16 %v26812_v39, %v26807_v50  ;;  %v20573_v41 = vld [vmem:[%s27131_s8 + $0x384] ss:$8 sps:$4 sm:$0xff]  }
 0xe8b   :  { %v14355_v34 = vadd.f32 %v14354_v46, %v14179_v29  ;;  %v14356_v61 = vpop.f32.mrb[198].mxu1  ;;  %v14403_v63 = vpack.c.bf16 %v26815_v58, %v26809_v11  ;;  %v20574_v46 = vld [vmem:[%s27131_s8 + $0x390] ss:$8 sps:$4 sm:$0xff]  }
 0xe8c   :  { %v14365_v45 = vmax.f32 %v14353_v13, 0.0  ;;  %v14357_v19 = vadd.f32 %v14356_v61, %v14175_v23  ;;  %v14358_v44 = vpop.f32.mrb[199].mxu1  ;;  %v20550_v23 = vld [vmem:[%s27131_s8 + $0x310] ss:$8 sps:$4 sm:$0xff]   ;;  %v20576_v13 = vld [vmem:[%s27131_s8 + $0x394] ss:$8 sps:$4 sm:$0xff]  }
 0xe8d   :  { %v14366_v21 = vmax.f32 %v14355_v34, 0.0  ;;  %v14359_v25 = vadd.f32 %v14358_v44, %v14179_v29  ;;  %17421 = vmatprep.mubr.msk.bf16.mxu1 %vm4730_vm0, %v14403_v63  ;;  %v20555_v29 = vld [vmem:[%s27131_s8 + $0x324] ss:$8 sps:$4 sm:$0xff]   ;;  %v20577_v34 = vld [vmem:[%s27131_s8 + $0x3a0] ss:$8 sps:$4 sm:$0xff]  }
 0xe8e   :  { %v26830_v40 = vadd.f32 %v14365_v45, %v14136_v1  ;;  %v14367_v49 = vmax.f32 %v14357_v19, 0.0  ;;  %14578 = vmatmul.mubr.bf16.vlgmr.msra.gmra.mrb[200].mxu1 %v14402_v38  ;;  %v20582_v61 = vld [vmem:[%s27131_s8 + $0x3b4] ss:$8 sps:$4 sm:$0xff]   ;;  %v20580_v63 = vld [vmem:[%s27131_s8 + $0x3b0] ss:$8 sps:$4 sm:$0xff]  }
 0xe8f   :  { %v26832_v31 = vadd.f32 %v14366_v21, %v14137_v28  ;;  %v14368_v51 = vmax.f32 %v14359_v25, 0.0  ;;  %14783 = vmatpush1.bf16.msra.mxu1 %v20547_v5  ;;  %v17079_v5 = vld [vmem:[%s27133_s9 + $0x4] sm:$0x3]  ;;  %v17396_v1 = vld [vmem:[%s27133_s9 + $0xc] sm:$0x3] }
 0xe90   :  { %v26837_v56 = vadd.f32 %v14367_v49, %v14138_v15  ;;  %14784 = vmatprep.subr.bf16.mxu1 %v20552_v24  ;;  %v13022_v38 = vrot.slane %v17079_v5, %v26344_v14  ;;  %v13026_v45 = vrot.slane %v17079_v5, %v26346_v8  ;;  %v14412_v19 = vrot.slane %v17396_v1, %v26344_v14 }
 0xe91   :  { %v26842_v18 = vadd.f32 %v14368_v51, %v14139_v26  ;;  %v14416_v44 = vrot.slane %v17396_v1, %v26346_v8 }
 0xe92   :  { %v14404_v6 = vpack.c.bf16 %v26837_v56, %v26830_v40  ;;  %v17954_v24 = vadd.f32 %v26777_v59, %v13022_v38  ;;  %v17955_v28 = vadd.f32 %v26779_v0, %v13026_v45  ;;  %v17956_v25 = vadd.f32 %v26781_v4, %v13022_v38 }
 0xe93   :  { %v14405_v16 = vpack.c.bf16 %v26842_v18, %v26832_v31  ;;  %14785 = vmatpush1.bf16.msra.mxu1 %v20550_v23  ;;  %v17957_v26 = vadd.f32 %v26783_v17, %v13026_v45 }
 0xe94   :  { %14786 = vmatprep.subr.bf16.mxu1 %v20555_v29  ;;  %v13375_v29 = vmax.f32 %v17954_v24, 0.0 }
 0xe95   :  { %17422 = vmatprep.mubr.msk.bf16.mxu1 %vm4730_vm0, %v14405_v16 }
 0xe96   :  { %14588 = vmatmul.mubr.bf16.gmra.mrb[204].mxu1 %v14404_v6 }
 0xe97   :  { %14787 = vmatpush1.bf16.msra.mxu1 %v20553_v20 }
 0xe98   :  { %14788 = vmatprep.subr.bf16.mxu1 %v20558_v2  ;;  %v13376_v2 = vmax.f32 %v17955_v28, 0.0 }
 0xe9b   :  { %14789 = vmatpush1.bf16.msra.mxu1 %v20556_v54 }
 0xe9c   :  { %14790 = vmatprep.subr.bf16.mxu1 %v20561_v33 }
 0xe9f   :  { %14791 = vmatpush1.bf16.msra.mxu1 %v20559_v9  ;;  %v13377_v9 = vmax.f32 %v17956_v25, 0.0 }
 0xea0   :  { %14792 = vmatprep.subr.bf16.mxu1 %v20564_v42  ;;  %v13378_v42 = vmax.f32 %v17957_v26, 0.0 }
 0xea3   :  { %14793 = vmatpush1.bf16.msra.mxu1 %v20562_v10 }
 0xea4   :  { %14794 = vmatprep.subr.bf16.mxu1 %v20567_v3  ;;  %v17958_v3 = vadd.f32 %v26785_v12, %v13022_v38 }
 0xea7   :  { %14795 = vmatpush1.bf16.msra.mxu1 %v20565_v62  ;;  %v17959_v62 = vadd.f32 %v26787_v57, %v13026_v45 }
 0xea8   :  { %14796 = vmatprep.subr.bf16.mxu1 %v20570_v43 }
 0xea9   :  { %v13380_v24 = vmax.f32 %v17959_v62, 0.0  ;;  %v20606_v62 = vld [vmem:[%s27131_s8 + $0x434] ss:$8 sps:$4 sm:$0xff]  }
 0xeab   :  { %14797 = vmatpush1.bf16.msra.mxu1 %v20568_v48 }
 0xeac   :  { %14798 = vmatprep.subr.bf16.mxu1 %v20573_v41  ;;  %v17960_v41 = vadd.f32 %v26789_v27, %v13022_v38 }
 0xeae   :  { %v13381_v27 = vmax.f32 %v17960_v41, 0.0  ;;  %v20609_v41 = vld [vmem:[%s27131_s8 + $0x444] ss:$8 sps:$4 sm:$0xff]  }
 0xeaf   :  { %14799 = vmatpush1.bf16.msra.mxu1 %v20571_v60 }
 0xeb0   :  { %14800 = vmatprep.subr.bf16.mxu1 %v20576_v13 }
 0xeb3   :  { %14801 = vmatpush1.bf16.msra.mxu1 %v20574_v46  ;;  %v17961_v46 = vadd.f32 %v26791_v55, %v13026_v45 }
 0xeb4   :  { %14802 = vmatprep.subr.bf16.mxu1 %v20579_v30 }
 0xeb5   :  { %v13382_v45 = vmax.f32 %v17961_v46, 0.0  ;;  %v20610_v46 = vld [vmem:[%s27131_s8 + $0x450] ss:$8 sps:$4 sm:$0xff]  }
 0xeb7   :  { %14803 = vmatpush1.bf16.msra.mxu1 %v20577_v34 }
 0xeb8   :  { %14804 = vmatprep.subr.bf16.mxu1 %v20582_v61 }
 0xebb   :  { %14805 = vmatpush1.bf16.msra.mxu1 %v20580_v63  ;;  %v13379_v63 = vmax.f32 %v17958_v3, 0.0  ;;  %v20601_v3 = vld [vmem:[%s27131_s8 + $0x420] ss:$8 sps:$4 sm:$0xff]  }
 0xf61   :  { %v14579_v21 = vpop.f32.mrb[200].mxu1 }
 0xf62   :  { %v14580_v15 = vadd.f32 %v14579_v21, %v14412_v19  ;;  %v14581_v49 = vpop.f32.mrb[201].mxu1 }
 0xf63   :  { %v14582_v51 = vadd.f32 %v14581_v49, %v14416_v44  ;;  %v14583_v23 = vpop.f32.mrb[202].mxu1 }
 0xf64   :  { %v14598_v16 = vmax.f32 %v14580_v15, 0.0  ;;  %v14584_v20 = vadd.f32 %v14583_v23, %v14412_v19  ;;  %v14585_v6 = vpop.f32.mrb[203].mxu1  ;;  %v20583_v23 = vld [vmem:[%s27131_s8 + $0x3c0] ss:$8 sps:$4 sm:$0xff]  }
 0xf65   :  { %v14599_v54 = vmax.f32 %v14582_v51, 0.0  ;;  %v14586_v33 = vadd.f32 %v14585_v6, %v14416_v44  ;;  %v20585_v51 = vld [vmem:[%s27131_s8 + $0x3c4] ss:$8 sps:$4 sm:$0xff]   ;;  %v20589_v6 = vld [vmem:[%s27131_s8 + $0x3e0] ss:$8 sps:$4 sm:$0xff]  }
 0xf66   :  { %v26920_v59 = vadd.f32 %v14598_v16, %v13375_v29  ;;  %v14600_v0 = vmax.f32 %v14584_v20, 0.0  ;;  %15094 = vmatprep.subr.bf16.mxu1 %v20585_v51  ;;  %v20588_v29 = vld [vmem:[%s27131_s8 + $0x3d4] ss:$8 sps:$4 sm:$0xff]   ;;  %v20586_v16 = vld [vmem:[%s27131_s8 + $0x3d0] ss:$8 sps:$4 sm:$0xff]  }
 0xf67   :  { %v26922_v10 = vadd.f32 %v14599_v54, %v13376_v2  ;;  %v14601_v4 = vmax.f32 %v14586_v33, 0.0  ;;  %v20591_v20 = vld [vmem:[%s27131_s8 + $0x3e4] ss:$8 sps:$4 sm:$0xff]   ;;  %v20594_v2 = vld [vmem:[%s27131_s8 + $0x3f4] ss:$8 sps:$4 sm:$0xff]  }
 0xf68   :  { %v26925_v17 = vadd.f32 %v14600_v0, %v13377_v9  ;;  %v20592_v54 = vld [vmem:[%s27131_s8 + $0x3f0] ss:$8 sps:$4 sm:$0xff]   ;;  %v20597_v33 = vld [vmem:[%s27131_s8 + $0x404] ss:$8 sps:$4 sm:$0xff]   ;;  %v20595_v9 = vld [vmem:[%s27131_s8 + $0x400] ss:$8 sps:$4 sm:$0xff]  }
 0xf69   :  { %v26928_v43 = vadd.f32 %v14601_v4, %v13378_v42  ;;  %v14589_v48 = vpop.f32.mrb[204].mxu1  ;;  %v20600_v0 = vld [vmem:[%s27131_s8 + $0x414] ss:$8 sps:$4 sm:$0xff]   ;;  %v20598_v42 = vld [vmem:[%s27131_s8 + $0x410] ss:$8 sps:$4 sm:$0xff]  }
 0xf6a   :  { %v14590_v60 = vadd.f32 %v14589_v48, %v14412_v19  ;;  %v14591_v13 = vpop.f32.mrb[205].mxu1  ;;  %v14639_v12 = vpack.c.bf16 %v26925_v17, %v26920_v59  ;;  %v20603_v4 = vld [vmem:[%s27131_s8 + $0x424] ss:$8 sps:$4 sm:$0xff]   ;;  %v20604_v48 = vld [vmem:[%s27131_s8 + $0x430] ss:$8 sps:$4 sm:$0xff]  }
 0xf6b   :  { %v14640_v30 = vpack.c.bf16 %v26928_v43, %v26922_v10  ;;  %v14592_v34 = vadd.f32 %v14591_v13, %v14416_v44  ;;  %v14593_v61 = vpop.f32.mrb[206].mxu1  ;;  %v20612_v13 = vld [vmem:[%s27131_s8 + $0x454] ss:$8 sps:$4 sm:$0xff]  }
 0xf6c   :  { %v14602_v5 = vmax.f32 %v14590_v60, 0.0  ;;  %v14594_v57 = vadd.f32 %v14593_v61, %v14412_v19  ;;  %v14595_v1 = vpop.f32.mrb[207].mxu1  ;;  %v20607_v60 = vld [vmem:[%s27131_s8 + $0x440] ss:$8 sps:$4 sm:$0xff]   ;;  %v20618_v61 = vld [vmem:[%s27131_s8 + $0x474] ss:$8 sps:$4 sm:$0xff]  }
 0xf6d   :  { %v14603_v28 = vmax.f32 %v14592_v34, 0.0  ;;  %v14596_v21 = vadd.f32 %v14595_v1, %v14416_v44  ;;  %17472 = vmatprep.mubr.msk.bf16.mxu1 %vm4730_vm0, %v14640_v30  ;;  %v20615_v30 = vld [vmem:[%s27131_s8 + $0x464] ss:$8 sps:$4 sm:$0xff]   ;;  %v20613_v34 = vld [vmem:[%s27131_s8 + $0x460] ss:$8 sps:$4 sm:$0xff]   ;;  %v20622_v1 = vld [vmem:[%s27134_s10 + $0x18] sm:$0xff]  }
 0xf6e   :  { %v26937_v38 = vadd.f32 %v14602_v5, %v13379_v63  ;;  %v14604_v55 = vmax.f32 %v14594_v57, 0.0  ;;  %14815 = vmatmul.mubr.bf16.vlgmr.msra.gmra.mrb[208].mxu1 %v14639_v12  ;;  %v20616_v63 = vld [vmem:[%s27131_s8 + $0x470] ss:$8 sps:$4 sm:$0xff]   ;;  %v20619_v12 = vld [vmem:[%s27134_s10] sm:$0xff]   ;;  %v20620_v5 = vld [vmem:[%s27134_s10 + $0x8] sm:$0xff]  }
 0xf6f   :  { %v26939_v25 = vadd.f32 %v14603_v28, %v13380_v24  ;;  %v14605_v15 = vmax.f32 %v14596_v21, 0.0  ;;  %15095 = vmatpush1.bf16.msra.mxu1 %v20583_v23  ;;  %15246 = vmatpush1.bf16.msra.mxu0 %v20619_v12  ;;  %v20621_v57 = vld [vmem:[%s27134_s10 + $0x10] sm:$0xff]   ;;  %v20623_v24 = vld [vmem:[%s27134_s10 + $0x20] sm:$0xff]   ;;  %v20624_v28 = vld [vmem:[%s27134_s10 + $0x28] sm:$0xff]  }
 0xf70   :  { %v26941_v49 = vadd.f32 %v14604_v55, %v13381_v27  ;;  %15096 = vmatprep.subr.bf16.mxu1 %v20588_v29  ;;  %15247 = vmatprep.subr.bf16.mxu0 %v27309_v53  ;;  %v20625_v21 = vld [vmem:[%s27134_s10 + $0x30] sm:$0xff]   ;;  %v20626_v27 = vld [vmem:[%s27134_s10 + $0x38] sm:$0xff]   ;;  %v20627_v55 = vld [vmem:[%s27134_s10 + $0x40] sm:$0xff]  }
 0xf71   :  { %v26943_v26 = vadd.f32 %v14605_v15, %v13382_v45  ;;  %v20628_v45 = vld [vmem:[%s27134_s10 + $0x48] sm:$0xff]  }
 0xf72   :  { %v14641_v44 = vpack.c.bf16 %v26941_v49, %v26937_v38  ;;  %v17052_v15 = vld [vmem:[%s27133_s9 + $0x8] sm:$0x3] }
 0xf73   :  { %v14642_v19 = vpack.c.bf16 %v26943_v26, %v26939_v25  ;;  %15097 = vmatpush1.bf16.msra.mxu1 %v20586_v16  ;;  %15248 = vmatpush1.bf16.msra.mxu0 %v20620_v5  ;;  %v12676_v51 = vrot.slane %v17052_v15, %v26346_v8 }
 0xf74   :  { %15098 = vmatprep.subr.bf16.mxu1 %v20591_v20  ;;  %15249 = vmatprep.subr.bf16.mxu0 %v27309_v53 }
 0xf75   :  { %17473 = vmatprep.mubr.msk.bf16.mxu1 %vm4730_vm0, %v14642_v19  ;;  %v17447_v19 = vld [vmem:[%s27133_s9 + $0xe] sm:$0x3]  ;;  %v12842_v20 = vadd.f32 %v26727_v35, %v12676_v51 }
 0xf76   :  { %14825 = vmatmul.mubr.bf16.gmra.mrb[212].mxu1 %v14641_v44  ;;  %v12672_v44 = vrot.slane %v17052_v15, %v26344_v14  ;;  %v14649_v23 = vrot.slane %v17447_v19, %v26344_v14  ;;  %v14653_v29 = vrot.slane %v17447_v19, %v26346_v8 }
 0xf77   :  { %15099 = vmatpush1.bf16.msra.mxu1 %v20589_v6  ;;  %15250 = vmatpush1.bf16.msra.mxu0 %v20621_v57 }
 0xf78   :  { %15100 = vmatprep.subr.bf16.mxu1 %v20594_v2  ;;  %15251 = vmatprep.subr.bf16.mxu0 %v27309_v53  ;;  %v12840_v16 = vadd.f32 %v26725_v22, %v12672_v44  ;;  %v12844_v2 = vadd.f32 %v26729_v32, %v12672_v44  ;;  %v12850_v32 = vadd.f32 %v26745_v37, %v12672_v44 }
 0xf79   :  { %v12854_v57 = vadd.f32 %v26749_v7, %v12672_v44 }
 0xf7a   :  { %v12862_v19 = vmax.f32 %v12850_v32, 0.0 }
 0xf7b   :  { %15101 = vmatpush1.bf16.msra.mxu1 %v20592_v54  ;;  %15252 = vmatpush1.bf16.msra.mxu0 %v20622_v1 }
 0xf7c   :  { %15102 = vmatprep.subr.bf16.mxu1 %v20597_v33  ;;  %15253 = vmatprep.subr.bf16.mxu0 %v27309_v53 }
 0xf7f   :  { %15103 = vmatpush1.bf16.msra.mxu1 %v20595_v9  ;;  %15254 = vmatpush1.bf16.msra.mxu0 %v20623_v24  ;;  %v12846_v9 = vadd.f32 %v26734_v47, %v12676_v51  ;;  %v12852_v47 = vadd.f32 %v26747_v36, %v12676_v51 }
 0xf80   :  { %15104 = vmatprep.subr.bf16.mxu1 %v20600_v0  ;;  %15255 = vmatprep.subr.bf16.mxu0 %v27309_v53 }
 0xf81   :  { %v12861_v35 = vmax.f32 %v12846_v9, 0.0  ;;  %v12863_v7 = vmax.f32 %v12852_v47, 0.0 }
 0xf83   :  { %15105 = vmatpush1.bf16.msra.mxu1 %v20598_v42  ;;  %15256 = vmatpush1.bf16.msra.mxu0 %v20624_v28 }
 0xf84   :  { %15106 = vmatprep.subr.bf16.mxu1 %v20603_v4  ;;  %15257 = vmatprep.subr.bf16.mxu0 %v27309_v53  ;;  %v12858_v4 = vmax.f32 %v12840_v16, 0.0 }
 0xf87   :  { %15107 = vmatpush1.bf16.msra.mxu1 %v20601_v3  ;;  %15258 = vmatpush1.bf16.msra.mxu0 %v20625_v21 }
 0xf88   :  { %15108 = vmatprep.subr.bf16.mxu1 %v20606_v62  ;;  %15259 = vmatprep.subr.bf16.mxu0 %v27309_v53 }
 0xf8b   :  { %15109 = vmatpush1.bf16.msra.mxu1 %v20604_v48  ;;  %15260 = vmatpush1.bf16.msra.mxu0 %v20626_v27  ;;  %v12856_v27 = vadd.f32 %v26754_v52, %v12676_v51 }
 0xf8c   :  { %15110 = vmatprep.subr.bf16.mxu1 %v20609_v41  ;;  %15261 = vmatprep.subr.bf16.mxu0 %v27309_v53  ;;  %v12859_v41 = vmax.f32 %v12842_v20, 0.0 }
 0xf8d   :  { %v12865_v9 = vmax.f32 %v12856_v27, 0.0 }
 0xf8f   :  { %15111 = vmatpush1.bf16.msra.mxu1 %v20607_v60  ;;  %15262 = vmatpush1.bf16.msra.mxu0 %v20627_v55 }
 0xf90   :  { %15112 = vmatprep.subr.bf16.mxu1 %v20612_v13  ;;  %15263 = vmatprep.subr.bf16.mxu0 %v27309_v53 }
 0xf93   :  { %15113 = vmatpush1.bf16.msra.mxu1 %v20610_v46  ;;  %15264 = vmatpush1.bf16.msra.mxu0 %v20628_v45  ;;  %v12860_v46 = vmax.f32 %v12844_v2, 0.0 }
 0xf94   :  { %15114 = vmatprep.subr.bf16.mxu1 %v20615_v30  ;;  %15265 = vmatprep.subr.bf16.mxu0 %v27309_v53 }
 0xf97   :  { %15115 = vmatpush1.bf16.msra.mxu1 %v20613_v34 }
 0xf98   :  { %15116 = vmatprep.subr.bf16.mxu1 %v20618_v61 }
 0xf9b   :  { %15117 = vmatpush1.bf16.msra.mxu1 %v20616_v63 }
0x1041   :  { %v14816_v6 = vpop.f32.mrb[208].mxu1 }
0x1042   :  { %v14817_v54 = vadd.f32 %v14816_v6, %v14649_v23  ;;  %v14818_v33 = vpop.f32.mrb[209].mxu1 }
0x1043   :  { %v14819_v0 = vadd.f32 %v14818_v33, %v14653_v29  ;;  %v14820_v42 = vpop.f32.mrb[210].mxu1 }
0x1044   :  { %v14835_v3 = vmax.f32 %v14817_v54, 0.0  ;;  %v14821_v62 = vadd.f32 %v14820_v42, %v14649_v23  ;;  %v14822_v48 = vpop.f32.mrb[211].mxu1 }
0x1045   :  { %v14836_v60 = vmax.f32 %v14819_v0, 0.0  ;;  %v14823_v13 = vadd.f32 %v14822_v48, %v14653_v29 }
0x1046   :  { %v14843_v22 = vadd.f32 %v14835_v3, %v12858_v4  ;;  %v14837_v30 = vmax.f32 %v14821_v62, 0.0 }
0x1047   :  { %v14844_v34 = vadd.f32 %v14836_v60, %v12859_v41  ;;  %v14838_v61 = vmax.f32 %v14823_v13, 0.0 }
0x1048   :  { %v14845_v63 = vadd.f32 %v14837_v30, %v12860_v46  ;;  %v14851_v1 = vmul.f32 %v14843_v22, %v26920_v59 }
0x1049   :  { %v14846_v12 = vadd.f32 %v14838_v61, %v12861_v35  ;;  %v14826_v5 = vpop.f32.mrb[212].mxu1  ;;  %v14852_v55 = vmul.f32 %v14844_v34, %v26922_v10 }
0x104a   :  { %v14853_v24 = vmul.f32 %v14845_v63, %v26925_v17  ;;  %v14827_v28 = vadd.f32 %v14826_v5, %v14649_v23  ;;  %v14828_v21 = vpop.f32.mrb[213].mxu1  ;;  %v12864_v17 = vmax.f32 %v12854_v57, 0.0 }
0x104b   :  { %v14854_v45 = vmul.f32 %v14846_v12, %v26928_v43  ;;  %v14829_v37 = vadd.f32 %v14828_v21, %v14653_v29  ;;  %v14830_v15 = vpop.f32.mrb[214].mxu1 }
0x104c   :  { %v14859_v36 = vmax.f32 %v14851_v1, %v14853_v24  ;;  %v14839_v16 = vmax.f32 %v14827_v28, 0.0  ;;  %v14831_v20 = vadd.f32 %v14830_v15, %v14649_v23  ;;  %v14832_v6 = vpop.f32.mrb[215].mxu1 }
0x104d   :  { %v14860_v44 = vmax.f32 %v14852_v55, %v14854_v45  ;;  %v14840_v59 = vmax.f32 %v14829_v37, 0.0  ;;  %v14833_v2 = vadd.f32 %v14832_v6, %v14653_v29 }
0x104e   :  { %v14847_v54 = vadd.f32 %v14839_v16, %v12862_v19  ;;  %v14841_v33 = vmax.f32 %v14831_v20, 0.0 }
0x104f   :  { %v14848_v52 = vadd.f32 %v14840_v59, %v12863_v7  ;;  %v14842_v51 = vmax.f32 %v14833_v2, 0.0 }
0x1050   :  { %v14855_v10 = vmul.f32 %v14847_v54, %v26937_v38  ;;  %v14849_v43 = vadd.f32 %v14841_v33, %v12864_v17 }
0x1051   :  { %v14856_v0 = vmul.f32 %v14848_v52, %v26939_v25  ;;  %v14850_v42 = vadd.f32 %v14842_v51, %v12865_v9 }
0x1052   :  { %v14861_v4 = vmax.f32 %v14859_v36, %v14855_v10  ;;  %v14857_v23 = vmul.f32 %v14849_v43, %v26941_v49 }
0x1053   :  { %v14862_v3 = vmax.f32 %v14860_v44, %v14856_v0  ;;  %v14858_v62 = vmul.f32 %v14850_v42, %v26943_v26 }
0x1054   :  { %v14863_v48 = vmax.f32 %v14861_v4, %v14857_v23 }
0x1055   :  { %v14864_v29 = vmax.f32 %v14862_v3, %v14858_v62 }
0x1056   :  { %v14865_v41 = vsub.f32 %v14851_v1, %v14863_v48  ;;  %v14871_v60 = vsub.f32 %v14853_v24, %v14863_v48  ;;  %v14877_v13 = vsub.f32 %v14855_v10, %v14863_v48  ;;  %v14883_v46 = vsub.f32 %v14857_v23, %v14863_v48 }
0x1057   :  { %v14866_v22 = vsub.f32 %v14852_v55, %v14864_v29  ;;  %v14872_v30 = vsub.f32 %v14854_v45, %v14864_v29  ;;  %v14878_v35 = vsub.f32 %v14856_v0, %v14864_v29  ;;  %v14884_v38 = vsub.f32 %v14858_v62, %v14864_v29 }
0x1058   :  { %v14867_v34 = vmul.f32 1.442695, %v14865_v41  ;;  %v14873_v61 = vmul.f32 1.442695, %v14871_v60  ;;  %v14879_v25 = vmul.f32 1.442695, %v14877_v13 }
0x1059   :  { %v14885_v32 = vmul.f32 1.442695, %v14883_v46  ;;  %v14869_v63 = vmul.f32 1.442695, %v14866_v22  ;;  %v14875_v49 = vmul.f32 1.442695, %v14872_v30 }
0x105a   :  { %20631 = vpow2.f32 %v14867_v34  ;;  %v14881_v26 = vmul.f32 1.442695, %v14878_v35  ;;  %v14887_v47 = vmul.f32 1.442695, %v14884_v38  ;;  %v20629_v30 = vld [vmem:[%s27134_s10 + $0x50] sm:$0xff]   ;;  %v20630_v35 = vld [vmem:[%s27134_s10 + $0x58] sm:$0xff]   ;;  %v14909_v38 = vadd.f32 %v26812_v39, %v26807_v50 }
0x105b   :  { %20633 = vpow2.f32 %v14873_v61  ;;  %15266 = vmatpush1.bf16.msra.mxu0 %v20629_v30  ;;  %v14910_v34 = vadd.f32 %v26815_v58, %v26809_v11 }
0x105c   :  { %20635 = vpow2.f32 %v14879_v25  ;;  %15267 = vmatprep.subr.bf16.mxu0 %v27309_v53  ;;  %v14917_v61 = vadd.f32 %v14909_v38, %v26830_v40  ;;  %v17498_v25 = vld [vmem:[%s27133_s9 + $0x10] sm:$0x3] }
0x105d   :  { %20637 = vpow2.f32 %v14885_v32  ;;  %v14918_v32 = vadd.f32 %v14910_v34, %v26832_v31 }
0x105e   :  { %20639 = vpow2.f32 %v14869_v63  ;;  %v14925_v53 = vadd.f32 %v14917_v61, %v26837_v56  ;;  %v14964_v63 = vrot.slane %v17498_v25, %v26344_v14  ;;  %v17524_v14 = vld [vmem:[%s27135_s11] ss:$0 sm:$0xff] }
0x105f   :  { %20641 = vpow2.f32 %v14875_v49  ;;  %15268 = vmatpush1.bf16.msra.mxu0 %v20630_v35  ;;  %v14926_v49 = vadd.f32 %v14918_v32, %v26842_v18 }
0x1060   :  { %20643 = vpow2.f32 %v14881_v26  ;;  %v14968_v26 = vrot.slane %v17498_v25, %v26346_v8 }
0x1061   :  { %20645 = vpow2.f32 %v14887_v47 }
0x1064   :  { %v20632_v12 = vpop.eup %20631 }
0x1065   :  { %v20634_v5 = vpop.eup %20633 }
0x1066   :  { %v20636_v57 = vpop.eup %20635  ;;  %v14889_v1 = vadd.f32 %v20634_v5, %v20632_v12 }
0x1067   :  { %v20638_v24 = vpop.eup %20637 }
0x1068   :  { %v20640_v28 = vpop.eup %20639  ;;  %v14891_v21 = vadd.f32 %v20636_v57, %v14889_v1 }
0x1069   :  { %v20642_v27 = vpop.eup %20641 }
0x106a   :  { %v14893_v55 = vadd.f32 %v20638_v24, %v14891_v21  ;;  %v14890_v45 = vadd.f32 %v20642_v27, %v20640_v28  ;;  %v20644_v37 = vpop.eup %20643 }
0x106b   :  { %v20646_v19 = vpop.eup %20645 }
0x106c   :  { %20647 = vrcp.f32 %v14893_v55  ;;  %v14892_v15 = vadd.f32 %v20644_v37, %v14890_v45 }
0x106e   :  { %v14894_v36 = vadd.f32 %v20646_v19, %v14892_v15 }
0x1070   :  { %20649 = vrcp.f32 %v14894_v36 }
0x1076   :  { %v20648_v16 = vpop.eup %20647 }
0x1077   :  { %v14899_v20 = vmul.f32 %v20648_v16, %v20632_v12  ;;  %v14903_v6 = vmul.f32 %v20648_v16, %v20634_v5  ;;  %v14911_v7 = vmul.f32 %v20648_v16, %v20636_v57  ;;  %v14919_v44 = vmul.f32 %v20648_v16, %v20638_v24 }
0x1079   :  { %v14901_v59 = vmul.f32 %v14899_v20, %v26807_v50  ;;  %v14905_v2 = vmul.f32 %v14903_v6, %v26812_v39  ;;  %v14913_v10 = vmul.f32 %v14911_v7, %v26830_v40  ;;  %v14921_v4 = vmul.f32 %v14919_v44, %v26837_v56 }
0x107a   :  { %v20650_v17 = vpop.eup %20649  ;;  %v14929_v39 = vmul.f32 0.25, %v14925_v53 }
0x107b   :  { %v14900_v54 = vmul.f32 %v20650_v17, %v20640_v28  ;;  %v14904_v33 = vmul.f32 %v20650_v17, %v20642_v27  ;;  %v14912_v9 = vmul.f32 %v20650_v17, %v20644_v37  ;;  %v14920_v52 = vmul.f32 %v20650_v17, %v20646_v19 }
0x107c   :  { %v14907_v51 = vadd.f32 %v14905_v2, %v14901_v59 }
0x107d   :  { %v14902_v43 = vmul.f32 %v14900_v54, %v26809_v11  ;;  %v14906_v0 = vmul.f32 %v14904_v33, %v26815_v58  ;;  %v14914_v3 = vmul.f32 %v14912_v9, %v26832_v31  ;;  %v14922_v29 = vmul.f32 %v14920_v52, %v26842_v18 }
0x107e   :  { %v14915_v42 = vadd.f32 %v14913_v10, %v14907_v51  ;;  %v14930_v58 = vmul.f32 0.25, %v14926_v49 }
0x107f   :  { %v14908_v23 = vadd.f32 %v14906_v0, %v14902_v43 }
0x1080   :  { %v14923_v62 = vadd.f32 %v14921_v4, %v14915_v42 }
0x1081   :  { %v14916_v48 = vadd.f32 %v14914_v3, %v14908_v23 }
0x1082   :  { %v14927_v60 = vmul.f32 0.25, %v14923_v62 }
0x1083   :  { %v14924_v41 = vadd.f32 %v14922_v29, %v14916_v48 }
0x1084   :  { %v14956_v22 = vpack.c.bf16 %v14927_v60, %v14927_v60 }
0x1085   :  { %v14928_v13 = vmul.f32 0.25, %v14924_v41 }
0x1087   :  { %v14957_v46 = vpack.c.bf16 %v14928_v13, %v14928_v13 }
0x1089   :  { %17523 = vmatprep.mubr.msk.bf16.mxu1 %vm4730_vm0, %v14957_v46 }
0x108a   :  { %15127 = vmatmul.mubr.bf16.vlgmr.msra.gmra.mrb[216].mxu1 %v14956_v22 }
0x115d   :  { %v15128_v50 = vpop.f32.mrb[216].mxu1 }
0x115e   :  { %v15129_v47 = vadd.f32 %v15128_v50, %v14964_v63  ;;  %v15130_v11 = vpop.f32.mrb[217].mxu1 }
0x115f   :  { %v15131_v40 = vadd.f32 %v15130_v11, %v14968_v26  ;;  %v15132_v12 = vpop.f32.mrb[218].mxu1 }
0x1160   :  { %v15135_v5 = vadd.f32 %v15129_v47, %v14929_v39  ;;  %v15133_v57 = vpop.f32.mrb[219].mxu1 }
0x1161   :  { %v15136_v1 = vadd.f32 %v15131_v40, %v14930_v58 }
0x1162   :  { %v15161_v31 = vpack.c.bf16 %v15135_v5, %v15135_v5 }
0x1163   :  { %v15162_v24 = vpack.c.bf16 %v15136_v1, %v15136_v1 }
0x1165   :  { %17537 = vmatprep.mubr.msk.bf16.mxu0 %vm4730_vm0, %v15162_v24 }
0x1166   :  { %15278 = vmatmul.mubr.bf16.vlgmr.msra.gmra.mrb[88].mxu0 %v15161_v31 }
0x1239   :  { %v15279_v8 = vpop.f32.mrb[88].mxu0 }
0x123a   :  { %v15280_v56 = vadd.f32 %v17524_v14, %v15279_v8  ;;  %v15281_v18 = vpop.f32.mrb[89].mxu0 }
0x123b   :  { %v15282_v28 = vpop.f32.mrb[90].mxu0 }
0x123c   :  { %15285 = vst [vmem:[%s27136_s12] sm:$0xff] %v15280_v56  ;;  %v15283_v21 = vpop.f32.mrb[91].mxu0 }

</bundles_post_ra>
